<compile_context>
chip_gen: v7x
topology: tpu7x:2x2x1
jax: 0.10.0
libtpu: 0.0.40
codegen_flags: <defaults>
</compile_context>

<pallas_src>
import functools
from math import sqrt

import jax
import jax.numpy as jnp
from jax import lax
from jax.experimental import pallas as pl
from jax.experimental.pallas import tpu as pltpu


# ----------------------------------------------------------------------------
# Static configuration for the step-0 path
# ----------------------------------------------------------------------------
_PAD_B = 16                      # batch rows padded to a full bf16 sublane tile
_H = _W = 4                      # step=0 spatial size
_NPOS = _H * _W                  # 16 spatial positions
_K1 = 4 * 9                      # folded conv1 contraction: 4 in-ch x 3x3 taps
_K1P = 128                       # lane-padded contraction dim
_S1 = sqrt(2.0 / (513 * 3 * 3))  # EqualConv2d equal-lr scale, fan_in = Cin*k*k
_S2 = sqrt(2.0 / (512 * 4 * 4))


def _round_up(x, m):
    return (x + m - 1) // m * m


# ----------------------------------------------------------------------------
# The single fused Pallas kernel (no grid; all operands are full VMEM blocks)
# ----------------------------------------------------------------------------
def _fused_step0_kernel(patch_ref, c1w_ref, c1b_ref, w2_ref, c2b_ref,
                        hw_ref, hb_ref, out_ref):
    # conv1 (from_rgb folded in; stddev channel is patch channel 3):
    #   rows are ordered (spatial position p, batch b) with p major.
    h1 = jnp.dot(patch_ref[...], c1w_ref[...],
                 preferred_element_type=jnp.float32)          # (16*PAD_B, 512)
    h1 = h1 + c1b_ref[...]                                    # exact rgb-bias halo table
    h1 = jnp.where(h1 >= 0.0, h1, 0.2 * h1)                   # LeakyReLU(0.2)
    h1 = h1.astype(jnp.bfloat16)

    # conv2 (4x4 "valid" conv == sum of 16 per-position matmuls); static unroll,
    # each slice is a full, aligned 16-row bf16 tile.
    acc = jnp.zeros((_PAD_B, 512), jnp.float32)
    for p in range(_NPOS):
        acc = acc + jnp.dot(h1[p * _PAD_B:(p + 1) * _PAD_B, :], w2_ref[p],
                            preferred_element_type=jnp.float32)
    feat = acc + c2b_ref[...]
    feat = jnp.where(feat >= 0.0, feat, 0.2 * feat)           # LeakyReLU(0.2)

    # final Linear(512, 1+n_label) fused with head[5] (512 -> cont_dim)
    o = jnp.dot(feat.astype(jnp.bfloat16), hw_ref[...],
                preferred_element_type=jnp.float32) + hb_ref[...]
    out_ref[...] = o.astype(out_ref.dtype)


def _fused_step0_call(patches, packed):
    nhp = packed['head_w'].shape[1]
    return pl.pallas_call(
        _fused_step0_kernel,
        out_shape=jax.ShapeDtypeStruct((_PAD_B, nhp), jnp.float32),
        in_specs=[pl.BlockSpec(memory_space=pltpu.MemorySpace.VMEM)] * 7,
        out_specs=pl.BlockSpec(memory_space=pltpu.MemorySpace.VMEM),
        compiler_params=pltpu.CompilerParams(vmem_limit_bytes=32 * 1024 * 1024),
    )(patches, packed['c1_w'], packed['c1_b'], packed['c2_w'], packed['c2_b'],
      packed['head_w'], packed['head_b'])


# ----------------------------------------------------------------------------
# Parameters (deterministic synthetic init; shapes follow DualEncoder.__init__
# for the modules touched by the step==0 forward path)
# ----------------------------------------------------------------------------
def init_params(key, cont_dim=32, n_label=10):
    ks = jax.random.split(key, 9)
    p = {}
    # from_rgb[5] = nn.Conv2d(3, 512, 1)
    p['from_rgb5_w'] = 0.1 * jax.random.normal(ks[0], (512, 3, 1, 1), jnp.float32)
    p['from_rgb5_b'] = 0.01 * jax.random.normal(ks[1], (512,), jnp.float32)
    # progression[5] = ConvBlock(513, 512, 3, 1, 4, 0) with EqualConv2d (N(0,1) weights, zero bias)
    p['prog5_conv1_w'] = jax.random.normal(ks[2], (512, 513, 3, 3), jnp.float32)
    p['prog5_conv1_b'] = jnp.zeros((512,), jnp.float32)
    p['prog5_conv2_w'] = jax.random.normal(ks[3], (512, 512, 4, 4), jnp.float32)
    p['prog5_conv2_b'] = jnp.zeros((512,), jnp.float32)
    # head[5] = Conv2d(512,1,1) -> Flatten -> Linear(1, cont_dim, bias=False)
    p['head5_conv_w'] = 0.05 * jax.random.normal(ks[4], (1, 512, 1, 1), jnp.float32)
    p['head5_conv_b'] = 0.02 * jax.random.normal(ks[5], (1,), jnp.float32)
    p['head5_lin_w'] = 0.1 * jax.random.normal(ks[6], (cont_dim, 1), jnp.float32)
    # final linear: Linear(512, 1 + n_label)
    p['linear_w'] = 0.05 * jax.random.normal(ks[7], (1 + n_label, 512), jnp.float32)
    p['linear_b'] = 0.01 * jax.random.normal(ks[8], (1 + n_label,), jnp.float32)
    return p


# ----------------------------------------------------------------------------
# One-time weight packing: from_rgb fold, equal-lr scale fold, head/linear fold,
# transpose/pad/bf16.  Runs once; the per-forward path never touches weights.
# ----------------------------------------------------------------------------
def pack_params(params):
    f32 = jnp.float32
    w1 = params['prog5_conv1_w'].astype(f32)                 # (512, 513, 3, 3)
    wrgb = params['from_rgb5_w'].reshape(512, 3).astype(f32)
    brgb = params['from_rgb5_b'].astype(f32)
    b1 = params['prog5_conv1_b'].astype(f32)

    # ---- conv1 with from_rgb folded in (rgb channels); stddev channel literal ----
    w_fold = jnp.einsum('omij,mc->ocij', w1[:, :512], wrgb)  # (512, 3, 3, 3)
    w4 = jnp.concatenate([w_fold, w1[:, 512:513]], axis=1)   # (512, 4, 3, 3)
    c1w = (_S1 * w4).transpose(1, 2, 3, 0).reshape(_K1, 512)  # K index = m*9+kh*3+kw
    c1_w = jnp.zeros((_K1P, 512), jnp.bfloat16).at[:_K1].set(c1w.astype(jnp.bfloat16))

    # ---- exact per-position bias: rgb bias through conv1's zero padding + b1 ----
    v = jnp.einsum('omij,m->oij', w1[:, :512], brgb)         # (512, 3, 3)
    pos = jnp.arange(_H)
    inb = pos[:, None] + jnp.arange(3)[None, :] - 1          # (4, 3)
    mask1 = ((inb >= 0) & (inb < _H)).astype(f32)
    mask = (mask1[:, None, :, None] * mask1[None, :, None, :]).reshape(_NPOS, 3, 3)
    bias16 = _S1 * jnp.einsum('pij,oij->po', mask, v) + b1[None, :]   # (16, 512)
    c1_b = jnp.repeat(bias16, _PAD_B, axis=0)                # (16*PAD_B, 512) f32

    # ---- conv2 packed per input position p = kh*4 + kw ----
    w2 = params['prog5_conv2_w'].astype(f32)                 # (512, 512, 4, 4)
    c2_w = (_S2 * w2).transpose(2, 3, 1, 0).reshape(_NPOS, 512, 512).astype(jnp.bfloat16)
    c2_b = params['prog5_conv2_b'].astype(f32).reshape(1, 512)

    # ---- fused final Linear(512,1+n_label) + head[5] (1x1 conv -> Linear(1,cont_dim)) ----
    lin_wT = params['linear_w'].astype(f32).T                # (512, 1+n_label)
    c = params['head5_conv_w'].reshape(1, 512).astype(f32)
    L = params['head5_lin_w'].astype(f32)                    # (cont_dim, 1)
    head_w = c.T @ L.T                                       # (512, cont_dim)
    head_b = params['head5_conv_b'].astype(f32)[0] * L[:, 0]
    fw = jnp.concatenate([lin_wT, head_w], axis=1)           # (512, 1+n_label+cont_dim)
    fb = jnp.concatenate([params['linear_b'].astype(f32), head_b])
    nh = fw.shape[1]
    nhp = _round_up(nh, 128)
    hw = jnp.zeros((512, nhp), jnp.bfloat16).at[:, :nh].set(fw.astype(jnp.bfloat16))
    hb = jnp.zeros((1, nhp), f32).at[0, :nh].set(fb)

    return dict(c1_w=c1_w, c1_b=c1_b, c2_w=c2_w, c2_b=c2_b, head_w=hw, head_b=hb)


# ----------------------------------------------------------------------------
# Per-forward input prep: minibatch stddev + tiny 3x3 im2col on the raw input
# (<= 16x16x128 bf16), producing rows ordered (position p major, batch b minor).
# ----------------------------------------------------------------------------
def _build_patches(xf, ms):
    B = xf.shape[0]
    x4 = jnp.concatenate([xf, jnp.broadcast_to(ms, (B, 1, _H, _W))], axis=1)
    xp = jnp.pad(x4, ((0, 0), (0, 0), (1, 1), (1, 1)))
    cols = jnp.stack([xp[:, :, kh:kh + _H, kw:kw + _W]
                      for kh in range(3) for kw in range(3)], axis=2)  # (B,4,9,H,W)
    pt = cols.transpose(3, 4, 0, 1, 2).reshape(_NPOS, B, _K1)          # (16,B,36)
    out = jnp.zeros((_NPOS, _PAD_B, _K1P), jnp.bfloat16)
    out = out.at[:, :B, :_K1].set(pt.astype(jnp.bfloat16))
    return out.reshape(_NPOS * _PAD_B, _K1P)


# ----------------------------------------------------------------------------
# DualEncoder.forward, step=0 (default) path
# ----------------------------------------------------------------------------
def dual_encoder_forward(packed, x, *, n_label=10, cont_dim=32,
                         step=0, alpha=-1, mode='dis'):
    assert step == 0            # TODO(synk): step>0 progressive-growing branch
    B, C, H, W = x.shape
    assert C == 3 and H == _H and W == _W
    assert B <= _PAD_B          # TODO(synk): add an M grid axis for larger batches
    xf = x.astype(jnp.float32)

    # minibatch stddev: input.std(0).mean()  (NaN for B==1, same as torch)
    ms = jnp.mean(jnp.std(xf, axis=0, ddof=1))

    patches = _build_patches(xf, ms)
    out = _fused_step0_call(patches, packed)                 # (PAD_B, 128) f32

    n_logits = 1 + n_label
    logits = out[:B, :n_logits]
    head0 = out[:B, n_logits:n_logits + cont_dim]

    if mode == 'dis':
        return logits[:, 0], logits[:, 1:]
    elif mode == 'cont':
        return {'0': head0}
    return None                  # reference forward returns None for mode='dual'


# ----------------------------------------------------------------------------
# Pure-JAX f32 reference (mirrors the PyTorch forward) for correctness checking
# ----------------------------------------------------------------------------
def reference_forward(params, x):
    B = x.shape[0]
    dn = ('NCHW', 'OIHW', 'NCHW')
    out = lax.conv_general_dilated(x, params['from_rgb5_w'], (1, 1), 'VALID',
                                   dimension_numbers=dn)
    out = out + params['from_rgb5_b'][None, :, None, None]
    ms = jnp.mean(jnp.std(x, axis=0, ddof=1))
    out = jnp.concatenate([out, jnp.broadcast_to(ms, (B, 1, _H, _W))], axis=1)
    out = lax.conv_general_dilated(out, params['prog5_conv1_w'] * _S1, (1, 1),
                                   ((1, 1), (1, 1)), dimension_numbers=dn)
    out = out + params['prog5_conv1_b'][None, :, None, None]
    out = jnp.where(out >= 0.0, out, 0.2 * out)
    out = lax.conv_general_dilated(out, params['prog5_conv2_w'] * _S2, (1, 1),
                                   'VALID', dimension_numbers=dn)
    out = out + params['prog5_conv2_b'][None, :, None, None]
    out = jnp.where(out >= 0.0, out, 0.2 * out)
    feat = out[:, :, 0, 0]
    logits = feat @ params['linear_w'].T + params['linear_b']
    t = feat @ params['head5_conv_w'].reshape(1, 512).T + params['head5_conv_b']
    head0 = t @ params['head5_lin_w'].T
    return logits, head0


if __name__ == "__main__":
    key = jax.random.PRNGKey(0)
    kx, kp = jax.random.split(key)
    cont_dim, n_label = 32, 10
    # step=0 implies the coarsest 4x4 RGB input, NCHW
    x = jax.random.normal(kx, (2, 3, 4, 4), jnp.float32)

    params = init_params(kp, cont_dim=cont_dim, n_label=n_label)
    packed = pack_params(params)                # one-time weight pack
    packed = jax.block_until_ready(packed)

    fwd_dis = jax.jit(functools.partial(
        dual_encoder_forward, n_label=n_label, cont_dim=cont_dim,
        step=0, alpha=-1, mode='dis'))
    fwd_cont = jax.jit(functools.partial(
        dual_encoder_forward, n_label=n_label, cont_dim=cont_dim,
        step=0, alpha=-1, mode='cont'))

    d_score, d_cls = fwd_dis(packed, x)
    heads = fwd_cont(packed, x)
    jax.block_until_ready((d_score, d_cls, heads['0']))

    # shape / sanity checks
    assert d_score.shape == (2,)
    assert d_cls.shape == (2, n_label)
    assert heads['0'].shape == (2, cont_dim)
    assert bool(jnp.all(jnp.isfinite(d_score))) and bool(jnp.all(jnp.isfinite(d_cls)))

    # numerical check against a pure-JAX f32 reference (bf16 weights -> loose tol)
    ref_logits, ref_head = jax.jit(reference_forward)(params, x)
    logits_p = jnp.concatenate([d_score[:, None], d_cls], axis=1)
    assert jnp.allclose(logits_p, ref_logits, atol=5e-2, rtol=5e-2), \
        float(jnp.max(jnp.abs(logits_p - ref_logits)))
    assert jnp.allclose(heads['0'], ref_head, atol=5e-2, rtol=5e-2), \
        float(jnp.max(jnp.abs(heads['0'] - ref_head)))

    print("KERNEL_OK")
</pallas_src>

<mosaic_0001>
module attributes {stable_mosaic.version = 11 : i64} {
  func.func @_fused_step0_kernel(%arg0: memref<256x128xbf16, #tpu.memory_space<vmem>>, %arg1: memref<128x512xbf16, #tpu.memory_space<vmem>>, %arg2: memref<256x512xf32, #tpu.memory_space<vmem>>, %arg3: memref<16x512x512xbf16, #tpu.memory_space<vmem>>, %arg4: memref<1x512xf32, #tpu.memory_space<vmem>>, %arg5: memref<512x128xbf16, #tpu.memory_space<vmem>>, %arg6: memref<1x128xf32, #tpu.memory_space<vmem>>, %arg7: memref<16x128xf32, #tpu.memory_space<vmem>>) attributes {dimension_semantics = [], scalar_prefetch = 0 : i64, scratch_operands = 0 : i64, tpu.core_type = #tpu.core_type<tc>} {
    %c0 = arith.constant 0 : index
    %c0_0 = arith.constant 0 : index
    %0 = vector.load %arg0[%c0, %c0_0] : memref<256x128xbf16, #tpu.memory_space<vmem>>, vector<256x128xbf16>
    %c0_1 = arith.constant 0 : index
    %c0_2 = arith.constant 0 : index
    %1 = vector.load %arg1[%c0_1, %c0_2] : memref<128x512xbf16, #tpu.memory_space<vmem>>, vector<128x512xbf16>
    %cst = arith.constant dense<0.000000e+00> : vector<256x512xf32>
    %2 = tpu.matmul %0, %1, %cst {dimension_numbers = #tpu.dot_dimension_numbers<[1], [0], [0], [1], [0, 0, 1, 1], [], []>} : vector<256x128xbf16>, vector<128x512xbf16>, vector<256x512xf32> -> vector<256x512xf32>
    %c0_3 = arith.constant 0 : index
    %c0_4 = arith.constant 0 : index
    %3 = vector.load %arg2[%c0_3, %c0_4] : memref<256x512xf32, #tpu.memory_space<vmem>>, vector<256x512xf32>
    %4 = arith.addf %2, %3 : vector<256x512xf32>
    %cst_5 = arith.constant 0.000000e+00 : f32
    %5 = vector.broadcast %cst_5 : f32 to vector<256x512xf32>
    %6 = arith.cmpf oge, %4, %5 : vector<256x512xf32>
    %cst_6 = arith.constant 2.000000e-01 : f32
    %7 = vector.broadcast %cst_6 : f32 to vector<256x512xf32>
    %8 = arith.mulf %7, %4 : vector<256x512xf32>
    %9 = arith.select %6, %4, %8 : vector<256x512xi1>, vector<256x512xf32>
    %10 = arith.truncf %9 : vector<256x512xf32> to vector<256x512xbf16>
    %cst_7 = arith.constant 0.000000e+00 : f32
    %11 = vector.broadcast %cst_7 : f32 to vector<16x512xf32>
    %12 = vector.extract_strided_slice %10 {offsets = [0, 0], sizes = [16, 512], strides = [1, 1]} : vector<256x512xbf16> to vector<16x512xbf16>
    %c0_8 = arith.constant 0 : index
    %c0_9 = arith.constant 0 : index
    %c0_10 = arith.constant 0 : index
    %13 = vector.load %arg3[%c0_8, %c0_9, %c0_10] : memref<16x512x512xbf16, #tpu.memory_space<vmem>>, vector<1x512x512xbf16>
    %14 = vector.shape_cast %13 : vector<1x512x512xbf16> to vector<512x512xbf16>
    %cst_11 = arith.constant dense<0.000000e+00> : vector<16x512xf32>
    %15 = tpu.matmul %12, %14, %cst_11 {dimension_numbers = #tpu.dot_dimension_numbers<[1], [0], [0], [1], [0, 0, 1, 1], [], []>} : vector<16x512xbf16>, vector<512x512xbf16>, vector<16x512xf32> -> vector<16x512xf32>
    %16 = arith.addf %11, %15 : vector<16x512xf32>
    %17 = vector.extract_strided_slice %10 {offsets = [16, 0], sizes = [16, 512], strides = [1, 1]} : vector<256x512xbf16> to vector<16x512xbf16>
    %c1 = arith.constant 1 : index
    %c0_12 = arith.constant 0 : index
    %c0_13 = arith.constant 0 : index
    %18 = vector.load %arg3[%c1, %c0_12, %c0_13] : memref<16x512x512xbf16, #tpu.memory_space<vmem>>, vector<1x512x512xbf16>
    %19 = vector.shape_cast %18 : vector<1x512x512xbf16> to vector<512x512xbf16>
    %cst_14 = arith.constant dense<0.000000e+00> : vector<16x512xf32>
    %20 = tpu.matmul %17, %19, %cst_14 {dimension_numbers = #tpu.dot_dimension_numbers<[1], [0], [0], [1], [0, 0, 1, 1], [], []>} : vector<16x512xbf16>, vector<512x512xbf16>, vector<16x512xf32> -> vector<16x512xf32>
    %21 = arith.addf %16, %20 : vector<16x512xf32>
    %22 = vector.extract_strided_slice %10 {offsets = [32, 0], sizes = [16, 512], strides = [1, 1]} : vector<256x512xbf16> to vector<16x512xbf16>
    %c2 = arith.constant 2 : index
    %c0_15 = arith.constant 0 : index
    %c0_16 = arith.constant 0 : index
    %23 = vector.load %arg3[%c2, %c0_15, %c0_16] : memref<16x512x512xbf16, #tpu.memory_space<vmem>>, vector<1x512x512xbf16>
    %24 = vector.shape_cast %23 : vector<1x512x512xbf16> to vector<512x512xbf16>
    %cst_17 = arith.constant dense<0.000000e+00> : vector<16x512xf32>
    %25 = tpu.matmul %22, %24, %cst_17 {dimension_numbers = #tpu.dot_dimension_numbers<[1], [0], [0], [1], [0, 0, 1, 1], [], []>} : vector<16x512xbf16>, vector<512x512xbf16>, vector<16x512xf32> -> vector<16x512xf32>
    %26 = arith.addf %21, %25 : vector<16x512xf32>
    %27 = vector.extract_strided_slice %10 {offsets = [48, 0], sizes = [16, 512], strides = [1, 1]} : vector<256x512xbf16> to vector<16x512xbf16>
    %c3 = arith.constant 3 : index
    %c0_18 = arith.constant 0 : index
    %c0_19 = arith.constant 0 : index
    %28 = vector.load %arg3[%c3, %c0_18, %c0_19] : memref<16x512x512xbf16, #tpu.memory_space<vmem>>, vector<1x512x512xbf16>
    %29 = vector.shape_cast %28 : vector<1x512x512xbf16> to vector<512x512xbf16>
    %cst_20 = arith.constant dense<0.000000e+00> : vector<16x512xf32>
    %30 = tpu.matmul %27, %29, %cst_20 {dimension_numbers = #tpu.dot_dimension_numbers<[1], [0], [0], [1], [0, 0, 1, 1], [], []>} : vector<16x512xbf16>, vector<512x512xbf16>, vector<16x512xf32> -> vector<16x512xf32>
    %31 = arith.addf %26, %30 : vector<16x512xf32>
    %32 = vector.extract_strided_slice %10 {offsets = [64, 0], sizes = [16, 512], strides = [1, 1]} : vector<256x512xbf16> to vector<16x512xbf16>
    %c4 = arith.constant 4 : index
    %c0_21 = arith.constant 0 : index
    %c0_22 = arith.constant 0 : index
    %33 = vector.load %arg3[%c4, %c0_21, %c0_22] : memref<16x512x512xbf16, #tpu.memory_space<vmem>>, vector<1x512x512xbf16>
    %34 = vector.shape_cast %33 : vector<1x512x512xbf16> to vector<512x512xbf16>
    %cst_23 = arith.constant dense<0.000000e+00> : vector<16x512xf32>
    %35 = tpu.matmul %32, %34, %cst_23 {dimension_numbers = #tpu.dot_dimension_numbers<[1], [0], [0], [1], [0, 0, 1, 1], [], []>} : vector<16x512xbf16>, vector<512x512xbf16>, vector<16x512xf32> -> vector<16x512xf32>
    %36 = arith.addf %31, %35 : vector<16x512xf32>
    %37 = vector.extract_strided_slice %10 {offsets = [80, 0], sizes = [16, 512], strides = [1, 1]} : vector<256x512xbf16> to vector<16x512xbf16>
    %c5 = arith.constant 5 : index
    %c0_24 = arith.constant 0 : index
    %c0_25 = arith.constant 0 : index
    %38 = vector.load %arg3[%c5, %c0_24, %c0_25] : memref<16x512x512xbf16, #tpu.memory_space<vmem>>, vector<1x512x512xbf16>
    %39 = vector.shape_cast %38 : vector<1x512x512xbf16> to vector<512x512xbf16>
    %cst_26 = arith.constant dense<0.000000e+00> : vector<16x512xf32>
    %40 = tpu.matmul %37, %39, %cst_26 {dimension_numbers = #tpu.dot_dimension_numbers<[1], [0], [0], [1], [0, 0, 1, 1], [], []>} : vector<16x512xbf16>, vector<512x512xbf16>, vector<16x512xf32> -> vector<16x512xf32>
    %41 = arith.addf %36, %40 : vector<16x512xf32>
    %42 = vector.extract_strided_slice %10 {offsets = [96, 0], sizes = [16, 512], strides = [1, 1]} : vector<256x512xbf16> to vector<16x512xbf16>
    %c6 = arith.constant 6 : index
    %c0_27 = arith.constant 0 : index
    %c0_28 = arith.constant 0 : index
    %43 = vector.load %arg3[%c6, %c0_27, %c0_28] : memref<16x512x512xbf16, #tpu.memory_space<vmem>>, vector<1x512x512xbf16>
    %44 = vector.shape_cast %43 : vector<1x512x512xbf16> to vector<512x512xbf16>
    %cst_29 = arith.constant dense<0.000000e+00> : vector<16x512xf32>
    %45 = tpu.matmul %42, %44, %cst_29 {dimension_numbers = #tpu.dot_dimension_numbers<[1], [0], [0], [1], [0, 0, 1, 1], [], []>} : vector<16x512xbf16>, vector<512x512xbf16>, vector<16x512xf32> -> vector<16x512xf32>
    %46 = arith.addf %41, %45 : vector<16x512xf32>
    %47 = vector.extract_strided_slice %10 {offsets = [112, 0], sizes = [16, 512], strides = [1, 1]} : vector<256x512xbf16> to vector<16x512xbf16>
    %c7 = arith.constant 7 : index
    %c0_30 = arith.constant 0 : index
    %c0_31 = arith.constant 0 : index
    %48 = vector.load %arg3[%c7, %c0_30, %c0_31] : memref<16x512x512xbf16, #tpu.memory_space<vmem>>, vector<1x512x512xbf16>
    %49 = vector.shape_cast %48 : vector<1x512x512xbf16> to vector<512x512xbf16>
    %cst_32 = arith.constant dense<0.000000e+00> : vector<16x512xf32>
    %50 = tpu.matmul %47, %49, %cst_32 {dimension_numbers = #tpu.dot_dimension_numbers<[1], [0], [0], [1], [0, 0, 1, 1], [], []>} : vector<16x512xbf16>, vector<512x512xbf16>, vector<16x512xf32> -> vector<16x512xf32>
    %51 = arith.addf %46, %50 : vector<16x512xf32>
    %52 = vector.extract_strided_slice %10 {offsets = [128, 0], sizes = [16, 512], strides = [1, 1]} : vector<256x512xbf16> to vector<16x512xbf16>
    %c8 = arith.constant 8 : index
    %c0_33 = arith.constant 0 : index
    %c0_34 = arith.constant 0 : index
    %53 = vector.load %arg3[%c8, %c0_33, %c0_34] : memref<16x512x512xbf16, #tpu.memory_space<vmem>>, vector<1x512x512xbf16>
    %54 = vector.shape_cast %53 : vector<1x512x512xbf16> to vector<512x512xbf16>
    %cst_35 = arith.constant dense<0.000000e+00> : vector<16x512xf32>
    %55 = tpu.matmul %52, %54, %cst_35 {dimension_numbers = #tpu.dot_dimension_numbers<[1], [0], [0], [1], [0, 0, 1, 1], [], []>} : vector<16x512xbf16>, vector<512x512xbf16>, vector<16x512xf32> -> vector<16x512xf32>
    %56 = arith.addf %51, %55 : vector<16x512xf32>
    %57 = vector.extract_strided_slice %10 {offsets = [144, 0], sizes = [16, 512], strides = [1, 1]} : vector<256x512xbf16> to vector<16x512xbf16>
    %c9 = arith.constant 9 : index
    %c0_36 = arith.constant 0 : index
    %c0_37 = arith.constant 0 : index
    %58 = vector.load %arg3[%c9, %c0_36, %c0_37] : memref<16x512x512xbf16, #tpu.memory_space<vmem>>, vector<1x512x512xbf16>
    %59 = vector.shape_cast %58 : vector<1x512x512xbf16> to vector<512x512xbf16>
    %cst_38 = arith.constant dense<0.000000e+00> : vector<16x512xf32>
    %60 = tpu.matmul %57, %59, %cst_38 {dimension_numbers = #tpu.dot_dimension_numbers<[1], [0], [0], [1], [0, 0, 1, 1], [], []>} : vector<16x512xbf16>, vector<512x512xbf16>, vector<16x512xf32> -> vector<16x512xf32>
    %61 = arith.addf %56, %60 : vector<16x512xf32>
    %62 = vector.extract_strided_slice %10 {offsets = [160, 0], sizes = [16, 512], strides = [1, 1]} : vector<256x512xbf16> to vector<16x512xbf16>
    %c10 = arith.constant 10 : index
    %c0_39 = arith.constant 0 : index
    %c0_40 = arith.constant 0 : index
    %63 = vector.load %arg3[%c10, %c0_39, %c0_40] : memref<16x512x512xbf16, #tpu.memory_space<vmem>>, vector<1x512x512xbf16>
    %64 = vector.shape_cast %63 : vector<1x512x512xbf16> to vector<512x512xbf16>
    %cst_41 = arith.constant dense<0.000000e+00> : vector<16x512xf32>
    %65 = tpu.matmul %62, %64, %cst_41 {dimension_numbers = #tpu.dot_dimension_numbers<[1], [0], [0], [1], [0, 0, 1, 1], [], []>} : vector<16x512xbf16>, vector<512x512xbf16>, vector<16x512xf32> -> vector<16x512xf32>
    %66 = arith.addf %61, %65 : vector<16x512xf32>
    %67 = vector.extract_strided_slice %10 {offsets = [176, 0], sizes = [16, 512], strides = [1, 1]} : vector<256x512xbf16> to vector<16x512xbf16>
    %c11 = arith.constant 11 : index
    %c0_42 = arith.constant 0 : index
    %c0_43 = arith.constant 0 : index
    %68 = vector.load %arg3[%c11, %c0_42, %c0_43] : memref<16x512x512xbf16, #tpu.memory_space<vmem>>, vector<1x512x512xbf16>
    %69 = vector.shape_cast %68 : vector<1x512x512xbf16> to vector<512x512xbf16>
    %cst_44 = arith.constant dense<0.000000e+00> : vector<16x512xf32>
    %70 = tpu.matmul %67, %69, %cst_44 {dimension_numbers = #tpu.dot_dimension_numbers<[1], [0], [0], [1], [0, 0, 1, 1], [], []>} : vector<16x512xbf16>, vector<512x512xbf16>, vector<16x512xf32> -> vector<16x512xf32>
    %71 = arith.addf %66, %70 : vector<16x512xf32>
    %72 = vector.extract_strided_slice %10 {offsets = [192, 0], sizes = [16, 512], strides = [1, 1]} : vector<256x512xbf16> to vector<16x512xbf16>
    %c12 = arith.constant 12 : index
    %c0_45 = arith.constant 0 : index
    %c0_46 = arith.constant 0 : index
    %73 = vector.load %arg3[%c12, %c0_45, %c0_46] : memref<16x512x512xbf16, #tpu.memory_space<vmem>>, vector<1x512x512xbf16>
    %74 = vector.shape_cast %73 : vector<1x512x512xbf16> to vector<512x512xbf16>
    %cst_47 = arith.constant dense<0.000000e+00> : vector<16x512xf32>
    %75 = tpu.matmul %72, %74, %cst_47 {dimension_numbers = #tpu.dot_dimension_numbers<[1], [0], [0], [1], [0, 0, 1, 1], [], []>} : vector<16x512xbf16>, vector<512x512xbf16>, vector<16x512xf32> -> vector<16x512xf32>
    %76 = arith.addf %71, %75 : vector<16x512xf32>
    %77 = vector.extract_strided_slice %10 {offsets = [208, 0], sizes = [16, 512], strides = [1, 1]} : vector<256x512xbf16> to vector<16x512xbf16>
    %c13 = arith.constant 13 : index
    %c0_48 = arith.constant 0 : index
    %c0_49 = arith.constant 0 : index
    %78 = vector.load %arg3[%c13, %c0_48, %c0_49] : memref<16x512x512xbf16, #tpu.memory_space<vmem>>, vector<1x512x512xbf16>
    %79 = vector.shape_cast %78 : vector<1x512x512xbf16> to vector<512x512xbf16>
    %cst_50 = arith.constant dense<0.000000e+00> : vector<16x512xf32>
    %80 = tpu.matmul %77, %79, %cst_50 {dimension_numbers = #tpu.dot_dimension_numbers<[1], [0], [0], [1], [0, 0, 1, 1], [], []>} : vector<16x512xbf16>, vector<512x512xbf16>, vector<16x512xf32> -> vector<16x512xf32>
    %81 = arith.addf %76, %80 : vector<16x512xf32>
    %82 = vector.extract_strided_slice %10 {offsets = [224, 0], sizes = [16, 512], strides = [1, 1]} : vector<256x512xbf16> to vector<16x512xbf16>
    %c14 = arith.constant 14 : index
    %c0_51 = arith.constant 0 : index
    %c0_52 = arith.constant 0 : index
    %83 = vector.load %arg3[%c14, %c0_51, %c0_52] : memref<16x512x512xbf16, #tpu.memory_space<vmem>>, vector<1x512x512xbf16>
    %84 = vector.shape_cast %83 : vector<1x512x512xbf16> to vector<512x512xbf16>
    %cst_53 = arith.constant dense<0.000000e+00> : vector<16x512xf32>
    %85 = tpu.matmul %82, %84, %cst_53 {dimension_numbers = #tpu.dot_dimension_numbers<[1], [0], [0], [1], [0, 0, 1, 1], [], []>} : vector<16x512xbf16>, vector<512x512xbf16>, vector<16x512xf32> -> vector<16x512xf32>
    %86 = arith.addf %81, %85 : vector<16x512xf32>
    %87 = vector.extract_strided_slice %10 {offsets = [240, 0], sizes = [16, 512], strides = [1, 1]} : vector<256x512xbf16> to vector<16x512xbf16>
    %c15 = arith.constant 15 : index
    %c0_54 = arith.constant 0 : index
    %c0_55 = arith.constant 0 : index
    %88 = vector.load %arg3[%c15, %c0_54, %c0_55] : memref<16x512x512xbf16, #tpu.memory_space<vmem>>, vector<1x512x512xbf16>
    %89 = vector.shape_cast %88 : vector<1x512x512xbf16> to vector<512x512xbf16>
    %cst_56 = arith.constant dense<0.000000e+00> : vector<16x512xf32>
    %90 = tpu.matmul %87, %89, %cst_56 {dimension_numbers = #tpu.dot_dimension_numbers<[1], [0], [0], [1], [0, 0, 1, 1], [], []>} : vector<16x512xbf16>, vector<512x512xbf16>, vector<16x512xf32> -> vector<16x512xf32>
    %91 = arith.addf %86, %90 : vector<16x512xf32>
    %c0_57 = arith.constant 0 : index
    %c0_58 = arith.constant 0 : index
    %92 = vector.load %arg4[%c0_57, %c0_58] : memref<1x512xf32, #tpu.memory_space<vmem>>, vector<1x512xf32>
    %93 = vector.broadcast %92 : vector<1x512xf32> to vector<16x512xf32>
    %94 = arith.addf %91, %93 : vector<16x512xf32>
    %cst_59 = arith.constant 0.000000e+00 : f32
    %95 = vector.broadcast %cst_59 : f32 to vector<16x512xf32>
    %96 = arith.cmpf oge, %94, %95 : vector<16x512xf32>
    %cst_60 = arith.constant 2.000000e-01 : f32
    %97 = vector.broadcast %cst_60 : f32 to vector<16x512xf32>
    %98 = arith.mulf %97, %94 : vector<16x512xf32>
    %99 = arith.select %96, %94, %98 : vector<16x512xi1>, vector<16x512xf32>
    %100 = arith.truncf %99 : vector<16x512xf32> to vector<16x512xbf16>
    %c0_61 = arith.constant 0 : index
    %c0_62 = arith.constant 0 : index
    %101 = vector.load %arg5[%c0_61, %c0_62] : memref<512x128xbf16, #tpu.memory_space<vmem>>, vector<512x128xbf16>
    %cst_63 = arith.constant dense<0.000000e+00> : vector<16x128xf32>
    %102 = tpu.matmul %100, %101, %cst_63 {dimension_numbers = #tpu.dot_dimension_numbers<[1], [0], [0], [1], [0, 0, 1, 1], [], []>} : vector<16x512xbf16>, vector<512x128xbf16>, vector<16x128xf32> -> vector<16x128xf32>
    %c0_64 = arith.constant 0 : index
    %c0_65 = arith.constant 0 : index
    %103 = vector.load %arg6[%c0_64, %c0_65] : memref<1x128xf32, #tpu.memory_space<vmem>>, vector<1x128xf32>
    %104 = vector.broadcast %103 : vector<1x128xf32> to vector<16x128xf32>
    %105 = arith.addf %102, %104 : vector<16x128xf32>
    %c0_66 = arith.constant 0 : index
    %c0_67 = arith.constant 0 : index
    %106 = vector.load %arg7[%c0_66, %c0_67] : memref<16x128xf32, #tpu.memory_space<vmem>>, vector<16x128xf32>
    tpu.vector_store %arg7[%c0_66, %c0_67], %105 {strides = array<i32>} : memref<16x128xf32, #tpu.memory_space<vmem>>, vector<16x128xf32>,
    return
  }
}

</mosaic_0001>

<bundles_post_ra>
// kernel: dual_encoder_forward.1
= control target key start
LH: loop header
LB: loop body
LE: loop exit
PB: predicated region body
PF: predicated region fallthrough
CT: control target
= control target key end

     0   :  { %12 = vsyncpa [#allocation3], 0  ;;  %s23904_s0 = inlined_call_operand.vmem [shape: bf16[256,128], index: 0, kind: input, shape index: {}]   ;;  %s23905_s1 = inlined_call_operand.hbm [shape: bf16[128,512], index: 1, kind: input, shape index: {}]   ;;  %s23906_s2 = inlined_call_operand.hbm [shape: f32[256,512], index: 2, kind: input, shape index: {}]   ;;  %s23907_s3 = inlined_call_operand.hbm [shape: bf16[16,512,512], index: 3, kind: input, shape index: {}]   ;;  %s23908_s4 = inlined_call_operand.hbm [shape: f32[1,512], index: 4, kind: input, shape index: {}]   ;;  %s23909_s5 = inlined_call_operand.hbm [shape: bf16[512,128], index: 5, kind: input, shape index: {}]   ;;  %s23910_s6 = inlined_call_operand.hbm [shape: f32[1,128], index: 6, kind: input, shape index: {}]   ;;  %s23911_s7 = inlined_call_operand.vmem [shape: f32[16,128], index: 7, kind: output, shape index: {}]  }
   0x1   :  { %13 = vsyncpa [#allocation5], 0 }
   0x2   :  { %14 = vsyncpa [#allocation8], 0 }
   0x3   :  { %15 = vsyncpa [#allocation11], 0  ;;  %s22709_s24 = smov [#allocation4]   ;;  %s22569_s28 = scalar_lea.hbm %s23906_s2, 16384 }
   0x4   :  { %s35_s25 = sshll.u32 %s22709_s24, 4  ;;  %p22570_p0 = scmp.ne.s32.totalorder %s23906_s2, %s22569_s28  ;;  %s36_s25 = int_to_ptr.vmem [resolvable:$true] %s35_s25 }
   0x5   :  { %p22573_p1 = scmp.lt.u32.totalorder %s22569_s28, %s23906_s2 }
   0x7   :  { %p22575_p2 = pnand %p22573_p1, %p22570_p0 }
   0x9   :  { %22578 = shalt.err (!%p22575_p2)
}
   0xa   :  { %s22579_s10 = scalar_lea.vmem %s36_s25, 16384  ;;  %p22584_p4 = scmp.lt.s32.totalorder %s36_s25, %s36_s25 }
   0xb   :  { %p22580_p3 = scmp.ne.s32.totalorder %s36_s25, %s22579_s10  ;;  %p22585_p5 = scmp.lt.s32.totalorder %s22579_s10, %s22579_s10 }
   0xd   :  { %p22586_p6 = por %p22585_p5, %p22584_p4 }
   0xf   :  { %p22587_p7 = pnand %p22586_p6, %p22580_p3 }
  0x11   :  { %22590 = shalt.err (!%p22587_p7)
}
  0x12   :  { %s22710_s11 = smov 512   ;;  %s22711_s12 = smov 32  }
  0x13   :  { %41 = dma.hbm_to_vmem [thread:$0]  %s23906_s2, 16384, %s36_s25, [#allocation5], %s22710_s11, %s22710_s11, %s22711_s12  }
  0x14   :  { %s22712_s15 = smov [#allocation7]   ;;  %s22713_s17 = smov [#allocation2]  }
  0x15   :  { %s60_s16 = sshll.u32 %s22712_s15, 4  ;;  %s23_s18 = sshll.u32 %s22713_s17, 4  ;;  %s61_s16 = int_to_ptr.vmem [resolvable:$true] %s60_s16  ;;  %s24_s18 = int_to_ptr.vmem [resolvable:$true] %s23_s18 }
  0x16   :  { %s22591_s21 = scalar_lea.hbm %s23908_s4, 64 }
  0x17   :  { %p22592_p8 = scmp.ne.s32.totalorder %s23908_s4, %s22591_s21  ;;  %p22595_p9 = scmp.lt.u32.totalorder %s22591_s21, %s23908_s4 }
  0x19   :  { %p22597_p10 = pnand %p22595_p9, %p22592_p8 }
  0x1b   :  { %22600 = shalt.err (!%p22597_p10)
}
  0x1c   :  { %s22601_s2 = scalar_lea.vmem %s61_s16, 64  ;;  %p22606_p12 = scmp.lt.s32.totalorder %s61_s16, %s61_s16 }
  0x1d   :  { %p22602_p11 = scmp.ne.s32.totalorder %s61_s16, %s22601_s2  ;;  %p22607_p13 = scmp.lt.s32.totalorder %s22601_s2, %s22601_s2 }
  0x1f   :  { %p22608_p0 = por %p22607_p13, %p22606_p12 }
  0x21   :  { %p22609_p1 = pnand %p22608_p0, %p22602_p11 }
  0x23   :  { %22612 = shalt.err (!%p22609_p1)
}
  0x24   :  { %63 = dma.hbm_to_vmem [thread:$0]  %s23908_s4, 64, %s61_s16, [#allocation8]  }
  0x25   :  { %s22613_s30 = scalar_lea.hbm %s23905_s1, 4096 }
  0x26   :  { %p22614_p2 = scmp.ne.s32.totalorder %s23905_s1, %s22613_s30  ;;  %p22617_p3 = scmp.lt.u32.totalorder %s22613_s30, %s23905_s1 }
  0x28   :  { %p22619_p4 = pnand %p22617_p3, %p22614_p2 }
  0x2a   :  { %22622 = shalt.err (!%p22619_p4)
}
  0x2b   :  { %s22623_s12 = scalar_lea.vmem %s24_s18, 4096  ;;  %p22628_p6 = scmp.lt.s32.totalorder %s24_s18, %s24_s18 }
  0x2c   :  { %p22624_p5 = scmp.ne.s32.totalorder %s24_s18, %s22623_s12  ;;  %p22629_p7 = scmp.lt.s32.totalorder %s22623_s12, %s22623_s12 }
  0x2e   :  { %p22630_p8 = por %p22629_p7, %p22628_p6 }
  0x30   :  { %p22631_p9 = pnand %p22630_p8, %p22624_p5 }
  0x32   :  { %22634 = shalt.err (!%p22631_p9)
}
  0x33   :  { %s22714_s4 = smov 256   ;;  %s22715_s13 = smov 16  }
  0x34   :  { %29 = dma.hbm_to_vmem [thread:$0]  %s23905_s1, 4096, %s24_s18, [#allocation3], %s22714_s4, %s22714_s4, %s22715_s13  }
  0x35   :  { %s22716_s16 = smov [#allocation6]   ;;  %s22717_s19 = smov [#allocation9]  }
  0x36   :  { %s47_s17 = sshll.u32 %s22716_s16, 4  ;;  %s69_s20 = sshll.u32 %s22717_s19, 4  ;;  %s48_s17 = int_to_ptr.vmem [resolvable:$true] %s47_s17  ;;  %s70_s20 = int_to_ptr.vmem [resolvable:$true] %s69_s20 }
  0x37   :  { %s22635_s23 = scalar_lea.hbm %s23907_s3, 262144 }
  0x38   :  { %p22636_p10 = scmp.ne.s32.totalorder %s23907_s3, %s22635_s23  ;;  %p22639_p11 = scmp.lt.u32.totalorder %s22635_s23, %s23907_s3 }
  0x3a   :  { %p22641_p12 = pnand %p22639_p11, %p22636_p10 }
  0x3c   :  { %22644 = shalt.err (!%p22641_p12)
}
  0x3d   :  { %s22645_s1 = scalar_lea.vmem %s48_s17, 262144  ;;  %p22650_p0 = scmp.lt.s32.totalorder %s48_s17, %s48_s17 }
  0x3e   :  { %p22646_p13 = scmp.ne.s32.totalorder %s48_s17, %s22645_s1  ;;  %p22651_p1 = scmp.lt.s32.totalorder %s22645_s1, %s22645_s1 }
  0x40   :  { %p22652_p2 = por %p22651_p1, %p22650_p0 }
  0x42   :  { %p22653_p3 = pnand %p22652_p2, %p22646_p13 }
  0x44   :  { %22656 = shalt.err (!%p22653_p3)
}
  0x45   :  { %53 = dma.hbm_to_vmem [thread:$0]  %s23907_s3, 262144, %s48_s17, [#allocation5], %s22714_s4, %s22714_s4, %s22715_s13  }
  0x46   :  { %s22657_s30 = scalar_lea.hbm %s23909_s5, 4096 }
  0x47   :  { %p22658_p4 = scmp.ne.s32.totalorder %s23909_s5, %s22657_s30  ;;  %p22661_p5 = scmp.lt.u32.totalorder %s22657_s30, %s23909_s5 }
  0x49   :  { %p22663_p6 = pnand %p22661_p5, %p22658_p4 }
  0x4b   :  { %22666 = shalt.err (!%p22663_p6)
}
  0x4c   :  { %s22667_s12 = scalar_lea.vmem %s70_s20, 4096  ;;  %p22672_p8 = scmp.lt.s32.totalorder %s70_s20, %s70_s20 }
  0x4d   :  { %p22668_p7 = scmp.ne.s32.totalorder %s70_s20, %s22667_s12  ;;  %p22673_p9 = scmp.lt.s32.totalorder %s22667_s12, %s22667_s12 }
  0x4f   :  { %p22674_p10 = por %p22673_p9, %p22672_p8 }
  0x51   :  { %p22675_p11 = pnand %p22674_p10, %p22668_p7 }
  0x53   :  { %22678 = shalt.err (!%p22675_p11)
}
  0x54   :  { %s22718_s3 = smov 64   ;;  %s22719_s4 = smov 4  }
  0x55   :  { %75 = dma.hbm_to_vmem [thread:$0]  %s23909_s5, 4096, %s70_s20, [#allocation8], %s22718_s3, %s22718_s3, %s22719_s4  }
  0x56   :  { %s22720_s15 = smov [#allocation10]   ;;  %s22679_s21 = scalar_lea.hbm %s23910_s6, 16 }
  0x57   :  { %s82_s16 = sshll.u32 %s22720_s15, 4  ;;  %p22680_p12 = scmp.ne.s32.totalorder %s23910_s6, %s22679_s21  ;;  %s83_s16 = int_to_ptr.vmem [resolvable:$true] %s82_s16 }
  0x58   :  { %p22683_p13 = scmp.lt.u32.totalorder %s22679_s21, %s23910_s6 }
  0x5a   :  { %p22685_p0 = pnand %p22683_p13, %p22680_p12 }
  0x5c   :  { %22688 = shalt.err (!%p22685_p0)
}
  0x5d   :  { %s22689_s2 = scalar_lea.vmem %s83_s16, 16  ;;  %s22693_s5 = scalar_lea.vmem %s83_s16, 32 }
  0x5e   :  { %p22690_p1 = scmp.ne.s32.totalorder %s83_s16, %s22689_s2  ;;  %p22694_p2 = scmp.lt.s32.totalorder %s83_s16, %s83_s16 }
  0x5f   :  { %p22695_p3 = scmp.lt.s32.totalorder %s22693_s5, %s22689_s2 }
  0x61   :  { %p22696_p4 = por %p22695_p3, %p22694_p2 }
  0x63   :  { %p22697_p5 = pnand %p22696_p4, %p22690_p1 }
  0x65   :  { %22700 = shalt.err (!%p22697_p5)
}
  0x66   :  { %85 = dma.hbm_to_vmem [thread:$0]  %s23910_s6, 16, %s83_s16, [#allocation11]  }
  0x67   :  { %22701 = dma.done.wait [#allocation3], 4096  }
  0x68   :  { %22702 = vsyncadd [#allocation3], 4294963200 }
  0x69   :  { %22703 = dma.done.wait [#allocation5], 278528  }
  0x6a   :  { %22704 = vsyncadd [#allocation5], 4294688768 }
  0x6b   :  { %22705 = dma.done.wait [#allocation8], 4160  }
  0x6c   :  { %22706 = vsyncadd [#allocation8], 4294963136 }
  0x6d   :  { %22707 = dma.done.wait [#allocation11], 16  }
  0x6e   :  { %22708 = vsyncadd [#allocation11], 4294967280  ;;  %v22721_v0 = vmov 0   ;;  %v19401_v1 = vld [vmem:[#allocation2 + $0x4] ss:$16 sps:$4 sm:$0xff]   ;;  %v19426_v38 = vld [vmem:[%s23904_s0 + $0x8] sm:$0xff]  }
  0x6f   :  { %585 = vmatprep.mubr.bf16.mxu0 %v22721_v0  ;;  %778 = vmatprep.mubr.bf16.mxu1 %v22721_v0  ;;  %v19403_v2 = vld [vmem:[#allocation2] ss:$16 sps:$4 sm:$0xff]   ;;  %v19404_v3 = vld [vmem:[#allocation2 + $0x24] ss:$16 sps:$4 sm:$0xff]   ;;  %v19427_v10 = vld [vmem:[#allocation2 + $0xc] ss:$16 sps:$4 sm:$0xff]  }
  0x70   :  { %553 = vmatprep.subr.bf16.mxu0 %v19401_v1  ;;  %v19406_v4 = vld [vmem:[#allocation2 + $0x20] ss:$16 sps:$4 sm:$0xff]   ;;  %v19407_v5 = vld [vmem:[#allocation2 + $0x44] ss:$16 sps:$4 sm:$0xff]   ;;  %v19429_v11 = vld [vmem:[#allocation2 + $0x8] ss:$16 sps:$4 sm:$0xff]   ;;  %746 = vmatprep.subr.bf16.mxu1 %v19427_v10 }
  0x71   :  { %554 = vmatpush1.bf16.msra.mxu0 %v19403_v2  ;;  %v19409_v6 = vld [vmem:[#allocation2 + $0x40] ss:$16 sps:$4 sm:$0xff]   ;;  %v19410_v7 = vld [vmem:[#allocation2 + $0x64] ss:$16 sps:$4 sm:$0xff]   ;;  %v19430_v12 = vld [vmem:[#allocation2 + $0x2c] ss:$16 sps:$4 sm:$0xff]   ;;  %747 = vmatpush1.bf16.msra.mxu1 %v19429_v11 }
  0x72   :  { %555 = vmatprep.subr.bf16.mxu0 %v19404_v3  ;;  %v19412_v8 = vld [vmem:[#allocation2 + $0x60] ss:$16 sps:$4 sm:$0xff]   ;;  %v19413_v9 = vld [vmem:[#allocation2 + $0x84] ss:$16 sps:$4 sm:$0xff]   ;;  %v19432_v15 = vld [vmem:[#allocation2 + $0x28] ss:$16 sps:$4 sm:$0xff]   ;;  %748 = vmatprep.subr.bf16.mxu1 %v19430_v12 }
  0x73   :  { %v19415_v13 = vld [vmem:[#allocation2 + $0x80] ss:$16 sps:$4 sm:$0xff]   ;;  %v19416_v14 = vld [vmem:[#allocation2 + $0xa4] ss:$16 sps:$4 sm:$0xff]   ;;  %v19433_v16 = vld [vmem:[#allocation2 + $0x4c] ss:$16 sps:$4 sm:$0xff]  }
  0x74   :  { %v19418_v17 = vld [vmem:[#allocation2 + $0xa0] ss:$16 sps:$4 sm:$0xff]   ;;  %v19419_v18 = vld [vmem:[#allocation2 + $0xc4] ss:$16 sps:$4 sm:$0xff]   ;;  %v19435_v19 = vld [vmem:[#allocation2 + $0x48] ss:$16 sps:$4 sm:$0xff]  }
  0x75   :  { %556 = vmatpush1.bf16.msra.mxu0 %v19406_v4  ;;  %749 = vmatpush1.bf16.msra.mxu1 %v19432_v15  ;;  %v19436_v20 = vld [vmem:[#allocation2 + $0x6c] ss:$16 sps:$4 sm:$0xff]   ;;  %v19421_v21 = vld [vmem:[#allocation2 + $0xc0] ss:$16 sps:$4 sm:$0xff]   ;;  %v19422_v22 = vld [vmem:[#allocation2 + $0xe4] ss:$16 sps:$4 sm:$0xff]  }
  0x76   :  { %557 = vmatprep.subr.bf16.mxu0 %v19407_v5  ;;  %750 = vmatprep.subr.bf16.mxu1 %v19433_v16  ;;  %v19438_v23 = vld [vmem:[#allocation2 + $0x68] ss:$16 sps:$4 sm:$0xff]   ;;  %v19439_v24 = vld [vmem:[#allocation2 + $0x8c] ss:$16 sps:$4 sm:$0xff]   ;;  %v19424_v25 = vld [vmem:[#allocation2 + $0xe0] ss:$16 sps:$4 sm:$0xff]  }
  0x77   :  { %v19441_v26 = vld [vmem:[#allocation2 + $0x88] ss:$16 sps:$4 sm:$0xff]   ;;  %v19453_v27 = vld [vmem:[#allocation6 + $0x404] ss:$16 sps:$4 sm:$0xff]   ;;  %v19442_v28 = vld [vmem:[#allocation2 + $0xac] ss:$16 sps:$4 sm:$0xff]  }
  0x78   :  { %v19425_v29 = vld [vmem:[%s23904_s0] sm:$0xff]   ;;  %v19444_v30 = vld [vmem:[#allocation2 + $0xa8] ss:$16 sps:$4 sm:$0xff]   ;;  %v19445_v33 = vld [vmem:[#allocation2 + $0xcc] ss:$16 sps:$4 sm:$0xff]  }
  0x79   :  { %558 = vmatpush1.bf16.msra.mxu0 %v19409_v6  ;;  %751 = vmatpush1.bf16.msra.mxu1 %v19435_v19  ;;  %v19451_v31 = vld [vmem:[#allocation6 + $0x400] ss:$16 sps:$4 sm:$0xff]   ;;  %v19459_v32 = vld [vmem:[#allocation6 + $0x424] ss:$16 sps:$4 sm:$0xff]   ;;  %v19447_v34 = vld [vmem:[#allocation2 + $0xc8] ss:$16 sps:$4 sm:$0xff]  }
  0x7a   :  { %559 = vmatprep.subr.bf16.mxu0 %v19410_v7  ;;  %752 = vmatprep.subr.bf16.mxu1 %v19436_v20  ;;  %v19457_v35 = vld [vmem:[#allocation6 + $0x420] ss:$16 sps:$4 sm:$0xff]   ;;  %v19466_v36 = vld [vmem:[#allocation6 + $0x444] ss:$16 sps:$4 sm:$0xff]   ;;  %v19448_v37 = vld [vmem:[#allocation2 + $0xec] ss:$16 sps:$4 sm:$0xff]  }
  0x7b   :  { %v19450_v39 = vld [vmem:[#allocation2 + $0xe8] ss:$16 sps:$4 sm:$0xff]   ;;  %v19464_v40 = vld [vmem:[#allocation6 + $0x440] ss:$16 sps:$4 sm:$0xff]   ;;  %v19473_v41 = vld [vmem:[#allocation6 + $0x464] ss:$16 sps:$4 sm:$0xff]  }
  0x7c   :  { %v19456_v42 = vld [vmem:[#allocation6 + $0x40c] ss:$16 sps:$4 sm:$0xff]   ;;  %v19471_v43 = vld [vmem:[#allocation6 + $0x460] ss:$16 sps:$4 sm:$0xff]   ;;  %v19454_v44 = vld [vmem:[#allocation6 + $0x408] ss:$16 sps:$4 sm:$0xff]  }
  0x7d   :  { %560 = vmatpush1.bf16.msra.mxu0 %v19412_v8  ;;  %753 = vmatpush1.bf16.msra.mxu1 %v19438_v23  ;;  %v19462_v45 = vld [vmem:[#allocation6 + $0x42c] ss:$16 sps:$4 sm:$0xff]   ;;  %v19480_v46 = vld [vmem:[#allocation6 + $0x484] ss:$16 sps:$4 sm:$0xff]   ;;  %v19460_v47 = vld [vmem:[#allocation6 + $0x428] ss:$16 sps:$4 sm:$0xff]  }
  0x7e   :  { %561 = vmatprep.subr.bf16.mxu0 %v19413_v9  ;;  %754 = vmatprep.subr.bf16.mxu1 %v19439_v24  ;;  %v19463_v48 = vld [vmem:[%s23904_s0 + $0x10] sm:$0xff]   ;;  %v19469_v51 = vld [vmem:[#allocation6 + $0x44c] ss:$16 sps:$4 sm:$0xff]   ;;  %v19467_v53 = vld [vmem:[#allocation6 + $0x448] ss:$16 sps:$4 sm:$0xff]  }
  0x7f   :  { %v19478_v49 = vld [vmem:[#allocation6 + $0x480] ss:$16 sps:$4 sm:$0xff]   ;;  %v19487_v50 = vld [vmem:[#allocation6 + $0x4a4] ss:$16 sps:$4 sm:$0xff]   ;;  %v19476_v54 = vld [vmem:[#allocation6 + $0x46c] ss:$16 sps:$4 sm:$0xff]  }
  0x80   :  { %v19485_v52 = vld [vmem:[#allocation6 + $0x4a0] ss:$16 sps:$4 sm:$0xff]   ;;  %v19494_v55 = vld [vmem:[#allocation6 + $0x4c4] ss:$16 sps:$4 sm:$0xff]   ;;  %v19470_v56 = vld [vmem:[%s23904_s0 + $0x18] sm:$0xff]  }
  0x81   :  { %562 = vmatpush1.bf16.msra.mxu0 %v19415_v13  ;;  %755 = vmatpush1.bf16.msra.mxu1 %v19441_v26  ;;  %v19492_v57 = vld [vmem:[#allocation6 + $0x4c0] ss:$16 sps:$4 sm:$0xff]   ;;  %v19474_v58 = vld [vmem:[#allocation6 + $0x468] ss:$16 sps:$4 sm:$0xff]   ;;  %v19501_v59 = vld [vmem:[#allocation6 + $0x4e4] ss:$16 sps:$4 sm:$0xff]  }
  0x82   :  { %563 = vmatprep.subr.bf16.mxu0 %v19416_v14  ;;  %756 = vmatprep.subr.bf16.mxu1 %v19442_v28  ;;  %v19483_v60 = vld [vmem:[#allocation6 + $0x48c] ss:$16 sps:$4 sm:$0xff]   ;;  %v19499_v61 = vld [vmem:[#allocation6 + $0x4e0] ss:$16 sps:$4 sm:$0xff]   ;;  %v19481_v62 = vld [vmem:[#allocation6 + $0x488] ss:$16 sps:$4 sm:$0xff]  }
  0x83   :  { %v19490_v63 = vld [vmem:[#allocation6 + $0x4ac] ss:$16 sps:$4 sm:$0xff]   ;;  %v19508_v1 = vld [vmem:[#allocation6 + $0x504] ss:$16 sps:$4 sm:$0xff]   ;;  %v19488_v3 = vld [vmem:[#allocation6 + $0x4a8] ss:$16 sps:$4 sm:$0xff]  }
  0x84   :  { %v19477_v2 = vld [vmem:[%s23904_s0 + $0x20] sm:$0xff]   ;;  %v19497_v6 = vld [vmem:[#allocation6 + $0x4cc] ss:$16 sps:$4 sm:$0xff]   ;;  %v19495_v8 = vld [vmem:[#allocation6 + $0x4c8] ss:$16 sps:$4 sm:$0xff]  }
  0x85   :  { %564 = vmatpush1.bf16.msra.mxu0 %v19418_v17  ;;  %757 = vmatpush1.bf16.msra.mxu1 %v19444_v30  ;;  %v19506_v4 = vld [vmem:[#allocation6 + $0x500] ss:$16 sps:$4 sm:$0xff]   ;;  %v19515_v5 = vld [vmem:[#allocation6 + $0x524] ss:$16 sps:$4 sm:$0xff]   ;;  %v19504_v9 = vld [vmem:[#allocation6 + $0x4ec] ss:$16 sps:$4 sm:$0xff]  }
  0x86   :  { %565 = vmatprep.subr.bf16.mxu0 %v19419_v18  ;;  %758 = vmatprep.subr.bf16.mxu1 %v19445_v33  ;;  %v19513_v7 = vld [vmem:[#allocation6 + $0x520] ss:$16 sps:$4 sm:$0xff]   ;;  %v19522_v10 = vld [vmem:[#allocation6 + $0x544] ss:$16 sps:$4 sm:$0xff]   ;;  %v19484_v11 = vld [vmem:[%s23904_s0 + $0x28] sm:$0xff]  }
  0x87   :  { %v19520_v12 = vld [vmem:[#allocation6 + $0x540] ss:$16 sps:$4 sm:$0xff]   ;;  %v19502_v13 = vld [vmem:[#allocation6 + $0x4e8] ss:$16 sps:$4 sm:$0xff]   ;;  %v19529_v14 = vld [vmem:[#allocation6 + $0x564] ss:$16 sps:$4 sm:$0xff]  }
  0x88   :  { %v19511_v15 = vld [vmem:[#allocation6 + $0x50c] ss:$16 sps:$4 sm:$0xff]   ;;  %v19527_v16 = vld [vmem:[#allocation6 + $0x560] ss:$16 sps:$4 sm:$0xff]   ;;  %v19509_v17 = vld [vmem:[#allocation6 + $0x508] ss:$16 sps:$4 sm:$0xff]  }
  0x89   :  { %566 = vmatpush1.bf16.msra.mxu0 %v19421_v21  ;;  %759 = vmatpush1.bf16.msra.mxu1 %v19447_v34  ;;  %v19518_v18 = vld [vmem:[#allocation6 + $0x52c] ss:$16 sps:$4 sm:$0xff]   ;;  %v19536_v19 = vld [vmem:[#allocation6 + $0x584] ss:$16 sps:$4 sm:$0xff]   ;;  %v19534_v21 = vld [vmem:[#allocation6 + $0x580] ss:$16 sps:$4 sm:$0xff]  }
  0x8a   :  { %567 = vmatprep.subr.bf16.mxu0 %v19422_v22  ;;  %760 = vmatprep.subr.bf16.mxu1 %v19448_v37  ;;  %v19491_v20 = vld [vmem:[%s23904_s0 + $0x30] sm:$0xff]   ;;  %v19516_v22 = vld [vmem:[#allocation6 + $0x528] ss:$16 sps:$4 sm:$0xff]   ;;  %v19525_v24 = vld [vmem:[#allocation6 + $0x54c] ss:$16 sps:$4 sm:$0xff]  }
  0x8b   :  { %v19543_v23 = vld [vmem:[#allocation6 + $0x5a4] ss:$16 sps:$4 sm:$0xff]   ;;  %v19523_v26 = vld [vmem:[#allocation6 + $0x548] ss:$16 sps:$4 sm:$0xff]   ;;  %v19539_v30 = vld [vmem:[#allocation6 + $0x58c] ss:$16 sps:$4 sm:$0xff]  }
  0x8c   :  { %v19498_v28 = vld [vmem:[%s23904_s0 + $0x38] sm:$0xff]   ;;  %v19505_v33 = vld [vmem:[%s23904_s0 + $0x40] sm:$0xff]  }
  0x8d   :  { %568 = vmatpush1.bf16.msra.mxu0 %v19424_v25  ;;  %761 = vmatpush1.bf16.msra.mxu1 %v19450_v39  ;;  %v19541_v25 = vld [vmem:[#allocation6 + $0x5a0] ss:$16 sps:$4 sm:$0xff]   ;;  %v19544_v34 = vld [vmem:[#allocation6 + $0x5a8] ss:$16 sps:$4 sm:$0xff]   ;;  %v19550_v39 = vld [vmem:[#allocation6 + $0x5c4] ss:$16 sps:$4 sm:$0xff]  }
  0x8e   :  { %2284 = vmatprep.subr.bf16.mxu0 %v19453_v27  ;;  %2370 = vmatprep.subr.bf16.mxu1 %v19456_v42  ;;  %v19532_v27 = vld [vmem:[#allocation6 + $0x56c] ss:$16 sps:$4 sm:$0xff]  }
  0x8f   :  { %v19526_v37 = vld [vmem:[%s23904_s0 + $0x58] sm:$0xff]  }
  0x90   :  { %586 = vmatmul.mubr.bf16.vlgmr.msra.gmra.mrb[0].mxu0 %v19425_v29  ;;  %779 = vmatmul.mubr.bf16.vlgmr.msra.gmra.mrb[0].mxu1 %v19425_v29  ;;  %v19530_v29 = vld [vmem:[#allocation6 + $0x568] ss:$16 sps:$4 sm:$0xff]   ;;  %v19553_v42 = vld [vmem:[#allocation6 + $0x5cc] ss:$16 sps:$4 sm:$0xff]  }
  0x91   :  { %595 = vmatprep.mubr.bf16.mxu0 %v22721_v0  ;;  %2285 = vmatpush1.bf16.msra.mxu0 %v19451_v31  ;;  %v19537_v31 = vld [vmem:[#allocation6 + $0x588] ss:$16 sps:$4 sm:$0xff]  }
  0x92   :  { %2286 = vmatprep.subr.bf16.mxu0 %v19459_v32  ;;  %788 = vmatprep.mubr.bf16.mxu1 %v22721_v0  ;;  %v19546_v32 = vld [vmem:[#allocation6 + $0x5ac] ss:$16 sps:$4 sm:$0xff]  }
  0x93   :  { %2371 = vmatpush1.bf16.msra.mxu1 %v19454_v44  ;;  %v19560_v44 = vld [vmem:[#allocation6 + $0x5ec] ss:$16 sps:$4 sm:$0xff]  }
  0x94   :  { %2372 = vmatprep.subr.bf16.mxu1 %v19462_v45  ;;  %v19555_v45 = vld [vmem:[#allocation6 + $0x5e0] ss:$16 sps:$4 sm:$0xff]  }
  0x95   :  { %2287 = vmatpush1.bf16.msra.mxu0 %v19457_v35  ;;  %v19512_v35 = vld [vmem:[%s23904_s0 + $0x48] sm:$0xff]  }
  0x96   :  { %2288 = vmatprep.subr.bf16.mxu0 %v19466_v36  ;;  %v19519_v36 = vld [vmem:[%s23904_s0 + $0x50] sm:$0xff]  }
  0x97   :  { %2373 = vmatpush1.bf16.msra.mxu1 %v19460_v47  ;;  %v19540_v47 = vld [vmem:[%s23904_s0 + $0x68] sm:$0xff]  }
  0x98   :  { %596 = vmatmul.mubr.bf16.gmra.mrb[4].mxu0 %v19426_v38  ;;  %2374 = vmatprep.subr.bf16.mxu1 %v19469_v51  ;;  %v19554_v51 = vld [vmem:[%s23904_s0 + $0x78] sm:$0xff]  }
  0x99   :  { %605 = vmatprep.mubr.bf16.mxu0 %v22721_v0  ;;  %2289 = vmatpush1.bf16.msra.mxu0 %v19464_v40  ;;  %v19533_v40 = vld [vmem:[%s23904_s0 + $0x60] sm:$0xff]  }
  0x9a   :  { %2290 = vmatprep.subr.bf16.mxu0 %v19473_v41  ;;  %789 = vmatmul.mubr.bf16.gmra.mrb[4].mxu1 %v19426_v38  ;;  %v19548_v38 = vld [vmem:[#allocation6 + $0x5c0] ss:$16 sps:$4 sm:$0xff]   ;;  %v19551_v41 = vld [vmem:[#allocation6 + $0x5c8] ss:$16 sps:$4 sm:$0xff]  }
  0x9b   :  { %798 = vmatprep.mubr.bf16.mxu1 %v22721_v0  ;;  %2375 = vmatpush1.bf16.msra.mxu1 %v19467_v53  ;;  %v170_v53 = vld [vmem:[#allocation4 + $0x8] sm:$0xff] }
  0x9c   :  { %2376 = vmatprep.subr.bf16.mxu1 %v19476_v54 }
  0x9d   :  { %2291 = vmatpush1.bf16.msra.mxu0 %v19471_v43  ;;  %v19557_v43 = vld [vmem:[#allocation6 + $0x5e4] ss:$16 sps:$4 sm:$0xff]  }
  0x9e   :  { %2292 = vmatprep.subr.bf16.mxu0 %v19480_v46  ;;  %v19558_v46 = vld [vmem:[#allocation6 + $0x5e8] ss:$16 sps:$4 sm:$0xff]  }
  0x9f   :  { %2377 = vmatpush1.bf16.msra.mxu1 %v19474_v58 }
  0xa0   :  { %606 = vmatmul.mubr.bf16.gmra.mrb[8].mxu0 %v19463_v48  ;;  %2378 = vmatprep.subr.bf16.mxu1 %v19483_v60 }
  0xa1   :  { %615 = vmatprep.mubr.bf16.mxu0 %v22721_v0  ;;  %2293 = vmatpush1.bf16.msra.mxu0 %v19478_v49  ;;  %v19566_v49 = vld [vmem:[#allocation6 + $0x60c] ss:$16 sps:$4 sm:$0xff]  }
  0xa2   :  { %2294 = vmatprep.subr.bf16.mxu0 %v19487_v50  ;;  %799 = vmatmul.mubr.bf16.gmra.mrb[8].mxu1 %v19463_v48  ;;  %v19563_v48 = vld [vmem:[#allocation6 + $0x604] ss:$16 sps:$4 sm:$0xff]  }
  0xa3   :  { %808 = vmatprep.mubr.bf16.mxu1 %v22721_v0  ;;  %2379 = vmatpush1.bf16.msra.mxu1 %v19481_v62  ;;  %v19547_v50 = vld [vmem:[%s23904_s0 + $0x70] sm:$0xff]  }
  0xa4   :  { %2380 = vmatprep.subr.bf16.mxu1 %v19490_v63 }
  0xa5   :  { %2295 = vmatpush1.bf16.msra.mxu0 %v19485_v52  ;;  %v169_v52 = vld [vmem:[#allocation4] sm:$0xff] }
  0xa6   :  { %2296 = vmatprep.subr.bf16.mxu0 %v19494_v55  ;;  %v173_v55 = vld [vmem:[#allocation4 + $0x20] sm:$0xff] }
  0xa7   :  { %2381 = vmatpush1.bf16.msra.mxu1 %v19488_v3 }
  0xa8   :  { %616 = vmatmul.mubr.bf16.gmra.mrb[12].mxu0 %v19470_v56  ;;  %2382 = vmatprep.subr.bf16.mxu1 %v19497_v6 }
  0xa9   :  { %625 = vmatprep.mubr.bf16.mxu0 %v22721_v0  ;;  %2297 = vmatpush1.bf16.msra.mxu0 %v19492_v57 }
  0xaa   :  { %2298 = vmatprep.subr.bf16.mxu0 %v19501_v59  ;;  %809 = vmatmul.mubr.bf16.gmra.mrb[12].mxu1 %v19470_v56  ;;  %v174_v56 = vld [vmem:[#allocation4 + $0x28] sm:$0xff] }
  0xab   :  { %818 = vmatprep.mubr.bf16.mxu1 %v22721_v0  ;;  %2383 = vmatpush1.bf16.msra.mxu1 %v19495_v8 }
  0xac   :  { %2384 = vmatprep.subr.bf16.mxu1 %v19504_v9 }
  0xad   :  { %2299 = vmatpush1.bf16.msra.mxu0 %v19499_v61 }
  0xae   :  { %2300 = vmatprep.subr.bf16.mxu0 %v19508_v1 }
  0xaf   :  { %2385 = vmatpush1.bf16.msra.mxu1 %v19502_v13 }
  0xb0   :  { %626 = vmatmul.mubr.bf16.gmra.mrb[16].mxu0 %v19477_v2  ;;  %2386 = vmatprep.subr.bf16.mxu1 %v19511_v15 }
  0xb1   :  { %635 = vmatprep.mubr.bf16.mxu0 %v22721_v0  ;;  %2301 = vmatpush1.bf16.msra.mxu0 %v19506_v4  ;;  %v177_v4 = vld [vmem:[#allocation4 + $0x40] sm:$0xff] }
  0xb2   :  { %2302 = vmatprep.subr.bf16.mxu0 %v19515_v5  ;;  %819 = vmatmul.mubr.bf16.gmra.mrb[16].mxu1 %v19477_v2 }
  0xb3   :  { %828 = vmatprep.mubr.bf16.mxu1 %v22721_v0  ;;  %2387 = vmatpush1.bf16.msra.mxu1 %v19509_v17 }
  0xb4   :  { %2388 = vmatprep.subr.bf16.mxu1 %v19518_v18 }
  0xb5   :  { %2303 = vmatpush1.bf16.msra.mxu0 %v19513_v7  ;;  %v178_v7 = vld [vmem:[#allocation4 + $0x48] sm:$0xff] }
  0xb6   :  { %2304 = vmatprep.subr.bf16.mxu0 %v19522_v10  ;;  %v181_v10 = vld [vmem:[#allocation4 + $0x60] sm:$0xff] }
  0xb7   :  { %2389 = vmatpush1.bf16.msra.mxu1 %v19516_v22  ;;  %v171_v22 = vld [vmem:[#allocation4 + $0x10] sm:$0xff] }
  0xb8   :  { %636 = vmatmul.mubr.bf16.gmra.mrb[20].mxu0 %v19484_v11  ;;  %2390 = vmatprep.subr.bf16.mxu1 %v19525_v24 }
  0xb9   :  { %645 = vmatprep.mubr.bf16.mxu0 %v22721_v0  ;;  %2305 = vmatpush1.bf16.msra.mxu0 %v19520_v12 }
  0xba   :  { %2306 = vmatprep.subr.bf16.mxu0 %v19529_v14  ;;  %829 = vmatmul.mubr.bf16.gmra.mrb[20].mxu1 %v19484_v11  ;;  %v182_v11 = vld [vmem:[#allocation4 + $0x68] sm:$0xff] }
  0xbb   :  { %838 = vmatprep.mubr.bf16.mxu1 %v22721_v0  ;;  %2391 = vmatpush1.bf16.msra.mxu1 %v19523_v26 }
  0xbc   :  { %2392 = vmatprep.subr.bf16.mxu1 %v19532_v27 }
  0xbd   :  { %2307 = vmatpush1.bf16.msra.mxu0 %v19527_v16 }
  0xbe   :  { %2308 = vmatprep.subr.bf16.mxu0 %v19536_v19 }
  0xbf   :  { %2393 = vmatpush1.bf16.msra.mxu1 %v19530_v29 }
  0xc0   :  { %646 = vmatmul.mubr.bf16.gmra.mrb[24].mxu0 %v19491_v20  ;;  %2394 = vmatprep.subr.bf16.mxu1 %v19539_v30  ;;  %v175_v30 = vld [vmem:[#allocation4 + $0x30] sm:$0xff] }
  0xc1   :  { %655 = vmatprep.mubr.bf16.mxu0 %v22721_v0  ;;  %2309 = vmatpush1.bf16.msra.mxu0 %v19534_v21 }
  0xc2   :  { %2310 = vmatprep.subr.bf16.mxu0 %v19543_v23  ;;  %839 = vmatmul.mubr.bf16.gmra.mrb[24].mxu1 %v19491_v20 }
  0xc3   :  { %848 = vmatprep.mubr.bf16.mxu1 %v22721_v0  ;;  %2395 = vmatpush1.bf16.msra.mxu1 %v19537_v31 }
  0xc4   :  { %2396 = vmatprep.subr.bf16.mxu1 %v19546_v32 }
  0xc5   :  { %2311 = vmatpush1.bf16.msra.mxu0 %v19541_v25 }
  0xc6   :  { %2312 = vmatprep.subr.bf16.mxu0 %v19550_v39 }
  0xc7   :  { %2397 = vmatpush1.bf16.msra.mxu1 %v19544_v34 }
  0xc8   :  { %656 = vmatmul.mubr.bf16.gmra.mrb[28].mxu0 %v19498_v28  ;;  %2398 = vmatprep.subr.bf16.mxu1 %v19553_v42 }
  0xc9   :  { %665 = vmatprep.mubr.bf16.mxu0 %v22721_v0  ;;  %2313 = vmatpush1.bf16.msra.mxu0 %v19548_v38 }
  0xca   :  { %849 = vmatmul.mubr.bf16.gmra.mrb[28].mxu1 %v19498_v28  ;;  %2314 = vmatprep.subr.bf16.mxu0 %v19557_v43  ;;  %v19561_v43 = vld [vmem:[#allocation6 + $0x600] ss:$16 sps:$4 sm:$0xff]  }
  0xcb   :  { %858 = vmatprep.mubr.bf16.mxu1 %v22721_v0  ;;  %2399 = vmatpush1.bf16.msra.mxu1 %v19551_v41 }
  0xcc   :  { %2400 = vmatprep.subr.bf16.mxu1 %v19560_v44  ;;  %v19564_v44 = vld [vmem:[#allocation6 + $0x608] ss:$16 sps:$4 sm:$0xff]  }
  0xcd   :  { %2315 = vmatpush1.bf16.msra.mxu0 %v19555_v45 }
  0xce   :  { %2327 = vmatprep.subr.bf16.mxu0 %v19563_v48  ;;  %v19572_v48 = vld [vmem:[#allocation6 + $0x62c] ss:$16 sps:$4 sm:$0xff]  }
  0xcf   :  { %2401 = vmatpush1.bf16.msra.mxu1 %v19558_v46 }
  0xd0   :  { %666 = vmatmul.mubr.bf16.gmra.mrb[32].mxu0 %v19505_v33  ;;  %2413 = vmatprep.subr.bf16.mxu1 %v19566_v49 }
  0xd1   :  { %675 = vmatprep.mubr.bf16.mxu0 %v22721_v0 }
  0xd2   :  { %859 = vmatmul.mubr.bf16.gmra.mrb[32].mxu1 %v19505_v33 }
  0xd3   :  { %868 = vmatprep.mubr.bf16.mxu1 %v22721_v0 }
  0xd8   :  { %676 = vmatmul.mubr.bf16.gmra.mrb[36].mxu0 %v19512_v35 }
  0xd9   :  { %685 = vmatprep.mubr.bf16.mxu0 %v22721_v0 }
  0xda   :  { %869 = vmatmul.mubr.bf16.gmra.mrb[36].mxu1 %v19512_v35  ;;  %v185_v35 = vld [vmem:[#allocation4 + $0x80] sm:$0xff] }
  0xdb   :  { %878 = vmatprep.mubr.bf16.mxu1 %v22721_v0 }
  0xe0   :  { %686 = vmatmul.mubr.bf16.gmra.mrb[40].mxu0 %v19519_v36 }
  0xe1   :  { %695 = vmatprep.mubr.bf16.mxu0 %v22721_v0 }
  0xe2   :  { %879 = vmatmul.mubr.bf16.gmra.mrb[40].mxu1 %v19519_v36  ;;  %v189_v36 = vld [vmem:[#allocation4 + $0xa0] sm:$0xff] }
  0xe3   :  { %888 = vmatprep.mubr.bf16.mxu1 %v22721_v0 }
  0xe8   :  { %696 = vmatmul.mubr.bf16.gmra.mrb[44].mxu0 %v19526_v37 }
  0xe9   :  { %705 = vmatprep.mubr.bf16.mxu0 %v22721_v0 }
  0xea   :  { %889 = vmatmul.mubr.bf16.gmra.mrb[44].mxu1 %v19526_v37 }
  0xeb   :  { %898 = vmatprep.mubr.bf16.mxu1 %v22721_v0 }
  0xf0   :  { %706 = vmatmul.mubr.bf16.gmra.mrb[48].mxu0 %v19533_v40 }
  0xf1   :  { %715 = vmatprep.mubr.bf16.mxu0 %v22721_v0 }
  0xf2   :  { %899 = vmatmul.mubr.bf16.gmra.mrb[48].mxu1 %v19533_v40 }
  0xf3   :  { %908 = vmatprep.mubr.bf16.mxu1 %v22721_v0 }
  0xf8   :  { %716 = vmatmul.mubr.bf16.gmra.mrb[52].mxu0 %v19540_v47 }
  0xf9   :  { %725 = vmatprep.mubr.bf16.mxu0 %v22721_v0 }
  0xfa   :  { %909 = vmatmul.mubr.bf16.gmra.mrb[52].mxu1 %v19540_v47  ;;  %v19569_v47 = vld [vmem:[#allocation6 + $0x624] ss:$16 sps:$4 sm:$0xff]  }
  0xfb   :  { %918 = vmatprep.mubr.bf16.mxu1 %v22721_v0 }
 0x100   :  { %726 = vmatmul.mubr.bf16.gmra.mrb[56].mxu0 %v19547_v50 }
 0x101   :  { %735 = vmatprep.mubr.bf16.mxu0 %v22721_v0 }
 0x102   :  { %919 = vmatmul.mubr.bf16.gmra.mrb[56].mxu1 %v19547_v50 }
 0x103   :  { %928 = vmatprep.mubr.bf16.mxu1 %v22721_v0 }
 0x108   :  { %736 = vmatmul.mubr.bf16.gmra.mrb[60].mxu0 %v19554_v51 }
 0x10a   :  { %929 = vmatmul.mubr.bf16.gmra.mrb[60].mxu1 %v19554_v51  ;;  %v19567_v51 = vld [vmem:[#allocation6 + $0x620] ss:$16 sps:$4 sm:$0xff]  }
 0x163   :  { %v587_v54 = vpop.f32.mrb[0].mxu0  ;;  %v780_v26 = vpop.f32.mrb[0].mxu1 }
 0x164   :  { %v588_v57 = vadd.f32 %v587_v54, %v169_v52  ;;  %v589_v58 = vpop.f32.mrb[1].mxu0  ;;  %v781_v28 = vadd.f32 %v780_v26, %v171_v22  ;;  %v22918_v29 = vpop.f32.mrb[1].mxu1  ;;  %v179_v54 = vld [vmem:[#allocation4 + $0x50] sm:$0xff]  ;;  %v193_v22 = vld [vmem:[#allocation4 + $0xc0] sm:$0xff] }
 0x165   :  { %v590_v59 = vadd.f32 %v589_v58, %v170_v53  ;;  %v591_v60 = vpop.f32.mrb[2].mxu0  ;;  %v784_v34 = vpop.f32.mrb[2].mxu1  ;;  %v180_v58 = vld [vmem:[#allocation4 + $0x58] sm:$0xff] }
 0x166   :  { %v1067_v61 = vmul.f32 0.2, %v588_v57  ;;  %v592_v62 = vadd.f32 %v591_v60, %v173_v55  ;;  %v593_v63 = vpop.f32.mrb[3].mxu0  ;;  %vm939_vm0 = vcmp.ge.f32.partialorder %v588_v57, 0.0  ;;  %vm941_vm8 = vcmp.ge.f32.partialorder %v781_v28, 0.0  ;;  %v22920_v40 = vpop.f32.mrb[3].mxu1 }
 0x167   :  { %v1068_v1 = vmul.f32 0.2, %v590_v59  ;;  %v594_v2 = vadd.f32 %v593_v63, %v174_v56  ;;  %vm940_vm1 = vcmp.ge.f32.partialorder %v590_v59, 0.0  ;;  %v1069_v39 = vmul.f32 0.2, %v781_v28  ;;  %v183_v63 = vld [vmem:[#allocation4 + $0x70] sm:$0xff] }
 0x168   :  { %vm943_vm2 = vcmp.ge.f32.partialorder %v592_v62, 0.0  ;;  %v1071_v3 = vmul.f32 0.2, %v592_v62  ;;  %v1195_v5 = vsel %vm939_vm0, %v588_v57, %v1067_v61  ;;  %v785_v45 = vadd.f32 %v784_v34, %v175_v30  ;;  %v19570_v57 = vld [vmem:[#allocation6 + $0x628] ss:$16 sps:$4 sm:$0xff]  }
 0x169   :  { %vm944_vm3 = vcmp.ge.f32.partialorder %v594_v2, 0.0  ;;  %v1072_v0 = vmul.f32 0.2, %v594_v2  ;;  %v1196_v12 = vsel %vm940_vm1, %v590_v59, %v1068_v1  ;;  %v1197_v52 = vsel %vm941_vm8, %v781_v28, %v1069_v39  ;;  %v19575_v60 = vld [vmem:[#allocation6 + $0x644] ss:$16 sps:$4 sm:$0xff]  }
 0x16a   :  { %v1199_v6 = vsel %vm943_vm2, %v592_v62, %v1071_v3  ;;  %vm945_vm9 = vcmp.ge.f32.partialorder %v785_v45, 0.0  ;;  %v1073_v53 = vmul.f32 0.2, %v785_v45  ;;  %v19578_v1 = vld [vmem:[#allocation6 + $0x64c] ss:$16 sps:$4 sm:$0xff]  }
 0x16b   :  { %v22914_v8 = vpack.c.bf16 %v1199_v6, %v1195_v5  ;;  %v597_v9 = vpop.f32.mrb[4].mxu0  ;;  %v1200_v13 = vsel %vm944_vm3, %v594_v2, %v1072_v0  ;;  %v19579_v34 = vld [vmem:[#allocation6 + $0x660] ss:$16 sps:$4 sm:$0xff]  }
 0x16c   :  { %v598_v14 = vadd.f32 %v597_v9, %v177_v4  ;;  %v599_v15 = vpop.f32.mrb[5].mxu0  ;;  %v22916_v16 = vpack.c.bf16 %v1200_v13, %v1196_v12  ;;  %v1201_v61 = vsel %vm945_vm9, %v785_v45, %v1073_v53  ;;  %v184_v4 = vld [vmem:[#allocation4 + $0x78] sm:$0xff]  ;;  %v19581_v12 = vld [vmem:[#allocation6 + $0x664] ss:$16 sps:$4 sm:$0xff]   ;;  %v19585_v53 = vld [vmem:[#allocation6 + $0x680] ss:$16 sps:$4 sm:$0xff]  }
 0x16d   :  { %23958 = vst [vmem:[#allocation16_spill] sm:$0xff] %v22914_v8  ;;  %v600_v17 = vadd.f32 %v599_v15, %v178_v7  ;;  %v601_v18 = vpop.f32.mrb[6].mxu0  ;;  %v790_v62 = vpop.f32.mrb[4].mxu1  ;;  %v22927_v2 = vpack.c.bf16 %v1201_v61, %v1197_v52  ;;  %v19573_v7 = vld [vmem:[#allocation6 + $0x640] ss:$16 sps:$4 sm:$0xff]  }
 0x16e   :  { %v1075_v19 = vmul.f32 0.2, %v598_v14  ;;  %v602_v20 = vadd.f32 %v601_v18, %v181_v10  ;;  %v603_v21 = vpop.f32.mrb[7].mxu0  ;;  %vm947_vm4 = vcmp.ge.f32.partialorder %v598_v14, 0.0  ;;  %v791_v3 = vadd.f32 %v790_v62, %v179_v54  ;;  %v792_v0 = vpop.f32.mrb[5].mxu1 }
 0x16f   :  { %vm948_vm5 = vcmp.ge.f32.partialorder %v600_v17, 0.0  ;;  %v1076_v23 = vmul.f32 0.2, %v600_v17  ;;  %v604_v24 = vadd.f32 %v603_v21, %v182_v11  ;;  %23959 = vst [vmem:[#allocation17_spill] sm:$0xff] %v22927_v2  ;;  %v19576_v9 = vld [vmem:[#allocation6 + $0x648] ss:$16 sps:$4 sm:$0xff]   ;;  %v793_v10 = vadd.f32 %v792_v0, %v180_v58 }
 0x170   :  { %vm951_vm6 = vcmp.ge.f32.partialorder %v602_v20, 0.0  ;;  %v1079_v25 = vmul.f32 0.2, %v602_v20  ;;  %v1203_v31 = vsel %vm947_vm4, %v598_v14, %v1075_v19  ;;  %v794_v11 = vpop.f32.mrb[6].mxu1  ;;  %vm949_vm12 = vcmp.ge.f32.partialorder %v791_v3, 0.0  ;;  %v201_v0 = vld [vmem:[#allocation4 + $0x100] sm:$0xff] }
 0x171   :  { %vm952_vm7 = vcmp.ge.f32.partialorder %v604_v24, 0.0  ;;  %v1080_v27 = vmul.f32 0.2, %v604_v24  ;;  %v1204_v33 = vsel %vm948_vm5, %v600_v17, %v1076_v23  ;;  %v1077_v13 = vmul.f32 0.2, %v791_v3  ;;  %v796_v15 = vpop.f32.mrb[7].mxu1 }
 0x172   :  { %v1207_v32 = vsel %vm951_vm6, %v602_v20, %v1079_v25  ;;  %v795_v14 = vadd.f32 %v794_v11, %v183_v63  ;;  %vm950_vm13 = vcmp.ge.f32.partialorder %v793_v10, 0.0  ;;  %v1078_v19 = vmul.f32 0.2, %v793_v10  ;;  %v19584_v25 = vld [vmem:[#allocation6 + $0x66c] ss:$16 sps:$4 sm:$0xff]  }
 0x173   :  { %v1327_v37 = vpack.c.bf16 %v1207_v32, %v1203_v31  ;;  %v1208_v38 = vsel %vm952_vm7, %v604_v24, %v1080_v27  ;;  %v607_v41 = vpop.f32.mrb[8].mxu0  ;;  %v797_v20 = vadd.f32 %v796_v15, %v184_v4  ;;  %v197_v24 = vld [vmem:[#allocation4 + $0xe0] sm:$0xff]  ;;  %v1205_v26 = vsel %vm949_vm12, %v791_v3, %v1077_v13  ;;  %v187_v32 = vld [vmem:[#allocation4 + $0x90] sm:$0xff]  ;;  %v19588_v54 = vld [vmem:[#allocation6 + $0x688] ss:$16 sps:$4 sm:$0xff]  }
 0x174   :  { %v1328_v42 = vpack.c.bf16 %v1208_v38, %v1204_v33  ;;  %v22922_v46 = vpop.f32.mrb[9].mxu0  ;;  %v608_v49 = vadd.f32 %v607_v41, %v185_v35  ;;  %vm953_vm14 = vcmp.ge.f32.partialorder %v795_v14, 0.0  ;;  %v1081_v27 = vmul.f32 0.2, %v795_v14  ;;  %v19582_v35 = vld [vmem:[#allocation6 + $0x668] ss:$16 sps:$4 sm:$0xff]  }
 0x175   :  { %v611_v50 = vpop.f32.mrb[10].mxu0  ;;  %vm954_vm15 = vcmp.ge.f32.partialorder %v797_v20, 0.0  ;;  %v1082_v30 = vmul.f32 0.2, %v797_v20  ;;  %v1206_v31 = vsel %vm950_vm13, %v793_v10, %v1078_v19  ;;  %v19587_v41 = vld [vmem:[#allocation6 + $0x684] ss:$16 sps:$4 sm:$0xff]  }
 0x176   :  { %2316 = vmatprep.mubr.bf16.mxu0 %v1328_v42  ;;  %2402 = vmatprep.mubr.bf16.mxu1 %v1328_v42  ;;  %v612_v55 = vadd.f32 %v611_v50, %v189_v36  ;;  %v22925_v56 = vpop.f32.mrb[11].mxu0  ;;  %vm955_vm10 = vcmp.ge.f32.partialorder %v608_v49, 0.0  ;;  %v1083_v59 = vmul.f32 0.2, %v608_v49  ;;  %v172_v36 = vld [vmem:[#allocation4 + $0x18] sm:$0xff]  ;;  %v800_v45 = vpop.f32.mrb[8].mxu1 }
 0x177   :  { %2317 = vmatmul.mubr.bf16.vlgmr.msra.gmra.mrb[64].mxu0 %v1327_v37  ;;  %2403 = vmatmul.mubr.bf16.vlgmr.msra.gmra.mrb[64].mxu1 %v1327_v37  ;;  %v1209_v37 = vsel %vm953_vm14, %v795_v14, %v1081_v27  ;;  %v19590_v42 = vld [vmem:[#allocation6 + $0x68c] ss:$16 sps:$4 sm:$0xff]   ;;  %v801_v50 = vadd.f32 %v800_v45, %v187_v32  ;;  %v19593_v58 = vld [vmem:[#allocation6 + $0x6a4] ss:$16 sps:$4 sm:$0xff]   ;;  %v19591_v10 = vld [vmem:[#allocation6 + $0x6a0] ss:$16 sps:$4 sm:$0xff]  }
 0x178   :  { %2328 = vmatpush1.bf16.msra.mxu0 %v19561_v43  ;;  %2414 = vmatpush1.bf16.msra.mxu1 %v19564_v44  ;;  %vm959_vm11 = vcmp.ge.f32.partialorder %v612_v55, 0.0  ;;  %v1211_v5 = vsel %vm955_vm10, %v608_v49, %v1083_v59  ;;  %v1087_v6 = vmul.f32 0.2, %v612_v55  ;;  %v22939_v43 = vpack.c.bf16 %v1209_v37, %v1205_v26  ;;  %v19596_v63 = vld [vmem:[#allocation6 + $0x6ac] ss:$16 sps:$4 sm:$0xff]   ;;  %v195_v13 = vld [vmem:[#allocation4 + $0xd0] sm:$0xff] }
 0x179   :  { %2329 = vmatprep.subr.bf16.mxu0 %v19569_v47  ;;  %2415 = vmatprep.subr.bf16.mxu1 %v19572_v48  ;;  %v1210_v44 = vsel %vm954_vm15, %v797_v20, %v1082_v30  ;;  %v191_v47 = vld [vmem:[#allocation4 + $0xb0] sm:$0xff]  ;;  %v176_v48 = vld [vmem:[#allocation4 + $0x38] sm:$0xff]  ;;  %vm957_vm1 = vcmp.ge.f32.partialorder %v801_v50, 0.0  ;;  %v1085_v59 = vmul.f32 0.2, %v801_v50 }
 0x17a   :  { %v1215_v17 = vsel %vm959_vm11, %v612_v55, %v1087_v6  ;;  %v1330_v49 = vpack.c.bf16 %v1210_v44, %v1206_v31  ;;  %v22945_v55 = vadd.f32 %v22918_v29, %v172_v36  ;;  %v19594_v11 = vld [vmem:[#allocation6 + $0x6a8] ss:$16 sps:$4 sm:$0xff]   ;;  %v19599_v14 = vld [vmem:[#allocation6 + $0x6c4] ss:$16 sps:$4 sm:$0xff]   ;;  %v19602_v15 = vld [vmem:[#allocation6 + $0x6cc] ss:$16 sps:$4 sm:$0xff]  }
 0x17b   :  { %v617_v18 = vpop.f32.mrb[12].mxu0  ;;  %v22931_v21 = vpack.c.bf16 %v1215_v17, %v1211_v5  ;;  %v1213_v5 = vsel %vm957_vm1, %v801_v50, %v1085_v59  ;;  %v199_v26 = vld [vmem:[#allocation4 + $0xf0] sm:$0xff] }
 0x17c   :  { %2330 = vmatpush1.bf16.msra.mxu0 %v19567_v51  ;;  %2416 = vmatpush1.bf16.msra.mxu1 %v19570_v57  ;;  %v22933_v23 = vpop.f32.mrb[13].mxu0  ;;  %v618_v38 = vadd.f32 %v617_v18, %v193_v22  ;;  %v22942_v51 = vpop.f32.mrb[9].mxu1  ;;  %vm942_vm4 = vcmp.ge.f32.partialorder %v22945_v55, 0.0  ;;  %v1070_v20 = vmul.f32 0.2, %v22945_v55 }
 0x17d   :  { %23960 = vst [vmem:[#allocation18_spill] sm:$0xff] %v22931_v21  ;;  %2331 = vmatprep.subr.bf16.mxu0 %v19575_v60  ;;  %2417 = vmatprep.subr.bf16.mxu1 %v19578_v1  ;;  %v621_v28 = vpop.f32.mrb[14].mxu0  ;;  %v804_v57 = vpop.f32.mrb[10].mxu1  ;;  %v787_v1 = vadd.f32 %v22920_v40, %v176_v48  ;;  %v19597_v32 = vld [vmem:[#allocation6 + $0x6c0] ss:$16 sps:$4 sm:$0xff]  }
 0x17e   :  { %v22937_v33 = vpop.f32.mrb[15].mxu0  ;;  %v622_v39 = vadd.f32 %v621_v28, %v197_v24  ;;  %vm963_vm0 = vcmp.ge.f32.partialorder %v618_v38, 0.0  ;;  %v1091_v52 = vmul.f32 0.2, %v618_v38  ;;  %2359 = vmatprep.mubr.bf16.mxu0 %v1330_v49  ;;  %2445 = vmatprep.mubr.bf16.mxu1 %v1330_v49  ;;  %v805_v60 = vadd.f32 %v804_v57, %v191_v47  ;;  %v22947_v61 = vpop.f32.mrb[11].mxu1  ;;  %v209_v47 = vld [vmem:[#allocation4 + $0x140] sm:$0xff] }
 0x17f   :  { %v1074_v22 = vmul.f32 0.2, %v787_v1  ;;  %vm946_vm5 = vcmp.ge.f32.partialorder %v787_v1, 0.0  ;;  %v19605_v44 = vld [vmem:[#allocation6 + $0x6e4] ss:$16 sps:$4 sm:$0xff]   ;;  %v1198_v50 = vsel %vm942_vm4, %v22945_v55, %v1070_v20 }
 0x180   :  { %2332 = vmatpush1.bf16.msra.mxu0 %v19573_v7  ;;  %2418 = vmatpush1.bf16.msra.mxu1 %v19576_v9  ;;  %vm967_vm2 = vcmp.ge.f32.partialorder %v622_v39, 0.0  ;;  %v1219_v3 = vsel %vm963_vm0, %v618_v38, %v1091_v52  ;;  %v1095_v29 = vmul.f32 0.2, %v622_v39  ;;  %vm961_vm3 = vcmp.ge.f32.partialorder %v805_v60, 0.0  ;;  %v205_v7 = vld [vmem:[#allocation4 + $0x120] sm:$0xff] }
 0x181   :  { %2333 = vmatprep.subr.bf16.mxu0 %v19581_v12  ;;  %2419 = vmatprep.subr.bf16.mxu1 %v19584_v25  ;;  %v1089_v6 = vmul.f32 0.2, %v805_v60  ;;  %v810_v25 = vpop.f32.mrb[12].mxu1  ;;  %v213_v49 = vld [vmem:[#allocation4 + $0x160] sm:$0xff]  ;;  %v1202_v52 = vsel %vm946_vm5, %v787_v1, %v1074_v22  ;;  %v19614_v1 = vld [vmem:[#allocation6 + $0x70c] ss:$16 sps:$4 sm:$0xff]  }
 0x182   :  { %v1223_v12 = vsel %vm967_vm2, %v622_v39, %v1095_v29  ;;  %v811_v28 = vadd.f32 %v810_v25, %v195_v13  ;;  %v22963_v30 = vpop.f32.mrb[13].mxu1  ;;  %v19611_v55 = vld [vmem:[#allocation6 + $0x704] ss:$16 sps:$4 sm:$0xff]  }
 0x183   :  { %v627_v62 = vpop.f32.mrb[16].mxu0  ;;  %v1217_v17 = vsel %vm961_vm3, %v805_v60, %v1089_v6  ;;  %v22958_v18 = vpack.c.bf16 %v1223_v12, %v1219_v3  ;;  %v203_v60 = vld [vmem:[#allocation4 + $0x110] sm:$0xff]  ;;  %v190_v12 = vld [vmem:[#allocation4 + $0xa8] sm:$0xff] }
 0x184   :  { %2334 = vmatpush1.bf16.msra.mxu0 %v19579_v34  ;;  %2420 = vmatpush1.bf16.msra.mxu1 %v19582_v35  ;;  %v22951_v4 = vpop.f32.mrb[17].mxu0  ;;  %v628_v19 = vadd.f32 %v627_v62, %v201_v0  ;;  %v22961_v24 = vpack.c.bf16 %v1217_v17, %v1213_v5  ;;  %v19600_v34 = vld [vmem:[#allocation6 + $0x6c8] ss:$16 sps:$4 sm:$0xff]   ;;  %v814_v35 = vpop.f32.mrb[14].mxu1  ;;  %vm965_vm8 = vcmp.ge.f32.partialorder %v811_v28, 0.0 }
 0x185   :  { %2335 = vmatprep.subr.bf16.mxu0 %v19587_v41  ;;  %2421 = vmatprep.subr.bf16.mxu1 %v19590_v42  ;;  %v631_v9 = vpop.f32.mrb[18].mxu0  ;;  %23961 = vst [vmem:[#allocation19_spill] sm:$0xff] %v22958_v18  ;;  %v1093_v37 = vmul.f32 0.2, %v811_v28  ;;  %v815_v38 = vadd.f32 %v814_v35, %v199_v26  ;;  %v22965_v39 = vpop.f32.mrb[15].mxu1  ;;  %v614_v35 = vadd.f32 %v22925_v56, %v190_v12  ;;  %v241_v18 = vld [vmem:[#allocation4 + $0x240] sm:$0xff] }
 0x186   :  { %v22955_v40 = vpop.f32.mrb[19].mxu0  ;;  %23962 = vst [vmem:[#allocation20_spill] sm:$0xff] %v22961_v24  ;;  %v632_v27 = vadd.f32 %v631_v9, %v205_v7  ;;  %vm971_vm6 = vcmp.ge.f32.partialorder %v628_v19, 0.0  ;;  %v1099_v31 = vmul.f32 0.2, %v628_v19  ;;  %v820_v7 = vpop.f32.mrb[16].mxu1 }
 0x187   :  { %vm969_vm9 = vcmp.ge.f32.partialorder %v815_v38, 0.0  ;;  %v1097_v57 = vmul.f32 0.2, %v815_v38  ;;  %v19603_v62 = vld [vmem:[#allocation6 + $0x6e0] ss:$16 sps:$4 sm:$0xff]   ;;  %v821_v13 = vadd.f32 %v820_v7, %v203_v60  ;;  %vm960_vm15 = vcmp.ge.f32.partialorder %v614_v35, 0.0 }
 0x188   :  { %2336 = vmatpush1.bf16.msra.mxu0 %v19585_v53  ;;  %2422 = vmatpush1.bf16.msra.mxu1 %v19588_v54  ;;  %vm975_vm7 = vcmp.ge.f32.partialorder %v632_v27, 0.0  ;;  %v1103_v36 = vmul.f32 0.2, %v632_v27  ;;  %v1227_v41 = vsel %vm971_vm6, %v628_v19, %v1099_v31  ;;  %v19608_v53 = vld [vmem:[#allocation6 + $0x6ec] ss:$16 sps:$4 sm:$0xff]   ;;  %v1221_v54 = vsel %vm965_vm8, %v811_v28, %v1093_v37  ;;  %v207_v9 = vld [vmem:[#allocation4 + $0x130] sm:$0xff] }
 0x189   :  { %2337 = vmatprep.subr.bf16.mxu0 %v19593_v58  ;;  %2423 = vmatprep.subr.bf16.mxu1 %v19596_v63  ;;  %v19606_v63 = vld [vmem:[#allocation6 + $0x6e8] ss:$16 sps:$4 sm:$0xff]   ;;  %v1225_v3 = vsel %vm969_vm9, %v815_v38, %v1097_v57  ;;  %v19609_v17 = vld [vmem:[#allocation6 + $0x700] ss:$16 sps:$4 sm:$0xff]   ;;  %vm973_vm12 = vcmp.ge.f32.partialorder %v821_v13, 0.0 }
 0x18a   :  { %v1231_v45 = vsel %vm975_vm7, %v632_v27, %v1103_v36  ;;  %v22978_v6 = vpack.c.bf16 %v1225_v3, %v1221_v54  ;;  %v19612_v19 = vld [vmem:[#allocation6 + $0x708] ss:$16 sps:$4 sm:$0xff]   ;;  %v1101_v25 = vmul.f32 0.2, %v821_v13  ;;  %v217_v37 = vld [vmem:[#allocation4 + $0x180] sm:$0xff]  ;;  %v215_v57 = vld [vmem:[#allocation4 + $0x170] sm:$0xff] }
 0x18b   :  { %v637_v42 = vpop.f32.mrb[20].mxu0  ;;  %v22974_v58 = vpack.c.bf16 %v1231_v45, %v1227_v41  ;;  %v221_v41 = vld [vmem:[#allocation4 + $0x1a0] sm:$0xff]  ;;  %v19626_v56 = vld [vmem:[#allocation6 + $0x74c] ss:$16 sps:$4 sm:$0xff]   ;;  %v1088_v3 = vmul.f32 0.2, %v614_v35 }
 0x18c   :  { %2338 = vmatpush1.bf16.msra.mxu0 %v19591_v10  ;;  %2424 = vmatpush1.bf16.msra.mxu1 %v19594_v11  ;;  %v22967_v48 = vpop.f32.mrb[21].mxu0  ;;  %v638_v29 = vadd.f32 %v637_v42, %v209_v47  ;;  %23964 = vst [vmem:[#allocation22_spill] sm:$0xff] %v22978_v6  ;;  %v22980_v10 = vpack.c.bf16 %v1202_v52, %v1198_v50  ;;  %v186_v11 = vld [vmem:[#allocation4 + $0x88] sm:$0xff]  ;;  %v19615_v50 = vld [vmem:[#allocation6 + $0x720] ss:$16 sps:$4 sm:$0xff]  }
 0x18d   :  { %2339 = vmatprep.subr.bf16.mxu0 %v19599_v14  ;;  %2425 = vmatprep.subr.bf16.mxu1 %v19602_v15  ;;  %23963 = vst [vmem:[#allocation21_spill] sm:$0xff] %v22974_v58  ;;  %v641_v59 = vpop.f32.mrb[22].mxu0  ;;  %v22982_v14 = vpop.f32.mrb[17].mxu1  ;;  %v19620_v42 = vld [vmem:[#allocation6 + $0x72c] ss:$16 sps:$4 sm:$0xff]  }
 0x18e   :  { %v642_v0 = vadd.f32 %v641_v59, %v213_v49  ;;  %v22976_v5 = vpop.f32.mrb[23].mxu0  ;;  %23965 = vst [vmem:[#allocation23_spill] sm:$0xff] %v22980_v10  ;;  %vm979_vm10 = vcmp.ge.f32.partialorder %v638_v29, 0.0  ;;  %v1107_v15 = vmul.f32 0.2, %v638_v29  ;;  %v824_v20 = vpop.f32.mrb[18].mxu1 }
 0x18f   :  { %v825_v26 = vadd.f32 %v824_v20, %v207_v9  ;;  %v22984_v27 = vpop.f32.mrb[19].mxu1  ;;  %v19618_v52 = vld [vmem:[#allocation6 + $0x728] ss:$16 sps:$4 sm:$0xff]   ;;  %v19621_v9 = vld [vmem:[#allocation6 + $0x740] ss:$16 sps:$4 sm:$0xff]  }
 0x190   :  { %2340 = vmatpush1.bf16.msra.mxu0 %v19597_v32  ;;  %2426 = vmatpush1.bf16.msra.mxu1 %v19600_v34  ;;  %vm983_vm11 = vcmp.ge.f32.partialorder %v642_v0, 0.0  ;;  %v1111_v22 = vmul.f32 0.2, %v642_v0  ;;  %v1235_v28 = vsel %vm979_vm10, %v638_v29, %v1107_v15  ;;  %v19617_v32 = vld [vmem:[#allocation6 + $0x724] ss:$16 sps:$4 sm:$0xff]   ;;  %v610_v34 = vadd.f32 %v22922_v46, %v186_v11  ;;  %v214_v58 = vld [vmem:[#allocation4 + $0x168] sm:$0xff] }
 0x191   :  { %2341 = vmatprep.subr.bf16.mxu0 %v19605_v44  ;;  %2427 = vmatprep.subr.bf16.mxu1 %v19608_v53  ;;  %v1229_v44 = vsel %vm973_vm12, %v821_v13, %v1101_v25  ;;  %vm977_vm13 = vcmp.ge.f32.partialorder %v825_v26, 0.0  ;;  %v1105_v45 = vmul.f32 0.2, %v825_v26  ;;  %v211_v46 = vld [vmem:[#allocation4 + $0x150] sm:$0xff]  ;;  %v19624_v11 = vld [vmem:[#allocation6 + $0x748] ss:$16 sps:$4 sm:$0xff]  }
 0x192   :  { %v1239_v36 = vsel %vm983_vm11, %v642_v0, %v1111_v22  ;;  %v19623_v53 = vld [vmem:[#allocation6 + $0x744] ss:$16 sps:$4 sm:$0xff]   ;;  %vm956_vm14 = vcmp.ge.f32.partialorder %v610_v34, 0.0  ;;  %v830_v0 = vpop.f32.mrb[20].mxu1 }
 0x193   :  { %v647_v31 = vpop.f32.mrb[24].mxu0  ;;  %v22991_v47 = vpack.c.bf16 %v1239_v36, %v1235_v28  ;;  %v1233_v54 = vsel %vm977_vm13, %v825_v26, %v1105_v45  ;;  %v19629_v15 = vld [vmem:[#allocation6 + $0x764] ss:$16 sps:$4 sm:$0xff]   ;;  %v19632_v26 = vld [vmem:[#allocation6 + $0x76c] ss:$16 sps:$4 sm:$0xff]  }
 0x194   :  { %2342 = vmatpush1.bf16.msra.mxu0 %v19603_v62  ;;  %2428 = vmatpush1.bf16.msra.mxu1 %v19606_v63  ;;  %v22988_v38 = vpop.f32.mrb[25].mxu0  ;;  %v648_v59 = vadd.f32 %v647_v31, %v217_v37  ;;  %v1084_v63 = vmul.f32 0.2, %v610_v34  ;;  %v22995_v29 = vpack.c.bf16 %v1233_v54, %v1229_v44  ;;  %v225_v31 = vld [vmem:[#allocation4 + $0x1c0] sm:$0xff]  ;;  %v219_v54 = vld [vmem:[#allocation4 + $0x190] sm:$0xff] }
 0x195   :  { %2343 = vmatprep.subr.bf16.mxu0 %v19611_v55  ;;  %2429 = vmatprep.subr.bf16.mxu1 %v19614_v1  ;;  %23966 = vst [vmem:[#allocation24_spill] sm:$0xff] %v22991_v47  ;;  %v651_v49 = vpop.f32.mrb[26].mxu0  ;;  %v831_v55 = vadd.f32 %v830_v0, %v211_v46  ;;  %v22997_v1 = vpop.f32.mrb[21].mxu1  ;;  %v229_v36 = vld [vmem:[#allocation4 + $0x1e0] sm:$0xff]  ;;  %v198_v46 = vld [vmem:[#allocation4 + $0xe8] sm:$0xff] }
 0x196   :  { %v652_v60 = vadd.f32 %v651_v49, %v221_v41  ;;  %v22993_v62 = vpop.f32.mrb[27].mxu0  ;;  %23967 = vst [vmem:[#allocation25_spill] sm:$0xff] %v22995_v29  ;;  %vm987_vm0 = vcmp.ge.f32.partialorder %v648_v59, 0.0  ;;  %v1115_v7 = vmul.f32 0.2, %v648_v59  ;;  %v834_v12 = vpop.f32.mrb[22].mxu1  ;;  %v1212_v37 = vsel %vm956_vm14, %v610_v34, %v1084_v63 }
 0x197   :  { %vm981_vm2 = vcmp.ge.f32.partialorder %v831_v55, 0.0  ;;  %v22999_v20 = vpop.f32.mrb[23].mxu1  ;;  %v1216_v41 = vsel %vm960_vm15, %v614_v35, %v1088_v3  ;;  %v208_v29 = vld [vmem:[#allocation4 + $0x138] sm:$0xff] }
 0x198   :  { %2344 = vmatpush1.bf16.msra.mxu0 %v19609_v17  ;;  %2430 = vmatpush1.bf16.msra.mxu1 %v19612_v19  ;;  %vm991_vm1 = vcmp.ge.f32.partialorder %v652_v60, 0.0  ;;  %v1119_v13 = vmul.f32 0.2, %v652_v60  ;;  %v1109_v17 = vmul.f32 0.2, %v831_v55  ;;  %v835_v19 = vadd.f32 %v834_v12, %v215_v57  ;;  %v223_v12 = vld [vmem:[#allocation4 + $0x1b0] sm:$0xff] }
 0x199   :  { %2345 = vmatprep.subr.bf16.mxu0 %v19617_v32  ;;  %2431 = vmatprep.subr.bf16.mxu1 %v19620_v42  ;;  %v1243_v22 = vsel %vm987_vm0, %v648_v59, %v1115_v7  ;;  %v194_v42 = vld [vmem:[#allocation4 + $0xc8] sm:$0xff]  ;;  %v188_v59 = vld [vmem:[#allocation4 + $0x98] sm:$0xff]  ;;  %v840_v7 = vpop.f32.mrb[24].mxu1 }
 0x19a   :  { %v1247_v28 = vsel %vm991_vm1, %v652_v60, %v1119_v13  ;;  %v1237_v44 = vsel %vm981_vm2, %v831_v55, %v1109_v17  ;;  %vm985_vm3 = vcmp.ge.f32.partialorder %v835_v19, 0.0  ;;  %v1113_v45 = vmul.f32 0.2, %v835_v19  ;;  %v19630_v57 = vld [vmem:[#allocation6 + $0x768] ss:$16 sps:$4 sm:$0xff]  }
 0x19b   :  { %v657_v25 = vpop.f32.mrb[28].mxu0  ;;  %v23006_v49 = vpack.c.bf16 %v1247_v28, %v1243_v22  ;;  %v192_v60 = vld [vmem:[#allocation4 + $0xb8] sm:$0xff]  ;;  %v23011_v3 = vadd.f32 %v22933_v23, %v194_v42  ;;  %v23015_v13 = vpack.c.bf16 %v1216_v41, %v1212_v37  ;;  %v23018_v17 = vadd.f32 %v22937_v33, %v198_v46  ;;  %v202_v22 = vld [vmem:[#allocation4 + $0x108] sm:$0xff]  ;;  %v19633_v23 = vld [vmem:[#allocation6 + $0x780] ss:$16 sps:$4 sm:$0xff]  }
 0x19c   :  { %2346 = vmatpush1.bf16.msra.mxu0 %v19615_v50  ;;  %2432 = vmatpush1.bf16.msra.mxu1 %v19618_v52  ;;  %v23001_v32 = vpop.f32.mrb[29].mxu0  ;;  %v19627_v52 = vld [vmem:[#allocation6 + $0x760] ss:$16 sps:$4 sm:$0xff]   ;;  %v1241_v0 = vsel %vm985_vm3, %v835_v19, %v1113_v45  ;;  %v658_v34 = vadd.f32 %v657_v25, %v225_v31  ;;  %v196_v19 = vld [vmem:[#allocation4 + $0xd8] sm:$0xff]  ;;  %v23023_v31 = vadd.f32 %v22942_v51, %v188_v59  ;;  %v19641_v33 = vld [vmem:[#allocation6 + $0x7a4] ss:$16 sps:$4 sm:$0xff]  }
 0x19d   :  { %2347 = vmatprep.subr.bf16.mxu0 %v19623_v53  ;;  %2433 = vmatprep.subr.bf16.mxu1 %v19626_v56  ;;  %23968 = vst [vmem:[#allocation26_spill] sm:$0xff] %v23006_v49  ;;  %v661_v50 = vpop.f32.mrb[30].mxu0  ;;  %v19635_v53 = vld [vmem:[#allocation6 + $0x784] ss:$16 sps:$4 sm:$0xff]   ;;  %v19638_v56 = vld [vmem:[#allocation6 + $0x78c] ss:$16 sps:$4 sm:$0xff]   ;;  %v23013_v55 = vpack.c.bf16 %v1241_v0, %v1237_v44  ;;  %v23037_v46 = vadd.f32 %v22951_v4, %v202_v22 }
 0x19e   :  { %v662_v63 = vadd.f32 %v661_v50, %v229_v36  ;;  %v23008_v35 = vpop.f32.mrb[31].mxu0  ;;  %23970 = vst [vmem:[#allocation28_spill] sm:$0xff] %v23015_v13  ;;  %vm995_vm4 = vcmp.ge.f32.partialorder %v658_v34, 0.0  ;;  %v1123_v25 = vmul.f32 0.2, %v658_v34  ;;  %v23026_v36 = vadd.f32 %v22947_v61, %v192_v60  ;;  %v233_v59 = vld [vmem:[#allocation4 + $0x200] sm:$0xff] }
 0x19f   :  { %23969 = vst [vmem:[#allocation27_spill] sm:$0xff] %v23013_v55  ;;  %v19636_v28 = vld [vmem:[#allocation6 + $0x788] ss:$16 sps:$4 sm:$0xff]   ;;  %v19644_v37 = vld [vmem:[#allocation6 + $0x7ac] ss:$16 sps:$4 sm:$0xff]   ;;  %v23034_v61 = vadd.f32 %v22963_v30, %v196_v19  ;;  %v237_v0 = vld [vmem:[#allocation4 + $0x220] sm:$0xff] }
 0x1a0   :  { %2348 = vmatpush1.bf16.msra.mxu0 %v19621_v9  ;;  %2434 = vmatpush1.bf16.msra.mxu1 %v19624_v11  ;;  %v841_v9 = vadd.f32 %v840_v7, %v219_v54  ;;  %v23020_v11 = vpop.f32.mrb[25].mxu1  ;;  %vm999_vm5 = vcmp.ge.f32.partialorder %v662_v63, 0.0  ;;  %v1251_v45 = vsel %vm995_vm4, %v658_v34, %v1123_v25  ;;  %v23031_v51 = vmul.f32 0.2, %v23011_v3  ;;  %v200_v34 = vld [vmem:[#allocation4 + $0xf8] sm:$0xff]  ;;  %v206_v7 = vld [vmem:[#allocation4 + $0x128] sm:$0xff] }
 0x1a1   :  { %2349 = vmatprep.subr.bf16.mxu0 %v19629_v15  ;;  %2435 = vmatprep.subr.bf16.mxu1 %v19632_v26  ;;  %v844_v15 = vpop.f32.mrb[26].mxu1  ;;  %v1127_v26 = vmul.f32 0.2, %v662_v63  ;;  %v19639_v19 = vld [vmem:[#allocation6 + $0x7a0] ss:$16 sps:$4 sm:$0xff]   ;;  %v23056_v49 = vadd.f32 %v22965_v39, %v200_v34  ;;  %v23062_v47 = vadd.f32 %v22955_v40, %v206_v7  ;;  %vm958_vm12 = vcmp.ge.f32.partialorder %v23023_v31, 0.0 }
 0x1a2   :  { %vm989_vm6 = vcmp.ge.f32.partialorder %v841_v9, 0.0  ;;  %v1117_v41 = vmul.f32 0.2, %v841_v9  ;;  %v845_v42 = vadd.f32 %v844_v15, %v223_v12  ;;  %v23028_v44 = vpop.f32.mrb[27].mxu1  ;;  %v19642_v25 = vld [vmem:[#allocation6 + $0x7a8] ss:$16 sps:$4 sm:$0xff]  }
 0x1a3   :  { %v667_v50 = vpop.f32.mrb[32].mxu0  ;;  %v1255_v54 = vsel %vm999_vm5, %v662_v63, %v1127_v26  ;;  %v23045_v4 = vmul.f32 0.2, %v23023_v31  ;;  %v23048_v63 = vmul.f32 0.2, %v23026_v36  ;;  %v227_v22 = vld [vmem:[#allocation4 + $0x1d0] sm:$0xff] }
 0x1a4   :  { %2350 = vmatpush1.bf16.msra.mxu0 %v19627_v52  ;;  %2436 = vmatpush1.bf16.msra.mxu1 %v19630_v57  ;;  %v23039_v60 = vpop.f32.mrb[33].mxu0  ;;  %v1245_v52 = vsel %vm989_vm6, %v841_v9, %v1117_v41  ;;  %vm993_vm7 = vcmp.ge.f32.partialorder %v845_v42, 0.0  ;;  %v1121_v57 = vmul.f32 0.2, %v845_v42  ;;  %v23042_v12 = vpack.c.bf16 %v1255_v54, %v1251_v45  ;;  %v204_v9 = vld [vmem:[#allocation4 + $0x118] sm:$0xff]  ;;  %v210_v26 = vld [vmem:[#allocation4 + $0x148] sm:$0xff] }
 0x1a5   :  { %2351 = vmatprep.subr.bf16.mxu0 %v19635_v53  ;;  %2437 = vmatprep.subr.bf16.mxu1 %v19638_v56  ;;  %v671_v30 = vpop.f32.mrb[34].mxu0  ;;  %v19647_v53 = vld [vmem:[#allocation6 + $0x7c4] ss:$16 sps:$4 sm:$0xff]   ;;  %v19650_v56 = vld [vmem:[#allocation6 + $0x7cc] ss:$16 sps:$4 sm:$0xff]   ;;  %v668_v45 = vadd.f32 %v667_v50, %v233_v59  ;;  %v23072_v40 = vadd.f32 %v22982_v14, %v204_v9  ;;  %v23075_v7 = vadd.f32 %v22967_v48, %v210_v26  ;;  %vm962_vm1 = vcmp.ge.f32.partialorder %v23026_v36, 0.0 }
 0x1a6   :  { %23971 = vst [vmem:[#allocation29_spill] sm:$0xff] %v23042_v12  ;;  %v23051_v15 = vmul.f32 0.2, %v23018_v17  ;;  %v1249_v41 = vsel %vm993_vm7, %v845_v42, %v1121_v57  ;;  %v672_v54 = vadd.f32 %v671_v30, %v237_v0  ;;  %v23053_v12 = vpop.f32.mrb[35].mxu0  ;;  %v23059_v55 = vmul.f32 0.2, %v23037_v46 }
 0x1a7   :  { %v23064_v6 = vpack.c.bf16 %v1249_v41, %v1245_v52  ;;  %v850_v42 = vpop.f32.mrb[28].mxu1  ;;  %v231_v50 = vld [vmem:[#allocation4 + $0x1f0] sm:$0xff]  ;;  %vm1003_vm8 = vcmp.ge.f32.partialorder %v668_v45, 0.0  ;;  %v1131_v59 = vmul.f32 0.2, %v668_v45  ;;  %v23083_v48 = vadd.f32 %v22984_v27, %v208_v29 }
 0x1a8   :  { %2352 = vmatpush1.bf16.msra.mxu0 %v19633_v23  ;;  %2438 = vmatpush1.bf16.msra.mxu1 %v19636_v28  ;;  %v23067_v23 = vmul.f32 0.2, %v23034_v61  ;;  %v851_v28 = vadd.f32 %v850_v42, %v227_v22  ;;  %v23069_v39 = vpop.f32.mrb[29].mxu1  ;;  %v19645_v0 = vld [vmem:[#allocation6 + $0x7c0] ss:$16 sps:$4 sm:$0xff]   ;;  %vm1007_vm9 = vcmp.ge.f32.partialorder %v672_v54, 0.0  ;;  %v23086_v9 = vadd.f32 %v22976_v5, %v214_v58 }
 0x1a9   :  { %23972 = vst [vmem:[#allocation30_spill] sm:$0xff] %v23064_v6  ;;  %2353 = vmatprep.subr.bf16.mxu0 %v19641_v33  ;;  %2439 = vmatprep.subr.bf16.mxu1 %v19644_v37  ;;  %v19648_v34 = vld [vmem:[#allocation6 + $0x7c8] ss:$16 sps:$4 sm:$0xff]   ;;  %v854_v52 = vpop.f32.mrb[30].mxu1  ;;  %v1135_v33 = vmul.f32 0.2, %v672_v54  ;;  %v1259_v42 = vsel %vm1003_vm8, %v668_v45, %v1131_v59 }
 0x1aa   :  { %v19653_v37 = vld [vmem:[#allocation6 + $0x7e4] ss:$16 sps:$4 sm:$0xff]   ;;  %v19656_v57 = vld [vmem:[#allocation6 + $0x7ec] ss:$16 sps:$4 sm:$0xff]   ;;  %vm997_vm10 = vcmp.ge.f32.partialorder %v851_v28, 0.0  ;;  %v855_v22 = vadd.f32 %v854_v52, %v231_v50  ;;  %v23077_v41 = vpop.f32.mrb[31].mxu1 }
 0x1ab   :  { %v1125_v30 = vmul.f32 0.2, %v851_v28  ;;  %v677_v6 = vpop.f32.mrb[36].mxu0  ;;  %v23080_v14 = vmul.f32 0.2, %v23056_v49  ;;  %v1263_v26 = vsel %vm1007_vm9, %v672_v54, %v1135_v33  ;;  %v245_v50 = vld [vmem:[#allocation4 + $0x260] sm:$0xff] }
 0x1ac   :  { %2354 = vmatpush1.bf16.msra.mxu0 %v19639_v19  ;;  %2440 = vmatpush1.bf16.msra.mxu1 %v19642_v25  ;;  %v23088_v24 = vpop.f32.mrb[37].mxu0  ;;  %v218_v45 = vld [vmem:[#allocation4 + $0x188] sm:$0xff]  ;;  %vm1001_vm11 = vcmp.ge.f32.partialorder %v855_v22, 0.0  ;;  %v1129_v25 = vmul.f32 0.2, %v855_v22  ;;  %v23091_v59 = vpack.c.bf16 %v1263_v26, %v1259_v42  ;;  %v235_v33 = vld [vmem:[#allocation4 + $0x210] sm:$0xff] }
 0x1ad   :  { %2355 = vmatprep.subr.bf16.mxu0 %v19647_v53  ;;  %2441 = vmatprep.subr.bf16.mxu1 %v19650_v56  ;;  %v1253_v19 = vsel %vm997_vm10, %v851_v28, %v1125_v30  ;;  %v681_v52 = vpop.f32.mrb[38].mxu0  ;;  %v19651_v27 = vld [vmem:[#allocation6 + $0x7e0] ss:$16 sps:$4 sm:$0xff]   ;;  %v19654_v29 = vld [vmem:[#allocation6 + $0x7e8] ss:$16 sps:$4 sm:$0xff]   ;;  %v23113_v8 = vadd.f32 %v22988_v38, %v218_v45  ;;  %vm964_vm6 = vcmp.ge.f32.partialorder %v23011_v3, 0.0 }
 0x1ae   :  { %23973 = vst [vmem:[#allocation31_spill] sm:$0xff] %v23091_v59  ;;  %v23094_v58 = vmul.f32 0.2, %v23062_v47  ;;  %v23097_v5 = vmul.f32 0.2, %v23075_v7  ;;  %v222_v54 = vld [vmem:[#allocation4 + $0x1a8] sm:$0xff]  ;;  %v1257_v26 = vsel %vm1001_vm11, %v855_v22, %v1129_v25  ;;  %v678_v59 = vadd.f32 %v677_v6, %v241_v18 }
 0x1af   :  { %v19659_v53 = vld [vmem:[#allocation6 + $0x4] ss:$16 sps:$4 sm:$0xff]   ;;  %v19662_v56 = vld [vmem:[#allocation6 + $0xc] ss:$16 sps:$4 sm:$0xff]   ;;  %v23101_v28 = vmul.f32 0.2, %v23072_v40  ;;  %v682_v21 = vadd.f32 %v681_v52, %v245_v50  ;;  %v23118_v18 = vadd.f32 %v22993_v62, %v222_v54 }
 0x1b0   :  { %23974 = vst [vmem:[#allocation32_spill] sm:$0xff] %v23094_v58  ;;  %23975 = vst [vmem:[#allocation33_spill] sm:$0xff] %v23097_v5  ;;  %v212_v30 = vld [vmem:[#allocation4 + $0x158] sm:$0xff]  ;;  %v23104_v13 = vpop.f32.mrb[39].mxu0  ;;  %2356 = vmatpush1.bf16.msra.mxu0 %v19645_v0  ;;  %2442 = vmatpush1.bf16.msra.mxu1 %v19648_v34  ;;  %v23107_v2 = vmul.f32 0.2, %v23083_v48  ;;  %v23115_v5 = vpack.c.bf16 %v1257_v26, %v1253_v19 }
 0x1b1   :  { %23976 = vst [vmem:[#allocation34_spill] sm:$0xff] %v23101_v28  ;;  %v216_v42 = vld [vmem:[#allocation4 + $0x178] sm:$0xff]  ;;  %v23110_v10 = vmul.f32 0.2, %v23086_v9  ;;  %v860_v28 = vpop.f32.mrb[32].mxu1  ;;  %v239_v58 = vld [vmem:[#allocation4 + $0x230] sm:$0xff]  ;;  %2357 = vmatprep.subr.bf16.mxu0 %v19653_v37  ;;  %2443 = vmatprep.subr.bf16.mxu1 %v19656_v57  ;;  %v23123_v38 = vadd.f32 %v22997_v1, %v212_v30 }
 0x1b2   :  { %23977 = vst [vmem:[#allocation35_spill] sm:$0xff] %v23107_v2  ;;  %23979 = vst [vmem:[#allocation37_spill] sm:$0xff] %v23115_v5  ;;  %v220_v6 = vld [vmem:[#allocation4 + $0x198] sm:$0xff]  ;;  %v226_v0 = vld [vmem:[#allocation4 + $0x1c8] sm:$0xff]  ;;  %v861_v34 = vadd.f32 %v860_v28, %v235_v33  ;;  %v23120_v22 = vpop.f32.mrb[33].mxu1  ;;  %vm1011_vm13 = vcmp.ge.f32.partialorder %v678_v59, 0.0  ;;  %v23126_v45 = vadd.f32 %v22999_v20, %v216_v42 }
 0x1b3   :  { %23978 = vst [vmem:[#allocation36_spill] sm:$0xff] %v23110_v10  ;;  %v1139_v50 = vmul.f32 0.2, %v678_v59  ;;  %v19657_v25 = vld [vmem:[#allocation6] ss:$16 sps:$4 sm:$0xff]   ;;  %v864_v19 = vpop.f32.mrb[34].mxu1  ;;  %v23134_v20 = vadd.f32 %v23020_v11, %v220_v6  ;;  %v23137_v30 = vadd.f32 %v23001_v32, %v226_v0 }
 0x1b4   :  { %vm1015_vm14 = vcmp.ge.f32.partialorder %v682_v21, 0.0  ;;  %v1143_v37 = vmul.f32 0.2, %v682_v21  ;;  %v19660_v57 = vld [vmem:[#allocation6 + $0x8] ss:$16 sps:$4 sm:$0xff]   ;;  %vm1005_vm15 = vcmp.ge.f32.partialorder %v861_v34, 0.0  ;;  %v865_v52 = vadd.f32 %v864_v19, %v239_v58  ;;  %2358 = vmatpush1.bf16.msra.mxu0 %v19651_v27  ;;  %2444 = vmatpush1.bf16.msra.mxu1 %v19654_v29 }
 0x1b5   :  { %v1133_v62 = vmul.f32 0.2, %v861_v34  ;;  %v23128_v54 = vpop.f32.mrb[35].mxu1  ;;  %v1267_v33 = vsel %vm1011_vm13, %v678_v59, %v1139_v50  ;;  %v687_v28 = vpop.f32.mrb[40].mxu0  ;;  %v19665_v26 = vld [vmem:[#allocation6 + $0x24] ss:$16 sps:$4 sm:$0xff]   ;;  %3096 = vmatprep.subr.bf16.mxu0 %v19659_v53  ;;  %3182 = vmatprep.subr.bf16.mxu1 %v19662_v56 }
 0x1b6   :  { %v19668_v5 = vld [vmem:[#allocation6 + $0x2c] ss:$16 sps:$4 sm:$0xff]   ;;  %v23131_v1 = vmul.f32 0.2, %v23113_v8  ;;  %23981 = vst [vmem:[#allocation39_spill] sm:$0xff] %v23134_v20  ;;  %23982 = vst [vmem:[#allocation40_spill] sm:$0xff] %v23137_v30  ;;  %v1271_v58 = vsel %vm1015_vm14, %v682_v21, %v1143_v37 }
 0x1b7   :  { %v230_v42 = vld [vmem:[#allocation4 + $0x1e8] sm:$0xff]  ;;  %v249_v19 = vld [vmem:[#allocation4 + $0x280] sm:$0xff]  ;;  %v23140_v10 = vpop.f32.mrb[41].mxu0  ;;  %v224_v59 = vld [vmem:[#allocation4 + $0x1b8] sm:$0xff]  ;;  %v1261_v27 = vsel %vm1005_vm15, %v861_v34, %v1133_v62  ;;  %vm1009_vm0 = vcmp.ge.f32.partialorder %v865_v52, 0.0  ;;  %v23143_v50 = vpack.c.bf16 %v1271_v58, %v1267_v33  ;;  %2360 = vmatmul.mubr.bf16.vlgmr.msra.gmra.mrb[64].mxu0 %v22939_v43  ;;  %2446 = vmatmul.mubr.bf16.vlgmr.msra.gmra.mrb[64].mxu1 %v22939_v43  ;;  %vm968_vm7 = vcmp.ge.f32.partialorder %v23018_v17, 0.0 }
 0x1b8   :  { %23980 = vst [vmem:[#allocation38_spill] sm:$0xff] %v23131_v1  ;;  %v1137_v29 = vmul.f32 0.2, %v865_v52  ;;  %v253_v11 = vld [vmem:[#allocation4 + $0x2a0] sm:$0xff]  ;;  %v691_v6 = vpop.f32.mrb[42].mxu0  ;;  %v243_v53 = vld [vmem:[#allocation4 + $0x250] sm:$0xff]  ;;  %v23158_v37 = vadd.f32 %v23008_v35, %v230_v42  ;;  %v688_v58 = vadd.f32 %v687_v28, %v249_v19  ;;  %3097 = vmatpush1.bf16.msra.mxu0 %v19657_v25  ;;  %3128 = vmatprep.mubr.bf16.mxu0 %v22916_v16 }
 0x1b9   :  { %23983 = vst [vmem:[#allocation41_spill] sm:$0xff] %v23143_v50  ;;  %v19663_v1 = vld [vmem:[#allocation6 + $0x20] ss:$16 sps:$4 sm:$0xff]   ;;  %v23147_v32 = vmul.f32 0.2, %v23123_v38  ;;  %v234_v62 = vld [vmem:[#allocation4 + $0x208] sm:$0xff]  ;;  %v692_v42 = vadd.f32 %v691_v6, %v253_v11  ;;  %3183 = vmatpush1.bf16.msra.mxu1 %v19660_v57  ;;  %3214 = vmatprep.mubr.bf16.mxu1 %v22916_v16 }
 0x1ba   :  { %v23150_v21 = vmul.f32 0.2, %v23126_v45  ;;  %v19666_v56 = vld [vmem:[#allocation6 + $0x28] ss:$16 sps:$4 sm:$0xff]   ;;  %v19671_v0 = vld [vmem:[#allocation6 + $0x44] ss:$16 sps:$4 sm:$0xff]   ;;  %v1265_v33 = vsel %vm1009_vm0, %v865_v52, %v1137_v29  ;;  %v23174_v52 = vadd.f32 %v23028_v44, %v224_v59  ;;  %3098 = vmatprep.subr.bf16.mxu0 %v19665_v26  ;;  %3184 = vmatprep.subr.bf16.mxu1 %v19668_v5  ;;  %v1214_v44 = vsel %vm958_vm12, %v23023_v31, %v23045_v4 }
 0x1bb   :  { %23984 = vst [vmem:[#allocation42_spill] sm:$0xff] %v23147_v32  ;;  %v23155_v34 = vmul.f32 0.2, %v23118_v18  ;;  %23987 = vst [vmem:[#allocation45_spill] sm:$0xff] %v23158_v37  ;;  %v23161_v50 = vpop.f32.mrb[43].mxu0  ;;  %v23170_v32 = vpack.c.bf16 %v1265_v33, %v1261_v27  ;;  %v247_v35 = vld [vmem:[#allocation4 + $0x270] sm:$0xff] }
 0x1bc   :  { %23985 = vst [vmem:[#allocation43_spill] sm:$0xff] %v23150_v21  ;;  %v23165_v21 = vmul.f32 0.2, %v23134_v20  ;;  %v23168_v43 = vmul.f32 0.2, %v23137_v30  ;;  %23991 = vst [vmem:[#allocation49_spill] sm:$0xff] %v23174_v52  ;;  %3099 = vmatpush1.bf16.msra.mxu0 %v19663_v1 }
 0x1bd   :  { %23986 = vst [vmem:[#allocation44_spill] sm:$0xff] %v23155_v34  ;;  %23990 = vst [vmem:[#allocation48_spill] sm:$0xff] %v23170_v32  ;;  %v870_v34 = vpop.f32.mrb[36].mxu1  ;;  %v228_v25 = vld [vmem:[#allocation4 + $0x1d8] sm:$0xff]  ;;  %vm1019_vm2 = vcmp.ge.f32.partialorder %v688_v58, 0.0  ;;  %v23179_v32 = vadd.f32 %v23039_v60, %v234_v62  ;;  %vm1023_vm3 = vcmp.ge.f32.partialorder %v692_v42, 0.0  ;;  %3185 = vmatpush1.bf16.msra.mxu1 %v19666_v56  ;;  %3100 = vmatprep.subr.bf16.mxu0 %v19671_v0 }
 0x1be   :  { %23988 = vst [vmem:[#allocation46_spill] sm:$0xff] %v23165_v21  ;;  %23989 = vst [vmem:[#allocation47_spill] sm:$0xff] %v23168_v43  ;;  %v232_v28 = vld [vmem:[#allocation4 + $0x1f8] sm:$0xff]  ;;  %v871_v19 = vadd.f32 %v870_v34, %v243_v53  ;;  %v23176_v29 = vpop.f32.mrb[37].mxu1  ;;  %v1147_v21 = vmul.f32 0.2, %v688_v58  ;;  %v23189_v60 = vadd.f32 %v23069_v39, %v228_v25 }
 0x1bf   :  { %v19669_v27 = vld [vmem:[#allocation6 + $0x40] ss:$16 sps:$4 sm:$0xff]   ;;  %v19674_v33 = vld [vmem:[#allocation6 + $0x4c] ss:$16 sps:$4 sm:$0xff]   ;;  %v874_v57 = vpop.f32.mrb[38].mxu1  ;;  %v697_v34 = vpop.f32.mrb[44].mxu0  ;;  %v23192_v62 = vadd.f32 %v23077_v41, %v232_v28 }
 0x1c0   :  { %v1151_v16 = vmul.f32 0.2, %v692_v42  ;;  %v19672_v59 = vld [vmem:[#allocation6 + $0x48] ss:$16 sps:$4 sm:$0xff]   ;;  %v19677_v11 = vld [vmem:[#allocation6 + $0x64] ss:$16 sps:$4 sm:$0xff]   ;;  %v875_v53 = vadd.f32 %v874_v57, %v247_v35  ;;  %v1275_v5 = vsel %vm1019_vm2, %v688_v58, %v1147_v21  ;;  %v1218_v35 = vsel %vm962_vm1, %v23026_v36, %v23048_v63  ;;  %3186 = vmatprep.subr.bf16.mxu1 %v19674_v33  ;;  %3101 = vmatpush1.bf16.msra.mxu0 %v19669_v27 }
 0x1c1   :  { %vm1013_vm4 = vcmp.ge.f32.partialorder %v871_v19, 0.0  ;;  %v1141_v6 = vmul.f32 0.2, %v871_v19  ;;  %v23185_v26 = vpop.f32.mrb[39].mxu1  ;;  %v238_v43 = vld [vmem:[#allocation4 + $0x228] sm:$0xff]  ;;  %v257_v31 = vld [vmem:[#allocation4 + $0x2c0] sm:$0xff]  ;;  %v23223_v2 = vpack.c.bf16 %v1218_v35, %v1214_v44  ;;  %3187 = vmatpush1.bf16.msra.mxu1 %v19672_v59  ;;  %3102 = vmatprep.subr.bf16.mxu0 %v19677_v11 }
 0x1c2   :  { %v1279_v30 = vsel %vm1023_vm3, %v692_v42, %v1151_v16  ;;  %v23194_v4 = vpop.f32.mrb[45].mxu0  ;;  %v261_v20 = vld [vmem:[#allocation4 + $0x2e0] sm:$0xff]  ;;  %v19680_v1 = vld [vmem:[#allocation6 + $0x6c] ss:$16 sps:$4 sm:$0xff]   ;;  %vm1017_vm5 = vcmp.ge.f32.partialorder %v875_v53, 0.0  ;;  %v251_v36 = vld [vmem:[#allocation4 + $0x290] sm:$0xff]  ;;  %v23210_v0 = vadd.f32 %v23053_v12, %v238_v43 }
 0x1c3   :  { %v1269_v39 = vsel %vm1013_vm4, %v871_v19, %v1141_v6  ;;  %v1145_v21 = vmul.f32 0.2, %v875_v53  ;;  %v23201_v41 = vpack.c.bf16 %v1279_v30, %v1275_v5  ;;  %v701_v58 = vpop.f32.mrb[46].mxu0  ;;  %v19675_v42 = vld [vmem:[#allocation6 + $0x60] ss:$16 sps:$4 sm:$0xff]   ;;  %v236_v57 = vld [vmem:[#allocation4 + $0x218] sm:$0xff]  ;;  %v698_v5 = vadd.f32 %v697_v34, %v257_v31  ;;  %3188 = vmatprep.subr.bf16.mxu1 %v19680_v1 }
 0x1c4   :  { %v23204_v25 = vmul.f32 0.2, %v23174_v52  ;;  %v23207_v28 = vmul.f32 0.2, %v23158_v37  ;;  %v19678_v63 = vld [vmem:[#allocation6 + $0x68] ss:$16 sps:$4 sm:$0xff]   ;;  %v23234_v59 = vadd.f32 %v23120_v22, %v236_v57  ;;  %3103 = vmatpush1.bf16.msra.mxu0 %v19675_v42 }
 0x1c5   :  { %23992 = vst [vmem:[#allocation50_spill] sm:$0xff] %v23201_v41  ;;  %v19683_v56 = vld [vmem:[#allocation6 + $0x84] ss:$16 sps:$4 sm:$0xff]   ;;  %v240_v19 = vld [vmem:[#allocation4 + $0x238] sm:$0xff]  ;;  %v242_v16 = vld [vmem:[#allocation4 + $0x248] sm:$0xff]  ;;  %v1273_v6 = vsel %vm1017_vm5, %v875_v53, %v1145_v21  ;;  %v702_v41 = vadd.f32 %v701_v58, %v261_v20  ;;  %v23213_v52 = vpop.f32.mrb[47].mxu0  ;;  %3189 = vmatpush1.bf16.msra.mxu1 %v19678_v63 }
 0x1c6   :  { %23993 = vst [vmem:[#allocation51_spill] sm:$0xff] %v23204_v25  ;;  %23994 = vst [vmem:[#allocation52_spill] sm:$0xff] %v23207_v28  ;;  %v246_v30 = vld [vmem:[#allocation4 + $0x268] sm:$0xff]  ;;  %v23216_v28 = vmul.f32 0.2, %v23189_v60  ;;  %v23221_v37 = vpack.c.bf16 %v1273_v6, %v1269_v39  ;;  %v880_v12 = vpop.f32.mrb[40].mxu1  ;;  %v23237_v11 = vadd.f32 %v23088_v24, %v242_v16  ;;  %v23243_v57 = vadd.f32 %v23128_v54, %v240_v19 }
 0x1c7   :  { %v250_v33 = vld [vmem:[#allocation4 + $0x288] sm:$0xff]  ;;  %v23219_v25 = vmul.f32 0.2, %v23179_v32  ;;  %v255_v43 = vld [vmem:[#allocation4 + $0x2b0] sm:$0xff]  ;;  %23998 = vst [vmem:[#allocation56_spill] sm:$0xff] %v23223_v2  ;;  %vm966_vm8 = vcmp.ge.f32.partialorder %v23034_v61, 0.0  ;;  %v881_v27 = vadd.f32 %v880_v12, %v251_v36  ;;  %v23246_v24 = vadd.f32 %v23104_v13, %v246_v30  ;;  %3104 = vmatprep.subr.bf16.mxu0 %v19683_v56 }
 0x1c8   :  { %23995 = vst [vmem:[#allocation53_spill] sm:$0xff] %v23216_v28  ;;  %23997 = vst [vmem:[#allocation55_spill] sm:$0xff] %v23221_v37  ;;  %v23229_v20 = vmul.f32 0.2, %v23192_v62  ;;  %v23231_v53 = vpop.f32.mrb[41].mxu1  ;;  %vm1027_vm9 = vcmp.ge.f32.partialorder %v698_v5, 0.0  ;;  %v23249_v16 = vadd.f32 %v23140_v10, %v250_v33 }
 0x1c9   :  { %23996 = vst [vmem:[#allocation54_spill] sm:$0xff] %v23219_v25  ;;  %v1155_v34 = vmul.f32 0.2, %v698_v5  ;;  %v19681_v31 = vld [vmem:[#allocation6 + $0x80] ss:$16 sps:$4 sm:$0xff]   ;;  %v884_v35 = vpop.f32.mrb[42].mxu1 }
 0x1ca   :  { %23999 = vst [vmem:[#allocation57_spill] sm:$0xff] %v23229_v20  ;;  %v19686_v44 = vld [vmem:[#allocation6 + $0x8c] ss:$16 sps:$4 sm:$0xff]   ;;  %vm1031_vm10 = vcmp.ge.f32.partialorder %v702_v41, 0.0  ;;  %v1159_v39 = vmul.f32 0.2, %v702_v41  ;;  %v885_v12 = vadd.f32 %v884_v35, %v255_v43  ;;  %3105 = vmatpush1.bf16.msra.mxu0 %v19681_v31 }
 0x1cb   :  { %v19684_v21 = vld [vmem:[#allocation6 + $0x88] ss:$16 sps:$4 sm:$0xff]   ;;  %v19689_v58 = vld [vmem:[#allocation6 + $0xa4] ss:$16 sps:$4 sm:$0xff]   ;;  %vm1021_vm11 = vcmp.ge.f32.partialorder %v881_v27, 0.0  ;;  %v23239_v37 = vpop.f32.mrb[43].mxu1  ;;  %v1283_v1 = vsel %vm1027_vm9, %v698_v5, %v1155_v34  ;;  %3190 = vmatprep.subr.bf16.mxu1 %v19686_v44 }
 0x1cc   :  { %v244_v6 = vld [vmem:[#allocation4 + $0x258] sm:$0xff]  ;;  %v1149_v36 = vmul.f32 0.2, %v881_v27  ;;  %v707_v2 = vpop.f32.mrb[48].mxu0  ;;  %v1287_v25 = vsel %vm1031_vm10, %v702_v41, %v1159_v39  ;;  %v265_v20 = vld [vmem:[#allocation4 + $0x300] sm:$0xff]  ;;  %v254_v5 = vld [vmem:[#allocation4 + $0x2a8] sm:$0xff]  ;;  %3191 = vmatpush1.bf16.msra.mxu1 %v19684_v21  ;;  %3106 = vmatprep.subr.bf16.mxu0 %v19689_v58 }
 0x1cd   :  { %v19692_v22 = vld [vmem:[#allocation6 + $0xac] ss:$16 sps:$4 sm:$0xff]   ;;  %v23252_v43 = vpop.f32.mrb[49].mxu0  ;;  %v269_v35 = vld [vmem:[#allocation4 + $0x320] sm:$0xff]  ;;  %vm1025_vm12 = vcmp.ge.f32.partialorder %v885_v12, 0.0  ;;  %v23255_v19 = vpack.c.bf16 %v1287_v25, %v1283_v1  ;;  %vm970_vm13 = vcmp.ge.f32.partialorder %v23056_v49, 0.0  ;;  %v23265_v63 = vadd.f32 %v23176_v29, %v244_v6 }
 0x1ce   :  { %v1277_v42 = vsel %vm1021_vm11, %v881_v27, %v1149_v36  ;;  %v1153_v54 = vmul.f32 0.2, %v885_v12  ;;  %v711_v13 = vpop.f32.mrb[50].mxu0  ;;  %v19687_v30 = vld [vmem:[#allocation6 + $0xa0] ss:$16 sps:$4 sm:$0xff]   ;;  %vm972_vm14 = vcmp.ge.f32.partialorder %v23037_v46, 0.0  ;;  %v708_v39 = vadd.f32 %v707_v2, %v265_v20  ;;  %3192 = vmatprep.subr.bf16.mxu1 %v19692_v22 }
 0x1cf   :  { %24000 = vst [vmem:[#allocation58_spill] sm:$0xff] %v23255_v19  ;;  %v23259_v10 = vmul.f32 0.2, %v23210_v0  ;;  %v23262_v41 = vmul.f32 0.2, %v23237_v11  ;;  %v259_v56 = vld [vmem:[#allocation4 + $0x2d0] sm:$0xff]  ;;  %v712_v36 = vadd.f32 %v711_v13, %v269_v35  ;;  %3107 = vmatpush1.bf16.msra.mxu0 %v19687_v30 }
 0x1d0   :  { %v19690_v33 = vld [vmem:[#allocation6 + $0xa8] ss:$16 sps:$4 sm:$0xff]   ;;  %v19695_v27 = vld [vmem:[#allocation6 + $0xc4] ss:$16 sps:$4 sm:$0xff]   ;;  %v23269_v25 = vmul.f32 0.2, %v23234_v59  ;;  %v1281_v44 = vsel %vm1025_vm12, %v885_v12, %v1153_v54 }
 0x1d1   :  { %24001 = vst [vmem:[#allocation59_spill] sm:$0xff] %v23259_v10  ;;  %24002 = vst [vmem:[#allocation60_spill] sm:$0xff] %v23262_v41  ;;  %v248_v34 = vld [vmem:[#allocation4 + $0x278] sm:$0xff]  ;;  %v23272_v1 = vpop.f32.mrb[51].mxu0  ;;  %v23275_v29 = vmul.f32 0.2, %v23243_v57  ;;  %v23281_v41 = vadd.f32 %v23161_v50, %v254_v5  ;;  %v23283_v10 = vpack.c.bf16 %v1281_v44, %v1277_v42  ;;  %3193 = vmatpush1.bf16.msra.mxu1 %v19690_v33  ;;  %3108 = vmatprep.subr.bf16.mxu0 %v19695_v27 }
 0x1d2   :  { %24003 = vst [vmem:[#allocation61_spill] sm:$0xff] %v23269_v25  ;;  %v19698_v19 = vld [vmem:[#allocation6 + $0xcc] ss:$16 sps:$4 sm:$0xff]   ;;  %v23278_v6 = vmul.f32 0.2, %v23246_v24  ;;  %v890_v25 = vpop.f32.mrb[44].mxu1  ;;  %v23294_v50 = vadd.f32 %v23185_v26, %v248_v34  ;;  %v1220_v26 = vsel %vm964_vm6, %v23011_v3, %v23031_v51  ;;  %v1224_v34 = vsel %vm968_vm7, %v23018_v17, %v23051_v15 }
 0x1d3   :  { %24005 = vst [vmem:[#allocation63_spill] sm:$0xff] %v23283_v10  ;;  %v263_v28 = vld [vmem:[#allocation4 + $0x2f0] sm:$0xff]  ;;  %v23286_v2 = vmul.f32 0.2, %v23249_v16  ;;  %v891_v20 = vadd.f32 %v890_v25, %v259_v56  ;;  %v23288_v31 = vpop.f32.mrb[45].mxu1  ;;  %vm1035_vm15 = vcmp.ge.f32.partialorder %v708_v39, 0.0  ;;  %3194 = vmatprep.subr.bf16.mxu1 %v19698_v19 }
 0x1d4   :  { %24004 = vst [vmem:[#allocation62_spill] sm:$0xff] %v23278_v6  ;;  %v1163_v12 = vmul.f32 0.2, %v708_v39  ;;  %v19693_v35 = vld [vmem:[#allocation6 + $0xc0] ss:$16 sps:$4 sm:$0xff]   ;;  %v894_v42 = vpop.f32.mrb[46].mxu1 }
 0x1d5   :  { %24006 = vst [vmem:[#allocation64_spill] sm:$0xff] %v23286_v2  ;;  %v23291_v54 = vmul.f32 0.2, %v23265_v63  ;;  %vm1039_vm0 = vcmp.ge.f32.partialorder %v712_v36, 0.0  ;;  %v1167_v21 = vmul.f32 0.2, %v712_v36  ;;  %v895_v56 = vadd.f32 %v894_v42, %v263_v28  ;;  %3109 = vmatpush1.bf16.msra.mxu0 %v19693_v35 }
 0x1d6   :  { %v19696_v58 = vld [vmem:[#allocation6 + $0xc8] ss:$16 sps:$4 sm:$0xff]   ;;  %vm1029_vm1 = vcmp.ge.f32.partialorder %v891_v20, 0.0  ;;  %v1157_v13 = vmul.f32 0.2, %v891_v20  ;;  %v23296_v25 = vpop.f32.mrb[47].mxu1  ;;  %v1291_v44 = vsel %vm1035_vm15, %v708_v39, %v1163_v12  ;;  %v1222_v28 = vsel %vm966_vm8, %v23034_v61, %v23067_v23 }
 0x1d7   :  { %24007 = vst [vmem:[#allocation65_spill] sm:$0xff] %v23291_v54  ;;  %v258_v5 = vld [vmem:[#allocation4 + $0x2c8] sm:$0xff]  ;;  %v19701_v22 = vld [vmem:[#allocation6 + $0xe4] ss:$16 sps:$4 sm:$0xff]   ;;  %v1295_v2 = vsel %vm1039_vm0, %v712_v36, %v1167_v21  ;;  %v717_v54 = vpop.f32.mrb[52].mxu0  ;;  %v252_v30 = vld [vmem:[#allocation4 + $0x298] sm:$0xff]  ;;  %3195 = vmatpush1.bf16.msra.mxu1 %v19696_v58 }
 0x1d8   :  { %v19704_v10 = vld [vmem:[#allocation6 + $0xec] ss:$16 sps:$4 sm:$0xff]   ;;  %v273_v6 = vld [vmem:[#allocation4 + $0x340] sm:$0xff]  ;;  %v1285_v39 = vsel %vm1029_vm1, %v891_v20, %v1157_v13  ;;  %vm1033_vm2 = vcmp.ge.f32.partialorder %v895_v56, 0.0  ;;  %v1161_v12 = vmul.f32 0.2, %v895_v56  ;;  %v23311_v42 = vpack.c.bf16 %v1295_v2, %v1291_v44  ;;  %3110 = vmatprep.subr.bf16.mxu0 %v19701_v22 }
 0x1d9   :  { %v262_v36 = vld [vmem:[#allocation4 + $0x2e8] sm:$0xff]  ;;  %v19699_v3 = vld [vmem:[#allocation6 + $0xe0] ss:$16 sps:$4 sm:$0xff]   ;;  %vm976_vm3 = vcmp.ge.f32.partialorder %v23062_v47, 0.0  ;;  %v23315_v17 = vmul.f32 0.2, %v23294_v50  ;;  %v23321_v61 = vadd.f32 %v23194_v4, %v258_v5  ;;  %v718_v19 = vadd.f32 %v717_v54, %v273_v6  ;;  %3196 = vmatprep.subr.bf16.mxu1 %v19704_v10 }
 0x1da   :  { %24008 = vst [vmem:[#allocation66_spill] sm:$0xff] %v23311_v42  ;;  %v23318_v51 = vmul.f32 0.2, %v23281_v41  ;;  %v267_v15 = vld [vmem:[#allocation4 + $0x310] sm:$0xff]  ;;  %v19702_v23 = vld [vmem:[#allocation6 + $0xe8] ss:$16 sps:$4 sm:$0xff]   ;;  %v1289_v27 = vsel %vm1033_vm2, %v895_v56, %v1161_v12  ;;  %v23326_v13 = vpack.c.bf16 %v1224_v34, %v1220_v26  ;;  %v1226_v44 = vsel %vm970_vm13, %v23056_v49, %v23080_v14  ;;  %3111 = vmatpush1.bf16.msra.mxu0 %v19699_v3 }
 0x1db   :  { %vm974_vm4 = vcmp.ge.f32.partialorder %v23072_v40, 0.0  ;;  %v256_v33 = vld [vmem:[#allocation4 + $0x2b8] sm:$0xff]  ;;  %v266_v2 = vld [vmem:[#allocation4 + $0x308] sm:$0xff]  ;;  %v23324_v20 = vpop.f32.mrb[53].mxu0  ;;  %v277_v21 = vld [vmem:[#allocation4 + $0x360] sm:$0xff]  ;;  %vm978_vm5 = vcmp.ge.f32.partialorder %v23083_v48, 0.0  ;;  %v23334_v5 = vadd.f32 %v23231_v53, %v252_v30  ;;  %v23337_v56 = vadd.f32 %v23213_v52, %v262_v36  ;;  %3197 = vmatpush1.bf16.msra.mxu1 %v19702_v23 }
 0x1dc   :  { %24009 = vst [vmem:[#allocation67_spill] sm:$0xff] %v23318_v51  ;;  %24010 = vst [vmem:[#allocation68_spill] sm:$0xff] %v23326_v13  ;;  %v19707_v4 = vld [vmem:[#allocation6 + $0x104] ss:$16 sps:$4 sm:$0xff]   ;;  %v23339_v6 = vpack.c.bf16 %v1289_v27, %v1285_v39  ;;  %v900_v54 = vpop.f32.mrb[48].mxu1  ;;  %v721_v34 = vpop.f32.mrb[54].mxu0  ;;  %v23341_v12 = vpack.c.bf16 %v1226_v44, %v1222_v28  ;;  %v23348_v28 = vadd.f32 %v23239_v37, %v256_v33 }
 0x1dd   :  { %v271_v26 = vld [vmem:[#allocation4 + $0x330] sm:$0xff]  ;;  %vm980_vm6 = vcmp.ge.f32.partialorder %v23075_v7, 0.0  ;;  %vm984_vm7 = vcmp.ge.f32.partialorder %v23086_v9, 0.0  ;;  %v260_v49 = vld [vmem:[#allocation4 + $0x2d8] sm:$0xff]  ;;  %v901_v53 = vadd.f32 %v900_v54, %v267_v15  ;;  %v23345_v35 = vpop.f32.mrb[49].mxu1  ;;  %vm1043_vm8 = vcmp.ge.f32.partialorder %v718_v19, 0.0  ;;  %3112 = vmatprep.subr.bf16.mxu0 %v19707_v4 }
 0x1de   :  { %24011 = vst [vmem:[#allocation69_spill] sm:$0xff] %v23339_v6  ;;  %24012 = vst [vmem:[#allocation70_spill] sm:$0xff] %v23341_v12  ;;  %v264_v14 = vld [vmem:[#allocation4 + $0x2f8] sm:$0xff]  ;;  %v1171_v52 = vmul.f32 0.2, %v718_v19  ;;  %v722_v30 = vadd.f32 %v721_v34, %v277_v21  ;;  %v23354_v22 = vadd.f32 %v23252_v43, %v266_v2  ;;  %v904_v27 = vpop.f32.mrb[50].mxu1  ;;  %v1228_v15 = vsel %vm972_vm14, %v23037_v46, %v23059_v55 }
 0x1df   :  { %v19705_v39 = vld [vmem:[#allocation6 + $0x100] ss:$16 sps:$4 sm:$0xff]   ;;  %v19710_v36 = vld [vmem:[#allocation6 + $0x10c] ss:$16 sps:$4 sm:$0xff]   ;;  %v23351_v58 = vmul.f32 0.2, %v23321_v61  ;;  %v905_v54 = vadd.f32 %v904_v27, %v271_v26  ;;  %v23370_v55 = vadd.f32 %v23288_v31, %v260_v49  ;;  %v23373_v46 = vadd.f32 %v23296_v25, %v264_v14 }
 0x1e0   :  { %v19708_v44 = vld [vmem:[#allocation6 + $0x108] ss:$16 sps:$4 sm:$0xff]   ;;  %vm1037_vm9 = vcmp.ge.f32.partialorder %v901_v53, 0.0  ;;  %v1165_v10 = vmul.f32 0.2, %v901_v53  ;;  %v23360_v34 = vpop.f32.mrb[51].mxu1  ;;  %v1299_v26 = vsel %vm1043_vm8, %v718_v19, %v1171_v52  ;;  %3198 = vmatprep.subr.bf16.mxu1 %v19710_v36  ;;  %3113 = vmatpush1.bf16.msra.mxu0 %v19705_v39 }
 0x1e1   :  { %24013 = vst [vmem:[#allocation71_spill] sm:$0xff] %v23351_v58  ;;  %v270_v21 = vld [vmem:[#allocation4 + $0x328] sm:$0xff]  ;;  %v23362_v37 = vpop.f32.mrb[55].mxu0  ;;  %v19713_v2 = vld [vmem:[#allocation6 + $0x124] ss:$16 sps:$4 sm:$0xff]   ;;  %vm982_vm10 = vcmp.ge.f32.partialorder %v23123_v38, 0.0  ;;  %3199 = vmatpush1.bf16.msra.mxu1 %v19708_v44 }
 0x1e2   :  { %v24014_v33 = vld [vmem:[#allocation32_spill] sm:$0xff]  ;;  %vm1047_vm11 = vcmp.ge.f32.partialorder %v722_v30, 0.0  ;;  %vm986_vm12 = vcmp.ge.f32.partialorder %v23126_v45, 0.0  ;;  %vm1041_vm13 = vcmp.ge.f32.partialorder %v905_v54, 0.0  ;;  %v1169_v3 = vmul.f32 0.2, %v905_v54  ;;  %3114 = vmatprep.subr.bf16.mxu0 %v19713_v2 }
 0x1e3   :  { %v1232_v43 = vsel %vm976_vm3, %v23062_v47, %v24014_v33  ;;  %v19716_v42 = vld [vmem:[#allocation6 + $0x12c] ss:$16 sps:$4 sm:$0xff]   ;;  %v1293_v47 = vsel %vm1037_vm9, %v901_v53, %v1165_v10  ;;  %v1175_v27 = vmul.f32 0.2, %v722_v30  ;;  %v281_v33 = vld [vmem:[#allocation4 + $0x380] sm:$0xff]  ;;  %v23385_v19 = vadd.f32 %v23272_v1, %v270_v21  ;;  %v275_v23 = vld [vmem:[#allocation4 + $0x350] sm:$0xff] }
 0x1e4   :  { %v19711_v6 = vld [vmem:[#allocation6 + $0x120] ss:$16 sps:$4 sm:$0xff]   ;;  %v23379_v31 = vmul.f32 0.2, %v23334_v5  ;;  %v23382_v25 = vmul.f32 0.2, %v23348_v28  ;;  %v23387_v49 = vpack.c.bf16 %v1232_v43, %v1228_v15  ;;  %v1297_v36 = vsel %vm1041_vm13, %v905_v54, %v1169_v3  ;;  %3200 = vmatprep.subr.bf16.mxu1 %v19716_v42 }
 0x1e5   :  { %v727_v4 = vpop.f32.mrb[56].mxu0  ;;  %v19714_v14 = vld [vmem:[#allocation6 + $0x128] ss:$16 sps:$4 sm:$0xff]   ;;  %v19719_v53 = vld [vmem:[#allocation6 + $0x144] ss:$16 sps:$4 sm:$0xff]   ;;  %v1303_v12 = vsel %vm1047_vm11, %v722_v30, %v1175_v27  ;;  %v910_v43 = vpop.f32.mrb[52].mxu1  ;;  %3115 = vmatpush1.bf16.msra.mxu0 %v19711_v6 }
 0x1e6   :  { %24015 = vst [vmem:[#allocation32_spill] sm:$0xff] %v23379_v31  ;;  %24016 = vst [vmem:[#allocation72_spill] sm:$0xff] %v23382_v25  ;;  %v23390_v52 = vmul.f32 0.2, %v23337_v56  ;;  %v274_v10 = vld [vmem:[#allocation4 + $0x348] sm:$0xff]  ;;  %v23393_v13 = vadd.f32 %v727_v4, %v281_v33  ;;  %v268_v21 = vld [vmem:[#allocation4 + $0x318] sm:$0xff]  ;;  %v23398_v25 = vpack.c.bf16 %v1297_v36, %v1293_v47  ;;  %v23400_v15 = vpack.c.bf16 %v1303_v12, %v1299_v26 }
 0x1e7   :  { %24017 = vst [vmem:[#allocation73_spill] sm:$0xff] %v23387_v49  ;;  %v19722_v58 = vld [vmem:[#allocation6 + $0x14c] ss:$16 sps:$4 sm:$0xff]   ;;  %v23396_v1 = vmul.f32 0.2, %v23354_v22  ;;  %v279_v49 = vld [vmem:[#allocation4 + $0x370] sm:$0xff]  ;;  %v911_v3 = vadd.f32 %v910_v43, %v275_v23  ;;  %v23416_v44 = vadd.f32 %v23324_v20, %v274_v10  ;;  %3201 = vmatpush1.bf16.msra.mxu1 %v19714_v14  ;;  %3116 = vmatprep.subr.bf16.mxu0 %v19719_v53 }
 0x1e8   :  { %24018 = vst [vmem:[#allocation74_spill] sm:$0xff] %v23390_v52  ;;  %24020 = vst [vmem:[#allocation76_spill] sm:$0xff] %v23398_v25  ;;  %v23402_v31 = vpop.f32.mrb[57].mxu0  ;;  %vm988_vm14 = vcmp.ge.f32.partialorder %v23113_v8, 0.0  ;;  %v23406_v30 = vmul.f32 0.2, %v23370_v55  ;;  %3202 = vmatprep.subr.bf16.mxu1 %v19722_v58 }
 0x1e9   :  { %24019 = vst [vmem:[#allocation75_spill] sm:$0xff] %v23396_v1  ;;  %24021 = vst [vmem:[#allocation77_spill] sm:$0xff] %v23400_v15  ;;  %v23409_v39 = vmul.f32 0.2, %v23373_v46  ;;  %v272_v54 = vld [vmem:[#allocation4 + $0x338] sm:$0xff]  ;;  %v912_v47 = vpop.f32.mrb[53].mxu1  ;;  %v23428_v1 = vadd.f32 %v23345_v35, %v268_v21 }
 0x1ea   :  { %24022 = vst [vmem:[#allocation78_spill] sm:$0xff] %v23406_v30  ;;  %vm992_vm15 = vcmp.ge.f32.partialorder %v23118_v18, 0.0  ;;  %v23413_v12 = vmul.f32 0.2, %v23385_v19  ;;  %v278_v2 = vld [vmem:[#allocation4 + $0x368] sm:$0xff]  ;;  %v914_v26 = vpop.f32.mrb[54].mxu1  ;;  %v23440_v6 = vadd.f32 %v23360_v34, %v272_v54 }
 0x1eb   :  { %24023 = vst [vmem:[#allocation79_spill] sm:$0xff] %v23409_v39  ;;  %v1179_v27 = vmul.f32 0.2, %v23393_v13  ;;  %v24025_v33 = vld [vmem:[#allocation34_spill] sm:$0xff]  ;;  %vm1045_vm0 = vcmp.ge.f32.partialorder %v911_v3, 0.0  ;;  %v915_v36 = vadd.f32 %v914_v26, %v279_v49  ;;  %v916_v43 = vpop.f32.mrb[55].mxu1 }
 0x1ec   :  { %24024 = vst [vmem:[#allocation80_spill] sm:$0xff] %v23413_v12  ;;  %v1230_v4 = vsel %vm974_vm4, %v23072_v40, %v24025_v33  ;;  %v1173_v23 = vmul.f32 0.2, %v911_v3  ;;  %v276_v42 = vld [vmem:[#allocation4 + $0x358] sm:$0xff]  ;;  %v285_v15 = vld [vmem:[#allocation4 + $0x3a0] sm:$0xff]  ;;  %vm1051_vm1 = vcmp.ge.f32.partialorder %v23393_v13, 0.0 }
 0x1ed   :  { %v24026_v25 = vld [vmem:[#allocation35_spill] sm:$0xff]  ;;  %v19720_v12 = vld [vmem:[#allocation6 + $0x148] ss:$16 sps:$4 sm:$0xff]   ;;  %v731_v40 = vpop.f32.mrb[58].mxu0  ;;  %v24027_v33 = vld [vmem:[#allocation33_spill] sm:$0xff]  ;;  %vm1049_vm2 = vcmp.ge.f32.partialorder %v915_v36, 0.0 }
 0x1ee   :  { %v1234_v20 = vsel %vm978_vm5, %v23083_v48, %v24026_v25  ;;  %v19717_v10 = vld [vmem:[#allocation6 + $0x140] ss:$16 sps:$4 sm:$0xff]   ;;  %v1236_v49 = vsel %vm980_vm6, %v23075_v7, %v24027_v33  ;;  %v24028_v26 = vld [vmem:[#allocation36_spill] sm:$0xff]  ;;  %v1301_v35 = vsel %vm1045_vm0, %v911_v3, %v1173_v23  ;;  %v1177_v25 = vmul.f32 0.2, %v915_v36  ;;  %v23448_v14 = vpop.f32.mrb[59].mxu0  ;;  %3203 = vmatpush1.bf16.msra.mxu1 %v19720_v12 }
 0x1ef   :  { %v1240_v39 = vsel %vm984_vm7, %v23086_v9, %v24028_v26  ;;  %v19725_v48 = vld [vmem:[#allocation6 + $0x164] ss:$16 sps:$4 sm:$0xff]   ;;  %v19723_v21 = vld [vmem:[#allocation6 + $0x160] ss:$16 sps:$4 sm:$0xff]   ;;  %v19728_v30 = vld [vmem:[#allocation6 + $0x16c] ss:$16 sps:$4 sm:$0xff]   ;;  %v23444_v7 = vadd.f32 %v23362_v37, %v278_v2  ;;  %v23446_v33 = vadd.f32 %v912_v47, %v276_v42  ;;  %v732_v52 = vadd.f32 %v731_v40, %v285_v15  ;;  %3117 = vmatpush1.bf16.msra.mxu0 %v19717_v10 }
 0x1f0   :  { %v283_v9 = vld [vmem:[#allocation4 + $0x390] sm:$0xff]  ;;  %v23450_v53 = vpack.c.bf16 %v1234_v20, %v1230_v4  ;;  %v19726_v34 = vld [vmem:[#allocation6 + $0x168] ss:$16 sps:$4 sm:$0xff]   ;;  %v24030_v26 = vld [vmem:[#allocation39_spill] sm:$0xff]  ;;  %v1305_v58 = vsel %vm1049_vm2, %v915_v36, %v1177_v25  ;;  %v1307_v37 = vsel %vm1051_vm1, %v23393_v13, %v1179_v27  ;;  %v737_v2 = vpop.f32.mrb[60].mxu0  ;;  %v23457_v15 = vpack.c.bf16 %v1240_v39, %v1236_v49  ;;  %v920_v25 = vpop.f32.mrb[56].mxu1  ;;  %3118 = vmatprep.subr.bf16.mxu0 %v19725_v48 }
 0x1f1   :  { %v19731_v54 = vld [vmem:[#allocation6 + $0x184] ss:$16 sps:$4 sm:$0xff]   ;;  %vm990_vm3 = vcmp.ge.f32.partialorder %v24030_v26, 0.0  ;;  %v280_v23 = vld [vmem:[#allocation4 + $0x378] sm:$0xff]  ;;  %v282_v47 = vld [vmem:[#allocation4 + $0x388] sm:$0xff]  ;;  %v23463_v40 = vpack.c.bf16 %v1305_v58, %v1301_v35  ;;  %vm1055_vm5 = vcmp.ge.f32.partialorder %v732_v52, 0.0  ;;  %v921_v27 = vadd.f32 %v920_v25, %v283_v9  ;;  %3204 = vmatprep.subr.bf16.mxu1 %v19728_v30 }
 0x1f2   :  { %24029 = vst [vmem:[#allocation34_spill] sm:$0xff] %v23450_v53  ;;  %v24031_v3 = vld [vmem:[#allocation49_spill] sm:$0xff]  ;;  %24032 = vst [vmem:[#allocation35_spill] sm:$0xff] %v23457_v15  ;;  %v24033_v42 = vld [vmem:[#allocation42_spill] sm:$0xff]  ;;  %v1183_v36 = vmul.f32 0.2, %v732_v52  ;;  %3205 = vmatpush1.bf16.msra.mxu1 %v19726_v34 }
 0x1f3   :  { %vm994_vm4 = vcmp.ge.f32.partialorder %v24031_v3, 0.0  ;;  %v1238_v4 = vsel %vm982_vm10, %v23123_v38, %v24033_v42  ;;  %v19734_v20 = vld [vmem:[#allocation6 + $0x18c] ss:$16 sps:$4 sm:$0xff]   ;;  %24034 = vst [vmem:[#allocation33_spill] sm:$0xff] %v23463_v40  ;;  %v287_v53 = vld [vmem:[#allocation4 + $0x3b0] sm:$0xff]  ;;  %v922_v10 = vpop.f32.mrb[57].mxu1  ;;  %v23480_v42 = vadd.f32 %v916_v43, %v280_v23  ;;  %3119 = vmatpush1.bf16.msra.mxu0 %v19723_v21 }
 0x1f4   :  { %v24035_v51 = vld [vmem:[#allocation43_spill] sm:$0xff]  ;;  %v23470_v39 = vmul.f32 0.2, %v23428_v1  ;;  %v23473_v38 = vmul.f32 0.2, %v23416_v44  ;;  %v924_v12 = vpop.f32.mrb[58].mxu1  ;;  %3120 = vmatprep.subr.bf16.mxu0 %v19731_v54  ;;  %3206 = vmatprep.subr.bf16.mxu1 %v19734_v20 }
 0x1f5   :  { %v1242_v13 = vsel %vm986_vm12, %v23126_v45, %v24035_v51  ;;  %v19729_v35 = vld [vmem:[#allocation6 + $0x180] ss:$16 sps:$4 sm:$0xff]   ;;  %v23478_v58 = vmul.f32 0.2, %v23440_v6  ;;  %v23483_v45 = vadd.f32 %v23402_v31, %v282_v47  ;;  %v1311_v51 = vsel %vm1055_vm5, %v732_v52, %v1183_v36  ;;  %v739_v40 = vpop.f32.mrb[61].mxu0  ;;  %v24040_v25 = vld [vmem:[#allocation40_spill] sm:$0xff] }
 0x1f6   :  { %24036 = vst [vmem:[#allocation36_spill] sm:$0xff] %v23470_v39  ;;  %24037 = vst [vmem:[#allocation39_spill] sm:$0xff] %v23473_v38  ;;  %v23475_v49 = vpack.c.bf16 %v1242_v13, %v1238_v4  ;;  %v289_v48 = vld [vmem:[#allocation4 + $0x3c0] sm:$0xff]  ;;  %v19732_v15 = vld [vmem:[#allocation6 + $0x188] ss:$16 sps:$4 sm:$0xff]   ;;  %vm996_vm6 = vcmp.ge.f32.partialorder %v24040_v25, 0.0  ;;  %v23488_v30 = vpack.c.bf16 %v1311_v51, %v1307_v37 }
 0x1f7   :  { %24039 = vst [vmem:[#allocation42_spill] sm:$0xff] %v23478_v58  ;;  %v19737_v9 = vld [vmem:[#allocation6 + $0x1a4] ss:$16 sps:$4 sm:$0xff]   ;;  %vm1053_vm8 = vcmp.ge.f32.partialorder %v921_v27, 0.0  ;;  %v1181_v13 = vmul.f32 0.2, %v921_v27  ;;  %v738_v36 = vadd.f32 %v737_v2, %v289_v48  ;;  %3121 = vmatpush1.bf16.msra.mxu0 %v19729_v35  ;;  %3207 = vmatpush1.bf16.msra.mxu1 %v19732_v15 }
 0x1f8   :  { %24038 = vst [vmem:[#allocation49_spill] sm:$0xff] %v23475_v49  ;;  %v24041_v4 = vld [vmem:[#allocation45_spill] sm:$0xff]  ;;  %24042 = vst [vmem:[#allocation43_spill] sm:$0xff] %v23488_v30  ;;  %v284_v23 = vld [vmem:[#allocation4 + $0x398] sm:$0xff]  ;;  %v925_v49 = vadd.f32 %v924_v12, %v287_v53  ;;  %v926_v31 = vpop.f32.mrb[59].mxu1  ;;  %vm998_vm9 = vcmp.ge.f32.partialorder %v23189_v60, 0.0  ;;  %3122 = vmatprep.subr.bf16.mxu0 %v19737_v9 }
 0x1f9   :  { %vm1000_vm7 = vcmp.ge.f32.partialorder %v24041_v4, 0.0  ;;  %v286_v43 = vld [vmem:[#allocation4 + $0x3a8] sm:$0xff]  ;;  %vm1002_vm10 = vcmp.ge.f32.partialorder %v23192_v62, 0.0  ;;  %v23493_v52 = vmul.f32 0.2, %v23444_v7  ;;  %v293_v37 = vld [vmem:[#allocation4 + $0x3e0] sm:$0xff]  ;;  %v1309_v21 = vsel %vm1053_vm8, %v921_v27, %v1181_v13 }
 0x1fa   :  { %v23496_v47 = vmul.f32 0.2, %v23446_v33  ;;  %v24045_v51 = vld [vmem:[#allocation38_spill] sm:$0xff]  ;;  %vm1004_vm11 = vcmp.ge.f32.partialorder %v23179_v32, 0.0  ;;  %vm1008_vm12 = vcmp.ge.f32.partialorder %v23210_v0, 0.0  ;;  %vm1057_vm13 = vcmp.ge.f32.partialorder %v925_v49, 0.0 }
 0x1fb   :  { %24043 = vst [vmem:[#allocation40_spill] sm:$0xff] %v23493_v52  ;;  %v1244_v30 = vsel %vm988_vm14, %v23113_v8, %v24045_v51  ;;  %v1185_v53 = vmul.f32 0.2, %v925_v49  ;;  %v288_v12 = vld [vmem:[#allocation4 + $0x3b8] sm:$0xff]  ;;  %v290_v52 = vld [vmem:[#allocation4 + $0x3c8] sm:$0xff]  ;;  %vm1006_vm14 = vcmp.ge.f32.partialorder %v23234_v59, 0.0  ;;  %v23512_v54 = vadd.f32 %v23448_v14, %v286_v43 }
 0x1fc   :  { %24044 = vst [vmem:[#allocation45_spill] sm:$0xff] %v23496_v47  ;;  %v741_v47 = vpop.f32.mrb[62].mxu0  ;;  %v24046_v2 = vld [vmem:[#allocation44_spill] sm:$0xff]  ;;  %v19735_v8 = vld [vmem:[#allocation6 + $0x1a0] ss:$16 sps:$4 sm:$0xff]   ;;  %vm1010_vm0 = vcmp.ge.f32.partialorder %v23243_v57, 0.0  ;;  %v23514_v27 = vadd.f32 %v922_v10, %v284_v23  ;;  %v23533_v39 = vadd.f32 %v739_v40, %v290_v52 }
 0x1fd   :  { %v1248_v48 = vsel %vm992_vm15, %v23118_v18, %v24046_v2  ;;  %v19740_v34 = vld [vmem:[#allocation6 + $0x1ac] ss:$16 sps:$4 sm:$0xff]   ;;  %vm1059_vm1 = vcmp.ge.f32.partialorder %v738_v36, 0.0  ;;  %v1187_v13 = vmul.f32 0.2, %v738_v36  ;;  %v1313_v14 = vsel %vm1057_vm13, %v925_v49, %v1185_v53  ;;  %v291_v10 = vld [vmem:[#allocation4 + $0x3d0] sm:$0xff]  ;;  %3123 = vmatpush1.bf16.msra.mxu0 %v19735_v8 }
 0x1fe   :  { %v19738_v51 = vld [vmem:[#allocation6 + $0x1a8] ss:$16 sps:$4 sm:$0xff]   ;;  %v23520_v18 = vmul.f32 0.2, %v23480_v42  ;;  %v23523_v20 = vmul.f32 0.2, %v23483_v45  ;;  %v742_v43 = vadd.f32 %v741_v47, %v293_v37  ;;  %v23529_v58 = vpack.c.bf16 %v1313_v14, %v1309_v21  ;;  %3208 = vmatprep.subr.bf16.mxu1 %v19740_v34 }
 0x1ff   :  { %v743_v23 = vpop.f32.mrb[63].mxu0  ;;  %v19743_v2 = vld [vmem:[#allocation6 + $0x1c4] ss:$16 sps:$4 sm:$0xff]   ;;  %v19746_v38 = vld [vmem:[#allocation6 + $0x1cc] ss:$16 sps:$4 sm:$0xff]   ;;  %v23535_v47 = vpack.c.bf16 %v1248_v48, %v1244_v30  ;;  %v1315_v35 = vsel %vm1059_vm1, %v738_v36, %v1187_v13  ;;  %vm1030_vm1 = vcmp.ge.f32.partialorder %v23370_v55, 0.0  ;;  %3209 = vmatpush1.bf16.msra.mxu1 %v19738_v51 }
 0x200   :  { %24047 = vst [vmem:[#allocation38_spill] sm:$0xff] %v23520_v18  ;;  %24048 = vst [vmem:[#allocation44_spill] sm:$0xff] %v23523_v20  ;;  %v23531_v18 = vadd.f32 %v926_v31, %v288_v12  ;;  %v930_v20 = vpop.f32.mrb[60].mxu1  ;;  %v295_v49 = vld [vmem:[#allocation4 + $0x3f0] sm:$0xff]  ;;  %vm1063_vm5 = vcmp.ge.f32.partialorder %v742_v43, 0.0  ;;  %v294_v53 = vld [vmem:[#allocation4 + $0x3e8] sm:$0xff]  ;;  %3124 = vmatprep.subr.bf16.mxu0 %v19743_v2  ;;  %3210 = vmatprep.subr.bf16.mxu1 %v19746_v38 }
 0x201   :  { %24049 = vst [vmem:[#allocation81_spill] sm:$0xff] %v23529_v58  ;;  %24050 = vst [vmem:[#allocation82_spill] sm:$0xff] %v23535_v47  ;;  %v1191_v37 = vmul.f32 0.2, %v742_v43  ;;  %v931_v21 = vadd.f32 %v930_v20, %v291_v10  ;;  %v932_v31 = vpop.f32.mrb[61].mxu1  ;;  %v24051_v52 = vld [vmem:[#allocation46_spill] sm:$0xff] }
 0x202   :  { %v19741_v40 = vld [vmem:[#allocation6 + $0x1c0] ss:$16 sps:$4 sm:$0xff]   ;;  %v23543_v15 = vmul.f32 0.2, %v23512_v54  ;;  %v23546_v9 = vmul.f32 0.2, %v23514_v27  ;;  %v1246_v36 = vsel %vm990_vm3, %v24030_v26, %v24051_v52 }
 0x203   :  { %v934_v30 = vpop.f32.mrb[62].mxu1  ;;  %v24052_v12 = vld [vmem:[#allocation51_spill] sm:$0xff]  ;;  %v19744_v34 = vld [vmem:[#allocation6 + $0x1c8] ss:$16 sps:$4 sm:$0xff]   ;;  %vm1034_vm2 = vcmp.ge.f32.partialorder %v23373_v46, 0.0  ;;  %v1319_v13 = vsel %vm1063_vm5, %v742_v43, %v1191_v37  ;;  %vm1061_vm8 = vcmp.ge.f32.partialorder %v931_v21, 0.0  ;;  %v23571_v37 = vadd.f32 %v743_v23, %v294_v53  ;;  %3125 = vmatpush1.bf16.msra.mxu0 %v19741_v40 }
 0x204   :  { %v1250_v48 = vsel %vm994_vm4, %v24031_v3, %v24052_v12  ;;  %v1189_v20 = vmul.f32 0.2, %v931_v21  ;;  %v292_v14 = vld [vmem:[#allocation4 + $0x3d8] sm:$0xff]  ;;  %v935_v10 = vadd.f32 %v934_v30, %v295_v49  ;;  %v936_v26 = vpop.f32.mrb[63].mxu1  ;;  %v23564_v3 = vmul.f32 0.2, %v23531_v18  ;;  %3211 = vmatpush1.bf16.msra.mxu1 %v19744_v34 }
 0x205   :  { %v296_v58 = vld [vmem:[#allocation4 + $0x3f8] sm:$0xff]  ;;  %v23567_v52 = vmul.f32 0.2, %v23533_v39  ;;  %v23569_v43 = vpack.c.bf16 %v1319_v13, %v1315_v35  ;;  %v19749_v49 = vld [vmem:[#allocation6 + $0x1e4] ss:$16 sps:$4 sm:$0xff]   ;;  %vm1044_vm5 = vcmp.ge.f32.partialorder %v23416_v44, 0.0  ;;  %v23575_v12 = vpack.c.bf16 %v1250_v48, %v1246_v36 }
 0x206   :  { %v1317_v8 = vsel %vm1061_vm8, %v931_v21, %v1189_v20  ;;  %vm1065_vm4 = vcmp.ge.f32.partialorder %v935_v10, 0.0  ;;  %v1193_v30 = vmul.f32 0.2, %v935_v10  ;;  %v19752_v47 = vld [vmem:[#allocation6 + $0x1ec] ss:$16 sps:$4 sm:$0xff]   ;;  %vm1048_vm13 = vcmp.ge.f32.partialorder %v23444_v7, 0.0  ;;  %3126 = vmatprep.subr.bf16.mxu0 %v19749_v49 }
 0x207   :  { %vm1046_vm3 = vcmp.ge.f32.partialorder %v23446_v33, 0.0  ;;  %vm1050_vm15 = vcmp.ge.f32.partialorder %v23480_v42, 0.0  ;;  %v23580_v23 = vadd.f32 %v932_v31, %v292_v14  ;;  %v23582_v51 = vadd.f32 %v936_v26, %v296_v58  ;;  %v24053_v2 = vld [vmem:[#allocation47_spill] sm:$0xff]  ;;  %v24054_v21 = vld [vmem:[#allocation52_spill] sm:$0xff]  ;;  %v24055_v48 = vld [vmem:[#allocation53_spill] sm:$0xff]  ;;  %3212 = vmatprep.subr.bf16.mxu1 %v19752_v47 }
 0x208   :  { %v1252_v35 = vsel %vm996_vm6, %v24040_v25, %v24053_v2  ;;  %v1256_v38 = vsel %vm1000_vm7, %v24041_v4, %v24054_v21  ;;  %v1321_v53 = vsel %vm1065_vm4, %v935_v10, %v1193_v30  ;;  %v1254_v58 = vsel %vm998_vm9, %v23189_v60, %v24055_v48  ;;  %v24056_v31 = vld [vmem:[#allocation57_spill] sm:$0xff]  ;;  %v24057_v60 = vld [vmem:[#allocation54_spill] sm:$0xff]  ;;  %v24067_v47 = vld [vmem:[#allocation64_spill] sm:$0xff] }
 0x209   :  { %v23593_v36 = vpack.c.bf16 %v1256_v38, %v1252_v35  ;;  %v1258_v25 = vsel %vm1002_vm10, %v23192_v62, %v24056_v31  ;;  %v19747_v13 = vld [vmem:[#allocation6 + $0x1e0] ss:$16 sps:$4 sm:$0xff]   ;;  %vm1056_vm6 = vcmp.ge.f32.partialorder %v23512_v54, 0.0  ;;  %vm1054_vm7 = vcmp.ge.f32.partialorder %v23514_v27, 0.0  ;;  %v19750_v10 = vld [vmem:[#allocation6 + $0x1e8] ss:$16 sps:$4 sm:$0xff]  }
 0x20a   :  { %vm1058_vm4 = vcmp.ge.f32.partialorder %v23531_v18, 0.0  ;;  %vm1060_vm8 = vcmp.ge.f32.partialorder %v23533_v39, 0.0  ;;  %v23607_v4 = vpack.c.bf16 %v1321_v53, %v1317_v8  ;;  %v23609_v20 = vpack.c.bf16 %v1258_v25, %v1254_v58  ;;  %v24058_v62 = vld [vmem:[#allocation59_spill] sm:$0xff]  ;;  %v24059_v2 = vld [vmem:[#allocation61_spill] sm:$0xff]  ;;  %v24060_v35 = vld [vmem:[#allocation60_spill] sm:$0xff]  ;;  %3127 = vmatpush1.bf16.msra.mxu0 %v19747_v13  ;;  %3213 = vmatpush1.bf16.msra.mxu1 %v19750_v10 }
 0x20b   :  { %v1260_v14 = vsel %vm1004_vm11, %v23179_v32, %v24057_v60  ;;  %v1264_v40 = vsel %vm1008_vm12, %v23210_v0, %v24058_v62  ;;  %v19755_v26 = vld [vmem:[#allocation6 + $0x204] ss:$16 sps:$4 sm:$0xff]   ;;  %vm1064_vm9 = vcmp.ge.f32.partialorder %v23571_v37, 0.0  ;;  %v23621_v8 = vmul.f32 0.2, %v23571_v37 }
 0x20c   :  { %v23623_v30 = vpack.c.bf16 %v1264_v40, %v1260_v14  ;;  %v1262_v32 = vsel %vm1006_vm14, %v23234_v59, %v24059_v2  ;;  %v1266_v0 = vsel %vm1010_vm0, %v23243_v57, %v23275_v29  ;;  %v19758_v34 = vld [vmem:[#allocation6 + $0x20c] ss:$16 sps:$4 sm:$0xff]   ;;  %vm24061_vm10 = vcmp.ge.f32.partialorder %v23237_v11, 0.0  ;;  %v19753_v31 = vld [vmem:[#allocation6 + $0x200] ss:$16 sps:$4 sm:$0xff]   ;;  %3139 = vmatprep.subr.bf16.mxu0 %v19755_v26 }
 0x20d   :  { %v23633_v49 = vpack.c.bf16 %v1266_v0, %v1262_v32  ;;  %v1268_v21 = vsel %vm24061_vm10, %v23237_v11, %v24060_v35  ;;  %v24062_v38 = vld [vmem:[#allocation62_spill] sm:$0xff]  ;;  %vm24063_vm11 = vcmp.ge.f32.partialorder %v23246_v24, 0.0  ;;  %v24064_v59 = vld [vmem:[#allocation65_spill] sm:$0xff]  ;;  %vm24065_vm12 = vcmp.ge.f32.partialorder %v23265_v63, 0.0  ;;  %v24069_v58 = vld [vmem:[#allocation67_spill] sm:$0xff]  ;;  %3225 = vmatprep.subr.bf16.mxu1 %v19758_v34 }
 0x20e   :  { %v1272_v53 = vsel %vm24063_vm11, %v23246_v24, %v24062_v38  ;;  %v1270_v48 = vsel %vm24065_vm12, %v23265_v63, %v24064_v59  ;;  %vm24066_vm14 = vcmp.ge.f32.partialorder %v23294_v50, 0.0  ;;  %vm24068_vm0 = vcmp.ge.f32.partialorder %v23249_v16, 0.0  ;;  %v24071_v60 = vld [vmem:[#allocation32_spill] sm:$0xff]  ;;  %v24075_v13 = vld [vmem:[#allocation71_spill] sm:$0xff]  ;;  %v24077_v40 = vld [vmem:[#allocation74_spill] sm:$0xff] }
 0x20f   :  { %v23647_v57 = vpack.c.bf16 %v1272_v53, %v1268_v21  ;;  %v1274_v29 = vsel %vm24066_vm14, %v23294_v50, %v23315_v17  ;;  %v1276_v11 = vsel %vm24068_vm0, %v23249_v16, %v24067_v47  ;;  %vm24070_vm10 = vcmp.ge.f32.partialorder %v23281_v41, 0.0  ;;  %v24073_v17 = vld [vmem:[#allocation72_spill] sm:$0xff]  ;;  %v24079_v10 = vld [vmem:[#allocation78_spill] sm:$0xff]  ;;  %v24080_v32 = vld [vmem:[#allocation79_spill] sm:$0xff] }
 0x210   :  { %v1280_v24 = vsel %vm24070_vm10, %v23281_v41, %v24069_v58  ;;  %v23661_v63 = vpack.c.bf16 %v1274_v29, %v1270_v48  ;;  %vm24072_vm11 = vcmp.ge.f32.partialorder %v23334_v5, 0.0  ;;  %vm24074_vm12 = vcmp.ge.f32.partialorder %v23348_v28, 0.0  ;;  %v19756_v14 = vld [vmem:[#allocation6 + $0x208] ss:$16 sps:$4 sm:$0xff]   ;;  %v19761_v2 = vld [vmem:[#allocation6 + $0x224] ss:$16 sps:$4 sm:$0xff]  }
 0x211   :  { %v23663_v25 = vpack.c.bf16 %v1280_v24, %v1276_v11  ;;  %v1278_v50 = vsel %vm24072_vm11, %v23334_v5, %v24071_v60  ;;  %v1282_v16 = vsel %vm24074_vm12, %v23348_v28, %v24073_v17  ;;  %vm1062_vm14 = vcmp.ge.f32.partialorder %v23580_v23, 0.0  ;;  %v19764_v34 = vld [vmem:[#allocation6 + $0x22c] ss:$16 sps:$4 sm:$0xff]   ;;  %v19759_v48 = vld [vmem:[#allocation6 + $0x220] ss:$16 sps:$4 sm:$0xff]  }
 0x212   :  { %v23674_v41 = vpack.c.bf16 %v1282_v16, %v1278_v50  ;;  %vm24076_vm0 = vcmp.ge.f32.partialorder %v23321_v61, 0.0  ;;  %vm24078_vm10 = vcmp.ge.f32.partialorder %v23337_v56, 0.0  ;;  %v1286_v26 = vsel %vm1030_vm1, %v23370_v55, %v24079_v10  ;;  %v24084_v38 = vld [vmem:[#allocation80_spill] sm:$0xff]  ;;  %v24088_v59 = vld [vmem:[#allocation42_spill] sm:$0xff]  ;;  %v24091_v58 = vld [vmem:[#allocation23_spill] sm:$0xff] }
 0x213   :  { %v1284_v62 = vsel %vm24076_vm0, %v23321_v61, %v24075_v13  ;;  %v1288_v5 = vsel %vm24078_vm10, %v23337_v56, %v24077_v40  ;;  %v1290_v0 = vsel %vm1034_vm2, %v23373_v46, %v24080_v32  ;;  %v24081_v61 = vld [vmem:[#allocation75_spill] sm:$0xff]  ;;  %vm24082_vm11 = vcmp.ge.f32.partialorder %v23354_v22, 0.0  ;;  %v24083_v56 = vld [vmem:[#allocation16_spill] sm:$0xff]  ;;  %v24093_v17 = vld [vmem:[#allocation45_spill] sm:$0xff] }
 0x214   :  { %v23684_v28 = vpack.c.bf16 %v1288_v5, %v1284_v62  ;;  %v1292_v35 = vsel %vm24082_vm11, %v23354_v22, %v24081_v61  ;;  %3129 = vmatmul.mubr.bf16.vlgmr.msra.gmra.mrb[64].mxu0 %v24083_v56  ;;  %v23699_v21 = vpack.c.bf16 %v1290_v0, %v1286_v26  ;;  %vm24085_vm12 = vcmp.ge.f32.partialorder %v23385_v19, 0.0  ;;  %v24086_v53 = vld [vmem:[#allocation36_spill] sm:$0xff]  ;;  %3215 = vmatmul.mubr.bf16.vlgmr.msra.gmra.mrb[64].mxu1 %v24083_v56  ;;  %v24094_v13 = vld [vmem:[#allocation38_spill] sm:$0xff]  ;;  %v19765_v10 = vld [vmem:[#allocation6 + $0x240] ss:$16 sps:$4 sm:$0xff]  }
 0x215   :  { %v1296_v55 = vsel %vm24085_vm12, %v23385_v19, %v24084_v38  ;;  %vm24087_vm1 = vcmp.ge.f32.partialorder %v23428_v1, 0.0  ;;  %vm24089_vm2 = vcmp.ge.f32.partialorder %v23440_v6, 0.0  ;;  %3140 = vmatpush1.bf16.msra.mxu0 %v19753_v31  ;;  %v1190_v29 = vmul.f32 0.2, %v23580_v23  ;;  %v24090_v19 = vld [vmem:[#allocation39_spill] sm:$0xff]  ;;  %3171 = vmatprep.mubr.bf16.mxu0 %v24091_v58  ;;  %v24092_v31 = vld [vmem:[#allocation40_spill] sm:$0xff] }
 0x216   :  { %v1294_v46 = vsel %vm24087_vm1, %v23428_v1, %v24086_v53  ;;  %v1298_v22 = vsel %vm24089_vm2, %v23440_v6, %v24088_v59  ;;  %v23715_v47 = vpack.c.bf16 %v1296_v55, %v1292_v35  ;;  %v1300_v1 = vsel %vm1044_vm5, %v23416_v44, %v24090_v19  ;;  %3226 = vmatpush1.bf16.msra.mxu1 %v19756_v14  ;;  %v19762_v24 = vld [vmem:[#allocation6 + $0x228] ss:$16 sps:$4 sm:$0xff]   ;;  %v19767_v6 = vld [vmem:[#allocation6 + $0x244] ss:$16 sps:$4 sm:$0xff]   ;;  %v19770_v14 = vld [vmem:[#allocation6 + $0x24c] ss:$16 sps:$4 sm:$0xff]  }
 0x217   :  { %v23717_v11 = vpack.c.bf16 %v1298_v22, %v1294_v46  ;;  %v1194_v60 = vmul.f32 0.2, %v23582_v51  ;;  %v1304_v50 = vsel %vm1048_vm13, %v23444_v7, %v24092_v31  ;;  %v1302_v16 = vsel %vm1046_vm3, %v23446_v33, %v24093_v17  ;;  %3257 = vmatprep.mubr.bf16.mxu1 %v24091_v58  ;;  %3141 = vmatprep.subr.bf16.mxu0 %v19761_v2  ;;  %v24095_v7 = vld [vmem:[#allocation44_spill] sm:$0xff]  ;;  %v19777_v61 = vld [vmem:[#allocation6 + $0x280] ss:$16 sps:$4 sm:$0xff]  }
 0x218   :  { %v1306_v44 = vsel %vm1050_vm15, %v23480_v42, %v24094_v13  ;;  %vm1066_vm5 = vcmp.ge.f32.partialorder %v23582_v51, 0.0  ;;  %v23739_v62 = vpack.c.bf16 %v1304_v50, %v1300_v1  ;;  %vm24096_vm13 = vcmp.ge.f32.partialorder %v23483_v45, 0.0  ;;  %3227 = vmatprep.subr.bf16.mxu1 %v19764_v34  ;;  %v19782_v0 = vld [vmem:[#allocation6 + $0x28c] ss:$16 sps:$4 sm:$0xff]   ;;  %v19780_v35 = vld [vmem:[#allocation6 + $0x288] ss:$16 sps:$4 sm:$0xff]  }
 0x219   :  { %v23741_v40 = vpack.c.bf16 %v1306_v44, %v1302_v16  ;;  %v1308_v33 = vsel %vm24096_vm13, %v23483_v45, %v24095_v7  ;;  %v1312_v42 = vsel %vm1056_vm6, %v23512_v54, %v23543_v15  ;;  %v1310_v5 = vsel %vm1054_vm7, %v23514_v27, %v23546_v9  ;;  %3142 = vmatpush1.bf16.msra.mxu0 %v19759_v48  ;;  %v19768_v15 = vld [vmem:[#allocation6 + $0x248] ss:$16 sps:$4 sm:$0xff]   ;;  %v19773_v9 = vld [vmem:[#allocation6 + $0x264] ss:$16 sps:$4 sm:$0xff]   ;;  %v19788_v34 = vld [vmem:[#allocation6 + $0x2ac] ss:$16 sps:$4 sm:$0xff]  }
 0x21a   :  { %v1314_v2 = vsel %vm1058_vm4, %v23531_v18, %v23564_v3  ;;  %v1316_v45 = vsel %vm1060_vm8, %v23533_v39, %v23567_v52  ;;  %v23763_v26 = vpack.c.bf16 %v1312_v42, %v1308_v33  ;;  %v1320_v27 = vsel %vm1064_vm9, %v23571_v37, %v23621_v8  ;;  %3228 = vmatpush1.bf16.msra.mxu1 %v19762_v24  ;;  %v19776_v52 = vld [vmem:[#allocation6 + $0x26c] ss:$16 sps:$4 sm:$0xff]   ;;  %v19771_v37 = vld [vmem:[#allocation6 + $0x260] ss:$16 sps:$4 sm:$0xff]   ;;  %v19774_v8 = vld [vmem:[#allocation6 + $0x268] ss:$16 sps:$4 sm:$0xff]  }
 0x21b   :  { %v23765_v54 = vpack.c.bf16 %v1314_v2, %v1310_v5  ;;  %v1318_v18 = vsel %vm1062_vm14, %v23580_v23, %v1190_v29  ;;  %3143 = vmatprep.subr.bf16.mxu0 %v19767_v6  ;;  %v23774_v39 = vpack.c.bf16 %v1320_v27, %v1316_v45  ;;  %v1322_v3 = vsel %vm1066_vm5, %v23582_v51, %v1194_v60  ;;  %v19779_v23 = vld [vmem:[#allocation6 + $0x284] ss:$16 sps:$4 sm:$0xff]   ;;  %v19783_v51 = vld [vmem:[#allocation6 + $0x2a0] ss:$16 sps:$4 sm:$0xff]   ;;  %v19786_v38 = vld [vmem:[#allocation6 + $0x2a8] ss:$16 sps:$4 sm:$0xff]  }
 0x21c   :  { %3229 = vmatprep.subr.bf16.mxu1 %v19770_v14  ;;  %v23779_v32 = vpack.c.bf16 %v1322_v3, %v1318_v18  ;;  %v19785_v56 = vld [vmem:[#allocation6 + $0x2a4] ss:$16 sps:$4 sm:$0xff]   ;;  %v19789_v53 = vld [vmem:[#allocation6 + $0x2c0] ss:$16 sps:$4 sm:$0xff]   ;;  %v19794_v46 = vld [vmem:[#allocation6 + $0x2cc] ss:$16 sps:$4 sm:$0xff]  }
 0x21d   :  { %3144 = vmatpush1.bf16.msra.mxu0 %v19765_v10  ;;  %v19791_v55 = vld [vmem:[#allocation6 + $0x2c4] ss:$16 sps:$4 sm:$0xff]   ;;  %v19792_v59 = vld [vmem:[#allocation6 + $0x2c8] ss:$16 sps:$4 sm:$0xff]   ;;  %v19795_v48 = vld [vmem:[#allocation6 + $0x2e0] ss:$16 sps:$4 sm:$0xff]  }
 0x21e   :  { %3230 = vmatpush1.bf16.msra.mxu1 %v19768_v15  ;;  %3145 = vmatprep.subr.bf16.mxu0 %v19773_v9  ;;  %v19797_v22 = vld [vmem:[#allocation6 + $0x2e4] ss:$16 sps:$4 sm:$0xff]   ;;  %v19800_v29 = vld [vmem:[#allocation6 + $0x2ec] ss:$16 sps:$4 sm:$0xff]   ;;  %v19798_v19 = vld [vmem:[#allocation6 + $0x2e8] ss:$16 sps:$4 sm:$0xff]  }
 0x21f   :  { %3231 = vmatprep.subr.bf16.mxu1 %v19776_v52  ;;  %v19803_v1 = vld [vmem:[#allocation6 + $0x304] ss:$16 sps:$4 sm:$0xff]   ;;  %v19801_v58 = vld [vmem:[#allocation6 + $0x300] ss:$16 sps:$4 sm:$0xff]   ;;  %v19806_v24 = vld [vmem:[#allocation6 + $0x30c] ss:$16 sps:$4 sm:$0xff]  }
 0x220   :  { %v19804_v6 = vld [vmem:[#allocation6 + $0x308] ss:$16 sps:$4 sm:$0xff]   ;;  %v19809_v60 = vld [vmem:[#allocation6 + $0x324] ss:$16 sps:$4 sm:$0xff]   ;;  %v19807_v31 = vld [vmem:[#allocation6 + $0x320] ss:$16 sps:$4 sm:$0xff]  }
 0x221   :  { %3146 = vmatpush1.bf16.msra.mxu0 %v19771_v37  ;;  %v19812_v50 = vld [vmem:[#allocation6 + $0x32c] ss:$16 sps:$4 sm:$0xff]   ;;  %v19810_v17 = vld [vmem:[#allocation6 + $0x328] ss:$16 sps:$4 sm:$0xff]   ;;  %v19815_v16 = vld [vmem:[#allocation6 + $0x344] ss:$16 sps:$4 sm:$0xff]  }
 0x222   :  { %3232 = vmatpush1.bf16.msra.mxu1 %v19774_v8  ;;  %3147 = vmatprep.subr.bf16.mxu0 %v19779_v23  ;;  %v19813_v13 = vld [vmem:[#allocation6 + $0x340] ss:$16 sps:$4 sm:$0xff]   ;;  %v19818_v44 = vld [vmem:[#allocation6 + $0x34c] ss:$16 sps:$4 sm:$0xff]   ;;  %v19816_v14 = vld [vmem:[#allocation6 + $0x348] ss:$16 sps:$4 sm:$0xff]  }
 0x223   :  { %3233 = vmatprep.subr.bf16.mxu1 %v19782_v0  ;;  %v19821_v7 = vld [vmem:[#allocation6 + $0x364] ss:$16 sps:$4 sm:$0xff]   ;;  %v19819_v33 = vld [vmem:[#allocation6 + $0x360] ss:$16 sps:$4 sm:$0xff]   ;;  %v19824_v42 = vld [vmem:[#allocation6 + $0x36c] ss:$16 sps:$4 sm:$0xff]  }
 0x224   :  { %v19822_v5 = vld [vmem:[#allocation6 + $0x368] ss:$16 sps:$4 sm:$0xff]   ;;  %v19827_v2 = vld [vmem:[#allocation6 + $0x384] ss:$16 sps:$4 sm:$0xff]   ;;  %v19825_v45 = vld [vmem:[#allocation6 + $0x380] ss:$16 sps:$4 sm:$0xff]  }
 0x225   :  { %3148 = vmatpush1.bf16.msra.mxu0 %v19777_v61  ;;  %v19830_v10 = vld [vmem:[#allocation6 + $0x38c] ss:$16 sps:$4 sm:$0xff]   ;;  %v19828_v27 = vld [vmem:[#allocation6 + $0x388] ss:$16 sps:$4 sm:$0xff]   ;;  %v19833_v18 = vld [vmem:[#allocation6 + $0x3a4] ss:$16 sps:$4 sm:$0xff]  }
 0x226   :  { %3234 = vmatpush1.bf16.msra.mxu1 %v19780_v35  ;;  %3149 = vmatprep.subr.bf16.mxu0 %v19785_v56  ;;  %v19831_v15 = vld [vmem:[#allocation6 + $0x3a0] ss:$16 sps:$4 sm:$0xff]   ;;  %v19836_v9 = vld [vmem:[#allocation6 + $0x3ac] ss:$16 sps:$4 sm:$0xff]   ;;  %v19834_v3 = vld [vmem:[#allocation6 + $0x3a8] ss:$16 sps:$4 sm:$0xff]  }
 0x227   :  { %3235 = vmatprep.subr.bf16.mxu1 %v19788_v34  ;;  %v19839_v52 = vld [vmem:[#allocation6 + $0x3c4] ss:$16 sps:$4 sm:$0xff]   ;;  %v19837_v37 = vld [vmem:[#allocation6 + $0x3c0] ss:$16 sps:$4 sm:$0xff]   ;;  %v19842_v8 = vld [vmem:[#allocation6 + $0x3cc] ss:$16 sps:$4 sm:$0xff]  }
 0x228   :  { %v19840_v23 = vld [vmem:[#allocation6 + $0x3c8] ss:$16 sps:$4 sm:$0xff]   ;;  %v19845_v0 = vld [vmem:[#allocation6 + $0x3e4] ss:$16 sps:$4 sm:$0xff]   ;;  %v19843_v61 = vld [vmem:[#allocation6 + $0x3e0] ss:$16 sps:$4 sm:$0xff]  }
 0x229   :  { %3150 = vmatpush1.bf16.msra.mxu0 %v19783_v51  ;;  %v19848_v35 = vld [vmem:[#allocation6 + $0x3ec] ss:$16 sps:$4 sm:$0xff]   ;;  %v19846_v56 = vld [vmem:[#allocation6 + $0x3e8] ss:$16 sps:$4 sm:$0xff]   ;;  %v19851_v51 = vld [vmem:[#allocation6 + $0x804] ss:$16 sps:$4 sm:$0xff]  }
 0x22a   :  { %3236 = vmatpush1.bf16.msra.mxu1 %v19786_v38  ;;  %3151 = vmatprep.subr.bf16.mxu0 %v19791_v55  ;;  %v19849_v34 = vld [vmem:[#allocation6 + $0x800] ss:$16 sps:$4 sm:$0xff]   ;;  %v19854_v38 = vld [vmem:[#allocation6 + $0x80c] ss:$16 sps:$4 sm:$0xff]   ;;  %v19852_v55 = vld [vmem:[#allocation6 + $0x808] ss:$16 sps:$4 sm:$0xff]  }
 0x22b   :  { %3237 = vmatprep.subr.bf16.mxu1 %v19794_v46  ;;  %v24097_v46 = vld [vmem:[#allocation17_spill] sm:$0xff] }
 0x22d   :  { %3152 = vmatpush1.bf16.msra.mxu0 %v19789_v53  ;;  %v19857_v53 = vld [vmem:[#allocation6 + $0x824] ss:$16 sps:$4 sm:$0xff]  }
 0x22e   :  { %3238 = vmatpush1.bf16.msra.mxu1 %v19792_v59  ;;  %3153 = vmatprep.subr.bf16.mxu0 %v19797_v22  ;;  %v19855_v59 = vld [vmem:[#allocation6 + $0x820] ss:$16 sps:$4 sm:$0xff]   ;;  %v19860_v22 = vld [vmem:[#allocation6 + $0x82c] ss:$16 sps:$4 sm:$0xff]  }
 0x22f   :  { %3239 = vmatprep.subr.bf16.mxu1 %v19800_v29  ;;  %v19863_v29 = vld [vmem:[#allocation6 + $0x844] ss:$16 sps:$4 sm:$0xff]  }
 0x231   :  { %3154 = vmatpush1.bf16.msra.mxu0 %v19795_v48  ;;  %v19858_v48 = vld [vmem:[#allocation6 + $0x828] ss:$16 sps:$4 sm:$0xff]  }
 0x232   :  { %3240 = vmatpush1.bf16.msra.mxu1 %v19798_v19  ;;  %3155 = vmatprep.subr.bf16.mxu0 %v19803_v1  ;;  %v24098_v19 = vld [vmem:[#allocation28_spill] sm:$0xff] }
 0x233   :  { %3241 = vmatprep.subr.bf16.mxu1 %v19806_v24  ;;  %v19866_v1 = vld [vmem:[#allocation6 + $0x84c] ss:$16 sps:$4 sm:$0xff]   ;;  %v19864_v24 = vld [vmem:[#allocation6 + $0x848] ss:$16 sps:$4 sm:$0xff]  }
 0x235   :  { %3156 = vmatpush1.bf16.msra.mxu0 %v19801_v58  ;;  %v19861_v58 = vld [vmem:[#allocation6 + $0x840] ss:$16 sps:$4 sm:$0xff]  }
 0x236   :  { %3242 = vmatpush1.bf16.msra.mxu1 %v19804_v6  ;;  %3157 = vmatprep.subr.bf16.mxu0 %v19809_v60  ;;  %v19869_v6 = vld [vmem:[#allocation6 + $0x864] ss:$16 sps:$4 sm:$0xff]   ;;  %v19867_v60 = vld [vmem:[#allocation6 + $0x860] ss:$16 sps:$4 sm:$0xff]  }
 0x237   :  { %3243 = vmatprep.subr.bf16.mxu1 %v19812_v50  ;;  %v19870_v50 = vld [vmem:[#allocation6 + $0x868] ss:$16 sps:$4 sm:$0xff]  }
 0x239   :  { %3158 = vmatpush1.bf16.msra.mxu0 %v19807_v31  ;;  %v19872_v31 = vld [vmem:[#allocation6 + $0x86c] ss:$16 sps:$4 sm:$0xff]  }
 0x23a   :  { %3244 = vmatpush1.bf16.msra.mxu1 %v19810_v17  ;;  %3159 = vmatprep.subr.bf16.mxu0 %v19815_v16  ;;  %v19875_v17 = vld [vmem:[#allocation6 + $0x884] ss:$16 sps:$4 sm:$0xff]   ;;  %v19873_v16 = vld [vmem:[#allocation6 + $0x880] ss:$16 sps:$4 sm:$0xff]  }
 0x23b   :  { %3245 = vmatprep.subr.bf16.mxu1 %v19818_v44  ;;  %v19876_v44 = vld [vmem:[#allocation6 + $0x888] ss:$16 sps:$4 sm:$0xff]  }
 0x23d   :  { %3160 = vmatpush1.bf16.msra.mxu0 %v19813_v13  ;;  %v19878_v13 = vld [vmem:[#allocation6 + $0x88c] ss:$16 sps:$4 sm:$0xff]  }
 0x23e   :  { %3246 = vmatpush1.bf16.msra.mxu1 %v19816_v14  ;;  %3161 = vmatprep.subr.bf16.mxu0 %v19821_v7  ;;  %v19881_v14 = vld [vmem:[#allocation6 + $0x8a4] ss:$16 sps:$4 sm:$0xff]   ;;  %v19879_v7 = vld [vmem:[#allocation6 + $0x8a0] ss:$16 sps:$4 sm:$0xff]  }
 0x23f   :  { %3247 = vmatprep.subr.bf16.mxu1 %v19824_v42  ;;  %v19882_v42 = vld [vmem:[#allocation6 + $0x8a8] ss:$16 sps:$4 sm:$0xff]  }
 0x241   :  { %3162 = vmatpush1.bf16.msra.mxu0 %v19819_v33  ;;  %v19884_v33 = vld [vmem:[#allocation6 + $0x8ac] ss:$16 sps:$4 sm:$0xff]  }
 0x242   :  { %3248 = vmatpush1.bf16.msra.mxu1 %v19822_v5  ;;  %3163 = vmatprep.subr.bf16.mxu0 %v19827_v2  ;;  %v19887_v5 = vld [vmem:[#allocation6 + $0x8c4] ss:$16 sps:$4 sm:$0xff]   ;;  %v19885_v2 = vld [vmem:[#allocation6 + $0x8c0] ss:$16 sps:$4 sm:$0xff]  }
 0x243   :  { %3249 = vmatprep.subr.bf16.mxu1 %v19830_v10  ;;  %v19888_v10 = vld [vmem:[#allocation6 + $0x8c8] ss:$16 sps:$4 sm:$0xff]  }
 0x245   :  { %3164 = vmatpush1.bf16.msra.mxu0 %v19825_v45  ;;  %v19890_v45 = vld [vmem:[#allocation6 + $0x8cc] ss:$16 sps:$4 sm:$0xff]  }
 0x246   :  { %3250 = vmatpush1.bf16.msra.mxu1 %v19828_v27  ;;  %3165 = vmatprep.subr.bf16.mxu0 %v19833_v18  ;;  %v19893_v27 = vld [vmem:[#allocation6 + $0x8e4] ss:$16 sps:$4 sm:$0xff]   ;;  %v19891_v18 = vld [vmem:[#allocation6 + $0x8e0] ss:$16 sps:$4 sm:$0xff]  }
 0x247   :  { %3251 = vmatprep.subr.bf16.mxu1 %v19836_v9  ;;  %v19894_v9 = vld [vmem:[#allocation6 + $0x8e8] ss:$16 sps:$4 sm:$0xff]  }
 0x249   :  { %3166 = vmatpush1.bf16.msra.mxu0 %v19831_v15  ;;  %v19896_v15 = vld [vmem:[#allocation6 + $0x8ec] ss:$16 sps:$4 sm:$0xff]  }
 0x24a   :  { %3252 = vmatpush1.bf16.msra.mxu1 %v19834_v3  ;;  %3167 = vmatprep.subr.bf16.mxu0 %v19839_v52  ;;  %v19899_v3 = vld [vmem:[#allocation6 + $0x904] ss:$16 sps:$4 sm:$0xff]   ;;  %v19897_v52 = vld [vmem:[#allocation6 + $0x900] ss:$16 sps:$4 sm:$0xff]  }
 0x24b   :  { %3253 = vmatprep.subr.bf16.mxu1 %v19842_v8  ;;  %v19900_v8 = vld [vmem:[#allocation6 + $0x908] ss:$16 sps:$4 sm:$0xff]  }
 0x24d   :  { %3168 = vmatpush1.bf16.msra.mxu0 %v19837_v37  ;;  %v19902_v37 = vld [vmem:[#allocation6 + $0x90c] ss:$16 sps:$4 sm:$0xff]  }
 0x24e   :  { %3254 = vmatpush1.bf16.msra.mxu1 %v19840_v23  ;;  %3169 = vmatprep.subr.bf16.mxu0 %v19845_v0  ;;  %v19905_v23 = vld [vmem:[#allocation6 + $0x924] ss:$16 sps:$4 sm:$0xff]   ;;  %v19903_v0 = vld [vmem:[#allocation6 + $0x920] ss:$16 sps:$4 sm:$0xff]  }
 0x24f   :  { %3255 = vmatprep.subr.bf16.mxu1 %v19848_v35  ;;  %v19906_v35 = vld [vmem:[#allocation6 + $0x928] ss:$16 sps:$4 sm:$0xff]  }
 0x251   :  { %3170 = vmatpush1.bf16.msra.mxu0 %v19843_v61  ;;  %v19908_v61 = vld [vmem:[#allocation6 + $0x92c] ss:$16 sps:$4 sm:$0xff]  }
 0x252   :  { %3256 = vmatpush1.bf16.msra.mxu1 %v19846_v56  ;;  %4037 = vmatprep.subr.bf16.mxu0 %v19851_v51  ;;  %v19911_v56 = vld [vmem:[#allocation6 + $0x944] ss:$16 sps:$4 sm:$0xff]   ;;  %v19909_v51 = vld [vmem:[#allocation6 + $0x940] ss:$16 sps:$4 sm:$0xff]  }
 0x253   :  { %4123 = vmatprep.subr.bf16.mxu1 %v19854_v38  ;;  %v19912_v38 = vld [vmem:[#allocation6 + $0x948] ss:$16 sps:$4 sm:$0xff]  }
 0x254   :  { %3172 = vmatmul.mubr.bf16.vlgmr.msra.gmra.mrb[64].mxu0 %v24097_v46 }
 0x255   :  { %3258 = vmatmul.mubr.bf16.vlgmr.msra.gmra.mrb[64].mxu1 %v24097_v46  ;;  %4038 = vmatpush1.bf16.msra.mxu0 %v19849_v34  ;;  %v19914_v34 = vld [vmem:[#allocation6 + $0x94c] ss:$16 sps:$4 sm:$0xff]  }
 0x256   :  { %4069 = vmatprep.mubr.bf16.mxu0 %v24098_v19  ;;  %4124 = vmatpush1.bf16.msra.mxu1 %v19852_v55  ;;  %v19917_v55 = vld [vmem:[#allocation6 + $0x964] ss:$16 sps:$4 sm:$0xff]   ;;  %v19920_v46 = vld [vmem:[#allocation6 + $0x96c] ss:$16 sps:$4 sm:$0xff]  }
 0x257   :  { %4155 = vmatprep.mubr.bf16.mxu1 %v24098_v19  ;;  %4039 = vmatprep.subr.bf16.mxu0 %v19857_v53  ;;  %v19915_v53 = vld [vmem:[#allocation6 + $0x960] ss:$16 sps:$4 sm:$0xff]   ;;  %v19924_v19 = vld [vmem:[#allocation6 + $0x988] ss:$16 sps:$4 sm:$0xff]  }
 0x258   :  { %4125 = vmatprep.subr.bf16.mxu1 %v19860_v22  ;;  %v19923_v22 = vld [vmem:[#allocation6 + $0x984] ss:$16 sps:$4 sm:$0xff]  }
 0x259   :  { %4040 = vmatpush1.bf16.msra.mxu0 %v19855_v59  ;;  %v19918_v59 = vld [vmem:[#allocation6 + $0x968] ss:$16 sps:$4 sm:$0xff]  }
 0x25a   :  { %4126 = vmatpush1.bf16.msra.mxu1 %v19858_v48  ;;  %4041 = vmatprep.subr.bf16.mxu0 %v19863_v29  ;;  %v19921_v48 = vld [vmem:[#allocation6 + $0x980] ss:$16 sps:$4 sm:$0xff]   ;;  %v19926_v29 = vld [vmem:[#allocation6 + $0x98c] ss:$16 sps:$4 sm:$0xff]  }
 0x25b   :  { %4127 = vmatprep.subr.bf16.mxu1 %v19866_v1  ;;  %v19929_v1 = vld [vmem:[#allocation6 + $0x9a4] ss:$16 sps:$4 sm:$0xff]  }
 0x25d   :  { %4042 = vmatpush1.bf16.msra.mxu0 %v19861_v58  ;;  %v19927_v58 = vld [vmem:[#allocation6 + $0x9a0] ss:$16 sps:$4 sm:$0xff]  }
 0x25e   :  { %4128 = vmatpush1.bf16.msra.mxu1 %v19864_v24  ;;  %4043 = vmatprep.subr.bf16.mxu0 %v19869_v6  ;;  %v19932_v24 = vld [vmem:[#allocation6 + $0x9ac] ss:$16 sps:$4 sm:$0xff]   ;;  %v19930_v6 = vld [vmem:[#allocation6 + $0x9a8] ss:$16 sps:$4 sm:$0xff]  }
 0x25f   :  { %4129 = vmatprep.subr.bf16.mxu1 %v19872_v31  ;;  %v19933_v31 = vld [vmem:[#allocation6 + $0x9c0] ss:$16 sps:$4 sm:$0xff]  }
 0x261   :  { %4044 = vmatpush1.bf16.msra.mxu0 %v19867_v60  ;;  %v19935_v60 = vld [vmem:[#allocation6 + $0x9c4] ss:$16 sps:$4 sm:$0xff]  }
 0x262   :  { %4130 = vmatpush1.bf16.msra.mxu1 %v19870_v50  ;;  %4045 = vmatprep.subr.bf16.mxu0 %v19875_v17  ;;  %v19938_v50 = vld [vmem:[#allocation6 + $0x9cc] ss:$16 sps:$4 sm:$0xff]   ;;  %v19936_v17 = vld [vmem:[#allocation6 + $0x9c8] ss:$16 sps:$4 sm:$0xff]  }
 0x263   :  { %4131 = vmatprep.subr.bf16.mxu1 %v19878_v13  ;;  %v19939_v13 = vld [vmem:[#allocation6 + $0x9e0] ss:$16 sps:$4 sm:$0xff]  }
 0x265   :  { %4046 = vmatpush1.bf16.msra.mxu0 %v19873_v16  ;;  %v19941_v16 = vld [vmem:[#allocation6 + $0x9e4] ss:$16 sps:$4 sm:$0xff]  }
 0x266   :  { %4132 = vmatpush1.bf16.msra.mxu1 %v19876_v44  ;;  %4047 = vmatprep.subr.bf16.mxu0 %v19881_v14  ;;  %v19944_v44 = vld [vmem:[#allocation6 + $0x9ec] ss:$16 sps:$4 sm:$0xff]   ;;  %v19942_v14 = vld [vmem:[#allocation6 + $0x9e8] ss:$16 sps:$4 sm:$0xff]  }
 0x267   :  { %4133 = vmatprep.subr.bf16.mxu1 %v19884_v33  ;;  %v19945_v33 = vld [vmem:[#allocation6 + $0xa00] ss:$16 sps:$4 sm:$0xff]  }
 0x269   :  { %4048 = vmatpush1.bf16.msra.mxu0 %v19879_v7  ;;  %v19947_v7 = vld [vmem:[#allocation6 + $0xa04] ss:$16 sps:$4 sm:$0xff]  }
 0x26a   :  { %4134 = vmatpush1.bf16.msra.mxu1 %v19882_v42  ;;  %4049 = vmatprep.subr.bf16.mxu0 %v19887_v5  ;;  %v19950_v42 = vld [vmem:[#allocation6 + $0xa0c] ss:$16 sps:$4 sm:$0xff]   ;;  %v19948_v5 = vld [vmem:[#allocation6 + $0xa08] ss:$16 sps:$4 sm:$0xff]  }
 0x26b   :  { %4135 = vmatprep.subr.bf16.mxu1 %v19890_v45  ;;  %v24099_v45 = vld [vmem:[#allocation18_spill] sm:$0xff] }
 0x26d   :  { %4050 = vmatpush1.bf16.msra.mxu0 %v19885_v2  ;;  %v19953_v2 = vld [vmem:[#allocation6 + $0xa24] ss:$16 sps:$4 sm:$0xff]  }
 0x26e   :  { %4136 = vmatpush1.bf16.msra.mxu1 %v19888_v10  ;;  %4051 = vmatprep.subr.bf16.mxu0 %v19893_v27  ;;  %v19951_v10 = vld [vmem:[#allocation6 + $0xa20] ss:$16 sps:$4 sm:$0xff]   ;;  %v19954_v27 = vld [vmem:[#allocation6 + $0xa28] ss:$16 sps:$4 sm:$0xff]  }
 0x26f   :  { %4137 = vmatprep.subr.bf16.mxu1 %v19896_v15  ;;  %v19959_v15 = vld [vmem:[#allocation6 + $0xa44] ss:$16 sps:$4 sm:$0xff]  }
 0x271   :  { %4052 = vmatpush1.bf16.msra.mxu0 %v19891_v18  ;;  %v19956_v18 = vld [vmem:[#allocation6 + $0xa2c] ss:$16 sps:$4 sm:$0xff]  }
 0x272   :  { %4138 = vmatpush1.bf16.msra.mxu1 %v19894_v9  ;;  %4053 = vmatprep.subr.bf16.mxu0 %v19899_v3  ;;  %v24100_v9 = vld [vmem:[#allocation56_spill] sm:$0xff] }
 0x273   :  { %4139 = vmatprep.subr.bf16.mxu1 %v19902_v37  ;;  %v19962_v3 = vld [vmem:[#allocation6 + $0xa4c] ss:$16 sps:$4 sm:$0xff]   ;;  %v19960_v37 = vld [vmem:[#allocation6 + $0xa48] ss:$16 sps:$4 sm:$0xff]  }
 0x275   :  { %4054 = vmatpush1.bf16.msra.mxu0 %v19897_v52  ;;  %v19957_v52 = vld [vmem:[#allocation6 + $0xa40] ss:$16 sps:$4 sm:$0xff]  }
 0x276   :  { %4140 = vmatpush1.bf16.msra.mxu1 %v19900_v8  ;;  %4055 = vmatprep.subr.bf16.mxu0 %v19905_v23  ;;  %v19965_v8 = vld [vmem:[#allocation6 + $0xa64] ss:$16 sps:$4 sm:$0xff]   ;;  %v19963_v23 = vld [vmem:[#allocation6 + $0xa60] ss:$16 sps:$4 sm:$0xff]  }
 0x277   :  { %4141 = vmatprep.subr.bf16.mxu1 %v19908_v61  ;;  %v19966_v61 = vld [vmem:[#allocation6 + $0xa68] ss:$16 sps:$4 sm:$0xff]  }
 0x279   :  { %4056 = vmatpush1.bf16.msra.mxu0 %v19903_v0  ;;  %v19968_v0 = vld [vmem:[#allocation6 + $0xa6c] ss:$16 sps:$4 sm:$0xff]  }
 0x27a   :  { %4142 = vmatpush1.bf16.msra.mxu1 %v19906_v35  ;;  %4057 = vmatprep.subr.bf16.mxu0 %v19911_v56  ;;  %v19971_v35 = vld [vmem:[#allocation6 + $0xa84] ss:$16 sps:$4 sm:$0xff]   ;;  %v19969_v56 = vld [vmem:[#allocation6 + $0xa80] ss:$16 sps:$4 sm:$0xff]  }
 0x27b   :  { %4143 = vmatprep.subr.bf16.mxu1 %v19914_v34  ;;  %v19972_v34 = vld [vmem:[#allocation6 + $0xa88] ss:$16 sps:$4 sm:$0xff]  }
 0x27d   :  { %4058 = vmatpush1.bf16.msra.mxu0 %v19909_v51  ;;  %v19974_v51 = vld [vmem:[#allocation6 + $0xa8c] ss:$16 sps:$4 sm:$0xff]  }
 0x27e   :  { %4144 = vmatpush1.bf16.msra.mxu1 %v19912_v38  ;;  %4059 = vmatprep.subr.bf16.mxu0 %v19917_v55  ;;  %v19977_v38 = vld [vmem:[#allocation6 + $0xaa4] ss:$16 sps:$4 sm:$0xff]   ;;  %v19975_v55 = vld [vmem:[#allocation6 + $0xaa0] ss:$16 sps:$4 sm:$0xff]  }
 0x27f   :  { %4145 = vmatprep.subr.bf16.mxu1 %v19920_v46  ;;  %v19978_v46 = vld [vmem:[#allocation6 + $0xaa8] ss:$16 sps:$4 sm:$0xff]  }
 0x281   :  { %4060 = vmatpush1.bf16.msra.mxu0 %v19915_v53  ;;  %v19980_v53 = vld [vmem:[#allocation6 + $0xaac] ss:$16 sps:$4 sm:$0xff]  }
 0x282   :  { %4146 = vmatpush1.bf16.msra.mxu1 %v19918_v59  ;;  %4061 = vmatprep.subr.bf16.mxu0 %v19923_v22  ;;  %v19983_v59 = vld [vmem:[#allocation6 + $0xac4] ss:$16 sps:$4 sm:$0xff]   ;;  %v19981_v22 = vld [vmem:[#allocation6 + $0xac0] ss:$16 sps:$4 sm:$0xff]  }
 0x283   :  { %4147 = vmatprep.subr.bf16.mxu1 %v19926_v29  ;;  %v19984_v29 = vld [vmem:[#allocation6 + $0xac8] ss:$16 sps:$4 sm:$0xff]  }
 0x285   :  { %4062 = vmatpush1.bf16.msra.mxu0 %v19921_v48  ;;  %v19986_v48 = vld [vmem:[#allocation6 + $0xacc] ss:$16 sps:$4 sm:$0xff]  }
 0x286   :  { %4148 = vmatpush1.bf16.msra.mxu1 %v19924_v19  ;;  %4063 = vmatprep.subr.bf16.mxu0 %v19929_v1  ;;  %v19989_v19 = vld [vmem:[#allocation6 + $0xae4] ss:$16 sps:$4 sm:$0xff]   ;;  %v19987_v1 = vld [vmem:[#allocation6 + $0xae0] ss:$16 sps:$4 sm:$0xff]  }
 0x287   :  { %4149 = vmatprep.subr.bf16.mxu1 %v19932_v24  ;;  %v19990_v24 = vld [vmem:[#allocation6 + $0xae8] ss:$16 sps:$4 sm:$0xff]  }
 0x289   :  { %4064 = vmatpush1.bf16.msra.mxu0 %v19927_v58  ;;  %v19992_v58 = vld [vmem:[#allocation6 + $0xaec] ss:$16 sps:$4 sm:$0xff]  }
 0x28a   :  { %4150 = vmatpush1.bf16.msra.mxu1 %v19930_v6  ;;  %4065 = vmatprep.subr.bf16.mxu0 %v19935_v60  ;;  %v19995_v6 = vld [vmem:[#allocation6 + $0xb04] ss:$16 sps:$4 sm:$0xff]   ;;  %v19993_v60 = vld [vmem:[#allocation6 + $0xb00] ss:$16 sps:$4 sm:$0xff]  }
 0x28b   :  { %4151 = vmatprep.subr.bf16.mxu1 %v19938_v50  ;;  %v19996_v50 = vld [vmem:[#allocation6 + $0xb08] ss:$16 sps:$4 sm:$0xff]  }
 0x28d   :  { %4066 = vmatpush1.bf16.msra.mxu0 %v19933_v31  ;;  %v19998_v31 = vld [vmem:[#allocation6 + $0xb0c] ss:$16 sps:$4 sm:$0xff]  }
 0x28e   :  { %4152 = vmatpush1.bf16.msra.mxu1 %v19936_v17  ;;  %4067 = vmatprep.subr.bf16.mxu0 %v19941_v16  ;;  %v20001_v17 = vld [vmem:[#allocation6 + $0xb24] ss:$16 sps:$4 sm:$0xff]   ;;  %v19999_v16 = vld [vmem:[#allocation6 + $0xb20] ss:$16 sps:$4 sm:$0xff]  }
 0x28f   :  { %4153 = vmatprep.subr.bf16.mxu1 %v19944_v44  ;;  %v20002_v44 = vld [vmem:[#allocation6 + $0xb28] ss:$16 sps:$4 sm:$0xff]  }
 0x291   :  { %4068 = vmatpush1.bf16.msra.mxu0 %v19939_v13  ;;  %v20004_v13 = vld [vmem:[#allocation6 + $0xb2c] ss:$16 sps:$4 sm:$0xff]  }
 0x292   :  { %4154 = vmatpush1.bf16.msra.mxu1 %v19942_v14  ;;  %4080 = vmatprep.subr.bf16.mxu0 %v19947_v7  ;;  %v20007_v14 = vld [vmem:[#allocation6 + $0xb44] ss:$16 sps:$4 sm:$0xff]   ;;  %v20005_v7 = vld [vmem:[#allocation6 + $0xb40] ss:$16 sps:$4 sm:$0xff]  }
 0x293   :  { %4166 = vmatprep.subr.bf16.mxu1 %v19950_v42  ;;  %v20008_v42 = vld [vmem:[#allocation6 + $0xb48] ss:$16 sps:$4 sm:$0xff]  }
 0x294   :  { %4070 = vmatmul.mubr.bf16.vlgmr.msra.gmra.mrb[64].mxu0 %v24099_v45 }
 0x295   :  { %4156 = vmatmul.mubr.bf16.vlgmr.msra.gmra.mrb[64].mxu1 %v24099_v45  ;;  %4081 = vmatpush1.bf16.msra.mxu0 %v19945_v33  ;;  %v20010_v33 = vld [vmem:[#allocation6 + $0xb4c] ss:$16 sps:$4 sm:$0xff]  }
 0x296   :  { %4112 = vmatprep.mubr.bf16.mxu0 %v24100_v9  ;;  %4167 = vmatpush1.bf16.msra.mxu1 %v19948_v5  ;;  %v20013_v5 = vld [vmem:[#allocation6 + $0xb64] ss:$16 sps:$4 sm:$0xff]   ;;  %v20016_v45 = vld [vmem:[#allocation6 + $0xb6c] ss:$16 sps:$4 sm:$0xff]  }
 0x297   :  { %4198 = vmatprep.mubr.bf16.mxu1 %v24100_v9  ;;  %4082 = vmatprep.subr.bf16.mxu0 %v19953_v2  ;;  %v20011_v2 = vld [vmem:[#allocation6 + $0xb60] ss:$16 sps:$4 sm:$0xff]   ;;  %v20020_v9 = vld [vmem:[#allocation6 + $0xb88] ss:$16 sps:$4 sm:$0xff]  }
 0x298   :  { %4168 = vmatprep.subr.bf16.mxu1 %v19956_v18  ;;  %v20017_v18 = vld [vmem:[#allocation6 + $0xb80] ss:$16 sps:$4 sm:$0xff]  }
 0x299   :  { %4083 = vmatpush1.bf16.msra.mxu0 %v19951_v10  ;;  %v20014_v10 = vld [vmem:[#allocation6 + $0xb68] ss:$16 sps:$4 sm:$0xff]  }
 0x29a   :  { %4169 = vmatpush1.bf16.msra.mxu1 %v19954_v27  ;;  %4084 = vmatprep.subr.bf16.mxu0 %v19959_v15  ;;  %v20019_v27 = vld [vmem:[#allocation6 + $0xb84] ss:$16 sps:$4 sm:$0xff]   ;;  %v20022_v15 = vld [vmem:[#allocation6 + $0xb8c] ss:$16 sps:$4 sm:$0xff]  }
 0x29b   :  { %4170 = vmatprep.subr.bf16.mxu1 %v19962_v3  ;;  %v20025_v3 = vld [vmem:[#allocation6 + $0xba4] ss:$16 sps:$4 sm:$0xff]  }
 0x29d   :  { %4085 = vmatpush1.bf16.msra.mxu0 %v19957_v52  ;;  %v20023_v52 = vld [vmem:[#allocation6 + $0xba0] ss:$16 sps:$4 sm:$0xff]  }
 0x29e   :  { %4171 = vmatpush1.bf16.msra.mxu1 %v19960_v37  ;;  %4086 = vmatprep.subr.bf16.mxu0 %v19965_v8  ;;  %v20028_v37 = vld [vmem:[#allocation6 + $0xbac] ss:$16 sps:$4 sm:$0xff]   ;;  %v20026_v8 = vld [vmem:[#allocation6 + $0xba8] ss:$16 sps:$4 sm:$0xff]  }
 0x29f   :  { %4172 = vmatprep.subr.bf16.mxu1 %v19968_v0  ;;  %v20029_v0 = vld [vmem:[#allocation6 + $0xbc0] ss:$16 sps:$4 sm:$0xff]  }
 0x2a1   :  { %4087 = vmatpush1.bf16.msra.mxu0 %v19963_v23  ;;  %v20031_v23 = vld [vmem:[#allocation6 + $0xbc4] ss:$16 sps:$4 sm:$0xff]  }
 0x2a2   :  { %4173 = vmatpush1.bf16.msra.mxu1 %v19966_v61  ;;  %4088 = vmatprep.subr.bf16.mxu0 %v19971_v35  ;;  %v20034_v61 = vld [vmem:[#allocation6 + $0xbcc] ss:$16 sps:$4 sm:$0xff]   ;;  %v20032_v35 = vld [vmem:[#allocation6 + $0xbc8] ss:$16 sps:$4 sm:$0xff]  }
 0x2a3   :  { %4174 = vmatprep.subr.bf16.mxu1 %v19974_v51  ;;  %v20035_v51 = vld [vmem:[#allocation6 + $0xbe0] ss:$16 sps:$4 sm:$0xff]  }
 0x2a5   :  { %4089 = vmatpush1.bf16.msra.mxu0 %v19969_v56  ;;  %v20037_v56 = vld [vmem:[#allocation6 + $0xbe4] ss:$16 sps:$4 sm:$0xff]  }
 0x2a6   :  { %4175 = vmatpush1.bf16.msra.mxu1 %v19972_v34  ;;  %4090 = vmatprep.subr.bf16.mxu0 %v19977_v38  ;;  %v20040_v34 = vld [vmem:[#allocation6 + $0xbec] ss:$16 sps:$4 sm:$0xff]   ;;  %v20038_v38 = vld [vmem:[#allocation6 + $0xbe8] ss:$16 sps:$4 sm:$0xff]  }
 0x2a7   :  { %4176 = vmatprep.subr.bf16.mxu1 %v19980_v53  ;;  %v20046_v53 = vld [vmem:[#allocation6 + $0xc0c] ss:$16 sps:$4 sm:$0xff]  }
 0x2a9   :  { %4091 = vmatpush1.bf16.msra.mxu0 %v19975_v55  ;;  %v20043_v55 = vld [vmem:[#allocation6 + $0xc04] ss:$16 sps:$4 sm:$0xff]  }
 0x2aa   :  { %4177 = vmatpush1.bf16.msra.mxu1 %v19978_v46  ;;  %4092 = vmatprep.subr.bf16.mxu0 %v19983_v59  ;;  %v20041_v46 = vld [vmem:[#allocation6 + $0xc00] ss:$16 sps:$4 sm:$0xff]   ;;  %v20044_v59 = vld [vmem:[#allocation6 + $0xc08] ss:$16 sps:$4 sm:$0xff]  }
 0x2ab   :  { %4178 = vmatprep.subr.bf16.mxu1 %v19986_v48  ;;  %v24101_v48 = vld [vmem:[#allocation20_spill] sm:$0xff] }
 0x2ad   :  { %4093 = vmatpush1.bf16.msra.mxu0 %v19981_v22  ;;  %v20049_v22 = vld [vmem:[#allocation6 + $0xc24] ss:$16 sps:$4 sm:$0xff]  }
 0x2ae   :  { %4179 = vmatpush1.bf16.msra.mxu1 %v19984_v29  ;;  %4094 = vmatprep.subr.bf16.mxu0 %v19989_v19  ;;  %v20047_v29 = vld [vmem:[#allocation6 + $0xc20] ss:$16 sps:$4 sm:$0xff]   ;;  %v20052_v19 = vld [vmem:[#allocation6 + $0xc2c] ss:$16 sps:$4 sm:$0xff]  }
 0x2af   :  { %4180 = vmatprep.subr.bf16.mxu1 %v19992_v58  ;;  %v20055_v58 = vld [vmem:[#allocation6 + $0xc44] ss:$16 sps:$4 sm:$0xff]  }
 0x2b1   :  { %4095 = vmatpush1.bf16.msra.mxu0 %v19987_v1  ;;  %v20050_v1 = vld [vmem:[#allocation6 + $0xc28] ss:$16 sps:$4 sm:$0xff]  }
 0x2b2   :  { %4181 = vmatpush1.bf16.msra.mxu1 %v19990_v24  ;;  %4096 = vmatprep.subr.bf16.mxu0 %v19995_v6  ;;  %v24102_v24 = vld [vmem:[#allocation68_spill] sm:$0xff] }
 0x2b3   :  { %4182 = vmatprep.subr.bf16.mxu1 %v19998_v31  ;;  %v20058_v6 = vld [vmem:[#allocation6 + $0xc4c] ss:$16 sps:$4 sm:$0xff]   ;;  %v20056_v31 = vld [vmem:[#allocation6 + $0xc48] ss:$16 sps:$4 sm:$0xff]  }
 0x2b5   :  { %4097 = vmatpush1.bf16.msra.mxu0 %v19993_v60  ;;  %v20053_v60 = vld [vmem:[#allocation6 + $0xc40] ss:$16 sps:$4 sm:$0xff]  }
 0x2b6   :  { %4183 = vmatpush1.bf16.msra.mxu1 %v19996_v50  ;;  %4098 = vmatprep.subr.bf16.mxu0 %v20001_v17  ;;  %v20061_v50 = vld [vmem:[#allocation6 + $0xc64] ss:$16 sps:$4 sm:$0xff]   ;;  %v20059_v17 = vld [vmem:[#allocation6 + $0xc60] ss:$16 sps:$4 sm:$0xff]  }
 0x2b7   :  { %4184 = vmatprep.subr.bf16.mxu1 %v20004_v13  ;;  %v20062_v13 = vld [vmem:[#allocation6 + $0xc68] ss:$16 sps:$4 sm:$0xff]  }
 0x2b9   :  { %4099 = vmatpush1.bf16.msra.mxu0 %v19999_v16  ;;  %v20064_v16 = vld [vmem:[#allocation6 + $0xc6c] ss:$16 sps:$4 sm:$0xff]  }
 0x2ba   :  { %4185 = vmatpush1.bf16.msra.mxu1 %v20002_v44  ;;  %4100 = vmatprep.subr.bf16.mxu0 %v20007_v14  ;;  %v20067_v44 = vld [vmem:[#allocation6 + $0xc84] ss:$16 sps:$4 sm:$0xff]   ;;  %v20065_v14 = vld [vmem:[#allocation6 + $0xc80] ss:$16 sps:$4 sm:$0xff]  }
 0x2bb   :  { %4186 = vmatprep.subr.bf16.mxu1 %v20010_v33  ;;  %v20068_v33 = vld [vmem:[#allocation6 + $0xc88] ss:$16 sps:$4 sm:$0xff]  }
 0x2bd   :  { %4101 = vmatpush1.bf16.msra.mxu0 %v20005_v7  ;;  %v20070_v7 = vld [vmem:[#allocation6 + $0xc8c] ss:$16 sps:$4 sm:$0xff]  }
 0x2be   :  { %4187 = vmatpush1.bf16.msra.mxu1 %v20008_v42  ;;  %4102 = vmatprep.subr.bf16.mxu0 %v20013_v5  ;;  %v20073_v42 = vld [vmem:[#allocation6 + $0xca4] ss:$16 sps:$4 sm:$0xff]   ;;  %v20071_v5 = vld [vmem:[#allocation6 + $0xca0] ss:$16 sps:$4 sm:$0xff]  }
 0x2bf   :  { %4188 = vmatprep.subr.bf16.mxu1 %v20016_v45  ;;  %v20074_v45 = vld [vmem:[#allocation6 + $0xca8] ss:$16 sps:$4 sm:$0xff]  }
 0x2c1   :  { %4103 = vmatpush1.bf16.msra.mxu0 %v20011_v2  ;;  %v20076_v2 = vld [vmem:[#allocation6 + $0xcac] ss:$16 sps:$4 sm:$0xff]  }
 0x2c2   :  { %4189 = vmatpush1.bf16.msra.mxu1 %v20014_v10  ;;  %4104 = vmatprep.subr.bf16.mxu0 %v20019_v27  ;;  %v20079_v10 = vld [vmem:[#allocation6 + $0xcc4] ss:$16 sps:$4 sm:$0xff]   ;;  %v20077_v27 = vld [vmem:[#allocation6 + $0xcc0] ss:$16 sps:$4 sm:$0xff]  }
 0x2c3   :  { %4190 = vmatprep.subr.bf16.mxu1 %v20022_v15  ;;  %v20080_v15 = vld [vmem:[#allocation6 + $0xcc8] ss:$16 sps:$4 sm:$0xff]  }
 0x2c5   :  { %4105 = vmatpush1.bf16.msra.mxu0 %v20017_v18  ;;  %v20082_v18 = vld [vmem:[#allocation6 + $0xccc] ss:$16 sps:$4 sm:$0xff]  }
 0x2c6   :  { %4191 = vmatpush1.bf16.msra.mxu1 %v20020_v9  ;;  %4106 = vmatprep.subr.bf16.mxu0 %v20025_v3  ;;  %v20085_v9 = vld [vmem:[#allocation6 + $0xce4] ss:$16 sps:$4 sm:$0xff]   ;;  %v20083_v3 = vld [vmem:[#allocation6 + $0xce0] ss:$16 sps:$4 sm:$0xff]  }
 0x2c7   :  { %4192 = vmatprep.subr.bf16.mxu1 %v20028_v37  ;;  %v20086_v37 = vld [vmem:[#allocation6 + $0xce8] ss:$16 sps:$4 sm:$0xff]  }
 0x2c9   :  { %4107 = vmatpush1.bf16.msra.mxu0 %v20023_v52  ;;  %v20088_v52 = vld [vmem:[#allocation6 + $0xcec] ss:$16 sps:$4 sm:$0xff]  }
 0x2ca   :  { %4193 = vmatpush1.bf16.msra.mxu1 %v20026_v8  ;;  %4108 = vmatprep.subr.bf16.mxu0 %v20031_v23  ;;  %v20091_v8 = vld [vmem:[#allocation6 + $0xd04] ss:$16 sps:$4 sm:$0xff]   ;;  %v20089_v23 = vld [vmem:[#allocation6 + $0xd00] ss:$16 sps:$4 sm:$0xff]  }
 0x2cb   :  { %4194 = vmatprep.subr.bf16.mxu1 %v20034_v61  ;;  %v20092_v61 = vld [vmem:[#allocation6 + $0xd08] ss:$16 sps:$4 sm:$0xff]  }
 0x2cd   :  { %4109 = vmatpush1.bf16.msra.mxu0 %v20029_v0  ;;  %v20094_v0 = vld [vmem:[#allocation6 + $0xd0c] ss:$16 sps:$4 sm:$0xff]  }
 0x2ce   :  { %4195 = vmatpush1.bf16.msra.mxu1 %v20032_v35  ;;  %4110 = vmatprep.subr.bf16.mxu0 %v20037_v56  ;;  %v20097_v35 = vld [vmem:[#allocation6 + $0xd24] ss:$16 sps:$4 sm:$0xff]   ;;  %v20095_v56 = vld [vmem:[#allocation6 + $0xd20] ss:$16 sps:$4 sm:$0xff]  }
 0x2cf   :  { %4196 = vmatprep.subr.bf16.mxu1 %v20040_v34  ;;  %v20098_v34 = vld [vmem:[#allocation6 + $0xd28] ss:$16 sps:$4 sm:$0xff]  }
 0x2d1   :  { %4111 = vmatpush1.bf16.msra.mxu0 %v20035_v51  ;;  %v20100_v51 = vld [vmem:[#allocation6 + $0xd2c] ss:$16 sps:$4 sm:$0xff]  }
 0x2d2   :  { %4197 = vmatpush1.bf16.msra.mxu1 %v20038_v38  ;;  %4986 = vmatprep.subr.bf16.mxu0 %v20043_v55  ;;  %v20103_v38 = vld [vmem:[#allocation6 + $0xd44] ss:$16 sps:$4 sm:$0xff]   ;;  %v20101_v55 = vld [vmem:[#allocation6 + $0xd40] ss:$16 sps:$4 sm:$0xff]  }
 0x2d3   :  { %5072 = vmatprep.subr.bf16.mxu1 %v20046_v53  ;;  %v20106_v53 = vld [vmem:[#allocation6 + $0xd4c] ss:$16 sps:$4 sm:$0xff]  }
 0x2d4   :  { %4113 = vmatmul.mubr.bf16.vlgmr.msra.gmra.mrb[64].mxu0 %v24101_v48 }
 0x2d5   :  { %4199 = vmatmul.mubr.bf16.vlgmr.msra.gmra.mrb[64].mxu1 %v24101_v48  ;;  %4987 = vmatpush1.bf16.msra.mxu0 %v20041_v46  ;;  %v20104_v46 = vld [vmem:[#allocation6 + $0xd48] ss:$16 sps:$4 sm:$0xff]   ;;  %v20112_v48 = vld [vmem:[#allocation6 + $0xd6c] ss:$16 sps:$4 sm:$0xff]  }
 0x2d6   :  { %5018 = vmatprep.mubr.bf16.mxu0 %v24102_v24  ;;  %5073 = vmatpush1.bf16.msra.mxu1 %v20044_v59  ;;  %v20109_v59 = vld [vmem:[#allocation6 + $0xd64] ss:$16 sps:$4 sm:$0xff]  }
 0x2d7   :  { %5104 = vmatprep.mubr.bf16.mxu1 %v24102_v24  ;;  %4988 = vmatprep.subr.bf16.mxu0 %v20049_v22  ;;  %v20107_v22 = vld [vmem:[#allocation6 + $0xd60] ss:$16 sps:$4 sm:$0xff]   ;;  %v20116_v24 = vld [vmem:[#allocation6 + $0xd88] ss:$16 sps:$4 sm:$0xff]  }
 0x2d8   :  { %5074 = vmatprep.subr.bf16.mxu1 %v20052_v19  ;;  %v20115_v19 = vld [vmem:[#allocation6 + $0xd84] ss:$16 sps:$4 sm:$0xff]  }
 0x2d9   :  { %4989 = vmatpush1.bf16.msra.mxu0 %v20047_v29  ;;  %v20110_v29 = vld [vmem:[#allocation6 + $0xd68] ss:$16 sps:$4 sm:$0xff]  }
 0x2da   :  { %5075 = vmatpush1.bf16.msra.mxu1 %v20050_v1  ;;  %4990 = vmatprep.subr.bf16.mxu0 %v20055_v58  ;;  %v20113_v1 = vld [vmem:[#allocation6 + $0xd80] ss:$16 sps:$4 sm:$0xff]   ;;  %v20118_v58 = vld [vmem:[#allocation6 + $0xd8c] ss:$16 sps:$4 sm:$0xff]  }
 0x2db   :  { %5076 = vmatprep.subr.bf16.mxu1 %v20058_v6  ;;  %v20121_v6 = vld [vmem:[#allocation6 + $0xda4] ss:$16 sps:$4 sm:$0xff]  }
 0x2dd   :  { %4991 = vmatpush1.bf16.msra.mxu0 %v20053_v60  ;;  %v20119_v60 = vld [vmem:[#allocation6 + $0xda0] ss:$16 sps:$4 sm:$0xff]  }
 0x2de   :  { %5077 = vmatpush1.bf16.msra.mxu1 %v20056_v31  ;;  %4992 = vmatprep.subr.bf16.mxu0 %v20061_v50  ;;  %v20124_v31 = vld [vmem:[#allocation6 + $0xdac] ss:$16 sps:$4 sm:$0xff]   ;;  %v20122_v50 = vld [vmem:[#allocation6 + $0xda8] ss:$16 sps:$4 sm:$0xff]  }
 0x2df   :  { %5078 = vmatprep.subr.bf16.mxu1 %v20064_v16  ;;  %v20125_v16 = vld [vmem:[#allocation6 + $0xdc0] ss:$16 sps:$4 sm:$0xff]  }
 0x2e1   :  { %4993 = vmatpush1.bf16.msra.mxu0 %v20059_v17  ;;  %v20127_v17 = vld [vmem:[#allocation6 + $0xdc4] ss:$16 sps:$4 sm:$0xff]  }
 0x2e2   :  { %5079 = vmatpush1.bf16.msra.mxu1 %v20062_v13  ;;  %4994 = vmatprep.subr.bf16.mxu0 %v20067_v44  ;;  %v20130_v13 = vld [vmem:[#allocation6 + $0xdcc] ss:$16 sps:$4 sm:$0xff]   ;;  %v20128_v44 = vld [vmem:[#allocation6 + $0xdc8] ss:$16 sps:$4 sm:$0xff]  }
 0x2e3   :  { %5080 = vmatprep.subr.bf16.mxu1 %v20070_v7  ;;  %v20131_v7 = vld [vmem:[#allocation6 + $0xde0] ss:$16 sps:$4 sm:$0xff]  }
 0x2e5   :  { %4995 = vmatpush1.bf16.msra.mxu0 %v20065_v14  ;;  %v20133_v14 = vld [vmem:[#allocation6 + $0xde4] ss:$16 sps:$4 sm:$0xff]  }
 0x2e6   :  { %5081 = vmatpush1.bf16.msra.mxu1 %v20068_v33  ;;  %4996 = vmatprep.subr.bf16.mxu0 %v20073_v42  ;;  %v20136_v33 = vld [vmem:[#allocation6 + $0xdec] ss:$16 sps:$4 sm:$0xff]   ;;  %v20134_v42 = vld [vmem:[#allocation6 + $0xde8] ss:$16 sps:$4 sm:$0xff]  }
 0x2e7   :  { %5082 = vmatprep.subr.bf16.mxu1 %v20076_v2  ;;  %v20137_v2 = vld [vmem:[#allocation6 + $0xe00] ss:$16 sps:$4 sm:$0xff]  }
 0x2e9   :  { %4997 = vmatpush1.bf16.msra.mxu0 %v20071_v5  ;;  %v20139_v5 = vld [vmem:[#allocation6 + $0xe04] ss:$16 sps:$4 sm:$0xff]  }
 0x2ea   :  { %5083 = vmatpush1.bf16.msra.mxu1 %v20074_v45  ;;  %4998 = vmatprep.subr.bf16.mxu0 %v20079_v10  ;;  %v20142_v45 = vld [vmem:[#allocation6 + $0xe0c] ss:$16 sps:$4 sm:$0xff]   ;;  %v20140_v10 = vld [vmem:[#allocation6 + $0xe08] ss:$16 sps:$4 sm:$0xff]  }
 0x2eb   :  { %5084 = vmatprep.subr.bf16.mxu1 %v20082_v18  ;;  %v24103_v18 = vld [vmem:[#allocation19_spill] sm:$0xff] }
 0x2ed   :  { %4999 = vmatpush1.bf16.msra.mxu0 %v20077_v27  ;;  %v20145_v27 = vld [vmem:[#allocation6 + $0xe24] ss:$16 sps:$4 sm:$0xff]  }
 0x2ee   :  { %5085 = vmatpush1.bf16.msra.mxu1 %v20080_v15  ;;  %5000 = vmatprep.subr.bf16.mxu0 %v20085_v9  ;;  %v20143_v15 = vld [vmem:[#allocation6 + $0xe20] ss:$16 sps:$4 sm:$0xff]   ;;  %v20146_v9 = vld [vmem:[#allocation6 + $0xe28] ss:$16 sps:$4 sm:$0xff]  }
 0x2ef   :  { %5086 = vmatprep.subr.bf16.mxu1 %v20088_v52  ;;  %v20151_v52 = vld [vmem:[#allocation6 + $0xe44] ss:$16 sps:$4 sm:$0xff]  }
 0x2f1   :  { %5001 = vmatpush1.bf16.msra.mxu0 %v20083_v3  ;;  %v20148_v3 = vld [vmem:[#allocation6 + $0xe2c] ss:$16 sps:$4 sm:$0xff]  }
 0x2f2   :  { %5087 = vmatpush1.bf16.msra.mxu1 %v20086_v37  ;;  %5002 = vmatprep.subr.bf16.mxu0 %v20091_v8  ;;  %v24104_v37 = vld [vmem:[#allocation70_spill] sm:$0xff] }
 0x2f3   :  { %5088 = vmatprep.subr.bf16.mxu1 %v20094_v0  ;;  %v20154_v8 = vld [vmem:[#allocation6 + $0xe4c] ss:$16 sps:$4 sm:$0xff]   ;;  %v20152_v0 = vld [vmem:[#allocation6 + $0xe48] ss:$16 sps:$4 sm:$0xff]  }
 0x2f5   :  { %5003 = vmatpush1.bf16.msra.mxu0 %v20089_v23  ;;  %v20149_v23 = vld [vmem:[#allocation6 + $0xe40] ss:$16 sps:$4 sm:$0xff]  }
 0x2f6   :  { %5089 = vmatpush1.bf16.msra.mxu1 %v20092_v61  ;;  %5004 = vmatprep.subr.bf16.mxu0 %v20097_v35  ;;  %v20157_v61 = vld [vmem:[#allocation6 + $0xe64] ss:$16 sps:$4 sm:$0xff]   ;;  %v20155_v35 = vld [vmem:[#allocation6 + $0xe60] ss:$16 sps:$4 sm:$0xff]  }
 0x2f7   :  { %5090 = vmatprep.subr.bf16.mxu1 %v20100_v51  ;;  %v20158_v51 = vld [vmem:[#allocation6 + $0xe68] ss:$16 sps:$4 sm:$0xff]  }
 0x2f9   :  { %5005 = vmatpush1.bf16.msra.mxu0 %v20095_v56  ;;  %v20160_v56 = vld [vmem:[#allocation6 + $0xe6c] ss:$16 sps:$4 sm:$0xff]  }
 0x2fa   :  { %5091 = vmatpush1.bf16.msra.mxu1 %v20098_v34  ;;  %5006 = vmatprep.subr.bf16.mxu0 %v20103_v38  ;;  %v20163_v34 = vld [vmem:[#allocation6 + $0xe84] ss:$16 sps:$4 sm:$0xff]   ;;  %v20161_v38 = vld [vmem:[#allocation6 + $0xe80] ss:$16 sps:$4 sm:$0xff]  }
 0x2fb   :  { %5092 = vmatprep.subr.bf16.mxu1 %v20106_v53  ;;  %v20164_v53 = vld [vmem:[#allocation6 + $0xe88] ss:$16 sps:$4 sm:$0xff]  }
 0x2fd   :  { %5007 = vmatpush1.bf16.msra.mxu0 %v20101_v55  ;;  %v20166_v55 = vld [vmem:[#allocation6 + $0xe8c] ss:$16 sps:$4 sm:$0xff]  }
 0x2fe   :  { %5093 = vmatpush1.bf16.msra.mxu1 %v20104_v46  ;;  %5008 = vmatprep.subr.bf16.mxu0 %v20109_v59  ;;  %v20169_v46 = vld [vmem:[#allocation6 + $0xea4] ss:$16 sps:$4 sm:$0xff]   ;;  %v20167_v59 = vld [vmem:[#allocation6 + $0xea0] ss:$16 sps:$4 sm:$0xff]  }
 0x2ff   :  { %5094 = vmatprep.subr.bf16.mxu1 %v20112_v48  ;;  %v20170_v48 = vld [vmem:[#allocation6 + $0xea8] ss:$16 sps:$4 sm:$0xff]  }
 0x301   :  { %5009 = vmatpush1.bf16.msra.mxu0 %v20107_v22  ;;  %v20172_v22 = vld [vmem:[#allocation6 + $0xeac] ss:$16 sps:$4 sm:$0xff]  }
 0x302   :  { %5095 = vmatpush1.bf16.msra.mxu1 %v20110_v29  ;;  %5010 = vmatprep.subr.bf16.mxu0 %v20115_v19  ;;  %v20175_v29 = vld [vmem:[#allocation6 + $0xec4] ss:$16 sps:$4 sm:$0xff]   ;;  %v20173_v19 = vld [vmem:[#allocation6 + $0xec0] ss:$16 sps:$4 sm:$0xff]  }
 0x303   :  { %5096 = vmatprep.subr.bf16.mxu1 %v20118_v58  ;;  %v20176_v58 = vld [vmem:[#allocation6 + $0xec8] ss:$16 sps:$4 sm:$0xff]  }
 0x305   :  { %5011 = vmatpush1.bf16.msra.mxu0 %v20113_v1  ;;  %v20178_v1 = vld [vmem:[#allocation6 + $0xecc] ss:$16 sps:$4 sm:$0xff]  }
 0x306   :  { %5097 = vmatpush1.bf16.msra.mxu1 %v20116_v24  ;;  %5012 = vmatprep.subr.bf16.mxu0 %v20121_v6  ;;  %v20181_v24 = vld [vmem:[#allocation6 + $0xee4] ss:$16 sps:$4 sm:$0xff]   ;;  %v20179_v6 = vld [vmem:[#allocation6 + $0xee0] ss:$16 sps:$4 sm:$0xff]  }
 0x307   :  { %5098 = vmatprep.subr.bf16.mxu1 %v20124_v31  ;;  %v20182_v31 = vld [vmem:[#allocation6 + $0xee8] ss:$16 sps:$4 sm:$0xff]  }
 0x309   :  { %5013 = vmatpush1.bf16.msra.mxu0 %v20119_v60  ;;  %v20184_v60 = vld [vmem:[#allocation6 + $0xeec] ss:$16 sps:$4 sm:$0xff]  }
 0x30a   :  { %5099 = vmatpush1.bf16.msra.mxu1 %v20122_v50  ;;  %5014 = vmatprep.subr.bf16.mxu0 %v20127_v17  ;;  %v20187_v50 = vld [vmem:[#allocation6 + $0xf04] ss:$16 sps:$4 sm:$0xff]   ;;  %v20185_v17 = vld [vmem:[#allocation6 + $0xf00] ss:$16 sps:$4 sm:$0xff]  }
 0x30b   :  { %5100 = vmatprep.subr.bf16.mxu1 %v20130_v13  ;;  %v20188_v13 = vld [vmem:[#allocation6 + $0xf08] ss:$16 sps:$4 sm:$0xff]  }
 0x30d   :  { %5015 = vmatpush1.bf16.msra.mxu0 %v20125_v16  ;;  %v20190_v16 = vld [vmem:[#allocation6 + $0xf0c] ss:$16 sps:$4 sm:$0xff]  }
 0x30e   :  { %5101 = vmatpush1.bf16.msra.mxu1 %v20128_v44  ;;  %5016 = vmatprep.subr.bf16.mxu0 %v20133_v14  ;;  %v20193_v44 = vld [vmem:[#allocation6 + $0xf24] ss:$16 sps:$4 sm:$0xff]   ;;  %v20191_v14 = vld [vmem:[#allocation6 + $0xf20] ss:$16 sps:$4 sm:$0xff]  }
 0x30f   :  { %5102 = vmatprep.subr.bf16.mxu1 %v20136_v33  ;;  %v20194_v33 = vld [vmem:[#allocation6 + $0xf28] ss:$16 sps:$4 sm:$0xff]  }
 0x311   :  { %5017 = vmatpush1.bf16.msra.mxu0 %v20131_v7  ;;  %v20196_v7 = vld [vmem:[#allocation6 + $0xf2c] ss:$16 sps:$4 sm:$0xff]  }
 0x312   :  { %5103 = vmatpush1.bf16.msra.mxu1 %v20134_v42  ;;  %5029 = vmatprep.subr.bf16.mxu0 %v20139_v5  ;;  %v20199_v42 = vld [vmem:[#allocation6 + $0xf44] ss:$16 sps:$4 sm:$0xff]   ;;  %v20197_v5 = vld [vmem:[#allocation6 + $0xf40] ss:$16 sps:$4 sm:$0xff]  }
 0x313   :  { %5115 = vmatprep.subr.bf16.mxu1 %v20142_v45  ;;  %v20200_v45 = vld [vmem:[#allocation6 + $0xf48] ss:$16 sps:$4 sm:$0xff]  }
 0x314   :  { %5019 = vmatmul.mubr.bf16.vlgmr.msra.gmra.mrb[64].mxu0 %v24103_v18 }
 0x315   :  { %5105 = vmatmul.mubr.bf16.vlgmr.msra.gmra.mrb[64].mxu1 %v24103_v18  ;;  %5030 = vmatpush1.bf16.msra.mxu0 %v20137_v2  ;;  %v20202_v2 = vld [vmem:[#allocation6 + $0xf4c] ss:$16 sps:$4 sm:$0xff]  }
 0x316   :  { %5061 = vmatprep.mubr.bf16.mxu0 %v24104_v37  ;;  %5116 = vmatpush1.bf16.msra.mxu1 %v20140_v10  ;;  %v20205_v10 = vld [vmem:[#allocation6 + $0xf64] ss:$16 sps:$4 sm:$0xff]   ;;  %v20208_v18 = vld [vmem:[#allocation6 + $0xf6c] ss:$16 sps:$4 sm:$0xff]  }
 0x317   :  { %5147 = vmatprep.mubr.bf16.mxu1 %v24104_v37  ;;  %5031 = vmatprep.subr.bf16.mxu0 %v20145_v27  ;;  %v20203_v27 = vld [vmem:[#allocation6 + $0xf60] ss:$16 sps:$4 sm:$0xff]   ;;  %v20212_v37 = vld [vmem:[#allocation6 + $0xf88] ss:$16 sps:$4 sm:$0xff]  }
 0x318   :  { %5117 = vmatprep.subr.bf16.mxu1 %v20148_v3  ;;  %v20209_v3 = vld [vmem:[#allocation6 + $0xf80] ss:$16 sps:$4 sm:$0xff]  }
 0x319   :  { %5032 = vmatpush1.bf16.msra.mxu0 %v20143_v15  ;;  %v20206_v15 = vld [vmem:[#allocation6 + $0xf68] ss:$16 sps:$4 sm:$0xff]  }
 0x31a   :  { %5118 = vmatpush1.bf16.msra.mxu1 %v20146_v9  ;;  %5033 = vmatprep.subr.bf16.mxu0 %v20151_v52  ;;  %v20211_v9 = vld [vmem:[#allocation6 + $0xf84] ss:$16 sps:$4 sm:$0xff]   ;;  %v20214_v52 = vld [vmem:[#allocation6 + $0xf8c] ss:$16 sps:$4 sm:$0xff]  }
 0x31b   :  { %5119 = vmatprep.subr.bf16.mxu1 %v20154_v8  ;;  %v20217_v8 = vld [vmem:[#allocation6 + $0xfa4] ss:$16 sps:$4 sm:$0xff]  }
 0x31d   :  { %5034 = vmatpush1.bf16.msra.mxu0 %v20149_v23  ;;  %v20215_v23 = vld [vmem:[#allocation6 + $0xfa0] ss:$16 sps:$4 sm:$0xff]  }
 0x31e   :  { %5120 = vmatpush1.bf16.msra.mxu1 %v20152_v0  ;;  %5035 = vmatprep.subr.bf16.mxu0 %v20157_v61  ;;  %v20220_v0 = vld [vmem:[#allocation6 + $0xfac] ss:$16 sps:$4 sm:$0xff]   ;;  %v20218_v61 = vld [vmem:[#allocation6 + $0xfa8] ss:$16 sps:$4 sm:$0xff]  }
 0x31f   :  { %5121 = vmatprep.subr.bf16.mxu1 %v20160_v56  ;;  %v20221_v56 = vld [vmem:[#allocation6 + $0xfc0] ss:$16 sps:$4 sm:$0xff]  }
 0x321   :  { %5036 = vmatpush1.bf16.msra.mxu0 %v20155_v35  ;;  %v20223_v35 = vld [vmem:[#allocation6 + $0xfc4] ss:$16 sps:$4 sm:$0xff]  }
 0x322   :  { %5122 = vmatpush1.bf16.msra.mxu1 %v20158_v51  ;;  %5037 = vmatprep.subr.bf16.mxu0 %v20163_v34  ;;  %v20226_v51 = vld [vmem:[#allocation6 + $0xfcc] ss:$16 sps:$4 sm:$0xff]   ;;  %v20224_v34 = vld [vmem:[#allocation6 + $0xfc8] ss:$16 sps:$4 sm:$0xff]  }
 0x323   :  { %5123 = vmatprep.subr.bf16.mxu1 %v20166_v55  ;;  %v20227_v55 = vld [vmem:[#allocation6 + $0xfe0] ss:$16 sps:$4 sm:$0xff]  }
 0x325   :  { %5038 = vmatpush1.bf16.msra.mxu0 %v20161_v38  ;;  %v20229_v38 = vld [vmem:[#allocation6 + $0xfe4] ss:$16 sps:$4 sm:$0xff]  }
 0x326   :  { %5124 = vmatpush1.bf16.msra.mxu1 %v20164_v53  ;;  %5039 = vmatprep.subr.bf16.mxu0 %v20169_v46  ;;  %v20232_v53 = vld [vmem:[#allocation6 + $0xfec] ss:$16 sps:$4 sm:$0xff]   ;;  %v20230_v46 = vld [vmem:[#allocation6 + $0xfe8] ss:$16 sps:$4 sm:$0xff]  }
 0x327   :  { %5125 = vmatprep.subr.bf16.mxu1 %v20172_v22  ;;  %v20238_v22 = vld [vmem:[#allocation6 + $0x100c] ss:$16 sps:$4 sm:$0xff]  }
 0x329   :  { %5040 = vmatpush1.bf16.msra.mxu0 %v20167_v59  ;;  %v20235_v59 = vld [vmem:[#allocation6 + $0x1004] ss:$16 sps:$4 sm:$0xff]  }
 0x32a   :  { %5126 = vmatpush1.bf16.msra.mxu1 %v20170_v48  ;;  %5041 = vmatprep.subr.bf16.mxu0 %v20175_v29  ;;  %v20233_v48 = vld [vmem:[#allocation6 + $0x1000] ss:$16 sps:$4 sm:$0xff]   ;;  %v20236_v29 = vld [vmem:[#allocation6 + $0x1008] ss:$16 sps:$4 sm:$0xff]  }
 0x32b   :  { %5127 = vmatprep.subr.bf16.mxu1 %v20178_v1  ;;  %v24105_v1 = vld [vmem:[#allocation22_spill] sm:$0xff] }
 0x32d   :  { %5042 = vmatpush1.bf16.msra.mxu0 %v20173_v19  ;;  %v20241_v19 = vld [vmem:[#allocation6 + $0x1024] ss:$16 sps:$4 sm:$0xff]  }
 0x32e   :  { %5128 = vmatpush1.bf16.msra.mxu1 %v20176_v58  ;;  %5043 = vmatprep.subr.bf16.mxu0 %v20181_v24  ;;  %v20239_v58 = vld [vmem:[#allocation6 + $0x1020] ss:$16 sps:$4 sm:$0xff]   ;;  %v20244_v24 = vld [vmem:[#allocation6 + $0x102c] ss:$16 sps:$4 sm:$0xff]  }
 0x32f   :  { %5129 = vmatprep.subr.bf16.mxu1 %v20184_v60  ;;  %v20247_v60 = vld [vmem:[#allocation6 + $0x1044] ss:$16 sps:$4 sm:$0xff]  }
 0x331   :  { %5044 = vmatpush1.bf16.msra.mxu0 %v20179_v6  ;;  %v20242_v6 = vld [vmem:[#allocation6 + $0x1028] ss:$16 sps:$4 sm:$0xff]  }
 0x332   :  { %5130 = vmatpush1.bf16.msra.mxu1 %v20182_v31  ;;  %5045 = vmatprep.subr.bf16.mxu0 %v20187_v50  ;;  %v24106_v31 = vld [vmem:[#allocation73_spill] sm:$0xff] }
 0x333   :  { %5131 = vmatprep.subr.bf16.mxu1 %v20190_v16  ;;  %v20250_v50 = vld [vmem:[#allocation6 + $0x104c] ss:$16 sps:$4 sm:$0xff]   ;;  %v20248_v16 = vld [vmem:[#allocation6 + $0x1048] ss:$16 sps:$4 sm:$0xff]  }
 0x335   :  { %5046 = vmatpush1.bf16.msra.mxu0 %v20185_v17  ;;  %v20245_v17 = vld [vmem:[#allocation6 + $0x1040] ss:$16 sps:$4 sm:$0xff]  }
 0x336   :  { %5132 = vmatpush1.bf16.msra.mxu1 %v20188_v13  ;;  %5047 = vmatprep.subr.bf16.mxu0 %v20193_v44  ;;  %v20253_v13 = vld [vmem:[#allocation6 + $0x1064] ss:$16 sps:$4 sm:$0xff]   ;;  %v20251_v44 = vld [vmem:[#allocation6 + $0x1060] ss:$16 sps:$4 sm:$0xff]  }
 0x337   :  { %5133 = vmatprep.subr.bf16.mxu1 %v20196_v7  ;;  %v20254_v7 = vld [vmem:[#allocation6 + $0x1068] ss:$16 sps:$4 sm:$0xff]  }
 0x339   :  { %5048 = vmatpush1.bf16.msra.mxu0 %v20191_v14  ;;  %v20256_v14 = vld [vmem:[#allocation6 + $0x106c] ss:$16 sps:$4 sm:$0xff]  }
 0x33a   :  { %5134 = vmatpush1.bf16.msra.mxu1 %v20194_v33  ;;  %5049 = vmatprep.subr.bf16.mxu0 %v20199_v42  ;;  %v20259_v33 = vld [vmem:[#allocation6 + $0x1084] ss:$16 sps:$4 sm:$0xff]   ;;  %v20257_v42 = vld [vmem:[#allocation6 + $0x1080] ss:$16 sps:$4 sm:$0xff]  }
 0x33b   :  { %5135 = vmatprep.subr.bf16.mxu1 %v20202_v2  ;;  %v20260_v2 = vld [vmem:[#allocation6 + $0x1088] ss:$16 sps:$4 sm:$0xff]  }
 0x33d   :  { %5050 = vmatpush1.bf16.msra.mxu0 %v20197_v5  ;;  %v20262_v5 = vld [vmem:[#allocation6 + $0x108c] ss:$16 sps:$4 sm:$0xff]  }
 0x33e   :  { %5136 = vmatpush1.bf16.msra.mxu1 %v20200_v45  ;;  %5051 = vmatprep.subr.bf16.mxu0 %v20205_v10  ;;  %v20265_v45 = vld [vmem:[#allocation6 + $0x10a4] ss:$16 sps:$4 sm:$0xff]   ;;  %v20263_v10 = vld [vmem:[#allocation6 + $0x10a0] ss:$16 sps:$4 sm:$0xff]  }
 0x33f   :  { %5137 = vmatprep.subr.bf16.mxu1 %v20208_v18  ;;  %v20266_v18 = vld [vmem:[#allocation6 + $0x10a8] ss:$16 sps:$4 sm:$0xff]  }
 0x341   :  { %5052 = vmatpush1.bf16.msra.mxu0 %v20203_v27  ;;  %v20268_v27 = vld [vmem:[#allocation6 + $0x10ac] ss:$16 sps:$4 sm:$0xff]  }
 0x342   :  { %5138 = vmatpush1.bf16.msra.mxu1 %v20206_v15  ;;  %5053 = vmatprep.subr.bf16.mxu0 %v20211_v9  ;;  %v20271_v15 = vld [vmem:[#allocation6 + $0x10c4] ss:$16 sps:$4 sm:$0xff]   ;;  %v20269_v9 = vld [vmem:[#allocation6 + $0x10c0] ss:$16 sps:$4 sm:$0xff]  }
 0x343   :  { %5139 = vmatprep.subr.bf16.mxu1 %v20214_v52  ;;  %v20272_v52 = vld [vmem:[#allocation6 + $0x10c8] ss:$16 sps:$4 sm:$0xff]  }
 0x345   :  { %5054 = vmatpush1.bf16.msra.mxu0 %v20209_v3  ;;  %v20274_v3 = vld [vmem:[#allocation6 + $0x10cc] ss:$16 sps:$4 sm:$0xff]  }
 0x346   :  { %5140 = vmatpush1.bf16.msra.mxu1 %v20212_v37  ;;  %5055 = vmatprep.subr.bf16.mxu0 %v20217_v8  ;;  %v20277_v37 = vld [vmem:[#allocation6 + $0x10e4] ss:$16 sps:$4 sm:$0xff]   ;;  %v20275_v8 = vld [vmem:[#allocation6 + $0x10e0] ss:$16 sps:$4 sm:$0xff]  }
 0x347   :  { %5141 = vmatprep.subr.bf16.mxu1 %v20220_v0  ;;  %v20278_v0 = vld [vmem:[#allocation6 + $0x10e8] ss:$16 sps:$4 sm:$0xff]  }
 0x349   :  { %5056 = vmatpush1.bf16.msra.mxu0 %v20215_v23  ;;  %v20280_v23 = vld [vmem:[#allocation6 + $0x10ec] ss:$16 sps:$4 sm:$0xff]  }
 0x34a   :  { %5142 = vmatpush1.bf16.msra.mxu1 %v20218_v61  ;;  %5057 = vmatprep.subr.bf16.mxu0 %v20223_v35  ;;  %v20283_v61 = vld [vmem:[#allocation6 + $0x1104] ss:$16 sps:$4 sm:$0xff]   ;;  %v20281_v35 = vld [vmem:[#allocation6 + $0x1100] ss:$16 sps:$4 sm:$0xff]  }
 0x34b   :  { %5143 = vmatprep.subr.bf16.mxu1 %v20226_v51  ;;  %v20284_v51 = vld [vmem:[#allocation6 + $0x1108] ss:$16 sps:$4 sm:$0xff]  }
 0x34d   :  { %5058 = vmatpush1.bf16.msra.mxu0 %v20221_v56  ;;  %v20286_v56 = vld [vmem:[#allocation6 + $0x110c] ss:$16 sps:$4 sm:$0xff]  }
 0x34e   :  { %5144 = vmatpush1.bf16.msra.mxu1 %v20224_v34  ;;  %5059 = vmatprep.subr.bf16.mxu0 %v20229_v38  ;;  %v20289_v34 = vld [vmem:[#allocation6 + $0x1124] ss:$16 sps:$4 sm:$0xff]   ;;  %v20287_v38 = vld [vmem:[#allocation6 + $0x1120] ss:$16 sps:$4 sm:$0xff]  }
 0x34f   :  { %5145 = vmatprep.subr.bf16.mxu1 %v20232_v53  ;;  %v20290_v53 = vld [vmem:[#allocation6 + $0x1128] ss:$16 sps:$4 sm:$0xff]  }
 0x351   :  { %5060 = vmatpush1.bf16.msra.mxu0 %v20227_v55  ;;  %v20292_v55 = vld [vmem:[#allocation6 + $0x112c] ss:$16 sps:$4 sm:$0xff]  }
 0x352   :  { %5146 = vmatpush1.bf16.msra.mxu1 %v20230_v46  ;;  %5935 = vmatprep.subr.bf16.mxu0 %v20235_v59  ;;  %v20295_v46 = vld [vmem:[#allocation6 + $0x1144] ss:$16 sps:$4 sm:$0xff]   ;;  %v20293_v59 = vld [vmem:[#allocation6 + $0x1140] ss:$16 sps:$4 sm:$0xff]  }
 0x353   :  { %6021 = vmatprep.subr.bf16.mxu1 %v20238_v22  ;;  %v20298_v22 = vld [vmem:[#allocation6 + $0x114c] ss:$16 sps:$4 sm:$0xff]  }
 0x354   :  { %5062 = vmatmul.mubr.bf16.vlgmr.msra.gmra.mrb[64].mxu0 %v24105_v1 }
 0x355   :  { %5148 = vmatmul.mubr.bf16.vlgmr.msra.gmra.mrb[64].mxu1 %v24105_v1  ;;  %5936 = vmatpush1.bf16.msra.mxu0 %v20233_v48  ;;  %v20296_v48 = vld [vmem:[#allocation6 + $0x1148] ss:$16 sps:$4 sm:$0xff]   ;;  %v20304_v1 = vld [vmem:[#allocation6 + $0x116c] ss:$16 sps:$4 sm:$0xff]  }
 0x356   :  { %5967 = vmatprep.mubr.bf16.mxu0 %v24106_v31  ;;  %6022 = vmatpush1.bf16.msra.mxu1 %v20236_v29  ;;  %v20301_v29 = vld [vmem:[#allocation6 + $0x1164] ss:$16 sps:$4 sm:$0xff]  }
 0x357   :  { %6053 = vmatprep.mubr.bf16.mxu1 %v24106_v31  ;;  %5937 = vmatprep.subr.bf16.mxu0 %v20241_v19  ;;  %v20299_v19 = vld [vmem:[#allocation6 + $0x1160] ss:$16 sps:$4 sm:$0xff]   ;;  %v20308_v31 = vld [vmem:[#allocation6 + $0x1188] ss:$16 sps:$4 sm:$0xff]  }
 0x358   :  { %6023 = vmatprep.subr.bf16.mxu1 %v20244_v24  ;;  %v20307_v24 = vld [vmem:[#allocation6 + $0x1184] ss:$16 sps:$4 sm:$0xff]  }
 0x359   :  { %5938 = vmatpush1.bf16.msra.mxu0 %v20239_v58  ;;  %v20302_v58 = vld [vmem:[#allocation6 + $0x1168] ss:$16 sps:$4 sm:$0xff]  }
 0x35a   :  { %6024 = vmatpush1.bf16.msra.mxu1 %v20242_v6  ;;  %5939 = vmatprep.subr.bf16.mxu0 %v20247_v60  ;;  %v20305_v6 = vld [vmem:[#allocation6 + $0x1180] ss:$16 sps:$4 sm:$0xff]   ;;  %v20310_v60 = vld [vmem:[#allocation6 + $0x118c] ss:$16 sps:$4 sm:$0xff]  }
 0x35b   :  { %6025 = vmatprep.subr.bf16.mxu1 %v20250_v50  ;;  %v20313_v50 = vld [vmem:[#allocation6 + $0x11a4] ss:$16 sps:$4 sm:$0xff]  }
 0x35d   :  { %5940 = vmatpush1.bf16.msra.mxu0 %v20245_v17  ;;  %v20311_v17 = vld [vmem:[#allocation6 + $0x11a0] ss:$16 sps:$4 sm:$0xff]  }
 0x35e   :  { %6026 = vmatpush1.bf16.msra.mxu1 %v20248_v16  ;;  %5941 = vmatprep.subr.bf16.mxu0 %v20253_v13  ;;  %v20316_v16 = vld [vmem:[#allocation6 + $0x11ac] ss:$16 sps:$4 sm:$0xff]   ;;  %v20314_v13 = vld [vmem:[#allocation6 + $0x11a8] ss:$16 sps:$4 sm:$0xff]  }
 0x35f   :  { %6027 = vmatprep.subr.bf16.mxu1 %v20256_v14  ;;  %v20317_v14 = vld [vmem:[#allocation6 + $0x11c0] ss:$16 sps:$4 sm:$0xff]  }
 0x361   :  { %5942 = vmatpush1.bf16.msra.mxu0 %v20251_v44  ;;  %v20319_v44 = vld [vmem:[#allocation6 + $0x11c4] ss:$16 sps:$4 sm:$0xff]  }
 0x362   :  { %6028 = vmatpush1.bf16.msra.mxu1 %v20254_v7  ;;  %5943 = vmatprep.subr.bf16.mxu0 %v20259_v33  ;;  %v20322_v7 = vld [vmem:[#allocation6 + $0x11cc] ss:$16 sps:$4 sm:$0xff]   ;;  %v20320_v33 = vld [vmem:[#allocation6 + $0x11c8] ss:$16 sps:$4 sm:$0xff]  }
 0x363   :  { %6029 = vmatprep.subr.bf16.mxu1 %v20262_v5  ;;  %v20323_v5 = vld [vmem:[#allocation6 + $0x11e0] ss:$16 sps:$4 sm:$0xff]  }
 0x365   :  { %5944 = vmatpush1.bf16.msra.mxu0 %v20257_v42  ;;  %v20325_v42 = vld [vmem:[#allocation6 + $0x11e4] ss:$16 sps:$4 sm:$0xff]  }
 0x366   :  { %6030 = vmatpush1.bf16.msra.mxu1 %v20260_v2  ;;  %5945 = vmatprep.subr.bf16.mxu0 %v20265_v45  ;;  %v20328_v2 = vld [vmem:[#allocation6 + $0x11ec] ss:$16 sps:$4 sm:$0xff]   ;;  %v20326_v45 = vld [vmem:[#allocation6 + $0x11e8] ss:$16 sps:$4 sm:$0xff]  }
 0x367   :  { %6031 = vmatprep.subr.bf16.mxu1 %v20268_v27  ;;  %v20329_v27 = vld [vmem:[#allocation6 + $0x1200] ss:$16 sps:$4 sm:$0xff]  }
 0x369   :  { %5946 = vmatpush1.bf16.msra.mxu0 %v20263_v10  ;;  %v20331_v10 = vld [vmem:[#allocation6 + $0x1204] ss:$16 sps:$4 sm:$0xff]  }
 0x36a   :  { %6032 = vmatpush1.bf16.msra.mxu1 %v20266_v18  ;;  %5947 = vmatprep.subr.bf16.mxu0 %v20271_v15  ;;  %v20334_v18 = vld [vmem:[#allocation6 + $0x120c] ss:$16 sps:$4 sm:$0xff]   ;;  %v20332_v15 = vld [vmem:[#allocation6 + $0x1208] ss:$16 sps:$4 sm:$0xff]  }
 0x36b   :  { %6033 = vmatprep.subr.bf16.mxu1 %v20274_v3  ;;  %v24107_v3 = vld [vmem:[#allocation21_spill] sm:$0xff] }
 0x36d   :  { %5948 = vmatpush1.bf16.msra.mxu0 %v20269_v9  ;;  %v20337_v9 = vld [vmem:[#allocation6 + $0x1224] ss:$16 sps:$4 sm:$0xff]  }
 0x36e   :  { %6034 = vmatpush1.bf16.msra.mxu1 %v20272_v52  ;;  %5949 = vmatprep.subr.bf16.mxu0 %v20277_v37  ;;  %v20335_v52 = vld [vmem:[#allocation6 + $0x1220] ss:$16 sps:$4 sm:$0xff]   ;;  %v20338_v37 = vld [vmem:[#allocation6 + $0x1228] ss:$16 sps:$4 sm:$0xff]  }
 0x36f   :  { %6035 = vmatprep.subr.bf16.mxu1 %v20280_v23  ;;  %v20343_v23 = vld [vmem:[#allocation6 + $0x1244] ss:$16 sps:$4 sm:$0xff]  }
 0x371   :  { %5950 = vmatpush1.bf16.msra.mxu0 %v20275_v8  ;;  %v20340_v8 = vld [vmem:[#allocation6 + $0x122c] ss:$16 sps:$4 sm:$0xff]  }
 0x372   :  { %6036 = vmatpush1.bf16.msra.mxu1 %v20278_v0  ;;  %5951 = vmatprep.subr.bf16.mxu0 %v20283_v61  ;;  %v24108_v0 = vld [vmem:[#allocation34_spill] sm:$0xff] }
 0x373   :  { %6037 = vmatprep.subr.bf16.mxu1 %v20286_v56  ;;  %v20346_v61 = vld [vmem:[#allocation6 + $0x124c] ss:$16 sps:$4 sm:$0xff]   ;;  %v20344_v56 = vld [vmem:[#allocation6 + $0x1248] ss:$16 sps:$4 sm:$0xff]  }
 0x375   :  { %5952 = vmatpush1.bf16.msra.mxu0 %v20281_v35  ;;  %v20341_v35 = vld [vmem:[#allocation6 + $0x1240] ss:$16 sps:$4 sm:$0xff]  }
 0x376   :  { %6038 = vmatpush1.bf16.msra.mxu1 %v20284_v51  ;;  %5953 = vmatprep.subr.bf16.mxu0 %v20289_v34  ;;  %v20349_v51 = vld [vmem:[#allocation6 + $0x1264] ss:$16 sps:$4 sm:$0xff]   ;;  %v20347_v34 = vld [vmem:[#allocation6 + $0x1260] ss:$16 sps:$4 sm:$0xff]  }
 0x377   :  { %6039 = vmatprep.subr.bf16.mxu1 %v20292_v55  ;;  %v20350_v55 = vld [vmem:[#allocation6 + $0x1268] ss:$16 sps:$4 sm:$0xff]  }
 0x379   :  { %5954 = vmatpush1.bf16.msra.mxu0 %v20287_v38  ;;  %v20352_v38 = vld [vmem:[#allocation6 + $0x126c] ss:$16 sps:$4 sm:$0xff]  }
 0x37a   :  { %6040 = vmatpush1.bf16.msra.mxu1 %v20290_v53  ;;  %5955 = vmatprep.subr.bf16.mxu0 %v20295_v46  ;;  %v20355_v53 = vld [vmem:[#allocation6 + $0x1284] ss:$16 sps:$4 sm:$0xff]   ;;  %v20353_v46 = vld [vmem:[#allocation6 + $0x1280] ss:$16 sps:$4 sm:$0xff]  }
 0x37b   :  { %6041 = vmatprep.subr.bf16.mxu1 %v20298_v22  ;;  %v20356_v22 = vld [vmem:[#allocation6 + $0x1288] ss:$16 sps:$4 sm:$0xff]  }
 0x37d   :  { %5956 = vmatpush1.bf16.msra.mxu0 %v20293_v59  ;;  %v20358_v59 = vld [vmem:[#allocation6 + $0x128c] ss:$16 sps:$4 sm:$0xff]  }
 0x37e   :  { %6042 = vmatpush1.bf16.msra.mxu1 %v20296_v48  ;;  %5957 = vmatprep.subr.bf16.mxu0 %v20301_v29  ;;  %v20361_v48 = vld [vmem:[#allocation6 + $0x12a4] ss:$16 sps:$4 sm:$0xff]   ;;  %v20359_v29 = vld [vmem:[#allocation6 + $0x12a0] ss:$16 sps:$4 sm:$0xff]  }
 0x37f   :  { %6043 = vmatprep.subr.bf16.mxu1 %v20304_v1  ;;  %v20362_v1 = vld [vmem:[#allocation6 + $0x12a8] ss:$16 sps:$4 sm:$0xff]  }
 0x381   :  { %5958 = vmatpush1.bf16.msra.mxu0 %v20299_v19  ;;  %v20364_v19 = vld [vmem:[#allocation6 + $0x12ac] ss:$16 sps:$4 sm:$0xff]  }
 0x382   :  { %6044 = vmatpush1.bf16.msra.mxu1 %v20302_v58  ;;  %5959 = vmatprep.subr.bf16.mxu0 %v20307_v24  ;;  %v20367_v58 = vld [vmem:[#allocation6 + $0x12c4] ss:$16 sps:$4 sm:$0xff]   ;;  %v20365_v24 = vld [vmem:[#allocation6 + $0x12c0] ss:$16 sps:$4 sm:$0xff]  }
 0x383   :  { %6045 = vmatprep.subr.bf16.mxu1 %v20310_v60  ;;  %v20368_v60 = vld [vmem:[#allocation6 + $0x12c8] ss:$16 sps:$4 sm:$0xff]  }
 0x385   :  { %5960 = vmatpush1.bf16.msra.mxu0 %v20305_v6  ;;  %v20370_v6 = vld [vmem:[#allocation6 + $0x12cc] ss:$16 sps:$4 sm:$0xff]  }
 0x386   :  { %6046 = vmatpush1.bf16.msra.mxu1 %v20308_v31  ;;  %5961 = vmatprep.subr.bf16.mxu0 %v20313_v50  ;;  %v20373_v31 = vld [vmem:[#allocation6 + $0x12e4] ss:$16 sps:$4 sm:$0xff]   ;;  %v20371_v50 = vld [vmem:[#allocation6 + $0x12e0] ss:$16 sps:$4 sm:$0xff]  }
 0x387   :  { %6047 = vmatprep.subr.bf16.mxu1 %v20316_v16  ;;  %v20374_v16 = vld [vmem:[#allocation6 + $0x12e8] ss:$16 sps:$4 sm:$0xff]  }
 0x389   :  { %5962 = vmatpush1.bf16.msra.mxu0 %v20311_v17  ;;  %v20376_v17 = vld [vmem:[#allocation6 + $0x12ec] ss:$16 sps:$4 sm:$0xff]  }
 0x38a   :  { %6048 = vmatpush1.bf16.msra.mxu1 %v20314_v13  ;;  %5963 = vmatprep.subr.bf16.mxu0 %v20319_v44  ;;  %v20379_v13 = vld [vmem:[#allocation6 + $0x1304] ss:$16 sps:$4 sm:$0xff]   ;;  %v20377_v44 = vld [vmem:[#allocation6 + $0x1300] ss:$16 sps:$4 sm:$0xff]  }
 0x38b   :  { %6049 = vmatprep.subr.bf16.mxu1 %v20322_v7  ;;  %v20380_v7 = vld [vmem:[#allocation6 + $0x1308] ss:$16 sps:$4 sm:$0xff]  }
 0x38d   :  { %5964 = vmatpush1.bf16.msra.mxu0 %v20317_v14  ;;  %v20382_v14 = vld [vmem:[#allocation6 + $0x130c] ss:$16 sps:$4 sm:$0xff]  }
 0x38e   :  { %6050 = vmatpush1.bf16.msra.mxu1 %v20320_v33  ;;  %5965 = vmatprep.subr.bf16.mxu0 %v20325_v42  ;;  %v20385_v33 = vld [vmem:[#allocation6 + $0x1324] ss:$16 sps:$4 sm:$0xff]   ;;  %v20383_v42 = vld [vmem:[#allocation6 + $0x1320] ss:$16 sps:$4 sm:$0xff]  }
 0x38f   :  { %6051 = vmatprep.subr.bf16.mxu1 %v20328_v2  ;;  %v20386_v2 = vld [vmem:[#allocation6 + $0x1328] ss:$16 sps:$4 sm:$0xff]  }
 0x391   :  { %5966 = vmatpush1.bf16.msra.mxu0 %v20323_v5  ;;  %v20388_v5 = vld [vmem:[#allocation6 + $0x132c] ss:$16 sps:$4 sm:$0xff]  }
 0x392   :  { %6052 = vmatpush1.bf16.msra.mxu1 %v20326_v45  ;;  %5978 = vmatprep.subr.bf16.mxu0 %v20331_v10  ;;  %v20391_v45 = vld [vmem:[#allocation6 + $0x1344] ss:$16 sps:$4 sm:$0xff]   ;;  %v20389_v10 = vld [vmem:[#allocation6 + $0x1340] ss:$16 sps:$4 sm:$0xff]  }
 0x393   :  { %6064 = vmatprep.subr.bf16.mxu1 %v20334_v18  ;;  %v20392_v18 = vld [vmem:[#allocation6 + $0x1348] ss:$16 sps:$4 sm:$0xff]  }
 0x394   :  { %5968 = vmatmul.mubr.bf16.vlgmr.msra.gmra.mrb[64].mxu0 %v24107_v3 }
 0x395   :  { %6054 = vmatmul.mubr.bf16.vlgmr.msra.gmra.mrb[64].mxu1 %v24107_v3  ;;  %5979 = vmatpush1.bf16.msra.mxu0 %v20329_v27  ;;  %v20394_v27 = vld [vmem:[#allocation6 + $0x134c] ss:$16 sps:$4 sm:$0xff]  }
 0x396   :  { %6010 = vmatprep.mubr.bf16.mxu0 %v24108_v0  ;;  %6065 = vmatpush1.bf16.msra.mxu1 %v20332_v15  ;;  %v20397_v15 = vld [vmem:[#allocation6 + $0x1364] ss:$16 sps:$4 sm:$0xff]   ;;  %v20400_v3 = vld [vmem:[#allocation6 + $0x136c] ss:$16 sps:$4 sm:$0xff]  }
 0x397   :  { %6096 = vmatprep.mubr.bf16.mxu1 %v24108_v0  ;;  %5980 = vmatprep.subr.bf16.mxu0 %v20337_v9  ;;  %v20395_v9 = vld [vmem:[#allocation6 + $0x1360] ss:$16 sps:$4 sm:$0xff]   ;;  %v20404_v0 = vld [vmem:[#allocation6 + $0x1388] ss:$16 sps:$4 sm:$0xff]  }
 0x398   :  { %6066 = vmatprep.subr.bf16.mxu1 %v20340_v8  ;;  %v20401_v8 = vld [vmem:[#allocation6 + $0x1380] ss:$16 sps:$4 sm:$0xff]  }
 0x399   :  { %5981 = vmatpush1.bf16.msra.mxu0 %v20335_v52  ;;  %v20398_v52 = vld [vmem:[#allocation6 + $0x1368] ss:$16 sps:$4 sm:$0xff]  }
 0x39a   :  { %6067 = vmatpush1.bf16.msra.mxu1 %v20338_v37  ;;  %5982 = vmatprep.subr.bf16.mxu0 %v20343_v23  ;;  %v20403_v37 = vld [vmem:[#allocation6 + $0x1384] ss:$16 sps:$4 sm:$0xff]   ;;  %v20406_v23 = vld [vmem:[#allocation6 + $0x138c] ss:$16 sps:$4 sm:$0xff]  }
 0x39b   :  { %6068 = vmatprep.subr.bf16.mxu1 %v20346_v61  ;;  %v20409_v61 = vld [vmem:[#allocation6 + $0x13a4] ss:$16 sps:$4 sm:$0xff]  }
 0x39d   :  { %5983 = vmatpush1.bf16.msra.mxu0 %v20341_v35  ;;  %v20407_v35 = vld [vmem:[#allocation6 + $0x13a0] ss:$16 sps:$4 sm:$0xff]  }
 0x39e   :  { %6069 = vmatpush1.bf16.msra.mxu1 %v20344_v56  ;;  %5984 = vmatprep.subr.bf16.mxu0 %v20349_v51  ;;  %v20412_v56 = vld [vmem:[#allocation6 + $0x13ac] ss:$16 sps:$4 sm:$0xff]   ;;  %v20410_v51 = vld [vmem:[#allocation6 + $0x13a8] ss:$16 sps:$4 sm:$0xff]  }
 0x39f   :  { %6070 = vmatprep.subr.bf16.mxu1 %v20352_v38  ;;  %v20413_v38 = vld [vmem:[#allocation6 + $0x13c0] ss:$16 sps:$4 sm:$0xff]  }
 0x3a1   :  { %5985 = vmatpush1.bf16.msra.mxu0 %v20347_v34  ;;  %v20415_v34 = vld [vmem:[#allocation6 + $0x13c4] ss:$16 sps:$4 sm:$0xff]  }
 0x3a2   :  { %6071 = vmatpush1.bf16.msra.mxu1 %v20350_v55  ;;  %5986 = vmatprep.subr.bf16.mxu0 %v20355_v53  ;;  %v20418_v55 = vld [vmem:[#allocation6 + $0x13cc] ss:$16 sps:$4 sm:$0xff]   ;;  %v20416_v53 = vld [vmem:[#allocation6 + $0x13c8] ss:$16 sps:$4 sm:$0xff]  }
 0x3a3   :  { %6072 = vmatprep.subr.bf16.mxu1 %v20358_v59  ;;  %v20419_v59 = vld [vmem:[#allocation6 + $0x13e0] ss:$16 sps:$4 sm:$0xff]  }
 0x3a5   :  { %5987 = vmatpush1.bf16.msra.mxu0 %v20353_v46  ;;  %v20421_v46 = vld [vmem:[#allocation6 + $0x13e4] ss:$16 sps:$4 sm:$0xff]  }
 0x3a6   :  { %6073 = vmatpush1.bf16.msra.mxu1 %v20356_v22  ;;  %5988 = vmatprep.subr.bf16.mxu0 %v20361_v48  ;;  %v20424_v22 = vld [vmem:[#allocation6 + $0x13ec] ss:$16 sps:$4 sm:$0xff]   ;;  %v20422_v48 = vld [vmem:[#allocation6 + $0x13e8] ss:$16 sps:$4 sm:$0xff]  }
 0x3a7   :  { %6074 = vmatprep.subr.bf16.mxu1 %v20364_v19  ;;  %v20430_v19 = vld [vmem:[#allocation6 + $0x140c] ss:$16 sps:$4 sm:$0xff]  }
 0x3a9   :  { %5989 = vmatpush1.bf16.msra.mxu0 %v20359_v29  ;;  %v20427_v29 = vld [vmem:[#allocation6 + $0x1404] ss:$16 sps:$4 sm:$0xff]  }
 0x3aa   :  { %6075 = vmatpush1.bf16.msra.mxu1 %v20362_v1  ;;  %5990 = vmatprep.subr.bf16.mxu0 %v20367_v58  ;;  %v20425_v1 = vld [vmem:[#allocation6 + $0x1400] ss:$16 sps:$4 sm:$0xff]   ;;  %v20428_v58 = vld [vmem:[#allocation6 + $0x1408] ss:$16 sps:$4 sm:$0xff]  }
 0x3ab   :  { %6076 = vmatprep.subr.bf16.mxu1 %v20370_v6  ;;  %v24109_v6 = vld [vmem:[#allocation25_spill] sm:$0xff] }
 0x3ad   :  { %5991 = vmatpush1.bf16.msra.mxu0 %v20365_v24  ;;  %v20433_v24 = vld [vmem:[#allocation6 + $0x1424] ss:$16 sps:$4 sm:$0xff]  }
 0x3ae   :  { %6077 = vmatpush1.bf16.msra.mxu1 %v20368_v60  ;;  %5992 = vmatprep.subr.bf16.mxu0 %v20373_v31  ;;  %v20431_v60 = vld [vmem:[#allocation6 + $0x1420] ss:$16 sps:$4 sm:$0xff]   ;;  %v20436_v31 = vld [vmem:[#allocation6 + $0x142c] ss:$16 sps:$4 sm:$0xff]  }
 0x3af   :  { %6078 = vmatprep.subr.bf16.mxu1 %v20376_v17  ;;  %v20439_v17 = vld [vmem:[#allocation6 + $0x1444] ss:$16 sps:$4 sm:$0xff]  }
 0x3b1   :  { %5993 = vmatpush1.bf16.msra.mxu0 %v20371_v50  ;;  %v20434_v50 = vld [vmem:[#allocation6 + $0x1428] ss:$16 sps:$4 sm:$0xff]  }
 0x3b2   :  { %6079 = vmatpush1.bf16.msra.mxu1 %v20374_v16  ;;  %5994 = vmatprep.subr.bf16.mxu0 %v20379_v13  ;;  %v24110_v16 = vld [vmem:[#allocation35_spill] sm:$0xff] }
 0x3b3   :  { %6080 = vmatprep.subr.bf16.mxu1 %v20382_v14  ;;  %v20442_v13 = vld [vmem:[#allocation6 + $0x144c] ss:$16 sps:$4 sm:$0xff]   ;;  %v20440_v14 = vld [vmem:[#allocation6 + $0x1448] ss:$16 sps:$4 sm:$0xff]  }
 0x3b5   :  { %5995 = vmatpush1.bf16.msra.mxu0 %v20377_v44  ;;  %v20437_v44 = vld [vmem:[#allocation6 + $0x1440] ss:$16 sps:$4 sm:$0xff]  }
 0x3b6   :  { %6081 = vmatpush1.bf16.msra.mxu1 %v20380_v7  ;;  %5996 = vmatprep.subr.bf16.mxu0 %v20385_v33  ;;  %v20445_v7 = vld [vmem:[#allocation6 + $0x1464] ss:$16 sps:$4 sm:$0xff]   ;;  %v20443_v33 = vld [vmem:[#allocation6 + $0x1460] ss:$16 sps:$4 sm:$0xff]  }
 0x3b7   :  { %6082 = vmatprep.subr.bf16.mxu1 %v20388_v5  ;;  %v20446_v5 = vld [vmem:[#allocation6 + $0x1468] ss:$16 sps:$4 sm:$0xff]  }
 0x3b9   :  { %5997 = vmatpush1.bf16.msra.mxu0 %v20383_v42  ;;  %v20448_v42 = vld [vmem:[#allocation6 + $0x146c] ss:$16 sps:$4 sm:$0xff]  }
 0x3ba   :  { %6083 = vmatpush1.bf16.msra.mxu1 %v20386_v2  ;;  %5998 = vmatprep.subr.bf16.mxu0 %v20391_v45  ;;  %v20451_v2 = vld [vmem:[#allocation6 + $0x1484] ss:$16 sps:$4 sm:$0xff]   ;;  %v20449_v45 = vld [vmem:[#allocation6 + $0x1480] ss:$16 sps:$4 sm:$0xff]  }
 0x3bb   :  { %6084 = vmatprep.subr.bf16.mxu1 %v20394_v27  ;;  %v20452_v27 = vld [vmem:[#allocation6 + $0x1488] ss:$16 sps:$4 sm:$0xff]  }
 0x3bd   :  { %5999 = vmatpush1.bf16.msra.mxu0 %v20389_v10  ;;  %v20454_v10 = vld [vmem:[#allocation6 + $0x148c] ss:$16 sps:$4 sm:$0xff]  }
 0x3be   :  { %6085 = vmatpush1.bf16.msra.mxu1 %v20392_v18  ;;  %6000 = vmatprep.subr.bf16.mxu0 %v20397_v15  ;;  %v20457_v18 = vld [vmem:[#allocation6 + $0x14a4] ss:$16 sps:$4 sm:$0xff]   ;;  %v20455_v15 = vld [vmem:[#allocation6 + $0x14a0] ss:$16 sps:$4 sm:$0xff]  }
 0x3bf   :  { %6086 = vmatprep.subr.bf16.mxu1 %v20400_v3  ;;  %v20458_v3 = vld [vmem:[#allocation6 + $0x14a8] ss:$16 sps:$4 sm:$0xff]  }
 0x3c1   :  { %6001 = vmatpush1.bf16.msra.mxu0 %v20395_v9  ;;  %v20460_v9 = vld [vmem:[#allocation6 + $0x14ac] ss:$16 sps:$4 sm:$0xff]  }
 0x3c2   :  { %6087 = vmatpush1.bf16.msra.mxu1 %v20398_v52  ;;  %6002 = vmatprep.subr.bf16.mxu0 %v20403_v37  ;;  %v20463_v52 = vld [vmem:[#allocation6 + $0x14c4] ss:$16 sps:$4 sm:$0xff]   ;;  %v20461_v37 = vld [vmem:[#allocation6 + $0x14c0] ss:$16 sps:$4 sm:$0xff]  }
 0x3c3   :  { %6088 = vmatprep.subr.bf16.mxu1 %v20406_v23  ;;  %v20464_v23 = vld [vmem:[#allocation6 + $0x14c8] ss:$16 sps:$4 sm:$0xff]  }
 0x3c5   :  { %6003 = vmatpush1.bf16.msra.mxu0 %v20401_v8  ;;  %v20466_v8 = vld [vmem:[#allocation6 + $0x14cc] ss:$16 sps:$4 sm:$0xff]  }
 0x3c6   :  { %6089 = vmatpush1.bf16.msra.mxu1 %v20404_v0  ;;  %6004 = vmatprep.subr.bf16.mxu0 %v20409_v61  ;;  %v20469_v0 = vld [vmem:[#allocation6 + $0x14e4] ss:$16 sps:$4 sm:$0xff]   ;;  %v20467_v61 = vld [vmem:[#allocation6 + $0x14e0] ss:$16 sps:$4 sm:$0xff]  }
 0x3c7   :  { %6090 = vmatprep.subr.bf16.mxu1 %v20412_v56  ;;  %v20470_v56 = vld [vmem:[#allocation6 + $0x14e8] ss:$16 sps:$4 sm:$0xff]  }
 0x3c9   :  { %6005 = vmatpush1.bf16.msra.mxu0 %v20407_v35  ;;  %v20472_v35 = vld [vmem:[#allocation6 + $0x14ec] ss:$16 sps:$4 sm:$0xff]  }
 0x3ca   :  { %6091 = vmatpush1.bf16.msra.mxu1 %v20410_v51  ;;  %6006 = vmatprep.subr.bf16.mxu0 %v20415_v34  ;;  %v20475_v51 = vld [vmem:[#allocation6 + $0x1504] ss:$16 sps:$4 sm:$0xff]   ;;  %v20473_v34 = vld [vmem:[#allocation6 + $0x1500] ss:$16 sps:$4 sm:$0xff]  }
 0x3cb   :  { %6092 = vmatprep.subr.bf16.mxu1 %v20418_v55  ;;  %v20476_v55 = vld [vmem:[#allocation6 + $0x1508] ss:$16 sps:$4 sm:$0xff]  }
 0x3cd   :  { %6007 = vmatpush1.bf16.msra.mxu0 %v20413_v38  ;;  %v20478_v38 = vld [vmem:[#allocation6 + $0x150c] ss:$16 sps:$4 sm:$0xff]  }
 0x3ce   :  { %6093 = vmatpush1.bf16.msra.mxu1 %v20416_v53  ;;  %6008 = vmatprep.subr.bf16.mxu0 %v20421_v46  ;;  %v20481_v53 = vld [vmem:[#allocation6 + $0x1524] ss:$16 sps:$4 sm:$0xff]   ;;  %v20479_v46 = vld [vmem:[#allocation6 + $0x1520] ss:$16 sps:$4 sm:$0xff]  }
 0x3cf   :  { %6094 = vmatprep.subr.bf16.mxu1 %v20424_v22  ;;  %v20482_v22 = vld [vmem:[#allocation6 + $0x1528] ss:$16 sps:$4 sm:$0xff]  }
 0x3d1   :  { %6009 = vmatpush1.bf16.msra.mxu0 %v20419_v59  ;;  %v20484_v59 = vld [vmem:[#allocation6 + $0x152c] ss:$16 sps:$4 sm:$0xff]  }
 0x3d2   :  { %6095 = vmatpush1.bf16.msra.mxu1 %v20422_v48  ;;  %6884 = vmatprep.subr.bf16.mxu0 %v20427_v29  ;;  %v20487_v48 = vld [vmem:[#allocation6 + $0x1544] ss:$16 sps:$4 sm:$0xff]   ;;  %v20485_v29 = vld [vmem:[#allocation6 + $0x1540] ss:$16 sps:$4 sm:$0xff]  }
 0x3d3   :  { %6970 = vmatprep.subr.bf16.mxu1 %v20430_v19  ;;  %v20490_v19 = vld [vmem:[#allocation6 + $0x154c] ss:$16 sps:$4 sm:$0xff]  }
 0x3d4   :  { %6011 = vmatmul.mubr.bf16.vlgmr.msra.gmra.mrb[64].mxu0 %v24109_v6 }
 0x3d5   :  { %6097 = vmatmul.mubr.bf16.vlgmr.msra.gmra.mrb[64].mxu1 %v24109_v6  ;;  %6885 = vmatpush1.bf16.msra.mxu0 %v20425_v1  ;;  %v20488_v1 = vld [vmem:[#allocation6 + $0x1548] ss:$16 sps:$4 sm:$0xff]   ;;  %v20496_v6 = vld [vmem:[#allocation6 + $0x156c] ss:$16 sps:$4 sm:$0xff]  }
 0x3d6   :  { %6916 = vmatprep.mubr.bf16.mxu0 %v24110_v16  ;;  %6971 = vmatpush1.bf16.msra.mxu1 %v20428_v58  ;;  %v20493_v58 = vld [vmem:[#allocation6 + $0x1564] ss:$16 sps:$4 sm:$0xff]  }
 0x3d7   :  { %7002 = vmatprep.mubr.bf16.mxu1 %v24110_v16  ;;  %6886 = vmatprep.subr.bf16.mxu0 %v20433_v24  ;;  %v20491_v24 = vld [vmem:[#allocation6 + $0x1560] ss:$16 sps:$4 sm:$0xff]   ;;  %v20500_v16 = vld [vmem:[#allocation6 + $0x1588] ss:$16 sps:$4 sm:$0xff]  }
 0x3d8   :  { %6972 = vmatprep.subr.bf16.mxu1 %v20436_v31  ;;  %v20499_v31 = vld [vmem:[#allocation6 + $0x1584] ss:$16 sps:$4 sm:$0xff]  }
 0x3d9   :  { %6887 = vmatpush1.bf16.msra.mxu0 %v20431_v60  ;;  %v20494_v60 = vld [vmem:[#allocation6 + $0x1568] ss:$16 sps:$4 sm:$0xff]  }
 0x3da   :  { %6973 = vmatpush1.bf16.msra.mxu1 %v20434_v50  ;;  %6888 = vmatprep.subr.bf16.mxu0 %v20439_v17  ;;  %v20497_v50 = vld [vmem:[#allocation6 + $0x1580] ss:$16 sps:$4 sm:$0xff]   ;;  %v20502_v17 = vld [vmem:[#allocation6 + $0x158c] ss:$16 sps:$4 sm:$0xff]  }
 0x3db   :  { %6974 = vmatprep.subr.bf16.mxu1 %v20442_v13  ;;  %v20505_v13 = vld [vmem:[#allocation6 + $0x15a4] ss:$16 sps:$4 sm:$0xff]  }
 0x3dd   :  { %6889 = vmatpush1.bf16.msra.mxu0 %v20437_v44  ;;  %v20503_v44 = vld [vmem:[#allocation6 + $0x15a0] ss:$16 sps:$4 sm:$0xff]  }
 0x3de   :  { %6975 = vmatpush1.bf16.msra.mxu1 %v20440_v14  ;;  %6890 = vmatprep.subr.bf16.mxu0 %v20445_v7  ;;  %v20508_v14 = vld [vmem:[#allocation6 + $0x15ac] ss:$16 sps:$4 sm:$0xff]   ;;  %v20506_v7 = vld [vmem:[#allocation6 + $0x15a8] ss:$16 sps:$4 sm:$0xff]  }
 0x3df   :  { %6976 = vmatprep.subr.bf16.mxu1 %v20448_v42  ;;  %v20509_v42 = vld [vmem:[#allocation6 + $0x15c0] ss:$16 sps:$4 sm:$0xff]  }
 0x3e1   :  { %6891 = vmatpush1.bf16.msra.mxu0 %v20443_v33  ;;  %v20511_v33 = vld [vmem:[#allocation6 + $0x15c4] ss:$16 sps:$4 sm:$0xff]  }
 0x3e2   :  { %6977 = vmatpush1.bf16.msra.mxu1 %v20446_v5  ;;  %6892 = vmatprep.subr.bf16.mxu0 %v20451_v2  ;;  %v20514_v5 = vld [vmem:[#allocation6 + $0x15cc] ss:$16 sps:$4 sm:$0xff]   ;;  %v20512_v2 = vld [vmem:[#allocation6 + $0x15c8] ss:$16 sps:$4 sm:$0xff]  }
 0x3e3   :  { %6978 = vmatprep.subr.bf16.mxu1 %v20454_v10  ;;  %v20515_v10 = vld [vmem:[#allocation6 + $0x15e0] ss:$16 sps:$4 sm:$0xff]  }
 0x3e5   :  { %6893 = vmatpush1.bf16.msra.mxu0 %v20449_v45  ;;  %v20517_v45 = vld [vmem:[#allocation6 + $0x15e4] ss:$16 sps:$4 sm:$0xff]  }
 0x3e6   :  { %6979 = vmatpush1.bf16.msra.mxu1 %v20452_v27  ;;  %6894 = vmatprep.subr.bf16.mxu0 %v20457_v18  ;;  %v20520_v27 = vld [vmem:[#allocation6 + $0x15ec] ss:$16 sps:$4 sm:$0xff]   ;;  %v20518_v18 = vld [vmem:[#allocation6 + $0x15e8] ss:$16 sps:$4 sm:$0xff]  }
 0x3e7   :  { %6980 = vmatprep.subr.bf16.mxu1 %v20460_v9  ;;  %v20521_v9 = vld [vmem:[#allocation6 + $0x1600] ss:$16 sps:$4 sm:$0xff]  }
 0x3e9   :  { %6895 = vmatpush1.bf16.msra.mxu0 %v20455_v15  ;;  %v20523_v15 = vld [vmem:[#allocation6 + $0x1604] ss:$16 sps:$4 sm:$0xff]  }
 0x3ea   :  { %6981 = vmatpush1.bf16.msra.mxu1 %v20458_v3  ;;  %6896 = vmatprep.subr.bf16.mxu0 %v20463_v52  ;;  %v20526_v3 = vld [vmem:[#allocation6 + $0x160c] ss:$16 sps:$4 sm:$0xff]   ;;  %v20524_v52 = vld [vmem:[#allocation6 + $0x1608] ss:$16 sps:$4 sm:$0xff]  }
 0x3eb   :  { %6982 = vmatprep.subr.bf16.mxu1 %v20466_v8  ;;  %v24111_v8 = vld [vmem:[#allocation24_spill] sm:$0xff] }
 0x3ed   :  { %6897 = vmatpush1.bf16.msra.mxu0 %v20461_v37  ;;  %v20529_v37 = vld [vmem:[#allocation6 + $0x1624] ss:$16 sps:$4 sm:$0xff]  }
 0x3ee   :  { %6983 = vmatpush1.bf16.msra.mxu1 %v20464_v23  ;;  %6898 = vmatprep.subr.bf16.mxu0 %v20469_v0  ;;  %v20527_v23 = vld [vmem:[#allocation6 + $0x1620] ss:$16 sps:$4 sm:$0xff]   ;;  %v20530_v0 = vld [vmem:[#allocation6 + $0x1628] ss:$16 sps:$4 sm:$0xff]  }
 0x3ef   :  { %6984 = vmatprep.subr.bf16.mxu1 %v20472_v35  ;;  %v20535_v35 = vld [vmem:[#allocation6 + $0x1644] ss:$16 sps:$4 sm:$0xff]  }
 0x3f1   :  { %6899 = vmatpush1.bf16.msra.mxu0 %v20467_v61  ;;  %v20532_v61 = vld [vmem:[#allocation6 + $0x162c] ss:$16 sps:$4 sm:$0xff]  }
 0x3f2   :  { %6985 = vmatpush1.bf16.msra.mxu1 %v20470_v56  ;;  %6900 = vmatprep.subr.bf16.mxu0 %v20475_v51  ;;  %v24112_v56 = vld [vmem:[#allocation49_spill] sm:$0xff] }
 0x3f3   :  { %6986 = vmatprep.subr.bf16.mxu1 %v20478_v38  ;;  %v20538_v51 = vld [vmem:[#allocation6 + $0x164c] ss:$16 sps:$4 sm:$0xff]   ;;  %v20536_v38 = vld [vmem:[#allocation6 + $0x1648] ss:$16 sps:$4 sm:$0xff]  }
 0x3f5   :  { %6901 = vmatpush1.bf16.msra.mxu0 %v20473_v34  ;;  %v20533_v34 = vld [vmem:[#allocation6 + $0x1640] ss:$16 sps:$4 sm:$0xff]  }
 0x3f6   :  { %6987 = vmatpush1.bf16.msra.mxu1 %v20476_v55  ;;  %6902 = vmatprep.subr.bf16.mxu0 %v20481_v53  ;;  %v20541_v55 = vld [vmem:[#allocation6 + $0x1664] ss:$16 sps:$4 sm:$0xff]   ;;  %v20539_v53 = vld [vmem:[#allocation6 + $0x1660] ss:$16 sps:$4 sm:$0xff]  }
 0x3f7   :  { %6988 = vmatprep.subr.bf16.mxu1 %v20484_v59  ;;  %v20542_v59 = vld [vmem:[#allocation6 + $0x1668] ss:$16 sps:$4 sm:$0xff]  }
 0x3f9   :  { %6903 = vmatpush1.bf16.msra.mxu0 %v20479_v46  ;;  %v20544_v46 = vld [vmem:[#allocation6 + $0x166c] ss:$16 sps:$4 sm:$0xff]  }
 0x3fa   :  { %6989 = vmatpush1.bf16.msra.mxu1 %v20482_v22  ;;  %6904 = vmatprep.subr.bf16.mxu0 %v20487_v48  ;;  %v20547_v22 = vld [vmem:[#allocation6 + $0x1684] ss:$16 sps:$4 sm:$0xff]   ;;  %v20545_v48 = vld [vmem:[#allocation6 + $0x1680] ss:$16 sps:$4 sm:$0xff]  }
 0x3fb   :  { %6990 = vmatprep.subr.bf16.mxu1 %v20490_v19  ;;  %v20548_v19 = vld [vmem:[#allocation6 + $0x1688] ss:$16 sps:$4 sm:$0xff]  }
 0x3fd   :  { %6905 = vmatpush1.bf16.msra.mxu0 %v20485_v29  ;;  %v20550_v29 = vld [vmem:[#allocation6 + $0x168c] ss:$16 sps:$4 sm:$0xff]  }
 0x3fe   :  { %6991 = vmatpush1.bf16.msra.mxu1 %v20488_v1  ;;  %6906 = vmatprep.subr.bf16.mxu0 %v20493_v58  ;;  %v20553_v1 = vld [vmem:[#allocation6 + $0x16a4] ss:$16 sps:$4 sm:$0xff]   ;;  %v20551_v58 = vld [vmem:[#allocation6 + $0x16a0] ss:$16 sps:$4 sm:$0xff]  }
 0x3ff   :  { %6992 = vmatprep.subr.bf16.mxu1 %v20496_v6  ;;  %v20554_v6 = vld [vmem:[#allocation6 + $0x16a8] ss:$16 sps:$4 sm:$0xff]  }
 0x401   :  { %6907 = vmatpush1.bf16.msra.mxu0 %v20491_v24  ;;  %v20556_v24 = vld [vmem:[#allocation6 + $0x16ac] ss:$16 sps:$4 sm:$0xff]  }
 0x402   :  { %6993 = vmatpush1.bf16.msra.mxu1 %v20494_v60  ;;  %6908 = vmatprep.subr.bf16.mxu0 %v20499_v31  ;;  %v20559_v60 = vld [vmem:[#allocation6 + $0x16c4] ss:$16 sps:$4 sm:$0xff]   ;;  %v20557_v31 = vld [vmem:[#allocation6 + $0x16c0] ss:$16 sps:$4 sm:$0xff]  }
 0x403   :  { %6994 = vmatprep.subr.bf16.mxu1 %v20502_v17  ;;  %v20560_v17 = vld [vmem:[#allocation6 + $0x16c8] ss:$16 sps:$4 sm:$0xff]  }
 0x405   :  { %6909 = vmatpush1.bf16.msra.mxu0 %v20497_v50  ;;  %v20562_v50 = vld [vmem:[#allocation6 + $0x16cc] ss:$16 sps:$4 sm:$0xff]  }
 0x406   :  { %6995 = vmatpush1.bf16.msra.mxu1 %v20500_v16  ;;  %6910 = vmatprep.subr.bf16.mxu0 %v20505_v13  ;;  %v20565_v16 = vld [vmem:[#allocation6 + $0x16e4] ss:$16 sps:$4 sm:$0xff]   ;;  %v20563_v13 = vld [vmem:[#allocation6 + $0x16e0] ss:$16 sps:$4 sm:$0xff]  }
 0x407   :  { %6996 = vmatprep.subr.bf16.mxu1 %v20508_v14  ;;  %v20566_v14 = vld [vmem:[#allocation6 + $0x16e8] ss:$16 sps:$4 sm:$0xff]  }
 0x409   :  { %6911 = vmatpush1.bf16.msra.mxu0 %v20503_v44  ;;  %v20568_v44 = vld [vmem:[#allocation6 + $0x16ec] ss:$16 sps:$4 sm:$0xff]  }
 0x40a   :  { %6997 = vmatpush1.bf16.msra.mxu1 %v20506_v7  ;;  %6912 = vmatprep.subr.bf16.mxu0 %v20511_v33  ;;  %v20571_v7 = vld [vmem:[#allocation6 + $0x1704] ss:$16 sps:$4 sm:$0xff]   ;;  %v20569_v33 = vld [vmem:[#allocation6 + $0x1700] ss:$16 sps:$4 sm:$0xff]  }
 0x40b   :  { %6998 = vmatprep.subr.bf16.mxu1 %v20514_v5  ;;  %v20572_v5 = vld [vmem:[#allocation6 + $0x1708] ss:$16 sps:$4 sm:$0xff]  }
 0x40d   :  { %6913 = vmatpush1.bf16.msra.mxu0 %v20509_v42  ;;  %v20574_v42 = vld [vmem:[#allocation6 + $0x170c] ss:$16 sps:$4 sm:$0xff]  }
 0x40e   :  { %6999 = vmatpush1.bf16.msra.mxu1 %v20512_v2  ;;  %6914 = vmatprep.subr.bf16.mxu0 %v20517_v45  ;;  %v20577_v2 = vld [vmem:[#allocation6 + $0x1724] ss:$16 sps:$4 sm:$0xff]   ;;  %v20575_v45 = vld [vmem:[#allocation6 + $0x1720] ss:$16 sps:$4 sm:$0xff]  }
 0x40f   :  { %7000 = vmatprep.subr.bf16.mxu1 %v20520_v27  ;;  %v20578_v27 = vld [vmem:[#allocation6 + $0x1728] ss:$16 sps:$4 sm:$0xff]  }
 0x411   :  { %6915 = vmatpush1.bf16.msra.mxu0 %v20515_v10  ;;  %v20580_v10 = vld [vmem:[#allocation6 + $0x172c] ss:$16 sps:$4 sm:$0xff]  }
 0x412   :  { %7001 = vmatpush1.bf16.msra.mxu1 %v20518_v18  ;;  %6927 = vmatprep.subr.bf16.mxu0 %v20523_v15  ;;  %v20583_v18 = vld [vmem:[#allocation6 + $0x1744] ss:$16 sps:$4 sm:$0xff]   ;;  %v20581_v15 = vld [vmem:[#allocation6 + $0x1740] ss:$16 sps:$4 sm:$0xff]  }
 0x413   :  { %7013 = vmatprep.subr.bf16.mxu1 %v20526_v3  ;;  %v20584_v3 = vld [vmem:[#allocation6 + $0x1748] ss:$16 sps:$4 sm:$0xff]  }
 0x414   :  { %6917 = vmatmul.mubr.bf16.vlgmr.msra.gmra.mrb[64].mxu0 %v24111_v8 }
 0x415   :  { %7003 = vmatmul.mubr.bf16.vlgmr.msra.gmra.mrb[64].mxu1 %v24111_v8  ;;  %6928 = vmatpush1.bf16.msra.mxu0 %v20521_v9  ;;  %v20586_v9 = vld [vmem:[#allocation6 + $0x174c] ss:$16 sps:$4 sm:$0xff]  }
 0x416   :  { %6959 = vmatprep.mubr.bf16.mxu0 %v24112_v56  ;;  %7014 = vmatpush1.bf16.msra.mxu1 %v20524_v52  ;;  %v20589_v52 = vld [vmem:[#allocation6 + $0x1764] ss:$16 sps:$4 sm:$0xff]   ;;  %v20592_v8 = vld [vmem:[#allocation6 + $0x176c] ss:$16 sps:$4 sm:$0xff]  }
 0x417   :  { %7045 = vmatprep.mubr.bf16.mxu1 %v24112_v56  ;;  %6929 = vmatprep.subr.bf16.mxu0 %v20529_v37  ;;  %v20587_v37 = vld [vmem:[#allocation6 + $0x1760] ss:$16 sps:$4 sm:$0xff]   ;;  %v20596_v56 = vld [vmem:[#allocation6 + $0x1788] ss:$16 sps:$4 sm:$0xff]  }
 0x418   :  { %7015 = vmatprep.subr.bf16.mxu1 %v20532_v61  ;;  %v20593_v61 = vld [vmem:[#allocation6 + $0x1780] ss:$16 sps:$4 sm:$0xff]  }
 0x419   :  { %6930 = vmatpush1.bf16.msra.mxu0 %v20527_v23  ;;  %v20590_v23 = vld [vmem:[#allocation6 + $0x1768] ss:$16 sps:$4 sm:$0xff]  }
 0x41a   :  { %7016 = vmatpush1.bf16.msra.mxu1 %v20530_v0  ;;  %6931 = vmatprep.subr.bf16.mxu0 %v20535_v35  ;;  %v20595_v0 = vld [vmem:[#allocation6 + $0x1784] ss:$16 sps:$4 sm:$0xff]   ;;  %v20598_v35 = vld [vmem:[#allocation6 + $0x178c] ss:$16 sps:$4 sm:$0xff]  }
 0x41b   :  { %7017 = vmatprep.subr.bf16.mxu1 %v20538_v51  ;;  %v20601_v51 = vld [vmem:[#allocation6 + $0x17a4] ss:$16 sps:$4 sm:$0xff]  }
 0x41d   :  { %6932 = vmatpush1.bf16.msra.mxu0 %v20533_v34  ;;  %v20599_v34 = vld [vmem:[#allocation6 + $0x17a0] ss:$16 sps:$4 sm:$0xff]  }
 0x41e   :  { %7018 = vmatpush1.bf16.msra.mxu1 %v20536_v38  ;;  %6933 = vmatprep.subr.bf16.mxu0 %v20541_v55  ;;  %v20604_v38 = vld [vmem:[#allocation6 + $0x17ac] ss:$16 sps:$4 sm:$0xff]   ;;  %v20602_v55 = vld [vmem:[#allocation6 + $0x17a8] ss:$16 sps:$4 sm:$0xff]  }
 0x41f   :  { %7019 = vmatprep.subr.bf16.mxu1 %v20544_v46  ;;  %v20605_v46 = vld [vmem:[#allocation6 + $0x17c0] ss:$16 sps:$4 sm:$0xff]  }
 0x421   :  { %6934 = vmatpush1.bf16.msra.mxu0 %v20539_v53  ;;  %v20607_v53 = vld [vmem:[#allocation6 + $0x17c4] ss:$16 sps:$4 sm:$0xff]  }
 0x422   :  { %7020 = vmatpush1.bf16.msra.mxu1 %v20542_v59  ;;  %6935 = vmatprep.subr.bf16.mxu0 %v20547_v22  ;;  %v20610_v59 = vld [vmem:[#allocation6 + $0x17cc] ss:$16 sps:$4 sm:$0xff]   ;;  %v20608_v22 = vld [vmem:[#allocation6 + $0x17c8] ss:$16 sps:$4 sm:$0xff]  }
 0x423   :  { %7021 = vmatprep.subr.bf16.mxu1 %v20550_v29  ;;  %v20611_v29 = vld [vmem:[#allocation6 + $0x17e0] ss:$16 sps:$4 sm:$0xff]  }
 0x425   :  { %6936 = vmatpush1.bf16.msra.mxu0 %v20545_v48  ;;  %v20613_v48 = vld [vmem:[#allocation6 + $0x17e4] ss:$16 sps:$4 sm:$0xff]  }
 0x426   :  { %7022 = vmatpush1.bf16.msra.mxu1 %v20548_v19  ;;  %6937 = vmatprep.subr.bf16.mxu0 %v20553_v1  ;;  %v20616_v19 = vld [vmem:[#allocation6 + $0x17ec] ss:$16 sps:$4 sm:$0xff]   ;;  %v20614_v1 = vld [vmem:[#allocation6 + $0x17e8] ss:$16 sps:$4 sm:$0xff]  }
 0x427   :  { %7023 = vmatprep.subr.bf16.mxu1 %v20556_v24  ;;  %v20622_v24 = vld [vmem:[#allocation6 + $0x180c] ss:$16 sps:$4 sm:$0xff]  }
 0x429   :  { %6938 = vmatpush1.bf16.msra.mxu0 %v20551_v58  ;;  %v20619_v58 = vld [vmem:[#allocation6 + $0x1804] ss:$16 sps:$4 sm:$0xff]  }
 0x42a   :  { %7024 = vmatpush1.bf16.msra.mxu1 %v20554_v6  ;;  %6939 = vmatprep.subr.bf16.mxu0 %v20559_v60  ;;  %v20617_v6 = vld [vmem:[#allocation6 + $0x1800] ss:$16 sps:$4 sm:$0xff]   ;;  %v20620_v60 = vld [vmem:[#allocation6 + $0x1808] ss:$16 sps:$4 sm:$0xff]  }
 0x42b   :  { %7025 = vmatprep.subr.bf16.mxu1 %v20562_v50  ;;  %v24113_v50 = vld [vmem:[#allocation27_spill] sm:$0xff] }
 0x42d   :  { %6940 = vmatpush1.bf16.msra.mxu0 %v20557_v31  ;;  %v20625_v31 = vld [vmem:[#allocation6 + $0x1824] ss:$16 sps:$4 sm:$0xff]  }
 0x42e   :  { %7026 = vmatpush1.bf16.msra.mxu1 %v20560_v17  ;;  %6941 = vmatprep.subr.bf16.mxu0 %v20565_v16  ;;  %v20623_v17 = vld [vmem:[#allocation6 + $0x1820] ss:$16 sps:$4 sm:$0xff]   ;;  %v20628_v16 = vld [vmem:[#allocation6 + $0x182c] ss:$16 sps:$4 sm:$0xff]  }
 0x42f   :  { %7027 = vmatprep.subr.bf16.mxu1 %v20568_v44  ;;  %v20631_v44 = vld [vmem:[#allocation6 + $0x1844] ss:$16 sps:$4 sm:$0xff]  }
 0x431   :  { %6942 = vmatpush1.bf16.msra.mxu0 %v20563_v13  ;;  %v20626_v13 = vld [vmem:[#allocation6 + $0x1828] ss:$16 sps:$4 sm:$0xff]  }
 0x432   :  { %7028 = vmatpush1.bf16.msra.mxu1 %v20566_v14  ;;  %6943 = vmatprep.subr.bf16.mxu0 %v20571_v7  ;;  %v24114_v14 = vld [vmem:[#allocation82_spill] sm:$0xff] }
 0x433   :  { %7029 = vmatprep.subr.bf16.mxu1 %v20574_v42  ;;  %v20634_v7 = vld [vmem:[#allocation6 + $0x184c] ss:$16 sps:$4 sm:$0xff]   ;;  %v20632_v42 = vld [vmem:[#allocation6 + $0x1848] ss:$16 sps:$4 sm:$0xff]  }
 0x435   :  { %6944 = vmatpush1.bf16.msra.mxu0 %v20569_v33  ;;  %v20629_v33 = vld [vmem:[#allocation6 + $0x1840] ss:$16 sps:$4 sm:$0xff]  }
 0x436   :  { %7030 = vmatpush1.bf16.msra.mxu1 %v20572_v5  ;;  %6945 = vmatprep.subr.bf16.mxu0 %v20577_v2  ;;  %v20637_v5 = vld [vmem:[#allocation6 + $0x1864] ss:$16 sps:$4 sm:$0xff]   ;;  %v20635_v2 = vld [vmem:[#allocation6 + $0x1860] ss:$16 sps:$4 sm:$0xff]  }
 0x437   :  { %7031 = vmatprep.subr.bf16.mxu1 %v20580_v10  ;;  %v20638_v10 = vld [vmem:[#allocation6 + $0x1868] ss:$16 sps:$4 sm:$0xff]  }
 0x439   :  { %6946 = vmatpush1.bf16.msra.mxu0 %v20575_v45  ;;  %v20640_v45 = vld [vmem:[#allocation6 + $0x186c] ss:$16 sps:$4 sm:$0xff]  }
 0x43a   :  { %7032 = vmatpush1.bf16.msra.mxu1 %v20578_v27  ;;  %6947 = vmatprep.subr.bf16.mxu0 %v20583_v18  ;;  %v20643_v27 = vld [vmem:[#allocation6 + $0x1884] ss:$16 sps:$4 sm:$0xff]   ;;  %v20641_v18 = vld [vmem:[#allocation6 + $0x1880] ss:$16 sps:$4 sm:$0xff]  }
 0x43b   :  { %7033 = vmatprep.subr.bf16.mxu1 %v20586_v9  ;;  %v20644_v9 = vld [vmem:[#allocation6 + $0x1888] ss:$16 sps:$4 sm:$0xff]  }
 0x43d   :  { %6948 = vmatpush1.bf16.msra.mxu0 %v20581_v15  ;;  %v20646_v15 = vld [vmem:[#allocation6 + $0x188c] ss:$16 sps:$4 sm:$0xff]  }
 0x43e   :  { %7034 = vmatpush1.bf16.msra.mxu1 %v20584_v3  ;;  %6949 = vmatprep.subr.bf16.mxu0 %v20589_v52  ;;  %v20649_v3 = vld [vmem:[#allocation6 + $0x18a4] ss:$16 sps:$4 sm:$0xff]   ;;  %v20647_v52 = vld [vmem:[#allocation6 + $0x18a0] ss:$16 sps:$4 sm:$0xff]  }
 0x43f   :  { %7035 = vmatprep.subr.bf16.mxu1 %v20592_v8  ;;  %v20650_v8 = vld [vmem:[#allocation6 + $0x18a8] ss:$16 sps:$4 sm:$0xff]  }
 0x441   :  { %6950 = vmatpush1.bf16.msra.mxu0 %v20587_v37  ;;  %v20652_v37 = vld [vmem:[#allocation6 + $0x18ac] ss:$16 sps:$4 sm:$0xff]  }
 0x442   :  { %7036 = vmatpush1.bf16.msra.mxu1 %v20590_v23  ;;  %6951 = vmatprep.subr.bf16.mxu0 %v20595_v0  ;;  %v20655_v23 = vld [vmem:[#allocation6 + $0x18c4] ss:$16 sps:$4 sm:$0xff]   ;;  %v20653_v0 = vld [vmem:[#allocation6 + $0x18c0] ss:$16 sps:$4 sm:$0xff]  }
 0x443   :  { %7037 = vmatprep.subr.bf16.mxu1 %v20598_v35  ;;  %v20656_v35 = vld [vmem:[#allocation6 + $0x18c8] ss:$16 sps:$4 sm:$0xff]  }
 0x445   :  { %6952 = vmatpush1.bf16.msra.mxu0 %v20593_v61  ;;  %v20658_v61 = vld [vmem:[#allocation6 + $0x18cc] ss:$16 sps:$4 sm:$0xff]  }
 0x446   :  { %7038 = vmatpush1.bf16.msra.mxu1 %v20596_v56  ;;  %6953 = vmatprep.subr.bf16.mxu0 %v20601_v51  ;;  %v20661_v56 = vld [vmem:[#allocation6 + $0x18e4] ss:$16 sps:$4 sm:$0xff]   ;;  %v20659_v51 = vld [vmem:[#allocation6 + $0x18e0] ss:$16 sps:$4 sm:$0xff]  }
 0x447   :  { %7039 = vmatprep.subr.bf16.mxu1 %v20604_v38  ;;  %v20662_v38 = vld [vmem:[#allocation6 + $0x18e8] ss:$16 sps:$4 sm:$0xff]  }
 0x449   :  { %6954 = vmatpush1.bf16.msra.mxu0 %v20599_v34  ;;  %v20664_v34 = vld [vmem:[#allocation6 + $0x18ec] ss:$16 sps:$4 sm:$0xff]  }
 0x44a   :  { %7040 = vmatpush1.bf16.msra.mxu1 %v20602_v55  ;;  %6955 = vmatprep.subr.bf16.mxu0 %v20607_v53  ;;  %v20667_v55 = vld [vmem:[#allocation6 + $0x1904] ss:$16 sps:$4 sm:$0xff]   ;;  %v20665_v53 = vld [vmem:[#allocation6 + $0x1900] ss:$16 sps:$4 sm:$0xff]  }
 0x44b   :  { %7041 = vmatprep.subr.bf16.mxu1 %v20610_v59  ;;  %v20668_v59 = vld [vmem:[#allocation6 + $0x1908] ss:$16 sps:$4 sm:$0xff]  }
 0x44d   :  { %6956 = vmatpush1.bf16.msra.mxu0 %v20605_v46  ;;  %v20670_v46 = vld [vmem:[#allocation6 + $0x190c] ss:$16 sps:$4 sm:$0xff]  }
 0x44e   :  { %7042 = vmatpush1.bf16.msra.mxu1 %v20608_v22  ;;  %6957 = vmatprep.subr.bf16.mxu0 %v20613_v48  ;;  %v20673_v22 = vld [vmem:[#allocation6 + $0x1924] ss:$16 sps:$4 sm:$0xff]   ;;  %v20671_v48 = vld [vmem:[#allocation6 + $0x1920] ss:$16 sps:$4 sm:$0xff]  }
 0x44f   :  { %7043 = vmatprep.subr.bf16.mxu1 %v20616_v19  ;;  %v20674_v19 = vld [vmem:[#allocation6 + $0x1928] ss:$16 sps:$4 sm:$0xff]  }
 0x451   :  { %6958 = vmatpush1.bf16.msra.mxu0 %v20611_v29  ;;  %v20676_v29 = vld [vmem:[#allocation6 + $0x192c] ss:$16 sps:$4 sm:$0xff]  }
 0x452   :  { %7044 = vmatpush1.bf16.msra.mxu1 %v20614_v1  ;;  %7833 = vmatprep.subr.bf16.mxu0 %v20619_v58  ;;  %v20679_v1 = vld [vmem:[#allocation6 + $0x1944] ss:$16 sps:$4 sm:$0xff]   ;;  %v20677_v58 = vld [vmem:[#allocation6 + $0x1940] ss:$16 sps:$4 sm:$0xff]  }
 0x453   :  { %7919 = vmatprep.subr.bf16.mxu1 %v20622_v24  ;;  %v20682_v24 = vld [vmem:[#allocation6 + $0x194c] ss:$16 sps:$4 sm:$0xff]  }
 0x454   :  { %6960 = vmatmul.mubr.bf16.vlgmr.msra.gmra.mrb[64].mxu0 %v24113_v50 }
 0x455   :  { %7046 = vmatmul.mubr.bf16.vlgmr.msra.gmra.mrb[64].mxu1 %v24113_v50  ;;  %7834 = vmatpush1.bf16.msra.mxu0 %v20617_v6  ;;  %v20680_v6 = vld [vmem:[#allocation6 + $0x1948] ss:$16 sps:$4 sm:$0xff]   ;;  %v20688_v50 = vld [vmem:[#allocation6 + $0x196c] ss:$16 sps:$4 sm:$0xff]  }
 0x456   :  { %7865 = vmatprep.mubr.bf16.mxu0 %v24114_v14  ;;  %7920 = vmatpush1.bf16.msra.mxu1 %v20620_v60  ;;  %v20685_v60 = vld [vmem:[#allocation6 + $0x1964] ss:$16 sps:$4 sm:$0xff]  }
 0x457   :  { %7951 = vmatprep.mubr.bf16.mxu1 %v24114_v14  ;;  %7835 = vmatprep.subr.bf16.mxu0 %v20625_v31  ;;  %v20683_v31 = vld [vmem:[#allocation6 + $0x1960] ss:$16 sps:$4 sm:$0xff]   ;;  %v20692_v14 = vld [vmem:[#allocation6 + $0x1988] ss:$16 sps:$4 sm:$0xff]  }
 0x458   :  { %7921 = vmatprep.subr.bf16.mxu1 %v20628_v16  ;;  %v20691_v16 = vld [vmem:[#allocation6 + $0x1984] ss:$16 sps:$4 sm:$0xff]  }
 0x459   :  { %7836 = vmatpush1.bf16.msra.mxu0 %v20623_v17  ;;  %v20686_v17 = vld [vmem:[#allocation6 + $0x1968] ss:$16 sps:$4 sm:$0xff]  }
 0x45a   :  { %7922 = vmatpush1.bf16.msra.mxu1 %v20626_v13  ;;  %7837 = vmatprep.subr.bf16.mxu0 %v20631_v44  ;;  %v20689_v13 = vld [vmem:[#allocation6 + $0x1980] ss:$16 sps:$4 sm:$0xff]   ;;  %v20694_v44 = vld [vmem:[#allocation6 + $0x198c] ss:$16 sps:$4 sm:$0xff]  }
 0x45b   :  { %7923 = vmatprep.subr.bf16.mxu1 %v20634_v7  ;;  %v20697_v7 = vld [vmem:[#allocation6 + $0x19a4] ss:$16 sps:$4 sm:$0xff]  }
 0x45d   :  { %7838 = vmatpush1.bf16.msra.mxu0 %v20629_v33  ;;  %v20695_v33 = vld [vmem:[#allocation6 + $0x19a0] ss:$16 sps:$4 sm:$0xff]  }
 0x45e   :  { %7924 = vmatpush1.bf16.msra.mxu1 %v20632_v42  ;;  %7839 = vmatprep.subr.bf16.mxu0 %v20637_v5  ;;  %v20700_v42 = vld [vmem:[#allocation6 + $0x19ac] ss:$16 sps:$4 sm:$0xff]   ;;  %v20698_v5 = vld [vmem:[#allocation6 + $0x19a8] ss:$16 sps:$4 sm:$0xff]  }
 0x45f   :  { %7925 = vmatprep.subr.bf16.mxu1 %v20640_v45  ;;  %v20701_v45 = vld [vmem:[#allocation6 + $0x19c0] ss:$16 sps:$4 sm:$0xff]  }
 0x461   :  { %7840 = vmatpush1.bf16.msra.mxu0 %v20635_v2  ;;  %v20703_v2 = vld [vmem:[#allocation6 + $0x19c4] ss:$16 sps:$4 sm:$0xff]  }
 0x462   :  { %7926 = vmatpush1.bf16.msra.mxu1 %v20638_v10  ;;  %7841 = vmatprep.subr.bf16.mxu0 %v20643_v27  ;;  %v20706_v10 = vld [vmem:[#allocation6 + $0x19cc] ss:$16 sps:$4 sm:$0xff]   ;;  %v20704_v27 = vld [vmem:[#allocation6 + $0x19c8] ss:$16 sps:$4 sm:$0xff]  }
 0x463   :  { %7927 = vmatprep.subr.bf16.mxu1 %v20646_v15  ;;  %v20707_v15 = vld [vmem:[#allocation6 + $0x19e0] ss:$16 sps:$4 sm:$0xff]  }
 0x465   :  { %7842 = vmatpush1.bf16.msra.mxu0 %v20641_v18  ;;  %v20709_v18 = vld [vmem:[#allocation6 + $0x19e4] ss:$16 sps:$4 sm:$0xff]  }
 0x466   :  { %7928 = vmatpush1.bf16.msra.mxu1 %v20644_v9  ;;  %7843 = vmatprep.subr.bf16.mxu0 %v20649_v3  ;;  %v20712_v9 = vld [vmem:[#allocation6 + $0x19ec] ss:$16 sps:$4 sm:$0xff]   ;;  %v20710_v3 = vld [vmem:[#allocation6 + $0x19e8] ss:$16 sps:$4 sm:$0xff]  }
 0x467   :  { %7929 = vmatprep.subr.bf16.mxu1 %v20652_v37  ;;  %v20713_v37 = vld [vmem:[#allocation6 + $0x1a00] ss:$16 sps:$4 sm:$0xff]  }
 0x469   :  { %7844 = vmatpush1.bf16.msra.mxu0 %v20647_v52  ;;  %v20715_v52 = vld [vmem:[#allocation6 + $0x1a04] ss:$16 sps:$4 sm:$0xff]  }
 0x46a   :  { %7930 = vmatpush1.bf16.msra.mxu1 %v20650_v8  ;;  %7845 = vmatprep.subr.bf16.mxu0 %v20655_v23  ;;  %v20718_v8 = vld [vmem:[#allocation6 + $0x1a0c] ss:$16 sps:$4 sm:$0xff]   ;;  %v20716_v23 = vld [vmem:[#allocation6 + $0x1a08] ss:$16 sps:$4 sm:$0xff]  }
 0x46b   :  { %7931 = vmatprep.subr.bf16.mxu1 %v20658_v61  ;;  %v24115_v61 = vld [vmem:[#allocation26_spill] sm:$0xff] }
 0x46d   :  { %7846 = vmatpush1.bf16.msra.mxu0 %v20653_v0  ;;  %v20721_v0 = vld [vmem:[#allocation6 + $0x1a24] ss:$16 sps:$4 sm:$0xff]  }
 0x46e   :  { %7932 = vmatpush1.bf16.msra.mxu1 %v20656_v35  ;;  %7847 = vmatprep.subr.bf16.mxu0 %v20661_v56  ;;  %v20719_v35 = vld [vmem:[#allocation6 + $0x1a20] ss:$16 sps:$4 sm:$0xff]   ;;  %v20722_v56 = vld [vmem:[#allocation6 + $0x1a28] ss:$16 sps:$4 sm:$0xff]  }
 0x46f   :  { %7933 = vmatprep.subr.bf16.mxu1 %v20664_v34  ;;  %v20727_v34 = vld [vmem:[#allocation6 + $0x1a44] ss:$16 sps:$4 sm:$0xff]  }
 0x471   :  { %7848 = vmatpush1.bf16.msra.mxu0 %v20659_v51  ;;  %v20724_v51 = vld [vmem:[#allocation6 + $0x1a2c] ss:$16 sps:$4 sm:$0xff]  }
 0x472   :  { %7934 = vmatpush1.bf16.msra.mxu1 %v20662_v38  ;;  %7849 = vmatprep.subr.bf16.mxu0 %v20667_v55  ;;  %v20730_v38 = vld [vmem:[#allocation6 + $0x1a4c] ss:$16 sps:$4 sm:$0xff]   ;;  %v20725_v55 = vld [vmem:[#allocation6 + $0x1a40] ss:$16 sps:$4 sm:$0xff]  }
 0x473   :  { %7935 = vmatprep.subr.bf16.mxu1 %v20670_v46  ;;  %v20733_v46 = vld [vmem:[#allocation6 + $0x1a64] ss:$16 sps:$4 sm:$0xff]  }
 0x475   :  { %7850 = vmatpush1.bf16.msra.mxu0 %v20665_v53  ;;  %v20728_v53 = vld [vmem:[#allocation6 + $0x1a48] ss:$16 sps:$4 sm:$0xff]  }
 0x476   :  { %7936 = vmatpush1.bf16.msra.mxu1 %v20668_v59  ;;  %7851 = vmatprep.subr.bf16.mxu0 %v20673_v22  ;;  %v20731_v59 = vld [vmem:[#allocation6 + $0x1a60] ss:$16 sps:$4 sm:$0xff]   ;;  %v20736_v22 = vld [vmem:[#allocation6 + $0x1a6c] ss:$16 sps:$4 sm:$0xff]  }
 0x477   :  { %7937 = vmatprep.subr.bf16.mxu1 %v20676_v29  ;;  %v20739_v29 = vld [vmem:[#allocation6 + $0x1a84] ss:$16 sps:$4 sm:$0xff]  }
 0x479   :  { %7852 = vmatpush1.bf16.msra.mxu0 %v20671_v48  ;;  %v20734_v48 = vld [vmem:[#allocation6 + $0x1a68] ss:$16 sps:$4 sm:$0xff]  }
 0x47a   :  { %7938 = vmatpush1.bf16.msra.mxu1 %v20674_v19  ;;  %7853 = vmatprep.subr.bf16.mxu0 %v20679_v1  ;;  %v20737_v19 = vld [vmem:[#allocation6 + $0x1a80] ss:$16 sps:$4 sm:$0xff]   ;;  %v20740_v1 = vld [vmem:[#allocation6 + $0x1a88] ss:$16 sps:$4 sm:$0xff]  }
 0x47b   :  { %7939 = vmatprep.subr.bf16.mxu1 %v20682_v24  ;;  %v20743_v24 = vld [vmem:[#allocation6 + $0x1aa0] ss:$16 sps:$4 sm:$0xff]  }
 0x47d   :  { %7854 = vmatpush1.bf16.msra.mxu0 %v20677_v58  ;;  %v20745_v58 = vld [vmem:[#allocation6 + $0x1aa4] ss:$16 sps:$4 sm:$0xff]  }
 0x47e   :  { %7940 = vmatpush1.bf16.msra.mxu1 %v20680_v6  ;;  %7855 = vmatprep.subr.bf16.mxu0 %v20685_v60  ;;  %v20748_v6 = vld [vmem:[#allocation6 + $0x1aac] ss:$16 sps:$4 sm:$0xff]   ;;  %v20746_v60 = vld [vmem:[#allocation6 + $0x1aa8] ss:$16 sps:$4 sm:$0xff]  }
 0x47f   :  { %7941 = vmatprep.subr.bf16.mxu1 %v20688_v50  ;;  %v20749_v50 = vld [vmem:[#allocation6 + $0x1ac0] ss:$16 sps:$4 sm:$0xff]  }
 0x481   :  { %7856 = vmatpush1.bf16.msra.mxu0 %v20683_v31  ;;  %v20751_v31 = vld [vmem:[#allocation6 + $0x1ac4] ss:$16 sps:$4 sm:$0xff]  }
 0x482   :  { %7942 = vmatpush1.bf16.msra.mxu1 %v20686_v17  ;;  %7857 = vmatprep.subr.bf16.mxu0 %v20691_v16  ;;  %v20754_v17 = vld [vmem:[#allocation6 + $0x1acc] ss:$16 sps:$4 sm:$0xff]   ;;  %v20752_v16 = vld [vmem:[#allocation6 + $0x1ac8] ss:$16 sps:$4 sm:$0xff]  }
 0x483   :  { %7943 = vmatprep.subr.bf16.mxu1 %v20694_v44  ;;  %v20755_v44 = vld [vmem:[#allocation6 + $0x1ae0] ss:$16 sps:$4 sm:$0xff]  }
 0x485   :  { %7858 = vmatpush1.bf16.msra.mxu0 %v20689_v13  ;;  %v20757_v13 = vld [vmem:[#allocation6 + $0x1ae4] ss:$16 sps:$4 sm:$0xff]  }
 0x486   :  { %7944 = vmatpush1.bf16.msra.mxu1 %v20692_v14  ;;  %7859 = vmatprep.subr.bf16.mxu0 %v20697_v7  ;;  %v20760_v14 = vld [vmem:[#allocation6 + $0x1aec] ss:$16 sps:$4 sm:$0xff]   ;;  %v20758_v7 = vld [vmem:[#allocation6 + $0x1ae8] ss:$16 sps:$4 sm:$0xff]  }
 0x487   :  { %7945 = vmatprep.subr.bf16.mxu1 %v20700_v42  ;;  %v20761_v42 = vld [vmem:[#allocation6 + $0x1b00] ss:$16 sps:$4 sm:$0xff]  }
 0x489   :  { %7860 = vmatpush1.bf16.msra.mxu0 %v20695_v33  ;;  %v20763_v33 = vld [vmem:[#allocation6 + $0x1b04] ss:$16 sps:$4 sm:$0xff]  }
 0x48a   :  { %7946 = vmatpush1.bf16.msra.mxu1 %v20698_v5  ;;  %7861 = vmatprep.subr.bf16.mxu0 %v20703_v2  ;;  %v20766_v5 = vld [vmem:[#allocation6 + $0x1b0c] ss:$16 sps:$4 sm:$0xff]   ;;  %v20764_v2 = vld [vmem:[#allocation6 + $0x1b08] ss:$16 sps:$4 sm:$0xff]  }
 0x48b   :  { %7947 = vmatprep.subr.bf16.mxu1 %v20706_v10  ;;  %v20767_v10 = vld [vmem:[#allocation6 + $0x1b20] ss:$16 sps:$4 sm:$0xff]  }
 0x48d   :  { %7862 = vmatpush1.bf16.msra.mxu0 %v20701_v45  ;;  %v20769_v45 = vld [vmem:[#allocation6 + $0x1b24] ss:$16 sps:$4 sm:$0xff]  }
 0x48e   :  { %7948 = vmatpush1.bf16.msra.mxu1 %v20704_v27  ;;  %7863 = vmatprep.subr.bf16.mxu0 %v20709_v18  ;;  %v20772_v27 = vld [vmem:[#allocation6 + $0x1b2c] ss:$16 sps:$4 sm:$0xff]   ;;  %v20770_v18 = vld [vmem:[#allocation6 + $0x1b28] ss:$16 sps:$4 sm:$0xff]  }
 0x48f   :  { %7949 = vmatprep.subr.bf16.mxu1 %v20712_v9  ;;  %v20773_v9 = vld [vmem:[#allocation6 + $0x1b40] ss:$16 sps:$4 sm:$0xff]  }
 0x491   :  { %7864 = vmatpush1.bf16.msra.mxu0 %v20707_v15  ;;  %v20775_v15 = vld [vmem:[#allocation6 + $0x1b44] ss:$16 sps:$4 sm:$0xff]  }
 0x492   :  { %7950 = vmatpush1.bf16.msra.mxu1 %v20710_v3  ;;  %7876 = vmatprep.subr.bf16.mxu0 %v20715_v52  ;;  %v20778_v3 = vld [vmem:[#allocation6 + $0x1b4c] ss:$16 sps:$4 sm:$0xff]   ;;  %v20776_v52 = vld [vmem:[#allocation6 + $0x1b48] ss:$16 sps:$4 sm:$0xff]  }
 0x493   :  { %7962 = vmatprep.subr.bf16.mxu1 %v20718_v8  ;;  %v20779_v8 = vld [vmem:[#allocation6 + $0x1b60] ss:$16 sps:$4 sm:$0xff]  }
 0x494   :  { %7866 = vmatmul.mubr.bf16.vlgmr.msra.gmra.mrb[64].mxu0 %v24115_v61 }
 0x495   :  { %7952 = vmatmul.mubr.bf16.vlgmr.msra.gmra.mrb[64].mxu1 %v24115_v61  ;;  %7877 = vmatpush1.bf16.msra.mxu0 %v20713_v37  ;;  %v20781_v37 = vld [vmem:[#allocation6 + $0x1b64] ss:$16 sps:$4 sm:$0xff]  }
 0x496   :  { %7908 = vmatprep.mubr.bf16.mxu0 %v23575_v12  ;;  %7963 = vmatpush1.bf16.msra.mxu1 %v20716_v23  ;;  %v20784_v23 = vld [vmem:[#allocation6 + $0x1b6c] ss:$16 sps:$4 sm:$0xff]   ;;  %v20787_v61 = vld [vmem:[#allocation6 + $0x1b84] ss:$16 sps:$4 sm:$0xff]  }
 0x497   :  { %7994 = vmatprep.mubr.bf16.mxu1 %v23575_v12  ;;  %7878 = vmatprep.subr.bf16.mxu0 %v20721_v0  ;;  %v20742_v12 = vld [vmem:[#allocation6 + $0x1a8c] ss:$16 sps:$4 sm:$0xff]   ;;  %v20782_v0 = vld [vmem:[#allocation6 + $0x1b68] ss:$16 sps:$4 sm:$0xff]  }
 0x498   :  { %7964 = vmatprep.subr.bf16.mxu1 %v20724_v51  ;;  %v20788_v51 = vld [vmem:[#allocation6 + $0x1b88] ss:$16 sps:$4 sm:$0xff]  }
 0x499   :  { %7879 = vmatpush1.bf16.msra.mxu0 %v20719_v35  ;;  %v20785_v35 = vld [vmem:[#allocation6 + $0x1b80] ss:$16 sps:$4 sm:$0xff]  }
 0x49a   :  { %7965 = vmatpush1.bf16.msra.mxu1 %v20722_v56  ;;  %7880 = vmatprep.subr.bf16.mxu0 %v20727_v34  ;;  %v20790_v56 = vld [vmem:[#allocation6 + $0x1b8c] ss:$16 sps:$4 sm:$0xff]   ;;  %v20793_v34 = vld [vmem:[#allocation6 + $0x1ba4] ss:$16 sps:$4 sm:$0xff]  }
 0x49b   :  { %7966 = vmatprep.subr.bf16.mxu1 %v20730_v38  ;;  %v20791_v38 = vld [vmem:[#allocation6 + $0x1ba0] ss:$16 sps:$4 sm:$0xff]  }
 0x49d   :  { %7881 = vmatpush1.bf16.msra.mxu0 %v20725_v55  ;;  %v20796_v55 = vld [vmem:[#allocation6 + $0x1bac] ss:$16 sps:$4 sm:$0xff]  }
 0x49e   :  { %7967 = vmatpush1.bf16.msra.mxu1 %v20728_v53  ;;  %7882 = vmatprep.subr.bf16.mxu0 %v20733_v46  ;;  %v20794_v53 = vld [vmem:[#allocation6 + $0x1ba8] ss:$16 sps:$4 sm:$0xff]   ;;  %v20799_v46 = vld [vmem:[#allocation6 + $0x1bc4] ss:$16 sps:$4 sm:$0xff]  }
 0x49f   :  { %7968 = vmatprep.subr.bf16.mxu1 %v20736_v22  ;;  %v20802_v22 = vld [vmem:[#allocation6 + $0x1bcc] ss:$16 sps:$4 sm:$0xff]  }
 0x4a1   :  { %7883 = vmatpush1.bf16.msra.mxu0 %v20731_v59  ;;  %v20797_v59 = vld [vmem:[#allocation6 + $0x1bc0] ss:$16 sps:$4 sm:$0xff]  }
 0x4a2   :  { %7969 = vmatpush1.bf16.msra.mxu1 %v20734_v48  ;;  %7884 = vmatprep.subr.bf16.mxu0 %v20739_v29  ;;  %v20800_v48 = vld [vmem:[#allocation6 + $0x1bc8] ss:$16 sps:$4 sm:$0xff]   ;;  %v20805_v29 = vld [vmem:[#allocation6 + $0x1be4] ss:$16 sps:$4 sm:$0xff]  }
 0x4a3   :  { %7970 = vmatprep.subr.bf16.mxu1 %v20742_v12  ;;  %v20808_v12 = vld [vmem:[#allocation6 + $0x1bec] ss:$16 sps:$4 sm:$0xff]  }
 0x4a5   :  { %7885 = vmatpush1.bf16.msra.mxu0 %v20737_v19  ;;  %v20803_v19 = vld [vmem:[#allocation6 + $0x1be0] ss:$16 sps:$4 sm:$0xff]  }
 0x4a6   :  { %7971 = vmatpush1.bf16.msra.mxu1 %v20740_v1  ;;  %7886 = vmatprep.subr.bf16.mxu0 %v20745_v58  ;;  %v20806_v1 = vld [vmem:[#allocation6 + $0x1be8] ss:$16 sps:$4 sm:$0xff]   ;;  %v20811_v58 = vld [vmem:[#allocation6 + $0x1c04] ss:$16 sps:$4 sm:$0xff]  }
 0x4a7   :  { %7972 = vmatprep.subr.bf16.mxu1 %v20748_v6  ;;  %v20809_v6 = vld [vmem:[#allocation6 + $0x1c00] ss:$16 sps:$4 sm:$0xff]  }
 0x4a9   :  { %7887 = vmatpush1.bf16.msra.mxu0 %v20743_v24  ;;  %v20814_v24 = vld [vmem:[#allocation6 + $0x1c0c] ss:$16 sps:$4 sm:$0xff]  }
 0x4aa   :  { %7973 = vmatpush1.bf16.msra.mxu1 %v20746_v60  ;;  %7888 = vmatprep.subr.bf16.mxu0 %v20751_v31  ;;  %v20812_v60 = vld [vmem:[#allocation6 + $0x1c08] ss:$16 sps:$4 sm:$0xff]   ;;  %v20817_v31 = vld [vmem:[#allocation6 + $0x1c24] ss:$16 sps:$4 sm:$0xff]  }
 0x4ab   :  { %7974 = vmatprep.subr.bf16.mxu1 %v20754_v17  ;;  %v20815_v17 = vld [vmem:[#allocation6 + $0x1c20] ss:$16 sps:$4 sm:$0xff]  }
 0x4ad   :  { %7889 = vmatpush1.bf16.msra.mxu0 %v20749_v50  ;;  %v24116_v50 = vld [vmem:[#allocation30_spill] sm:$0xff] }
 0x4ae   :  { %7975 = vmatpush1.bf16.msra.mxu1 %v20752_v16  ;;  %7890 = vmatprep.subr.bf16.mxu0 %v20757_v13  ;;  %v20820_v16 = vld [vmem:[#allocation6 + $0x1c2c] ss:$16 sps:$4 sm:$0xff]   ;;  %v20818_v13 = vld [vmem:[#allocation6 + $0x1c28] ss:$16 sps:$4 sm:$0xff]  }
 0x4af   :  { %7976 = vmatprep.subr.bf16.mxu1 %v20760_v14  ;;  %v20826_v14 = vld [vmem:[#allocation6 + $0x1c4c] ss:$16 sps:$4 sm:$0xff]  }
 0x4b1   :  { %7891 = vmatpush1.bf16.msra.mxu0 %v20755_v44  ;;  %v20823_v44 = vld [vmem:[#allocation6 + $0x1c44] ss:$16 sps:$4 sm:$0xff]  }
 0x4b2   :  { %7977 = vmatpush1.bf16.msra.mxu1 %v20758_v7  ;;  %7892 = vmatprep.subr.bf16.mxu0 %v20763_v33  ;;  %v20821_v7 = vld [vmem:[#allocation6 + $0x1c40] ss:$16 sps:$4 sm:$0xff]   ;;  %v20824_v33 = vld [vmem:[#allocation6 + $0x1c48] ss:$16 sps:$4 sm:$0xff]  }
 0x4b3   :  { %7978 = vmatprep.subr.bf16.mxu1 %v20766_v5  ;;  %v20827_v5 = vld [vmem:[#allocation6 + $0x1c60] ss:$16 sps:$4 sm:$0xff]  }
 0x4b5   :  { %7893 = vmatpush1.bf16.msra.mxu0 %v20761_v42  ;;  %v20829_v42 = vld [vmem:[#allocation6 + $0x1c64] ss:$16 sps:$4 sm:$0xff]  }
 0x4b6   :  { %7979 = vmatpush1.bf16.msra.mxu1 %v20764_v2  ;;  %7894 = vmatprep.subr.bf16.mxu0 %v20769_v45  ;;  %v20832_v2 = vld [vmem:[#allocation6 + $0x1c6c] ss:$16 sps:$4 sm:$0xff]   ;;  %v20830_v45 = vld [vmem:[#allocation6 + $0x1c68] ss:$16 sps:$4 sm:$0xff]  }
 0x4b7   :  { %7980 = vmatprep.subr.bf16.mxu1 %v20772_v27  ;;  %v20833_v27 = vld [vmem:[#allocation6 + $0x1c80] ss:$16 sps:$4 sm:$0xff]  }
 0x4b9   :  { %7895 = vmatpush1.bf16.msra.mxu0 %v20767_v10  ;;  %v20835_v10 = vld [vmem:[#allocation6 + $0x1c84] ss:$16 sps:$4 sm:$0xff]  }
 0x4ba   :  { %7981 = vmatpush1.bf16.msra.mxu1 %v20770_v18  ;;  %7896 = vmatprep.subr.bf16.mxu0 %v20775_v15  ;;  %v20836_v18 = vld [vmem:[#allocation6 + $0x1c88] ss:$16 sps:$4 sm:$0xff]   ;;  %v20841_v15 = vld [vmem:[#allocation6 + $0x1ca4] ss:$16 sps:$4 sm:$0xff]  }
 0x4bb   :  { %7982 = vmatprep.subr.bf16.mxu1 %v20778_v3  ;;  %v20844_v3 = vld [vmem:[#allocation6 + $0x1cac] ss:$16 sps:$4 sm:$0xff]  }
 0x4bd   :  { %7897 = vmatpush1.bf16.msra.mxu0 %v20773_v9  ;;  %v20839_v9 = vld [vmem:[#allocation6 + $0x1ca0] ss:$16 sps:$4 sm:$0xff]  }
 0x4be   :  { %7983 = vmatpush1.bf16.msra.mxu1 %v20776_v52  ;;  %7898 = vmatprep.subr.bf16.mxu0 %v20781_v37  ;;  %v20842_v52 = vld [vmem:[#allocation6 + $0x1ca8] ss:$16 sps:$4 sm:$0xff]   ;;  %v20847_v37 = vld [vmem:[#allocation6 + $0x1cc4] ss:$16 sps:$4 sm:$0xff]  }
 0x4bf   :  { %7984 = vmatprep.subr.bf16.mxu1 %v20784_v23  ;;  %v20850_v23 = vld [vmem:[#allocation6 + $0x1ccc] ss:$16 sps:$4 sm:$0xff]  }
 0x4c1   :  { %7899 = vmatpush1.bf16.msra.mxu0 %v20779_v8  ;;  %v20845_v8 = vld [vmem:[#allocation6 + $0x1cc0] ss:$16 sps:$4 sm:$0xff]  }
 0x4c2   :  { %7985 = vmatpush1.bf16.msra.mxu1 %v20782_v0  ;;  %7900 = vmatprep.subr.bf16.mxu0 %v20787_v61  ;;  %v20848_v0 = vld [vmem:[#allocation6 + $0x1cc8] ss:$16 sps:$4 sm:$0xff]   ;;  %v20853_v61 = vld [vmem:[#allocation6 + $0x1ce4] ss:$16 sps:$4 sm:$0xff]  }
 0x4c3   :  { %7986 = vmatprep.subr.bf16.mxu1 %v20790_v56  ;;  %v20856_v56 = vld [vmem:[#allocation6 + $0x1cec] ss:$16 sps:$4 sm:$0xff]  }
 0x4c5   :  { %7901 = vmatpush1.bf16.msra.mxu0 %v20785_v35  ;;  %v20851_v35 = vld [vmem:[#allocation6 + $0x1ce0] ss:$16 sps:$4 sm:$0xff]  }
 0x4c6   :  { %7987 = vmatpush1.bf16.msra.mxu1 %v20788_v51  ;;  %7902 = vmatprep.subr.bf16.mxu0 %v20793_v34  ;;  %v20854_v51 = vld [vmem:[#allocation6 + $0x1ce8] ss:$16 sps:$4 sm:$0xff]   ;;  %v20859_v34 = vld [vmem:[#allocation6 + $0x1d04] ss:$16 sps:$4 sm:$0xff]  }
 0x4c7   :  { %7988 = vmatprep.subr.bf16.mxu1 %v20796_v55  ;;  %v20862_v55 = vld [vmem:[#allocation6 + $0x1d0c] ss:$16 sps:$4 sm:$0xff]  }
 0x4c9   :  { %7903 = vmatpush1.bf16.msra.mxu0 %v20791_v38  ;;  %v20857_v38 = vld [vmem:[#allocation6 + $0x1d00] ss:$16 sps:$4 sm:$0xff]  }
 0x4ca   :  { %7989 = vmatpush1.bf16.msra.mxu1 %v20794_v53  ;;  %7904 = vmatprep.subr.bf16.mxu0 %v20799_v46  ;;  %v20860_v53 = vld [vmem:[#allocation6 + $0x1d08] ss:$16 sps:$4 sm:$0xff]   ;;  %v20865_v46 = vld [vmem:[#allocation6 + $0x1d24] ss:$16 sps:$4 sm:$0xff]  }
 0x4cb   :  { %7990 = vmatprep.subr.bf16.mxu1 %v20802_v22  ;;  %v20868_v22 = vld [vmem:[#allocation6 + $0x1d2c] ss:$16 sps:$4 sm:$0xff]  }
 0x4cd   :  { %7905 = vmatpush1.bf16.msra.mxu0 %v20797_v59  ;;  %v20863_v59 = vld [vmem:[#allocation6 + $0x1d20] ss:$16 sps:$4 sm:$0xff]  }
 0x4ce   :  { %7991 = vmatpush1.bf16.msra.mxu1 %v20800_v48  ;;  %7906 = vmatprep.subr.bf16.mxu0 %v20805_v29  ;;  %v20866_v48 = vld [vmem:[#allocation6 + $0x1d28] ss:$16 sps:$4 sm:$0xff]   ;;  %v20871_v29 = vld [vmem:[#allocation6 + $0x1d44] ss:$16 sps:$4 sm:$0xff]  }
 0x4cf   :  { %7992 = vmatprep.subr.bf16.mxu1 %v20808_v12  ;;  %v20874_v12 = vld [vmem:[#allocation6 + $0x1d4c] ss:$16 sps:$4 sm:$0xff]  }
 0x4d1   :  { %7907 = vmatpush1.bf16.msra.mxu0 %v20803_v19  ;;  %v20869_v19 = vld [vmem:[#allocation6 + $0x1d40] ss:$16 sps:$4 sm:$0xff]  }
 0x4d2   :  { %7993 = vmatpush1.bf16.msra.mxu1 %v20806_v1  ;;  %8782 = vmatprep.subr.bf16.mxu0 %v20811_v58  ;;  %v20872_v1 = vld [vmem:[#allocation6 + $0x1d48] ss:$16 sps:$4 sm:$0xff]   ;;  %v20877_v58 = vld [vmem:[#allocation6 + $0x1d64] ss:$16 sps:$4 sm:$0xff]  }
 0x4d3   :  { %8868 = vmatprep.subr.bf16.mxu1 %v20814_v24  ;;  %v20875_v24 = vld [vmem:[#allocation6 + $0x1d60] ss:$16 sps:$4 sm:$0xff]  }
 0x4d4   :  { %7909 = vmatmul.mubr.bf16.vlgmr.msra.gmra.mrb[64].mxu0 %v24116_v50 }
 0x4d5   :  { %7995 = vmatmul.mubr.bf16.vlgmr.msra.gmra.mrb[64].mxu1 %v24116_v50  ;;  %8783 = vmatpush1.bf16.msra.mxu0 %v20809_v6  ;;  %v20880_v6 = vld [vmem:[#allocation6 + $0x1d6c] ss:$16 sps:$4 sm:$0xff]   ;;  %v20881_v50 = vld [vmem:[#allocation6 + $0x1d80] ss:$16 sps:$4 sm:$0xff]  }
 0x4d6   :  { %8814 = vmatprep.mubr.bf16.mxu0 %v23593_v36  ;;  %8869 = vmatpush1.bf16.msra.mxu1 %v20812_v60  ;;  %v20878_v60 = vld [vmem:[#allocation6 + $0x1d68] ss:$16 sps:$4 sm:$0xff]  }
 0x4d7   :  { %8900 = vmatprep.mubr.bf16.mxu1 %v23593_v36  ;;  %8784 = vmatprep.subr.bf16.mxu0 %v20817_v31  ;;  %v20838_v36 = vld [vmem:[#allocation6 + $0x1c8c] ss:$16 sps:$4 sm:$0xff]   ;;  %v20883_v31 = vld [vmem:[#allocation6 + $0x1d84] ss:$16 sps:$4 sm:$0xff]  }
 0x4d8   :  { %8870 = vmatprep.subr.bf16.mxu1 %v20820_v16  ;;  %v20884_v16 = vld [vmem:[#allocation6 + $0x1d88] ss:$16 sps:$4 sm:$0xff]  }
 0x4d9   :  { %8785 = vmatpush1.bf16.msra.mxu0 %v20815_v17  ;;  %v20886_v17 = vld [vmem:[#allocation6 + $0x1d8c] ss:$16 sps:$4 sm:$0xff]  }
 0x4da   :  { %8871 = vmatpush1.bf16.msra.mxu1 %v20818_v13  ;;  %8786 = vmatprep.subr.bf16.mxu0 %v20823_v44  ;;  %v20889_v13 = vld [vmem:[#allocation6 + $0x1da4] ss:$16 sps:$4 sm:$0xff]   ;;  %v20887_v44 = vld [vmem:[#allocation6 + $0x1da0] ss:$16 sps:$4 sm:$0xff]  }
 0x4db   :  { %8872 = vmatprep.subr.bf16.mxu1 %v20826_v14  ;;  %v20892_v14 = vld [vmem:[#allocation6 + $0x1dac] ss:$16 sps:$4 sm:$0xff]  }
 0x4dd   :  { %8787 = vmatpush1.bf16.msra.mxu0 %v20821_v7  ;;  %v20890_v7 = vld [vmem:[#allocation6 + $0x1da8] ss:$16 sps:$4 sm:$0xff]  }
 0x4de   :  { %8873 = vmatpush1.bf16.msra.mxu1 %v20824_v33  ;;  %8788 = vmatprep.subr.bf16.mxu0 %v20829_v42  ;;  %v20895_v33 = vld [vmem:[#allocation6 + $0x1dc4] ss:$16 sps:$4 sm:$0xff]   ;;  %v20893_v42 = vld [vmem:[#allocation6 + $0x1dc0] ss:$16 sps:$4 sm:$0xff]  }
 0x4df   :  { %8874 = vmatprep.subr.bf16.mxu1 %v20832_v2  ;;  %v20896_v2 = vld [vmem:[#allocation6 + $0x1dc8] ss:$16 sps:$4 sm:$0xff]  }
 0x4e1   :  { %8789 = vmatpush1.bf16.msra.mxu0 %v20827_v5  ;;  %v20898_v5 = vld [vmem:[#allocation6 + $0x1dcc] ss:$16 sps:$4 sm:$0xff]  }
 0x4e2   :  { %8875 = vmatpush1.bf16.msra.mxu1 %v20830_v45  ;;  %8790 = vmatprep.subr.bf16.mxu0 %v20835_v10  ;;  %v20901_v45 = vld [vmem:[#allocation6 + $0x1de4] ss:$16 sps:$4 sm:$0xff]   ;;  %v20899_v10 = vld [vmem:[#allocation6 + $0x1de0] ss:$16 sps:$4 sm:$0xff]  }
 0x4e3   :  { %8876 = vmatprep.subr.bf16.mxu1 %v20838_v36  ;;  %v20902_v36 = vld [vmem:[#allocation6 + $0x1de8] ss:$16 sps:$4 sm:$0xff]  }
 0x4e5   :  { %8791 = vmatpush1.bf16.msra.mxu0 %v20833_v27  ;;  %v20904_v27 = vld [vmem:[#allocation6 + $0x1dec] ss:$16 sps:$4 sm:$0xff]  }
 0x4e6   :  { %8877 = vmatpush1.bf16.msra.mxu1 %v20836_v18  ;;  %8792 = vmatprep.subr.bf16.mxu0 %v20841_v15  ;;  %v20907_v18 = vld [vmem:[#allocation6 + $0x1e04] ss:$16 sps:$4 sm:$0xff]   ;;  %v20905_v15 = vld [vmem:[#allocation6 + $0x1e00] ss:$16 sps:$4 sm:$0xff]  }
 0x4e7   :  { %8878 = vmatprep.subr.bf16.mxu1 %v20844_v3  ;;  %v20908_v3 = vld [vmem:[#allocation6 + $0x1e08] ss:$16 sps:$4 sm:$0xff]  }
 0x4e9   :  { %8793 = vmatpush1.bf16.msra.mxu0 %v20839_v9  ;;  %v20910_v9 = vld [vmem:[#allocation6 + $0x1e0c] ss:$16 sps:$4 sm:$0xff]  }
 0x4ea   :  { %8879 = vmatpush1.bf16.msra.mxu1 %v20842_v52  ;;  %8794 = vmatprep.subr.bf16.mxu0 %v20847_v37  ;;  %v20913_v52 = vld [vmem:[#allocation6 + $0x1e24] ss:$16 sps:$4 sm:$0xff]  }
 0x4eb   :  { %8880 = vmatprep.subr.bf16.mxu1 %v20850_v23  ;;  %v24117_v37 = vld [vmem:[#allocation29_spill] sm:$0xff]  ;;  %v20914_v23 = vld [vmem:[#allocation6 + $0x1e28] ss:$16 sps:$4 sm:$0xff]  }
 0x4ed   :  { %8795 = vmatpush1.bf16.msra.mxu0 %v20845_v8  ;;  %v20911_v8 = vld [vmem:[#allocation6 + $0x1e20] ss:$16 sps:$4 sm:$0xff]  }
 0x4ee   :  { %8881 = vmatpush1.bf16.msra.mxu1 %v20848_v0  ;;  %8796 = vmatprep.subr.bf16.mxu0 %v20853_v61  ;;  %v20916_v0 = vld [vmem:[#allocation6 + $0x1e2c] ss:$16 sps:$4 sm:$0xff]   ;;  %v20919_v61 = vld [vmem:[#allocation6 + $0x1e44] ss:$16 sps:$4 sm:$0xff]  }
 0x4ef   :  { %8882 = vmatprep.subr.bf16.mxu1 %v20856_v56  ;;  %v20917_v56 = vld [vmem:[#allocation6 + $0x1e40] ss:$16 sps:$4 sm:$0xff]  }
 0x4f1   :  { %8797 = vmatpush1.bf16.msra.mxu0 %v20851_v35  ;;  %v20922_v35 = vld [vmem:[#allocation6 + $0x1e4c] ss:$16 sps:$4 sm:$0xff]  }
 0x4f2   :  { %8883 = vmatpush1.bf16.msra.mxu1 %v20854_v51  ;;  %8798 = vmatprep.subr.bf16.mxu0 %v20859_v34  ;;  %v20920_v51 = vld [vmem:[#allocation6 + $0x1e48] ss:$16 sps:$4 sm:$0xff]   ;;  %v20925_v34 = vld [vmem:[#allocation6 + $0x1e64] ss:$16 sps:$4 sm:$0xff]  }
 0x4f3   :  { %8884 = vmatprep.subr.bf16.mxu1 %v20862_v55  ;;  %v20928_v55 = vld [vmem:[#allocation6 + $0x1e6c] ss:$16 sps:$4 sm:$0xff]  }
 0x4f5   :  { %8799 = vmatpush1.bf16.msra.mxu0 %v20857_v38  ;;  %v20923_v38 = vld [vmem:[#allocation6 + $0x1e60] ss:$16 sps:$4 sm:$0xff]  }
 0x4f6   :  { %8885 = vmatpush1.bf16.msra.mxu1 %v20860_v53  ;;  %8800 = vmatprep.subr.bf16.mxu0 %v20865_v46  ;;  %v20926_v53 = vld [vmem:[#allocation6 + $0x1e68] ss:$16 sps:$4 sm:$0xff]   ;;  %v20931_v46 = vld [vmem:[#allocation6 + $0x1e84] ss:$16 sps:$4 sm:$0xff]  }
 0x4f7   :  { %8886 = vmatprep.subr.bf16.mxu1 %v20868_v22  ;;  %v20932_v22 = vld [vmem:[#allocation6 + $0x1e88] ss:$16 sps:$4 sm:$0xff]  }
 0x4f9   :  { %8801 = vmatpush1.bf16.msra.mxu0 %v20863_v59  ;;  %v20929_v59 = vld [vmem:[#allocation6 + $0x1e80] ss:$16 sps:$4 sm:$0xff]  }
 0x4fa   :  { %8887 = vmatpush1.bf16.msra.mxu1 %v20866_v48  ;;  %8802 = vmatprep.subr.bf16.mxu0 %v20871_v29  ;;  %v20937_v48 = vld [vmem:[#allocation6 + $0x1ea4] ss:$16 sps:$4 sm:$0xff]   ;;  %v20935_v29 = vld [vmem:[#allocation6 + $0x1ea0] ss:$16 sps:$4 sm:$0xff]  }
 0x4fb   :  { %8888 = vmatprep.subr.bf16.mxu1 %v20874_v12  ;;  %v20938_v12 = vld [vmem:[#allocation6 + $0x1ea8] ss:$16 sps:$4 sm:$0xff]  }
 0x4fd   :  { %8803 = vmatpush1.bf16.msra.mxu0 %v20869_v19  ;;  %v20940_v19 = vld [vmem:[#allocation6 + $0x1eac] ss:$16 sps:$4 sm:$0xff]  }
 0x4fe   :  { %8889 = vmatpush1.bf16.msra.mxu1 %v20872_v1  ;;  %8804 = vmatprep.subr.bf16.mxu0 %v20877_v58  ;;  %v20943_v1 = vld [vmem:[#allocation6 + $0x1ec4] ss:$16 sps:$4 sm:$0xff]   ;;  %v20941_v58 = vld [vmem:[#allocation6 + $0x1ec0] ss:$16 sps:$4 sm:$0xff]  }
 0x4ff   :  { %8890 = vmatprep.subr.bf16.mxu1 %v20880_v6  ;;  %v20944_v6 = vld [vmem:[#allocation6 + $0x1ec8] ss:$16 sps:$4 sm:$0xff]  }
 0x501   :  { %8805 = vmatpush1.bf16.msra.mxu0 %v20875_v24  ;;  %v20946_v24 = vld [vmem:[#allocation6 + $0x1ecc] ss:$16 sps:$4 sm:$0xff]  }
 0x502   :  { %8891 = vmatpush1.bf16.msra.mxu1 %v20878_v60  ;;  %8806 = vmatprep.subr.bf16.mxu0 %v20883_v31  ;;  %v20949_v60 = vld [vmem:[#allocation6 + $0x1ee4] ss:$16 sps:$4 sm:$0xff]   ;;  %v20947_v31 = vld [vmem:[#allocation6 + $0x1ee0] ss:$16 sps:$4 sm:$0xff]  }
 0x503   :  { %8892 = vmatprep.subr.bf16.mxu1 %v20886_v17  ;;  %v20950_v17 = vld [vmem:[#allocation6 + $0x1ee8] ss:$16 sps:$4 sm:$0xff]  }
 0x505   :  { %8807 = vmatpush1.bf16.msra.mxu0 %v20881_v50  ;;  %v20952_v50 = vld [vmem:[#allocation6 + $0x1eec] ss:$16 sps:$4 sm:$0xff]  }
 0x506   :  { %8893 = vmatpush1.bf16.msra.mxu1 %v20884_v16  ;;  %8808 = vmatprep.subr.bf16.mxu0 %v20889_v13  ;;  %v20955_v16 = vld [vmem:[#allocation6 + $0x1f04] ss:$16 sps:$4 sm:$0xff]   ;;  %v20953_v13 = vld [vmem:[#allocation6 + $0x1f00] ss:$16 sps:$4 sm:$0xff]  }
 0x507   :  { %8894 = vmatprep.subr.bf16.mxu1 %v20892_v14  ;;  %v20956_v14 = vld [vmem:[#allocation6 + $0x1f08] ss:$16 sps:$4 sm:$0xff]  }
 0x509   :  { %8809 = vmatpush1.bf16.msra.mxu0 %v20887_v44  ;;  %v20958_v44 = vld [vmem:[#allocation6 + $0x1f0c] ss:$16 sps:$4 sm:$0xff]  }
 0x50a   :  { %8895 = vmatpush1.bf16.msra.mxu1 %v20890_v7  ;;  %8810 = vmatprep.subr.bf16.mxu0 %v20895_v33  ;;  %v20961_v7 = vld [vmem:[#allocation6 + $0x1f24] ss:$16 sps:$4 sm:$0xff]   ;;  %v20959_v33 = vld [vmem:[#allocation6 + $0x1f20] ss:$16 sps:$4 sm:$0xff]  }
 0x50b   :  { %8896 = vmatprep.subr.bf16.mxu1 %v20898_v5  ;;  %v20962_v5 = vld [vmem:[#allocation6 + $0x1f28] ss:$16 sps:$4 sm:$0xff]  }
 0x50d   :  { %8811 = vmatpush1.bf16.msra.mxu0 %v20893_v42  ;;  %v20964_v42 = vld [vmem:[#allocation6 + $0x1f2c] ss:$16 sps:$4 sm:$0xff]  }
 0x50e   :  { %8897 = vmatpush1.bf16.msra.mxu1 %v20896_v2  ;;  %8812 = vmatprep.subr.bf16.mxu0 %v20901_v45  ;;  %v20967_v2 = vld [vmem:[#allocation6 + $0x1f44] ss:$16 sps:$4 sm:$0xff]   ;;  %v20965_v45 = vld [vmem:[#allocation6 + $0x1f40] ss:$16 sps:$4 sm:$0xff]  }
 0x50f   :  { %8898 = vmatprep.subr.bf16.mxu1 %v20904_v27  ;;  %v20968_v27 = vld [vmem:[#allocation6 + $0x1f48] ss:$16 sps:$4 sm:$0xff]  }
 0x511   :  { %8813 = vmatpush1.bf16.msra.mxu0 %v20899_v10  ;;  %v20970_v10 = vld [vmem:[#allocation6 + $0x1f4c] ss:$16 sps:$4 sm:$0xff]  }
 0x512   :  { %8899 = vmatpush1.bf16.msra.mxu1 %v20902_v36  ;;  %8825 = vmatprep.subr.bf16.mxu0 %v20907_v18  ;;  %v20973_v36 = vld [vmem:[#allocation6 + $0x1f64] ss:$16 sps:$4 sm:$0xff]   ;;  %v20971_v18 = vld [vmem:[#allocation6 + $0x1f60] ss:$16 sps:$4 sm:$0xff]  }
 0x513   :  { %8911 = vmatprep.subr.bf16.mxu1 %v20910_v9  ;;  %v20974_v9 = vld [vmem:[#allocation6 + $0x1f68] ss:$16 sps:$4 sm:$0xff]  }
 0x514   :  { %8815 = vmatmul.mubr.bf16.vlgmr.msra.gmra.mrb[64].mxu0 %v24117_v37 }
 0x515   :  { %8901 = vmatmul.mubr.bf16.vlgmr.msra.gmra.mrb[64].mxu1 %v24117_v37  ;;  %8826 = vmatpush1.bf16.msra.mxu0 %v20905_v15  ;;  %v20976_v15 = vld [vmem:[#allocation6 + $0x1f6c] ss:$16 sps:$4 sm:$0xff]  }
 0x516   :  { %8857 = vmatprep.mubr.bf16.mxu0 %v23609_v20  ;;  %8912 = vmatpush1.bf16.msra.mxu1 %v20908_v3  ;;  %v20979_v3 = vld [vmem:[#allocation6 + $0x1f84] ss:$16 sps:$4 sm:$0xff]   ;;  %v20982_v37 = vld [vmem:[#allocation6 + $0x1f8c] ss:$16 sps:$4 sm:$0xff]  }
 0x517   :  { %8943 = vmatprep.mubr.bf16.mxu1 %v23609_v20  ;;  %8827 = vmatprep.subr.bf16.mxu0 %v20913_v52  ;;  %v20934_v20 = vld [vmem:[#allocation6 + $0x1e8c] ss:$16 sps:$4 sm:$0xff]   ;;  %v20977_v52 = vld [vmem:[#allocation6 + $0x1f80] ss:$16 sps:$4 sm:$0xff]  }
 0x518   :  { %8913 = vmatprep.subr.bf16.mxu1 %v20916_v0  ;;  %v20983_v0 = vld [vmem:[#allocation6 + $0x1fa0] ss:$16 sps:$4 sm:$0xff]  }
 0x519   :  { %8828 = vmatpush1.bf16.msra.mxu0 %v20911_v8  ;;  %v20980_v8 = vld [vmem:[#allocation6 + $0x1f88] ss:$16 sps:$4 sm:$0xff]  }
 0x51a   :  { %8914 = vmatpush1.bf16.msra.mxu1 %v20914_v23  ;;  %8829 = vmatprep.subr.bf16.mxu0 %v20919_v61  ;;  %v20985_v23 = vld [vmem:[#allocation6 + $0x1fa4] ss:$16 sps:$4 sm:$0xff]   ;;  %v20988_v61 = vld [vmem:[#allocation6 + $0x1fac] ss:$16 sps:$4 sm:$0xff]  }
 0x51b   :  { %8915 = vmatprep.subr.bf16.mxu1 %v20922_v35  ;;  %v20986_v35 = vld [vmem:[#allocation6 + $0x1fa8] ss:$16 sps:$4 sm:$0xff]  }
 0x51d   :  { %8830 = vmatpush1.bf16.msra.mxu0 %v20917_v56  ;;  %v20991_v56 = vld [vmem:[#allocation6 + $0x1fc4] ss:$16 sps:$4 sm:$0xff]  }
 0x51e   :  { %8916 = vmatpush1.bf16.msra.mxu1 %v20920_v51  ;;  %8831 = vmatprep.subr.bf16.mxu0 %v20925_v34  ;;  %v20989_v51 = vld [vmem:[#allocation6 + $0x1fc0] ss:$16 sps:$4 sm:$0xff]   ;;  %v20994_v34 = vld [vmem:[#allocation6 + $0x1fcc] ss:$16 sps:$4 sm:$0xff]  }
 0x51f   :  { %8917 = vmatprep.subr.bf16.mxu1 %v20928_v55  ;;  %v20997_v55 = vld [vmem:[#allocation6 + $0x1fe4] ss:$16 sps:$4 sm:$0xff]  }
 0x521   :  { %8832 = vmatpush1.bf16.msra.mxu0 %v20923_v38  ;;  %v20992_v38 = vld [vmem:[#allocation6 + $0x1fc8] ss:$16 sps:$4 sm:$0xff]  }
 0x522   :  { %8918 = vmatpush1.bf16.msra.mxu1 %v20926_v53  ;;  %8833 = vmatprep.subr.bf16.mxu0 %v20931_v46  ;;  %v20995_v53 = vld [vmem:[#allocation6 + $0x1fe0] ss:$16 sps:$4 sm:$0xff]   ;;  %v21000_v46 = vld [vmem:[#allocation6 + $0x1fec] ss:$16 sps:$4 sm:$0xff]  }
 0x523   :  { %8919 = vmatprep.subr.bf16.mxu1 %v20934_v20  ;;  %v21003_v20 = vld [vmem:[#allocation6 + $0x2004] ss:$16 sps:$4 sm:$0xff]  }
 0x525   :  { %8834 = vmatpush1.bf16.msra.mxu0 %v20929_v59  ;;  %v20998_v59 = vld [vmem:[#allocation6 + $0x1fe8] ss:$16 sps:$4 sm:$0xff]  }
 0x526   :  { %8920 = vmatpush1.bf16.msra.mxu1 %v20932_v22  ;;  %8835 = vmatprep.subr.bf16.mxu0 %v20937_v48  ;;  %v21006_v22 = vld [vmem:[#allocation6 + $0x200c] ss:$16 sps:$4 sm:$0xff]   ;;  %v21001_v48 = vld [vmem:[#allocation6 + $0x2000] ss:$16 sps:$4 sm:$0xff]  }
 0x527   :  { %8921 = vmatprep.subr.bf16.mxu1 %v20940_v19  ;;  %v21009_v19 = vld [vmem:[#allocation6 + $0x2024] ss:$16 sps:$4 sm:$0xff]  }
 0x529   :  { %8836 = vmatpush1.bf16.msra.mxu0 %v20935_v29  ;;  %v21004_v29 = vld [vmem:[#allocation6 + $0x2008] ss:$16 sps:$4 sm:$0xff]  }
 0x52a   :  { %8922 = vmatpush1.bf16.msra.mxu1 %v20938_v12  ;;  %8837 = vmatprep.subr.bf16.mxu0 %v20943_v1  ;;  %v24118_v12 = vld [vmem:[#allocation37_spill] sm:$0xff] }
 0x52b   :  { %8923 = vmatprep.subr.bf16.mxu1 %v20946_v24  ;;  %v21007_v1 = vld [vmem:[#allocation6 + $0x2020] ss:$16 sps:$4 sm:$0xff]   ;;  %v21010_v24 = vld [vmem:[#allocation6 + $0x2028] ss:$16 sps:$4 sm:$0xff]  }
 0x52d   :  { %8838 = vmatpush1.bf16.msra.mxu0 %v20941_v58  ;;  %v21012_v58 = vld [vmem:[#allocation6 + $0x202c] ss:$16 sps:$4 sm:$0xff]  }
 0x52e   :  { %8924 = vmatpush1.bf16.msra.mxu1 %v20944_v6  ;;  %8839 = vmatprep.subr.bf16.mxu0 %v20949_v60  ;;  %v21015_v6 = vld [vmem:[#allocation6 + $0x2044] ss:$16 sps:$4 sm:$0xff]   ;;  %v21018_v60 = vld [vmem:[#allocation6 + $0x204c] ss:$16 sps:$4 sm:$0xff]  }
 0x52f   :  { %8925 = vmatprep.subr.bf16.mxu1 %v20952_v50  ;;  %v21016_v50 = vld [vmem:[#allocation6 + $0x2048] ss:$16 sps:$4 sm:$0xff]  }
 0x531   :  { %8840 = vmatpush1.bf16.msra.mxu0 %v20947_v31  ;;  %v21013_v31 = vld [vmem:[#allocation6 + $0x2040] ss:$16 sps:$4 sm:$0xff]  }
 0x532   :  { %8926 = vmatpush1.bf16.msra.mxu1 %v20950_v17  ;;  %8841 = vmatprep.subr.bf16.mxu0 %v20955_v16  ;;  %v21021_v17 = vld [vmem:[#allocation6 + $0x2064] ss:$16 sps:$4 sm:$0xff]   ;;  %v21019_v16 = vld [vmem:[#allocation6 + $0x2060] ss:$16 sps:$4 sm:$0xff]  }
 0x533   :  { %8927 = vmatprep.subr.bf16.mxu1 %v20958_v44  ;;  %v21022_v44 = vld [vmem:[#allocation6 + $0x2068] ss:$16 sps:$4 sm:$0xff]  }
 0x535   :  { %8842 = vmatpush1.bf16.msra.mxu0 %v20953_v13  ;;  %v21024_v13 = vld [vmem:[#allocation6 + $0x206c] ss:$16 sps:$4 sm:$0xff]  }
 0x536   :  { %8928 = vmatpush1.bf16.msra.mxu1 %v20956_v14  ;;  %8843 = vmatprep.subr.bf16.mxu0 %v20961_v7  ;;  %v21027_v14 = vld [vmem:[#allocation6 + $0x2084] ss:$16 sps:$4 sm:$0xff]   ;;  %v21025_v7 = vld [vmem:[#allocation6 + $0x2080] ss:$16 sps:$4 sm:$0xff]  }
 0x537   :  { %8929 = vmatprep.subr.bf16.mxu1 %v20964_v42  ;;  %v21033_v42 = vld [vmem:[#allocation6 + $0x20a4] ss:$16 sps:$4 sm:$0xff]  }
 0x539   :  { %8844 = vmatpush1.bf16.msra.mxu0 %v20959_v33  ;;  %v21028_v33 = vld [vmem:[#allocation6 + $0x2088] ss:$16 sps:$4 sm:$0xff]  }
 0x53a   :  { %8930 = vmatpush1.bf16.msra.mxu1 %v20962_v5  ;;  %8845 = vmatprep.subr.bf16.mxu0 %v20967_v2  ;;  %v21031_v5 = vld [vmem:[#allocation6 + $0x20a0] ss:$16 sps:$4 sm:$0xff]   ;;  %v21036_v2 = vld [vmem:[#allocation6 + $0x20ac] ss:$16 sps:$4 sm:$0xff]  }
 0x53b   :  { %8931 = vmatprep.subr.bf16.mxu1 %v20970_v10  ;;  %v21039_v10 = vld [vmem:[#allocation6 + $0x20c4] ss:$16 sps:$4 sm:$0xff]  }
 0x53d   :  { %8846 = vmatpush1.bf16.msra.mxu0 %v20965_v45  ;;  %v21034_v45 = vld [vmem:[#allocation6 + $0x20a8] ss:$16 sps:$4 sm:$0xff]  }
 0x53e   :  { %8932 = vmatpush1.bf16.msra.mxu1 %v20968_v27  ;;  %8847 = vmatprep.subr.bf16.mxu0 %v20973_v36  ;;  %v21042_v27 = vld [vmem:[#allocation6 + $0x20cc] ss:$16 sps:$4 sm:$0xff]   ;;  %v21037_v36 = vld [vmem:[#allocation6 + $0x20c0] ss:$16 sps:$4 sm:$0xff]  }
 0x53f   :  { %8933 = vmatprep.subr.bf16.mxu1 %v20976_v15  ;;  %v21045_v15 = vld [vmem:[#allocation6 + $0x20e4] ss:$16 sps:$4 sm:$0xff]  }
 0x541   :  { %8848 = vmatpush1.bf16.msra.mxu0 %v20971_v18  ;;  %v21040_v18 = vld [vmem:[#allocation6 + $0x20c8] ss:$16 sps:$4 sm:$0xff]  }
 0x542   :  { %8934 = vmatpush1.bf16.msra.mxu1 %v20974_v9  ;;  %8849 = vmatprep.subr.bf16.mxu0 %v20979_v3  ;;  %v21048_v9 = vld [vmem:[#allocation6 + $0x20ec] ss:$16 sps:$4 sm:$0xff]   ;;  %v21043_v3 = vld [vmem:[#allocation6 + $0x20e0] ss:$16 sps:$4 sm:$0xff]  }
 0x543   :  { %8935 = vmatprep.subr.bf16.mxu1 %v20982_v37  ;;  %v21051_v37 = vld [vmem:[#allocation6 + $0x2104] ss:$16 sps:$4 sm:$0xff]  }
 0x545   :  { %8850 = vmatpush1.bf16.msra.mxu0 %v20977_v52  ;;  %v21046_v52 = vld [vmem:[#allocation6 + $0x20e8] ss:$16 sps:$4 sm:$0xff]  }
 0x546   :  { %8936 = vmatpush1.bf16.msra.mxu1 %v20980_v8  ;;  %8851 = vmatprep.subr.bf16.mxu0 %v20985_v23  ;;  %v21054_v8 = vld [vmem:[#allocation6 + $0x210c] ss:$16 sps:$4 sm:$0xff]   ;;  %v21049_v23 = vld [vmem:[#allocation6 + $0x2100] ss:$16 sps:$4 sm:$0xff]  }
 0x547   :  { %8937 = vmatprep.subr.bf16.mxu1 %v20988_v61  ;;  %v21057_v61 = vld [vmem:[#allocation6 + $0x2124] ss:$16 sps:$4 sm:$0xff]  }
 0x549   :  { %8852 = vmatpush1.bf16.msra.mxu0 %v20983_v0  ;;  %v21052_v0 = vld [vmem:[#allocation6 + $0x2108] ss:$16 sps:$4 sm:$0xff]  }
 0x54a   :  { %8938 = vmatpush1.bf16.msra.mxu1 %v20986_v35  ;;  %8853 = vmatprep.subr.bf16.mxu0 %v20991_v56  ;;  %v21060_v35 = vld [vmem:[#allocation6 + $0x212c] ss:$16 sps:$4 sm:$0xff]   ;;  %v21055_v56 = vld [vmem:[#allocation6 + $0x2120] ss:$16 sps:$4 sm:$0xff]  }
 0x54b   :  { %8939 = vmatprep.subr.bf16.mxu1 %v20994_v34  ;;  %v21063_v34 = vld [vmem:[#allocation6 + $0x2144] ss:$16 sps:$4 sm:$0xff]  }
 0x54d   :  { %8854 = vmatpush1.bf16.msra.mxu0 %v20989_v51  ;;  %v21058_v51 = vld [vmem:[#allocation6 + $0x2128] ss:$16 sps:$4 sm:$0xff]  }
 0x54e   :  { %8940 = vmatpush1.bf16.msra.mxu1 %v20992_v38  ;;  %8855 = vmatprep.subr.bf16.mxu0 %v20997_v55  ;;  %v21066_v38 = vld [vmem:[#allocation6 + $0x214c] ss:$16 sps:$4 sm:$0xff]   ;;  %v21061_v55 = vld [vmem:[#allocation6 + $0x2140] ss:$16 sps:$4 sm:$0xff]  }
 0x54f   :  { %8941 = vmatprep.subr.bf16.mxu1 %v21000_v46  ;;  %v21069_v46 = vld [vmem:[#allocation6 + $0x2164] ss:$16 sps:$4 sm:$0xff]  }
 0x551   :  { %8856 = vmatpush1.bf16.msra.mxu0 %v20995_v53  ;;  %v21064_v53 = vld [vmem:[#allocation6 + $0x2148] ss:$16 sps:$4 sm:$0xff]  }
 0x552   :  { %8942 = vmatpush1.bf16.msra.mxu1 %v20998_v59  ;;  %9731 = vmatprep.subr.bf16.mxu0 %v21003_v20  ;;  %v21072_v59 = vld [vmem:[#allocation6 + $0x216c] ss:$16 sps:$4 sm:$0xff]   ;;  %v21067_v20 = vld [vmem:[#allocation6 + $0x2160] ss:$16 sps:$4 sm:$0xff]  }
 0x553   :  { %9817 = vmatprep.subr.bf16.mxu1 %v21006_v22  ;;  %v21070_v22 = vld [vmem:[#allocation6 + $0x2168] ss:$16 sps:$4 sm:$0xff]  }
 0x554   :  { %8858 = vmatmul.mubr.bf16.vlgmr.msra.gmra.mrb[64].mxu0 %v24118_v12 }
 0x555   :  { %8944 = vmatmul.mubr.bf16.vlgmr.msra.gmra.mrb[64].mxu1 %v24118_v12  ;;  %9732 = vmatpush1.bf16.msra.mxu0 %v21001_v48  ;;  %v21075_v48 = vld [vmem:[#allocation6 + $0x2184] ss:$16 sps:$4 sm:$0xff]   ;;  %v21076_v12 = vld [vmem:[#allocation6 + $0x2188] ss:$16 sps:$4 sm:$0xff]  }
 0x556   :  { %9763 = vmatprep.mubr.bf16.mxu0 %v23623_v30  ;;  %9818 = vmatpush1.bf16.msra.mxu1 %v21004_v29  ;;  %v21078_v29 = vld [vmem:[#allocation6 + $0x218c] ss:$16 sps:$4 sm:$0xff]  }
 0x557   :  { %9849 = vmatprep.mubr.bf16.mxu1 %v23623_v30  ;;  %9733 = vmatprep.subr.bf16.mxu0 %v21009_v19  ;;  %v21030_v30 = vld [vmem:[#allocation6 + $0x208c] ss:$16 sps:$4 sm:$0xff]   ;;  %v21073_v19 = vld [vmem:[#allocation6 + $0x2180] ss:$16 sps:$4 sm:$0xff]  }
 0x558   :  { %9819 = vmatprep.subr.bf16.mxu1 %v21012_v58  ;;  %v21084_v58 = vld [vmem:[#allocation6 + $0x21ac] ss:$16 sps:$4 sm:$0xff]  }
 0x559   :  { %9734 = vmatpush1.bf16.msra.mxu0 %v21007_v1  ;;  %v21081_v1 = vld [vmem:[#allocation6 + $0x21a4] ss:$16 sps:$4 sm:$0xff]  }
 0x55a   :  { %9820 = vmatpush1.bf16.msra.mxu1 %v21010_v24  ;;  %9735 = vmatprep.subr.bf16.mxu0 %v21015_v6  ;;  %v21079_v24 = vld [vmem:[#allocation6 + $0x21a0] ss:$16 sps:$4 sm:$0xff]   ;;  %v21082_v6 = vld [vmem:[#allocation6 + $0x21a8] ss:$16 sps:$4 sm:$0xff]  }
 0x55b   :  { %9821 = vmatprep.subr.bf16.mxu1 %v21018_v60  ;;  %v21087_v60 = vld [vmem:[#allocation6 + $0x21c4] ss:$16 sps:$4 sm:$0xff]  }
 0x55d   :  { %9736 = vmatpush1.bf16.msra.mxu0 %v21013_v31  ;;  %v21090_v31 = vld [vmem:[#allocation6 + $0x21cc] ss:$16 sps:$4 sm:$0xff]  }
 0x55e   :  { %9822 = vmatpush1.bf16.msra.mxu1 %v21016_v50  ;;  %9737 = vmatprep.subr.bf16.mxu0 %v21021_v17  ;;  %v21085_v50 = vld [vmem:[#allocation6 + $0x21c0] ss:$16 sps:$4 sm:$0xff]   ;;  %v21088_v17 = vld [vmem:[#allocation6 + $0x21c8] ss:$16 sps:$4 sm:$0xff]  }
 0x55f   :  { %9823 = vmatprep.subr.bf16.mxu1 %v21024_v13  ;;  %v21096_v13 = vld [vmem:[#allocation6 + $0x21ec] ss:$16 sps:$4 sm:$0xff]  }
 0x561   :  { %9738 = vmatpush1.bf16.msra.mxu0 %v21019_v16  ;;  %v21093_v16 = vld [vmem:[#allocation6 + $0x21e4] ss:$16 sps:$4 sm:$0xff]  }
 0x562   :  { %9824 = vmatpush1.bf16.msra.mxu1 %v21022_v44  ;;  %9739 = vmatprep.subr.bf16.mxu0 %v21027_v14  ;;  %v21091_v44 = vld [vmem:[#allocation6 + $0x21e0] ss:$16 sps:$4 sm:$0xff]   ;;  %v21094_v14 = vld [vmem:[#allocation6 + $0x21e8] ss:$16 sps:$4 sm:$0xff]  }
 0x563   :  { %9825 = vmatprep.subr.bf16.mxu1 %v21030_v30  ;;  %v21102_v30 = vld [vmem:[#allocation6 + $0x220c] ss:$16 sps:$4 sm:$0xff]  }
 0x565   :  { %9740 = vmatpush1.bf16.msra.mxu0 %v21025_v7  ;;  %v21099_v7 = vld [vmem:[#allocation6 + $0x2204] ss:$16 sps:$4 sm:$0xff]  }
 0x566   :  { %9826 = vmatpush1.bf16.msra.mxu1 %v21028_v33  ;;  %9741 = vmatprep.subr.bf16.mxu0 %v21033_v42  ;;  %v21097_v33 = vld [vmem:[#allocation6 + $0x2200] ss:$16 sps:$4 sm:$0xff]   ;;  %v21100_v42 = vld [vmem:[#allocation6 + $0x2208] ss:$16 sps:$4 sm:$0xff]  }
 0x567   :  { %9827 = vmatprep.subr.bf16.mxu1 %v21036_v2  ;;  %v24119_v2 = vld [vmem:[#allocation31_spill] sm:$0xff] }
 0x569   :  { %9742 = vmatpush1.bf16.msra.mxu0 %v21031_v5  ;;  %v21105_v5 = vld [vmem:[#allocation6 + $0x2224] ss:$16 sps:$4 sm:$0xff]  }
 0x56a   :  { %9828 = vmatpush1.bf16.msra.mxu1 %v21034_v45  ;;  %9743 = vmatprep.subr.bf16.mxu0 %v21039_v10  ;;  %v21108_v45 = vld [vmem:[#allocation6 + $0x222c] ss:$16 sps:$4 sm:$0xff]   ;;  %v21103_v10 = vld [vmem:[#allocation6 + $0x2220] ss:$16 sps:$4 sm:$0xff]  }
 0x56b   :  { %9829 = vmatprep.subr.bf16.mxu1 %v21042_v27  ;;  %v21106_v27 = vld [vmem:[#allocation6 + $0x2228] ss:$16 sps:$4 sm:$0xff]  }
 0x56d   :  { %9744 = vmatpush1.bf16.msra.mxu0 %v21037_v36  ;;  %v21111_v36 = vld [vmem:[#allocation6 + $0x2244] ss:$16 sps:$4 sm:$0xff]  }
 0x56e   :  { %9830 = vmatpush1.bf16.msra.mxu1 %v21040_v18  ;;  %9745 = vmatprep.subr.bf16.mxu0 %v21045_v15  ;;  %v21114_v18 = vld [vmem:[#allocation6 + $0x224c] ss:$16 sps:$4 sm:$0xff]   ;;  %v21109_v15 = vld [vmem:[#allocation6 + $0x2240] ss:$16 sps:$4 sm:$0xff]  }
 0x56f   :  { %9831 = vmatprep.subr.bf16.mxu1 %v21048_v9  ;;  %v21112_v9 = vld [vmem:[#allocation6 + $0x2248] ss:$16 sps:$4 sm:$0xff]  }
 0x571   :  { %9746 = vmatpush1.bf16.msra.mxu0 %v21043_v3  ;;  %v21117_v3 = vld [vmem:[#allocation6 + $0x2264] ss:$16 sps:$4 sm:$0xff]  }
 0x572   :  { %9832 = vmatpush1.bf16.msra.mxu1 %v21046_v52  ;;  %9747 = vmatprep.subr.bf16.mxu0 %v21051_v37  ;;  %v21120_v52 = vld [vmem:[#allocation6 + $0x226c] ss:$16 sps:$4 sm:$0xff]   ;;  %v21115_v37 = vld [vmem:[#allocation6 + $0x2260] ss:$16 sps:$4 sm:$0xff]  }
 0x573   :  { %9833 = vmatprep.subr.bf16.mxu1 %v21054_v8  ;;  %v21118_v8 = vld [vmem:[#allocation6 + $0x2268] ss:$16 sps:$4 sm:$0xff]  }
 0x575   :  { %9748 = vmatpush1.bf16.msra.mxu0 %v21049_v23  ;;  %v21123_v23 = vld [vmem:[#allocation6 + $0x2284] ss:$16 sps:$4 sm:$0xff]  }
 0x576   :  { %9834 = vmatpush1.bf16.msra.mxu1 %v21052_v0  ;;  %9749 = vmatprep.subr.bf16.mxu0 %v21057_v61  ;;  %v21126_v0 = vld [vmem:[#allocation6 + $0x228c] ss:$16 sps:$4 sm:$0xff]   ;;  %v21124_v61 = vld [vmem:[#allocation6 + $0x2288] ss:$16 sps:$4 sm:$0xff]  }
 0x577   :  { %9835 = vmatprep.subr.bf16.mxu1 %v21060_v35  ;;  %v21129_v35 = vld [vmem:[#allocation6 + $0x22a4] ss:$16 sps:$4 sm:$0xff]  }
 0x579   :  { %9750 = vmatpush1.bf16.msra.mxu0 %v21055_v56  ;;  %v21132_v56 = vld [vmem:[#allocation6 + $0x22ac] ss:$16 sps:$4 sm:$0xff]  }
 0x57a   :  { %9836 = vmatpush1.bf16.msra.mxu1 %v21058_v51  ;;  %9751 = vmatprep.subr.bf16.mxu0 %v21063_v34  ;;  %v21127_v51 = vld [vmem:[#allocation6 + $0x22a0] ss:$16 sps:$4 sm:$0xff]   ;;  %v21130_v34 = vld [vmem:[#allocation6 + $0x22a8] ss:$16 sps:$4 sm:$0xff]  }
 0x57b   :  { %9837 = vmatprep.subr.bf16.mxu1 %v21066_v38  ;;  %v21135_v38 = vld [vmem:[#allocation6 + $0x22c4] ss:$16 sps:$4 sm:$0xff]  }
 0x57d   :  { %9752 = vmatpush1.bf16.msra.mxu0 %v21061_v55  ;;  %v21138_v55 = vld [vmem:[#allocation6 + $0x22cc] ss:$16 sps:$4 sm:$0xff]  }
 0x57e   :  { %9838 = vmatpush1.bf16.msra.mxu1 %v21064_v53  ;;  %9753 = vmatprep.subr.bf16.mxu0 %v21069_v46  ;;  %v21133_v53 = vld [vmem:[#allocation6 + $0x22c0] ss:$16 sps:$4 sm:$0xff]   ;;  %v21136_v46 = vld [vmem:[#allocation6 + $0x22c8] ss:$16 sps:$4 sm:$0xff]  }
 0x57f   :  { %9839 = vmatprep.subr.bf16.mxu1 %v21072_v59  ;;  %v21141_v59 = vld [vmem:[#allocation6 + $0x22e4] ss:$16 sps:$4 sm:$0xff]  }
 0x581   :  { %9754 = vmatpush1.bf16.msra.mxu0 %v21067_v20  ;;  %v21144_v20 = vld [vmem:[#allocation6 + $0x22ec] ss:$16 sps:$4 sm:$0xff]  }
 0x582   :  { %9840 = vmatpush1.bf16.msra.mxu1 %v21070_v22  ;;  %9755 = vmatprep.subr.bf16.mxu0 %v21075_v48  ;;  %v21139_v22 = vld [vmem:[#allocation6 + $0x22e0] ss:$16 sps:$4 sm:$0xff]   ;;  %v21142_v48 = vld [vmem:[#allocation6 + $0x22e8] ss:$16 sps:$4 sm:$0xff]  }
 0x583   :  { %9841 = vmatprep.subr.bf16.mxu1 %v21078_v29  ;;  %v21147_v29 = vld [vmem:[#allocation6 + $0x2304] ss:$16 sps:$4 sm:$0xff]  }
 0x585   :  { %9756 = vmatpush1.bf16.msra.mxu0 %v21073_v19  ;;  %v21150_v19 = vld [vmem:[#allocation6 + $0x230c] ss:$16 sps:$4 sm:$0xff]  }
 0x586   :  { %9842 = vmatpush1.bf16.msra.mxu1 %v21076_v12  ;;  %9757 = vmatprep.subr.bf16.mxu0 %v21081_v1  ;;  %v21145_v12 = vld [vmem:[#allocation6 + $0x2300] ss:$16 sps:$4 sm:$0xff]   ;;  %v21148_v1 = vld [vmem:[#allocation6 + $0x2308] ss:$16 sps:$4 sm:$0xff]  }
 0x587   :  { %9843 = vmatprep.subr.bf16.mxu1 %v21084_v58  ;;  %v21153_v58 = vld [vmem:[#allocation6 + $0x2324] ss:$16 sps:$4 sm:$0xff]  }
 0x589   :  { %9758 = vmatpush1.bf16.msra.mxu0 %v21079_v24  ;;  %v21156_v24 = vld [vmem:[#allocation6 + $0x232c] ss:$16 sps:$4 sm:$0xff]  }
 0x58a   :  { %9844 = vmatpush1.bf16.msra.mxu1 %v21082_v6  ;;  %9759 = vmatprep.subr.bf16.mxu0 %v21087_v60  ;;  %v21151_v6 = vld [vmem:[#allocation6 + $0x2320] ss:$16 sps:$4 sm:$0xff]   ;;  %v21154_v60 = vld [vmem:[#allocation6 + $0x2328] ss:$16 sps:$4 sm:$0xff]  }
 0x58b   :  { %9845 = vmatprep.subr.bf16.mxu1 %v21090_v31  ;;  %v21159_v31 = vld [vmem:[#allocation6 + $0x2344] ss:$16 sps:$4 sm:$0xff]  }
 0x58d   :  { %9760 = vmatpush1.bf16.msra.mxu0 %v21085_v50  ;;  %v21162_v50 = vld [vmem:[#allocation6 + $0x234c] ss:$16 sps:$4 sm:$0xff]  }
 0x58e   :  { %9846 = vmatpush1.bf16.msra.mxu1 %v21088_v17  ;;  %9761 = vmatprep.subr.bf16.mxu0 %v21093_v16  ;;  %v21157_v17 = vld [vmem:[#allocation6 + $0x2340] ss:$16 sps:$4 sm:$0xff]   ;;  %v21160_v16 = vld [vmem:[#allocation6 + $0x2348] ss:$16 sps:$4 sm:$0xff]  }
 0x58f   :  { %9847 = vmatprep.subr.bf16.mxu1 %v21096_v13  ;;  %v21165_v13 = vld [vmem:[#allocation6 + $0x2364] ss:$16 sps:$4 sm:$0xff]  }
 0x591   :  { %9762 = vmatpush1.bf16.msra.mxu0 %v21091_v44  ;;  %v21168_v44 = vld [vmem:[#allocation6 + $0x236c] ss:$16 sps:$4 sm:$0xff]  }
 0x592   :  { %9848 = vmatpush1.bf16.msra.mxu1 %v21094_v14  ;;  %9774 = vmatprep.subr.bf16.mxu0 %v21099_v7  ;;  %v21163_v14 = vld [vmem:[#allocation6 + $0x2360] ss:$16 sps:$4 sm:$0xff]   ;;  %v21166_v7 = vld [vmem:[#allocation6 + $0x2368] ss:$16 sps:$4 sm:$0xff]  }
 0x593   :  { %9860 = vmatprep.subr.bf16.mxu1 %v21102_v30  ;;  %v21171_v30 = vld [vmem:[#allocation6 + $0x2384] ss:$16 sps:$4 sm:$0xff]  }
 0x594   :  { %9764 = vmatmul.mubr.bf16.vlgmr.msra.gmra.mrb[64].mxu0 %v24119_v2 }
 0x595   :  { %9850 = vmatmul.mubr.bf16.vlgmr.msra.gmra.mrb[64].mxu1 %v24119_v2  ;;  %9775 = vmatpush1.bf16.msra.mxu0 %v21097_v33  ;;  %v21174_v33 = vld [vmem:[#allocation6 + $0x238c] ss:$16 sps:$4 sm:$0xff]   ;;  %v21177_v2 = vld [vmem:[#allocation6 + $0x23a4] ss:$16 sps:$4 sm:$0xff]  }
 0x596   :  { %9806 = vmatprep.mubr.bf16.mxu0 %v23633_v49  ;;  %9861 = vmatpush1.bf16.msra.mxu1 %v21100_v42  ;;  %v21169_v42 = vld [vmem:[#allocation6 + $0x2380] ss:$16 sps:$4 sm:$0xff]  }
 0x597   :  { %9892 = vmatprep.mubr.bf16.mxu1 %v23633_v49  ;;  %9776 = vmatprep.subr.bf16.mxu0 %v21105_v5  ;;  %v21121_v49 = vld [vmem:[#allocation6 + $0x2280] ss:$16 sps:$4 sm:$0xff]   ;;  %v21172_v5 = vld [vmem:[#allocation6 + $0x2388] ss:$16 sps:$4 sm:$0xff]  }
 0x598   :  { %9862 = vmatprep.subr.bf16.mxu1 %v21108_v45  ;;  %v21180_v45 = vld [vmem:[#allocation6 + $0x23ac] ss:$16 sps:$4 sm:$0xff]  }
 0x599   :  { %9777 = vmatpush1.bf16.msra.mxu0 %v21103_v10  ;;  %v21175_v10 = vld [vmem:[#allocation6 + $0x23a0] ss:$16 sps:$4 sm:$0xff]  }
 0x59a   :  { %9863 = vmatpush1.bf16.msra.mxu1 %v21106_v27  ;;  %9778 = vmatprep.subr.bf16.mxu0 %v21111_v36  ;;  %v21178_v27 = vld [vmem:[#allocation6 + $0x23a8] ss:$16 sps:$4 sm:$0xff]   ;;  %v21183_v36 = vld [vmem:[#allocation6 + $0x23c4] ss:$16 sps:$4 sm:$0xff]  }
 0x59b   :  { %9864 = vmatprep.subr.bf16.mxu1 %v21114_v18  ;;  %v21186_v18 = vld [vmem:[#allocation6 + $0x23cc] ss:$16 sps:$4 sm:$0xff]  }
 0x59d   :  { %9779 = vmatpush1.bf16.msra.mxu0 %v21109_v15  ;;  %v21181_v15 = vld [vmem:[#allocation6 + $0x23c0] ss:$16 sps:$4 sm:$0xff]  }
 0x59e   :  { %9865 = vmatpush1.bf16.msra.mxu1 %v21112_v9  ;;  %9780 = vmatprep.subr.bf16.mxu0 %v21117_v3  ;;  %v21184_v9 = vld [vmem:[#allocation6 + $0x23c8] ss:$16 sps:$4 sm:$0xff]   ;;  %v21189_v3 = vld [vmem:[#allocation6 + $0x23e4] ss:$16 sps:$4 sm:$0xff]  }
 0x59f   :  { %9866 = vmatprep.subr.bf16.mxu1 %v21120_v52  ;;  %v21192_v52 = vld [vmem:[#allocation6 + $0x23ec] ss:$16 sps:$4 sm:$0xff]  }
 0x5a1   :  { %9781 = vmatpush1.bf16.msra.mxu0 %v21115_v37  ;;  %v21187_v37 = vld [vmem:[#allocation6 + $0x23e0] ss:$16 sps:$4 sm:$0xff]  }
 0x5a2   :  { %9867 = vmatpush1.bf16.msra.mxu1 %v21118_v8  ;;  %9782 = vmatprep.subr.bf16.mxu0 %v21123_v23  ;;  %v21190_v8 = vld [vmem:[#allocation6 + $0x23e8] ss:$16 sps:$4 sm:$0xff]   ;;  %v21195_v23 = vld [vmem:[#allocation6 + $0x2404] ss:$16 sps:$4 sm:$0xff]  }
 0x5a3   :  { %9868 = vmatprep.subr.bf16.mxu1 %v21126_v0  ;;  %v21198_v0 = vld [vmem:[#allocation6 + $0x240c] ss:$16 sps:$4 sm:$0xff]  }
 0x5a5   :  { %9783 = vmatpush1.bf16.msra.mxu0 %v21121_v49  ;;  %v21193_v49 = vld [vmem:[#allocation6 + $0x2400] ss:$16 sps:$4 sm:$0xff]  }
 0x5a6   :  { %9869 = vmatpush1.bf16.msra.mxu1 %v21124_v61  ;;  %9784 = vmatprep.subr.bf16.mxu0 %v21129_v35  ;;  %v21196_v61 = vld [vmem:[#allocation6 + $0x2408] ss:$16 sps:$4 sm:$0xff]   ;;  %v21201_v35 = vld [vmem:[#allocation6 + $0x2424] ss:$16 sps:$4 sm:$0xff]  }
 0x5a7   :  { %9870 = vmatprep.subr.bf16.mxu1 %v21132_v56  ;;  %v24120_v56 = vld [vmem:[#allocation48_spill] sm:$0xff] }
 0x5a9   :  { %9785 = vmatpush1.bf16.msra.mxu0 %v21127_v51  ;;  %v21204_v51 = vld [vmem:[#allocation6 + $0x242c] ss:$16 sps:$4 sm:$0xff]  }
 0x5aa   :  { %9871 = vmatpush1.bf16.msra.mxu1 %v21130_v34  ;;  %9786 = vmatprep.subr.bf16.mxu0 %v21135_v38  ;;  %v21199_v34 = vld [vmem:[#allocation6 + $0x2420] ss:$16 sps:$4 sm:$0xff]   ;;  %v21202_v38 = vld [vmem:[#allocation6 + $0x2428] ss:$16 sps:$4 sm:$0xff]  }
 0x5ab   :  { %9872 = vmatprep.subr.bf16.mxu1 %v21138_v55  ;;  %v21207_v55 = vld [vmem:[#allocation6 + $0x2444] ss:$16 sps:$4 sm:$0xff]  }
 0x5ad   :  { %9787 = vmatpush1.bf16.msra.mxu0 %v21133_v53  ;;  %v21210_v53 = vld [vmem:[#allocation6 + $0x244c] ss:$16 sps:$4 sm:$0xff]  }
 0x5ae   :  { %9873 = vmatpush1.bf16.msra.mxu1 %v21136_v46  ;;  %9788 = vmatprep.subr.bf16.mxu0 %v21141_v59  ;;  %v21205_v46 = vld [vmem:[#allocation6 + $0x2440] ss:$16 sps:$4 sm:$0xff]   ;;  %v21208_v59 = vld [vmem:[#allocation6 + $0x2448] ss:$16 sps:$4 sm:$0xff]  }
 0x5af   :  { %9874 = vmatprep.subr.bf16.mxu1 %v21144_v20  ;;  %v21213_v20 = vld [vmem:[#allocation6 + $0x2464] ss:$16 sps:$4 sm:$0xff]  }
 0x5b1   :  { %9789 = vmatpush1.bf16.msra.mxu0 %v21139_v22  ;;  %v21216_v22 = vld [vmem:[#allocation6 + $0x246c] ss:$16 sps:$4 sm:$0xff]  }
 0x5b2   :  { %9875 = vmatpush1.bf16.msra.mxu1 %v21142_v48  ;;  %9790 = vmatprep.subr.bf16.mxu0 %v21147_v29  ;;  %v21211_v48 = vld [vmem:[#allocation6 + $0x2460] ss:$16 sps:$4 sm:$0xff]   ;;  %v21214_v29 = vld [vmem:[#allocation6 + $0x2468] ss:$16 sps:$4 sm:$0xff]  }
 0x5b3   :  { %9876 = vmatprep.subr.bf16.mxu1 %v21150_v19  ;;  %v21219_v19 = vld [vmem:[#allocation6 + $0x2484] ss:$16 sps:$4 sm:$0xff]  }
 0x5b5   :  { %9791 = vmatpush1.bf16.msra.mxu0 %v21145_v12  ;;  %v21222_v12 = vld [vmem:[#allocation6 + $0x248c] ss:$16 sps:$4 sm:$0xff]  }
 0x5b6   :  { %9877 = vmatpush1.bf16.msra.mxu1 %v21148_v1  ;;  %9792 = vmatprep.subr.bf16.mxu0 %v21153_v58  ;;  %v21220_v1 = vld [vmem:[#allocation6 + $0x2488] ss:$16 sps:$4 sm:$0xff]   ;;  %v21225_v58 = vld [vmem:[#allocation6 + $0x24a4] ss:$16 sps:$4 sm:$0xff]  }
 0x5b7   :  { %9878 = vmatprep.subr.bf16.mxu1 %v21156_v24  ;;  %v21228_v24 = vld [vmem:[#allocation6 + $0x24ac] ss:$16 sps:$4 sm:$0xff]  }
 0x5b9   :  { %9793 = vmatpush1.bf16.msra.mxu0 %v21151_v6  ;;  %v21223_v6 = vld [vmem:[#allocation6 + $0x24a0] ss:$16 sps:$4 sm:$0xff]  }
 0x5ba   :  { %9879 = vmatpush1.bf16.msra.mxu1 %v21154_v60  ;;  %9794 = vmatprep.subr.bf16.mxu0 %v21159_v31  ;;  %v21226_v60 = vld [vmem:[#allocation6 + $0x24a8] ss:$16 sps:$4 sm:$0xff]   ;;  %v21231_v31 = vld [vmem:[#allocation6 + $0x24c4] ss:$16 sps:$4 sm:$0xff]  }
 0x5bb   :  { %9880 = vmatprep.subr.bf16.mxu1 %v21162_v50  ;;  %v21234_v50 = vld [vmem:[#allocation6 + $0x24cc] ss:$16 sps:$4 sm:$0xff]  }
 0x5bd   :  { %9795 = vmatpush1.bf16.msra.mxu0 %v21157_v17  ;;  %v21229_v17 = vld [vmem:[#allocation6 + $0x24c0] ss:$16 sps:$4 sm:$0xff]  }
 0x5be   :  { %9881 = vmatpush1.bf16.msra.mxu1 %v21160_v16  ;;  %9796 = vmatprep.subr.bf16.mxu0 %v21165_v13  ;;  %v21232_v16 = vld [vmem:[#allocation6 + $0x24c8] ss:$16 sps:$4 sm:$0xff]   ;;  %v21237_v13 = vld [vmem:[#allocation6 + $0x24e4] ss:$16 sps:$4 sm:$0xff]  }
 0x5bf   :  { %9882 = vmatprep.subr.bf16.mxu1 %v21168_v44  ;;  %v21240_v44 = vld [vmem:[#allocation6 + $0x24ec] ss:$16 sps:$4 sm:$0xff]  }
 0x5c1   :  { %9797 = vmatpush1.bf16.msra.mxu0 %v21163_v14  ;;  %v21235_v14 = vld [vmem:[#allocation6 + $0x24e0] ss:$16 sps:$4 sm:$0xff]  }
 0x5c2   :  { %9883 = vmatpush1.bf16.msra.mxu1 %v21166_v7  ;;  %9798 = vmatprep.subr.bf16.mxu0 %v21171_v30  ;;  %v21238_v7 = vld [vmem:[#allocation6 + $0x24e8] ss:$16 sps:$4 sm:$0xff]   ;;  %v21243_v30 = vld [vmem:[#allocation6 + $0x2504] ss:$16 sps:$4 sm:$0xff]  }
 0x5c3   :  { %9884 = vmatprep.subr.bf16.mxu1 %v21174_v33  ;;  %v21246_v33 = vld [vmem:[#allocation6 + $0x250c] ss:$16 sps:$4 sm:$0xff]  }
 0x5c5   :  { %9799 = vmatpush1.bf16.msra.mxu0 %v21169_v42  ;;  %v21241_v42 = vld [vmem:[#allocation6 + $0x2500] ss:$16 sps:$4 sm:$0xff]  }
 0x5c6   :  { %9885 = vmatpush1.bf16.msra.mxu1 %v21172_v5  ;;  %9800 = vmatprep.subr.bf16.mxu0 %v21177_v2  ;;  %v21244_v5 = vld [vmem:[#allocation6 + $0x2508] ss:$16 sps:$4 sm:$0xff]   ;;  %v21249_v2 = vld [vmem:[#allocation6 + $0x2524] ss:$16 sps:$4 sm:$0xff]  }
 0x5c7   :  { %9886 = vmatprep.subr.bf16.mxu1 %v21180_v45  ;;  %v21252_v45 = vld [vmem:[#allocation6 + $0x252c] ss:$16 sps:$4 sm:$0xff]  }
 0x5c9   :  { %9801 = vmatpush1.bf16.msra.mxu0 %v21175_v10  ;;  %v21247_v10 = vld [vmem:[#allocation6 + $0x2520] ss:$16 sps:$4 sm:$0xff]  }
 0x5ca   :  { %9887 = vmatpush1.bf16.msra.mxu1 %v21178_v27  ;;  %9802 = vmatprep.subr.bf16.mxu0 %v21183_v36  ;;  %v21250_v27 = vld [vmem:[#allocation6 + $0x2528] ss:$16 sps:$4 sm:$0xff]   ;;  %v21255_v36 = vld [vmem:[#allocation6 + $0x2544] ss:$16 sps:$4 sm:$0xff]  }
 0x5cb   :  { %9888 = vmatprep.subr.bf16.mxu1 %v21186_v18  ;;  %v21258_v18 = vld [vmem:[#allocation6 + $0x254c] ss:$16 sps:$4 sm:$0xff]  }
 0x5cd   :  { %9803 = vmatpush1.bf16.msra.mxu0 %v21181_v15  ;;  %v21253_v15 = vld [vmem:[#allocation6 + $0x2540] ss:$16 sps:$4 sm:$0xff]  }
 0x5ce   :  { %9889 = vmatpush1.bf16.msra.mxu1 %v21184_v9  ;;  %9804 = vmatprep.subr.bf16.mxu0 %v21189_v3  ;;  %v21256_v9 = vld [vmem:[#allocation6 + $0x2548] ss:$16 sps:$4 sm:$0xff]   ;;  %v21261_v3 = vld [vmem:[#allocation6 + $0x2564] ss:$16 sps:$4 sm:$0xff]  }
 0x5cf   :  { %9890 = vmatprep.subr.bf16.mxu1 %v21192_v52  ;;  %v21264_v52 = vld [vmem:[#allocation6 + $0x256c] ss:$16 sps:$4 sm:$0xff]  }
 0x5d1   :  { %9805 = vmatpush1.bf16.msra.mxu0 %v21187_v37  ;;  %v21259_v37 = vld [vmem:[#allocation6 + $0x2560] ss:$16 sps:$4 sm:$0xff]  }
 0x5d2   :  { %9891 = vmatpush1.bf16.msra.mxu1 %v21190_v8  ;;  %10680 = vmatprep.subr.bf16.mxu0 %v21195_v23  ;;  %v21262_v8 = vld [vmem:[#allocation6 + $0x2568] ss:$16 sps:$4 sm:$0xff]   ;;  %v21267_v23 = vld [vmem:[#allocation6 + $0x2584] ss:$16 sps:$4 sm:$0xff]  }
 0x5d3   :  { %10766 = vmatprep.subr.bf16.mxu1 %v21198_v0  ;;  %v21270_v0 = vld [vmem:[#allocation6 + $0x258c] ss:$16 sps:$4 sm:$0xff]  }
 0x5d4   :  { %9807 = vmatmul.mubr.bf16.vlgmr.msra.gmra.mrb[64].mxu0 %v24120_v56 }
 0x5d5   :  { %9893 = vmatmul.mubr.bf16.vlgmr.msra.gmra.mrb[64].mxu1 %v24120_v56  ;;  %10681 = vmatpush1.bf16.msra.mxu0 %v21193_v49  ;;  %v21265_v49 = vld [vmem:[#allocation6 + $0x2580] ss:$16 sps:$4 sm:$0xff]   ;;  %v21276_v56 = vld [vmem:[#allocation6 + $0x25ac] ss:$16 sps:$4 sm:$0xff]  }
 0x5d6   :  { %10712 = vmatprep.mubr.bf16.mxu0 %v23647_v57  ;;  %10767 = vmatpush1.bf16.msra.mxu1 %v21196_v61  ;;  %v21268_v61 = vld [vmem:[#allocation6 + $0x2588] ss:$16 sps:$4 sm:$0xff]  }
 0x5d7   :  { %10798 = vmatprep.mubr.bf16.mxu1 %v23647_v57  ;;  %10682 = vmatprep.subr.bf16.mxu0 %v21201_v35  ;;  %v21217_v57 = vld [vmem:[#allocation6 + $0x2480] ss:$16 sps:$4 sm:$0xff]   ;;  %v21273_v35 = vld [vmem:[#allocation6 + $0x25a4] ss:$16 sps:$4 sm:$0xff]  }
 0x5d8   :  { %10768 = vmatprep.subr.bf16.mxu1 %v21204_v51  ;;  %v21271_v51 = vld [vmem:[#allocation6 + $0x25a0] ss:$16 sps:$4 sm:$0xff]  }
 0x5d9   :  { %10683 = vmatpush1.bf16.msra.mxu0 %v21199_v34  ;;  %v21274_v34 = vld [vmem:[#allocation6 + $0x25a8] ss:$16 sps:$4 sm:$0xff]  }
 0x5da   :  { %10769 = vmatpush1.bf16.msra.mxu1 %v21202_v38  ;;  %10684 = vmatprep.subr.bf16.mxu0 %v21207_v55  ;;  %v21279_v38 = vld [vmem:[#allocation6 + $0x25c4] ss:$16 sps:$4 sm:$0xff]   ;;  %v21282_v55 = vld [vmem:[#allocation6 + $0x25cc] ss:$16 sps:$4 sm:$0xff]  }
 0x5db   :  { %10770 = vmatprep.subr.bf16.mxu1 %v21210_v53  ;;  %v21277_v53 = vld [vmem:[#allocation6 + $0x25c0] ss:$16 sps:$4 sm:$0xff]  }
 0x5dd   :  { %10685 = vmatpush1.bf16.msra.mxu0 %v21205_v46  ;;  %v21280_v46 = vld [vmem:[#allocation6 + $0x25c8] ss:$16 sps:$4 sm:$0xff]  }
 0x5de   :  { %10771 = vmatpush1.bf16.msra.mxu1 %v21208_v59  ;;  %10686 = vmatprep.subr.bf16.mxu0 %v21213_v20  ;;  %v21285_v59 = vld [vmem:[#allocation6 + $0x25e4] ss:$16 sps:$4 sm:$0xff]   ;;  %v21288_v20 = vld [vmem:[#allocation6 + $0x25ec] ss:$16 sps:$4 sm:$0xff]  }
 0x5df   :  { %10772 = vmatprep.subr.bf16.mxu1 %v21216_v22  ;;  %v21283_v22 = vld [vmem:[#allocation6 + $0x25e0] ss:$16 sps:$4 sm:$0xff]  }
 0x5e1   :  { %10687 = vmatpush1.bf16.msra.mxu0 %v21211_v48  ;;  %v21286_v48 = vld [vmem:[#allocation6 + $0x25e8] ss:$16 sps:$4 sm:$0xff]  }
 0x5e2   :  { %10773 = vmatpush1.bf16.msra.mxu1 %v21214_v29  ;;  %10688 = vmatprep.subr.bf16.mxu0 %v21219_v19  ;;  %v21291_v29 = vld [vmem:[#allocation6 + $0x2604] ss:$16 sps:$4 sm:$0xff]   ;;  %v21294_v19 = vld [vmem:[#allocation6 + $0x260c] ss:$16 sps:$4 sm:$0xff]  }
 0x5e3   :  { %10774 = vmatprep.subr.bf16.mxu1 %v21222_v12  ;;  %v21289_v12 = vld [vmem:[#allocation6 + $0x2600] ss:$16 sps:$4 sm:$0xff]  }
 0x5e5   :  { %10689 = vmatpush1.bf16.msra.mxu0 %v21217_v57  ;;  %v21292_v57 = vld [vmem:[#allocation6 + $0x2608] ss:$16 sps:$4 sm:$0xff]  }
 0x5e6   :  { %10775 = vmatpush1.bf16.msra.mxu1 %v21220_v1  ;;  %10690 = vmatprep.subr.bf16.mxu0 %v21225_v58  ;;  %v21297_v1 = vld [vmem:[#allocation6 + $0x2624] ss:$16 sps:$4 sm:$0xff]  }
 0x5e7   :  { %10776 = vmatprep.subr.bf16.mxu1 %v21228_v24  ;;  %v24121_v58 = vld [vmem:[#allocation41_spill] sm:$0xff] }
 0x5e8   :  { %v21300_v24 = vld [vmem:[#allocation6 + $0x262c] ss:$16 sps:$4 sm:$0xff]  }
 0x5e9   :  { %10691 = vmatpush1.bf16.msra.mxu0 %v21223_v6  ;;  %v21295_v6 = vld [vmem:[#allocation6 + $0x2620] ss:$16 sps:$4 sm:$0xff]  }
 0x5ea   :  { %10777 = vmatpush1.bf16.msra.mxu1 %v21226_v60  ;;  %10692 = vmatprep.subr.bf16.mxu0 %v21231_v31  ;;  %v21298_v60 = vld [vmem:[#allocation6 + $0x2628] ss:$16 sps:$4 sm:$0xff]   ;;  %v21303_v31 = vld [vmem:[#allocation6 + $0x2644] ss:$16 sps:$4 sm:$0xff]  }
 0x5eb   :  { %10778 = vmatprep.subr.bf16.mxu1 %v21234_v50  ;;  %v21306_v50 = vld [vmem:[#allocation6 + $0x264c] ss:$16 sps:$4 sm:$0xff]  }
 0x5ed   :  { %10693 = vmatpush1.bf16.msra.mxu0 %v21229_v17  ;;  %v21301_v17 = vld [vmem:[#allocation6 + $0x2640] ss:$16 sps:$4 sm:$0xff]  }
 0x5ee   :  { %10779 = vmatpush1.bf16.msra.mxu1 %v21232_v16  ;;  %10694 = vmatprep.subr.bf16.mxu0 %v21237_v13  ;;  %v21304_v16 = vld [vmem:[#allocation6 + $0x2648] ss:$16 sps:$4 sm:$0xff]   ;;  %v21309_v13 = vld [vmem:[#allocation6 + $0x2664] ss:$16 sps:$4 sm:$0xff]  }
 0x5ef   :  { %10780 = vmatprep.subr.bf16.mxu1 %v21240_v44  ;;  %v21312_v44 = vld [vmem:[#allocation6 + $0x266c] ss:$16 sps:$4 sm:$0xff]  }
 0x5f1   :  { %10695 = vmatpush1.bf16.msra.mxu0 %v21235_v14  ;;  %v21307_v14 = vld [vmem:[#allocation6 + $0x2660] ss:$16 sps:$4 sm:$0xff]  }
 0x5f2   :  { %10781 = vmatpush1.bf16.msra.mxu1 %v21238_v7  ;;  %10696 = vmatprep.subr.bf16.mxu0 %v21243_v30  ;;  %v21310_v7 = vld [vmem:[#allocation6 + $0x2668] ss:$16 sps:$4 sm:$0xff]   ;;  %v21315_v30 = vld [vmem:[#allocation6 + $0x2684] ss:$16 sps:$4 sm:$0xff]  }
 0x5f3   :  { %10782 = vmatprep.subr.bf16.mxu1 %v21246_v33  ;;  %v21318_v33 = vld [vmem:[#allocation6 + $0x268c] ss:$16 sps:$4 sm:$0xff]  }
 0x5f5   :  { %10697 = vmatpush1.bf16.msra.mxu0 %v21241_v42  ;;  %v21316_v42 = vld [vmem:[#allocation6 + $0x2688] ss:$16 sps:$4 sm:$0xff]  }
 0x5f6   :  { %10783 = vmatpush1.bf16.msra.mxu1 %v21244_v5  ;;  %10698 = vmatprep.subr.bf16.mxu0 %v21249_v2  ;;  %v21321_v5 = vld [vmem:[#allocation6 + $0x26a4] ss:$16 sps:$4 sm:$0xff]   ;;  %v21324_v2 = vld [vmem:[#allocation6 + $0x26ac] ss:$16 sps:$4 sm:$0xff]  }
 0x5f7   :  { %10784 = vmatprep.subr.bf16.mxu1 %v21252_v45  ;;  %v21319_v45 = vld [vmem:[#allocation6 + $0x26a0] ss:$16 sps:$4 sm:$0xff]  }
 0x5f9   :  { %10699 = vmatpush1.bf16.msra.mxu0 %v21247_v10  ;;  %v21322_v10 = vld [vmem:[#allocation6 + $0x26a8] ss:$16 sps:$4 sm:$0xff]  }
 0x5fa   :  { %10785 = vmatpush1.bf16.msra.mxu1 %v21250_v27  ;;  %10700 = vmatprep.subr.bf16.mxu0 %v21255_v36  ;;  %v21327_v27 = vld [vmem:[#allocation6 + $0x26c4] ss:$16 sps:$4 sm:$0xff]   ;;  %v21330_v36 = vld [vmem:[#allocation6 + $0x26cc] ss:$16 sps:$4 sm:$0xff]  }
 0x5fb   :  { %10786 = vmatprep.subr.bf16.mxu1 %v21258_v18  ;;  %v21325_v18 = vld [vmem:[#allocation6 + $0x26c0] ss:$16 sps:$4 sm:$0xff]  }
 0x5fd   :  { %10701 = vmatpush1.bf16.msra.mxu0 %v21253_v15  ;;  %v21328_v15 = vld [vmem:[#allocation6 + $0x26c8] ss:$16 sps:$4 sm:$0xff]  }
 0x5fe   :  { %10787 = vmatpush1.bf16.msra.mxu1 %v21256_v9  ;;  %10702 = vmatprep.subr.bf16.mxu0 %v21261_v3  ;;  %v21333_v9 = vld [vmem:[#allocation6 + $0x26e4] ss:$16 sps:$4 sm:$0xff]   ;;  %v21336_v3 = vld [vmem:[#allocation6 + $0x26ec] ss:$16 sps:$4 sm:$0xff]  }
 0x5ff   :  { %10788 = vmatprep.subr.bf16.mxu1 %v21264_v52  ;;  %v21331_v52 = vld [vmem:[#allocation6 + $0x26e0] ss:$16 sps:$4 sm:$0xff]  }
 0x601   :  { %10703 = vmatpush1.bf16.msra.mxu0 %v21259_v37  ;;  %v21334_v37 = vld [vmem:[#allocation6 + $0x26e8] ss:$16 sps:$4 sm:$0xff]  }
 0x602   :  { %10789 = vmatpush1.bf16.msra.mxu1 %v21262_v8  ;;  %10704 = vmatprep.subr.bf16.mxu0 %v21267_v23  ;;  %v21339_v8 = vld [vmem:[#allocation6 + $0x2704] ss:$16 sps:$4 sm:$0xff]   ;;  %v21342_v23 = vld [vmem:[#allocation6 + $0x270c] ss:$16 sps:$4 sm:$0xff]  }
 0x603   :  { %10790 = vmatprep.subr.bf16.mxu1 %v21270_v0  ;;  %v21337_v0 = vld [vmem:[#allocation6 + $0x2700] ss:$16 sps:$4 sm:$0xff]  }
 0x605   :  { %10705 = vmatpush1.bf16.msra.mxu0 %v21265_v49  ;;  %v21340_v49 = vld [vmem:[#allocation6 + $0x2708] ss:$16 sps:$4 sm:$0xff]  }
 0x606   :  { %10791 = vmatpush1.bf16.msra.mxu1 %v21268_v61  ;;  %10706 = vmatprep.subr.bf16.mxu0 %v21273_v35  ;;  %v21345_v61 = vld [vmem:[#allocation6 + $0x2724] ss:$16 sps:$4 sm:$0xff]   ;;  %v21348_v35 = vld [vmem:[#allocation6 + $0x272c] ss:$16 sps:$4 sm:$0xff]  }
 0x607   :  { %10792 = vmatprep.subr.bf16.mxu1 %v21276_v56  ;;  %v21343_v56 = vld [vmem:[#allocation6 + $0x2720] ss:$16 sps:$4 sm:$0xff]  }
 0x609   :  { %10707 = vmatpush1.bf16.msra.mxu0 %v21271_v51  ;;  %v21346_v51 = vld [vmem:[#allocation6 + $0x2728] ss:$16 sps:$4 sm:$0xff]  }
 0x60a   :  { %10793 = vmatpush1.bf16.msra.mxu1 %v21274_v34  ;;  %10708 = vmatprep.subr.bf16.mxu0 %v21279_v38  ;;  %v21351_v34 = vld [vmem:[#allocation6 + $0x2744] ss:$16 sps:$4 sm:$0xff]   ;;  %v21354_v38 = vld [vmem:[#allocation6 + $0x274c] ss:$16 sps:$4 sm:$0xff]  }
 0x60b   :  { %10794 = vmatprep.subr.bf16.mxu1 %v21282_v55  ;;  %v21349_v55 = vld [vmem:[#allocation6 + $0x2740] ss:$16 sps:$4 sm:$0xff]  }
 0x60d   :  { %10709 = vmatpush1.bf16.msra.mxu0 %v21277_v53  ;;  %v21352_v53 = vld [vmem:[#allocation6 + $0x2748] ss:$16 sps:$4 sm:$0xff]  }
 0x60e   :  { %10795 = vmatpush1.bf16.msra.mxu1 %v21280_v46  ;;  %10710 = vmatprep.subr.bf16.mxu0 %v21285_v59  ;;  %v21357_v46 = vld [vmem:[#allocation6 + $0x2764] ss:$16 sps:$4 sm:$0xff]   ;;  %v21360_v59 = vld [vmem:[#allocation6 + $0x276c] ss:$16 sps:$4 sm:$0xff]  }
 0x60f   :  { %10796 = vmatprep.subr.bf16.mxu1 %v21288_v20  ;;  %v21355_v20 = vld [vmem:[#allocation6 + $0x2760] ss:$16 sps:$4 sm:$0xff]  }
 0x611   :  { %10711 = vmatpush1.bf16.msra.mxu0 %v21283_v22  ;;  %v21358_v22 = vld [vmem:[#allocation6 + $0x2768] ss:$16 sps:$4 sm:$0xff]  }
 0x612   :  { %10797 = vmatpush1.bf16.msra.mxu1 %v21286_v48  ;;  %10723 = vmatprep.subr.bf16.mxu0 %v21291_v29  ;;  %v21363_v48 = vld [vmem:[#allocation6 + $0x2784] ss:$16 sps:$4 sm:$0xff]   ;;  %v21366_v29 = vld [vmem:[#allocation6 + $0x278c] ss:$16 sps:$4 sm:$0xff]  }
 0x613   :  { %10809 = vmatprep.subr.bf16.mxu1 %v21294_v19  ;;  %v21361_v19 = vld [vmem:[#allocation6 + $0x2780] ss:$16 sps:$4 sm:$0xff]  }
 0x614   :  { %10713 = vmatmul.mubr.bf16.vlgmr.msra.gmra.mrb[64].mxu0 %v24121_v58 }
 0x615   :  { %10799 = vmatmul.mubr.bf16.vlgmr.msra.gmra.mrb[64].mxu1 %v24121_v58  ;;  %10724 = vmatpush1.bf16.msra.mxu0 %v21289_v12  ;;  %v21364_v12 = vld [vmem:[#allocation6 + $0x2788] ss:$16 sps:$4 sm:$0xff]   ;;  %v21367_v58 = vld [vmem:[#allocation6 + $0x27a0] ss:$16 sps:$4 sm:$0xff]  }
 0x616   :  { %10755 = vmatprep.mubr.bf16.mxu0 %v23661_v63  ;;  %10810 = vmatpush1.bf16.msra.mxu1 %v21292_v57  ;;  %v21369_v57 = vld [vmem:[#allocation6 + $0x27a4] ss:$16 sps:$4 sm:$0xff]  }
 0x617   :  { %10841 = vmatprep.mubr.bf16.mxu1 %v23661_v63  ;;  %10725 = vmatprep.subr.bf16.mxu0 %v21297_v1  ;;  %v21313_v63 = vld [vmem:[#allocation6 + $0x2680] ss:$16 sps:$4 sm:$0xff]   ;;  %v21372_v1 = vld [vmem:[#allocation6 + $0x27ac] ss:$16 sps:$4 sm:$0xff]  }
 0x618   :  { %10811 = vmatprep.subr.bf16.mxu1 %v21300_v24  ;;  %v21370_v24 = vld [vmem:[#allocation6 + $0x27a8] ss:$16 sps:$4 sm:$0xff]  }
 0x619   :  { %10726 = vmatpush1.bf16.msra.mxu0 %v21295_v6  ;;  %v21375_v6 = vld [vmem:[#allocation6 + $0x27c4] ss:$16 sps:$4 sm:$0xff]  }
 0x61a   :  { %10812 = vmatpush1.bf16.msra.mxu1 %v21298_v60  ;;  %10727 = vmatprep.subr.bf16.mxu0 %v21303_v31  ;;  %v21378_v60 = vld [vmem:[#allocation6 + $0x27cc] ss:$16 sps:$4 sm:$0xff]   ;;  %v21373_v31 = vld [vmem:[#allocation6 + $0x27c0] ss:$16 sps:$4 sm:$0xff]  }
 0x61b   :  { %10813 = vmatprep.subr.bf16.mxu1 %v21306_v50  ;;  %v21376_v50 = vld [vmem:[#allocation6 + $0x27c8] ss:$16 sps:$4 sm:$0xff]  }
 0x61d   :  { %10728 = vmatpush1.bf16.msra.mxu0 %v21301_v17  ;;  %v21381_v17 = vld [vmem:[#allocation6 + $0x27e4] ss:$16 sps:$4 sm:$0xff]  }
 0x61e   :  { %10814 = vmatpush1.bf16.msra.mxu1 %v21304_v16  ;;  %10729 = vmatprep.subr.bf16.mxu0 %v21309_v13  ;;  %v21384_v16 = vld [vmem:[#allocation6 + $0x27ec] ss:$16 sps:$4 sm:$0xff]   ;;  %v21379_v13 = vld [vmem:[#allocation6 + $0x27e0] ss:$16 sps:$4 sm:$0xff]  }
 0x61f   :  { %10815 = vmatprep.subr.bf16.mxu1 %v21312_v44  ;;  %v21382_v44 = vld [vmem:[#allocation6 + $0x27e8] ss:$16 sps:$4 sm:$0xff]  }
 0x621   :  { %10730 = vmatpush1.bf16.msra.mxu0 %v21307_v14  ;;  %v21387_v14 = vld [vmem:[#allocation6 + $0x2804] ss:$16 sps:$4 sm:$0xff]  }
 0x622   :  { %10816 = vmatpush1.bf16.msra.mxu1 %v21310_v7  ;;  %10731 = vmatprep.subr.bf16.mxu0 %v21315_v30  ;;  %v21390_v7 = vld [vmem:[#allocation6 + $0x280c] ss:$16 sps:$4 sm:$0xff]   ;;  %v21385_v30 = vld [vmem:[#allocation6 + $0x2800] ss:$16 sps:$4 sm:$0xff]  }
 0x623   :  { %10817 = vmatprep.subr.bf16.mxu1 %v21318_v33  ;;  %v21388_v33 = vld [vmem:[#allocation6 + $0x2808] ss:$16 sps:$4 sm:$0xff]  }
 0x625   :  { %10732 = vmatpush1.bf16.msra.mxu0 %v21313_v63  ;;  %v21393_v63 = vld [vmem:[#allocation6 + $0x2824] ss:$16 sps:$4 sm:$0xff]  }
 0x626   :  { %10818 = vmatpush1.bf16.msra.mxu1 %v21316_v42  ;;  %10733 = vmatprep.subr.bf16.mxu0 %v21321_v5  ;;  %v24122_v42 = vld [vmem:[#allocation55_spill] sm:$0xff] }
 0x627   :  { %10819 = vmatprep.subr.bf16.mxu1 %v21324_v2  ;;  %v21396_v5 = vld [vmem:[#allocation6 + $0x282c] ss:$16 sps:$4 sm:$0xff]   ;;  %v21391_v2 = vld [vmem:[#allocation6 + $0x2820] ss:$16 sps:$4 sm:$0xff]  }
 0x629   :  { %10734 = vmatpush1.bf16.msra.mxu0 %v21319_v45  ;;  %v21394_v45 = vld [vmem:[#allocation6 + $0x2828] ss:$16 sps:$4 sm:$0xff]  }
 0x62a   :  { %10820 = vmatpush1.bf16.msra.mxu1 %v21322_v10  ;;  %10735 = vmatprep.subr.bf16.mxu0 %v21327_v27  ;;  %v21399_v10 = vld [vmem:[#allocation6 + $0x2844] ss:$16 sps:$4 sm:$0xff]   ;;  %v21402_v27 = vld [vmem:[#allocation6 + $0x284c] ss:$16 sps:$4 sm:$0xff]  }
 0x62b   :  { %10821 = vmatprep.subr.bf16.mxu1 %v21330_v36  ;;  %v21397_v36 = vld [vmem:[#allocation6 + $0x2840] ss:$16 sps:$4 sm:$0xff]  }
 0x62d   :  { %10736 = vmatpush1.bf16.msra.mxu0 %v21325_v18  ;;  %v21400_v18 = vld [vmem:[#allocation6 + $0x2848] ss:$16 sps:$4 sm:$0xff]  }
 0x62e   :  { %10822 = vmatpush1.bf16.msra.mxu1 %v21328_v15  ;;  %10737 = vmatprep.subr.bf16.mxu0 %v21333_v9  ;;  %v21405_v15 = vld [vmem:[#allocation6 + $0x2864] ss:$16 sps:$4 sm:$0xff]   ;;  %v21408_v9 = vld [vmem:[#allocation6 + $0x286c] ss:$16 sps:$4 sm:$0xff]  }
 0x62f   :  { %10823 = vmatprep.subr.bf16.mxu1 %v21336_v3  ;;  %v21403_v3 = vld [vmem:[#allocation6 + $0x2860] ss:$16 sps:$4 sm:$0xff]  }
 0x631   :  { %10738 = vmatpush1.bf16.msra.mxu0 %v21331_v52  ;;  %v21406_v52 = vld [vmem:[#allocation6 + $0x2868] ss:$16 sps:$4 sm:$0xff]  }
 0x632   :  { %10824 = vmatpush1.bf16.msra.mxu1 %v21334_v37  ;;  %10739 = vmatprep.subr.bf16.mxu0 %v21339_v8  ;;  %v21411_v37 = vld [vmem:[#allocation6 + $0x2884] ss:$16 sps:$4 sm:$0xff]   ;;  %v21414_v8 = vld [vmem:[#allocation6 + $0x288c] ss:$16 sps:$4 sm:$0xff]  }
 0x633   :  { %10825 = vmatprep.subr.bf16.mxu1 %v21342_v23  ;;  %v21412_v23 = vld [vmem:[#allocation6 + $0x2888] ss:$16 sps:$4 sm:$0xff]  }
 0x635   :  { %10740 = vmatpush1.bf16.msra.mxu0 %v21337_v0  ;;  %v21417_v0 = vld [vmem:[#allocation6 + $0x28a4] ss:$16 sps:$4 sm:$0xff]  }
 0x636   :  { %10826 = vmatpush1.bf16.msra.mxu1 %v21340_v49  ;;  %10741 = vmatprep.subr.bf16.mxu0 %v21345_v61  ;;  %v21420_v49 = vld [vmem:[#allocation6 + $0x28ac] ss:$16 sps:$4 sm:$0xff]   ;;  %v21415_v61 = vld [vmem:[#allocation6 + $0x28a0] ss:$16 sps:$4 sm:$0xff]  }
 0x637   :  { %10827 = vmatprep.subr.bf16.mxu1 %v21348_v35  ;;  %v21418_v35 = vld [vmem:[#allocation6 + $0x28a8] ss:$16 sps:$4 sm:$0xff]  }
 0x639   :  { %10742 = vmatpush1.bf16.msra.mxu0 %v21343_v56  ;;  %v21423_v56 = vld [vmem:[#allocation6 + $0x28c4] ss:$16 sps:$4 sm:$0xff]  }
 0x63a   :  { %10828 = vmatpush1.bf16.msra.mxu1 %v21346_v51  ;;  %10743 = vmatprep.subr.bf16.mxu0 %v21351_v34  ;;  %v21426_v51 = vld [vmem:[#allocation6 + $0x28cc] ss:$16 sps:$4 sm:$0xff]   ;;  %v21421_v34 = vld [vmem:[#allocation6 + $0x28c0] ss:$16 sps:$4 sm:$0xff]  }
 0x63b   :  { %10829 = vmatprep.subr.bf16.mxu1 %v21354_v38  ;;  %v21424_v38 = vld [vmem:[#allocation6 + $0x28c8] ss:$16 sps:$4 sm:$0xff]  }
 0x63d   :  { %10744 = vmatpush1.bf16.msra.mxu0 %v21349_v55  ;;  %v21429_v55 = vld [vmem:[#allocation6 + $0x28e4] ss:$16 sps:$4 sm:$0xff]  }
 0x63e   :  { %10830 = vmatpush1.bf16.msra.mxu1 %v21352_v53  ;;  %10745 = vmatprep.subr.bf16.mxu0 %v21357_v46  ;;  %v21432_v53 = vld [vmem:[#allocation6 + $0x28ec] ss:$16 sps:$4 sm:$0xff]   ;;  %v21427_v46 = vld [vmem:[#allocation6 + $0x28e0] ss:$16 sps:$4 sm:$0xff]  }
 0x63f   :  { %10831 = vmatprep.subr.bf16.mxu1 %v21360_v59  ;;  %v21430_v59 = vld [vmem:[#allocation6 + $0x28e8] ss:$16 sps:$4 sm:$0xff]  }
 0x641   :  { %10746 = vmatpush1.bf16.msra.mxu0 %v21355_v20  ;;  %v21435_v20 = vld [vmem:[#allocation6 + $0x2904] ss:$16 sps:$4 sm:$0xff]  }
 0x642   :  { %10832 = vmatpush1.bf16.msra.mxu1 %v21358_v22  ;;  %10747 = vmatprep.subr.bf16.mxu0 %v21363_v48  ;;  %v21438_v22 = vld [vmem:[#allocation6 + $0x290c] ss:$16 sps:$4 sm:$0xff]   ;;  %v21433_v48 = vld [vmem:[#allocation6 + $0x2900] ss:$16 sps:$4 sm:$0xff]  }
 0x643   :  { %10833 = vmatprep.subr.bf16.mxu1 %v21366_v29  ;;  %v21436_v29 = vld [vmem:[#allocation6 + $0x2908] ss:$16 sps:$4 sm:$0xff]  }
 0x645   :  { %10748 = vmatpush1.bf16.msra.mxu0 %v21361_v19  ;;  %v21441_v19 = vld [vmem:[#allocation6 + $0x2924] ss:$16 sps:$4 sm:$0xff]  }
 0x646   :  { %10834 = vmatpush1.bf16.msra.mxu1 %v21364_v12  ;;  %10749 = vmatprep.subr.bf16.mxu0 %v21369_v57  ;;  %v21444_v12 = vld [vmem:[#allocation6 + $0x292c] ss:$16 sps:$4 sm:$0xff]   ;;  %v21439_v57 = vld [vmem:[#allocation6 + $0x2920] ss:$16 sps:$4 sm:$0xff]  }
 0x647   :  { %10835 = vmatprep.subr.bf16.mxu1 %v21372_v1  ;;  %v21442_v1 = vld [vmem:[#allocation6 + $0x2928] ss:$16 sps:$4 sm:$0xff]  }
 0x649   :  { %10750 = vmatpush1.bf16.msra.mxu0 %v21367_v58  ;;  %v21447_v58 = vld [vmem:[#allocation6 + $0x2944] ss:$16 sps:$4 sm:$0xff]  }
 0x64a   :  { %10836 = vmatpush1.bf16.msra.mxu1 %v21370_v24  ;;  %10751 = vmatprep.subr.bf16.mxu0 %v21375_v6  ;;  %v21450_v24 = vld [vmem:[#allocation6 + $0x294c] ss:$16 sps:$4 sm:$0xff]   ;;  %v21445_v6 = vld [vmem:[#allocation6 + $0x2940] ss:$16 sps:$4 sm:$0xff]  }
 0x64b   :  { %10837 = vmatprep.subr.bf16.mxu1 %v21378_v60  ;;  %v21448_v60 = vld [vmem:[#allocation6 + $0x2948] ss:$16 sps:$4 sm:$0xff]  }
 0x64d   :  { %10752 = vmatpush1.bf16.msra.mxu0 %v21373_v31  ;;  %v21453_v31 = vld [vmem:[#allocation6 + $0x2964] ss:$16 sps:$4 sm:$0xff]  }
 0x64e   :  { %10838 = vmatpush1.bf16.msra.mxu1 %v21376_v50  ;;  %10753 = vmatprep.subr.bf16.mxu0 %v21381_v17  ;;  %v21456_v50 = vld [vmem:[#allocation6 + $0x296c] ss:$16 sps:$4 sm:$0xff]   ;;  %v21451_v17 = vld [vmem:[#allocation6 + $0x2960] ss:$16 sps:$4 sm:$0xff]  }
 0x64f   :  { %10839 = vmatprep.subr.bf16.mxu1 %v21384_v16  ;;  %v21454_v16 = vld [vmem:[#allocation6 + $0x2968] ss:$16 sps:$4 sm:$0xff]  }
 0x651   :  { %10754 = vmatpush1.bf16.msra.mxu0 %v21379_v13  ;;  %v21459_v13 = vld [vmem:[#allocation6 + $0x2984] ss:$16 sps:$4 sm:$0xff]  }
 0x652   :  { %10840 = vmatpush1.bf16.msra.mxu1 %v21382_v44  ;;  %11629 = vmatprep.subr.bf16.mxu0 %v21387_v14  ;;  %v21462_v44 = vld [vmem:[#allocation6 + $0x298c] ss:$16 sps:$4 sm:$0xff]   ;;  %v21457_v14 = vld [vmem:[#allocation6 + $0x2980] ss:$16 sps:$4 sm:$0xff]  }
 0x653   :  { %11715 = vmatprep.subr.bf16.mxu1 %v21390_v7  ;;  %v21460_v7 = vld [vmem:[#allocation6 + $0x2988] ss:$16 sps:$4 sm:$0xff]  }
 0x654   :  { %10756 = vmatmul.mubr.bf16.vlgmr.msra.gmra.mrb[64].mxu0 %v24122_v42 }
 0x655   :  { %10842 = vmatmul.mubr.bf16.vlgmr.msra.gmra.mrb[64].mxu1 %v24122_v42  ;;  %11630 = vmatpush1.bf16.msra.mxu0 %v21385_v30  ;;  %v21465_v30 = vld [vmem:[#allocation6 + $0x29a4] ss:$16 sps:$4 sm:$0xff]   ;;  %v21466_v42 = vld [vmem:[#allocation6 + $0x29a8] ss:$16 sps:$4 sm:$0xff]  }
 0x656   :  { %11661 = vmatprep.mubr.bf16.mxu0 %v23663_v25  ;;  %11716 = vmatpush1.bf16.msra.mxu1 %v21388_v33  ;;  %v21468_v33 = vld [vmem:[#allocation6 + $0x29ac] ss:$16 sps:$4 sm:$0xff]  }
 0x657   :  { %11747 = vmatprep.mubr.bf16.mxu1 %v23663_v25  ;;  %11631 = vmatprep.subr.bf16.mxu0 %v21393_v63  ;;  %v21409_v25 = vld [vmem:[#allocation6 + $0x2880] ss:$16 sps:$4 sm:$0xff]  }
 0x658   :  { %11717 = vmatprep.subr.bf16.mxu1 %v21396_v5  ;;  %v21463_v63 = vld [vmem:[#allocation6 + $0x29a0] ss:$16 sps:$4 sm:$0xff]   ;;  %v21471_v5 = vld [vmem:[#allocation6 + $0x29c4] ss:$16 sps:$4 sm:$0xff]  }
 0x659   :  { %11632 = vmatpush1.bf16.msra.mxu0 %v21391_v2  ;;  %v21474_v2 = vld [vmem:[#allocation6 + $0x29cc] ss:$16 sps:$4 sm:$0xff]  }
 0x65a   :  { %11718 = vmatpush1.bf16.msra.mxu1 %v21394_v45  ;;  %11633 = vmatprep.subr.bf16.mxu0 %v21399_v10  ;;  %v21469_v45 = vld [vmem:[#allocation6 + $0x29c0] ss:$16 sps:$4 sm:$0xff]   ;;  %v21472_v10 = vld [vmem:[#allocation6 + $0x29c8] ss:$16 sps:$4 sm:$0xff]  }
 0x65b   :  { %11719 = vmatprep.subr.bf16.mxu1 %v21402_v27  ;;  %v21477_v27 = vld [vmem:[#allocation6 + $0x29e4] ss:$16 sps:$4 sm:$0xff]  }
 0x65d   :  { %11634 = vmatpush1.bf16.msra.mxu0 %v21397_v36  ;;  %v21480_v36 = vld [vmem:[#allocation6 + $0x29ec] ss:$16 sps:$4 sm:$0xff]  }
 0x65e   :  { %11720 = vmatpush1.bf16.msra.mxu1 %v21400_v18  ;;  %11635 = vmatprep.subr.bf16.mxu0 %v21405_v15  ;;  %v21475_v18 = vld [vmem:[#allocation6 + $0x29e0] ss:$16 sps:$4 sm:$0xff]   ;;  %v21478_v15 = vld [vmem:[#allocation6 + $0x29e8] ss:$16 sps:$4 sm:$0xff]  }
 0x65f   :  { %11721 = vmatprep.subr.bf16.mxu1 %v21408_v9  ;;  %v21483_v9 = vld [vmem:[#allocation6 + $0x2a04] ss:$16 sps:$4 sm:$0xff]  }
 0x661   :  { %11636 = vmatpush1.bf16.msra.mxu0 %v21403_v3  ;;  %v21486_v3 = vld [vmem:[#allocation6 + $0x2a0c] ss:$16 sps:$4 sm:$0xff]  }
 0x662   :  { %11722 = vmatpush1.bf16.msra.mxu1 %v21406_v52  ;;  %11637 = vmatprep.subr.bf16.mxu0 %v21411_v37  ;;  %v21481_v52 = vld [vmem:[#allocation6 + $0x2a00] ss:$16 sps:$4 sm:$0xff]   ;;  %v21484_v37 = vld [vmem:[#allocation6 + $0x2a08] ss:$16 sps:$4 sm:$0xff]  }
 0x663   :  { %11723 = vmatprep.subr.bf16.mxu1 %v21414_v8  ;;  %v21489_v8 = vld [vmem:[#allocation6 + $0x2a24] ss:$16 sps:$4 sm:$0xff]  }
 0x665   :  { %11638 = vmatpush1.bf16.msra.mxu0 %v21409_v25  ;;  %v24123_v25 = vld [vmem:[#allocation50_spill] sm:$0xff] }
 0x666   :  { %11724 = vmatpush1.bf16.msra.mxu1 %v21412_v23  ;;  %11639 = vmatprep.subr.bf16.mxu0 %v21417_v0  ;;  %v21492_v23 = vld [vmem:[#allocation6 + $0x2a2c] ss:$16 sps:$4 sm:$0xff]   ;;  %v21487_v0 = vld [vmem:[#allocation6 + $0x2a20] ss:$16 sps:$4 sm:$0xff]  }
 0x667   :  { %11725 = vmatprep.subr.bf16.mxu1 %v21420_v49  ;;  %v21490_v49 = vld [vmem:[#allocation6 + $0x2a28] ss:$16 sps:$4 sm:$0xff]  }
 0x669   :  { %11640 = vmatpush1.bf16.msra.mxu0 %v21415_v61  ;;  %v21495_v61 = vld [vmem:[#allocation6 + $0x2a44] ss:$16 sps:$4 sm:$0xff]  }
 0x66a   :  { %11726 = vmatpush1.bf16.msra.mxu1 %v21418_v35  ;;  %11641 = vmatprep.subr.bf16.mxu0 %v21423_v56  ;;  %v21498_v35 = vld [vmem:[#allocation6 + $0x2a4c] ss:$16 sps:$4 sm:$0xff]   ;;  %v21493_v56 = vld [vmem:[#allocation6 + $0x2a40] ss:$16 sps:$4 sm:$0xff]  }
 0x66b   :  { %11727 = vmatprep.subr.bf16.mxu1 %v21426_v51  ;;  %v21496_v51 = vld [vmem:[#allocation6 + $0x2a48] ss:$16 sps:$4 sm:$0xff]  }
 0x66d   :  { %11642 = vmatpush1.bf16.msra.mxu0 %v21421_v34  ;;  %v21501_v34 = vld [vmem:[#allocation6 + $0x2a64] ss:$16 sps:$4 sm:$0xff]  }
 0x66e   :  { %11728 = vmatpush1.bf16.msra.mxu1 %v21424_v38  ;;  %11643 = vmatprep.subr.bf16.mxu0 %v21429_v55  ;;  %v21504_v38 = vld [vmem:[#allocation6 + $0x2a6c] ss:$16 sps:$4 sm:$0xff]   ;;  %v21499_v55 = vld [vmem:[#allocation6 + $0x2a60] ss:$16 sps:$4 sm:$0xff]  }
 0x66f   :  { %11729 = vmatprep.subr.bf16.mxu1 %v21432_v53  ;;  %v21502_v53 = vld [vmem:[#allocation6 + $0x2a68] ss:$16 sps:$4 sm:$0xff]  }
 0x671   :  { %11644 = vmatpush1.bf16.msra.mxu0 %v21427_v46  ;;  %v21507_v46 = vld [vmem:[#allocation6 + $0x2a84] ss:$16 sps:$4 sm:$0xff]  }
 0x672   :  { %11730 = vmatpush1.bf16.msra.mxu1 %v21430_v59  ;;  %11645 = vmatprep.subr.bf16.mxu0 %v21435_v20  ;;  %v21510_v59 = vld [vmem:[#allocation6 + $0x2a8c] ss:$16 sps:$4 sm:$0xff]   ;;  %v21508_v20 = vld [vmem:[#allocation6 + $0x2a88] ss:$16 sps:$4 sm:$0xff]  }
 0x673   :  { %11731 = vmatprep.subr.bf16.mxu1 %v21438_v22  ;;  %v21513_v22 = vld [vmem:[#allocation6 + $0x2aa4] ss:$16 sps:$4 sm:$0xff]  }
 0x675   :  { %11646 = vmatpush1.bf16.msra.mxu0 %v21433_v48  ;;  %v21516_v48 = vld [vmem:[#allocation6 + $0x2aac] ss:$16 sps:$4 sm:$0xff]  }
 0x676   :  { %11732 = vmatpush1.bf16.msra.mxu1 %v21436_v29  ;;  %11647 = vmatprep.subr.bf16.mxu0 %v21441_v19  ;;  %v21511_v29 = vld [vmem:[#allocation6 + $0x2aa0] ss:$16 sps:$4 sm:$0xff]   ;;  %v21514_v19 = vld [vmem:[#allocation6 + $0x2aa8] ss:$16 sps:$4 sm:$0xff]  }
 0x677   :  { %11733 = vmatprep.subr.bf16.mxu1 %v21444_v12  ;;  %v21519_v12 = vld [vmem:[#allocation6 + $0x2ac4] ss:$16 sps:$4 sm:$0xff]  }
 0x679   :  { %11648 = vmatpush1.bf16.msra.mxu0 %v21439_v57  ;;  %v21522_v57 = vld [vmem:[#allocation6 + $0x2acc] ss:$16 sps:$4 sm:$0xff]  }
 0x67a   :  { %11734 = vmatpush1.bf16.msra.mxu1 %v21442_v1  ;;  %11649 = vmatprep.subr.bf16.mxu0 %v21447_v58  ;;  %v21517_v1 = vld [vmem:[#allocation6 + $0x2ac0] ss:$16 sps:$4 sm:$0xff]   ;;  %v21520_v58 = vld [vmem:[#allocation6 + $0x2ac8] ss:$16 sps:$4 sm:$0xff]  }
 0x67b   :  { %11735 = vmatprep.subr.bf16.mxu1 %v21450_v24  ;;  %v21525_v24 = vld [vmem:[#allocation6 + $0x2ae4] ss:$16 sps:$4 sm:$0xff]  }
 0x67d   :  { %11650 = vmatpush1.bf16.msra.mxu0 %v21445_v6  ;;  %v21528_v6 = vld [vmem:[#allocation6 + $0x2aec] ss:$16 sps:$4 sm:$0xff]  }
 0x67e   :  { %11736 = vmatpush1.bf16.msra.mxu1 %v21448_v60  ;;  %11651 = vmatprep.subr.bf16.mxu0 %v21453_v31  ;;  %v21523_v60 = vld [vmem:[#allocation6 + $0x2ae0] ss:$16 sps:$4 sm:$0xff]   ;;  %v21526_v31 = vld [vmem:[#allocation6 + $0x2ae8] ss:$16 sps:$4 sm:$0xff]  }
 0x67f   :  { %11737 = vmatprep.subr.bf16.mxu1 %v21456_v50  ;;  %v21531_v50 = vld [vmem:[#allocation6 + $0x2b04] ss:$16 sps:$4 sm:$0xff]  }
 0x681   :  { %11652 = vmatpush1.bf16.msra.mxu0 %v21451_v17  ;;  %v21534_v17 = vld [vmem:[#allocation6 + $0x2b0c] ss:$16 sps:$4 sm:$0xff]  }
 0x682   :  { %11738 = vmatpush1.bf16.msra.mxu1 %v21454_v16  ;;  %11653 = vmatprep.subr.bf16.mxu0 %v21459_v13  ;;  %v21529_v16 = vld [vmem:[#allocation6 + $0x2b00] ss:$16 sps:$4 sm:$0xff]   ;;  %v21532_v13 = vld [vmem:[#allocation6 + $0x2b08] ss:$16 sps:$4 sm:$0xff]  }
 0x683   :  { %11739 = vmatprep.subr.bf16.mxu1 %v21462_v44  ;;  %v21537_v44 = vld [vmem:[#allocation6 + $0x2b24] ss:$16 sps:$4 sm:$0xff]  }
 0x685   :  { %11654 = vmatpush1.bf16.msra.mxu0 %v21457_v14  ;;  %v21540_v14 = vld [vmem:[#allocation6 + $0x2b2c] ss:$16 sps:$4 sm:$0xff]  }
 0x686   :  { %11740 = vmatpush1.bf16.msra.mxu1 %v21460_v7  ;;  %11655 = vmatprep.subr.bf16.mxu0 %v21465_v30  ;;  %v21535_v7 = vld [vmem:[#allocation6 + $0x2b20] ss:$16 sps:$4 sm:$0xff]   ;;  %v21538_v30 = vld [vmem:[#allocation6 + $0x2b28] ss:$16 sps:$4 sm:$0xff]  }
 0x687   :  { %11741 = vmatprep.subr.bf16.mxu1 %v21468_v33  ;;  %v21543_v33 = vld [vmem:[#allocation6 + $0x2b44] ss:$16 sps:$4 sm:$0xff]  }
 0x689   :  { %11656 = vmatpush1.bf16.msra.mxu0 %v21463_v63  ;;  %v21546_v63 = vld [vmem:[#allocation6 + $0x2b4c] ss:$16 sps:$4 sm:$0xff]  }
 0x68a   :  { %11742 = vmatpush1.bf16.msra.mxu1 %v21466_v42  ;;  %11657 = vmatprep.subr.bf16.mxu0 %v21471_v5  ;;  %v21541_v42 = vld [vmem:[#allocation6 + $0x2b40] ss:$16 sps:$4 sm:$0xff]   ;;  %v21544_v5 = vld [vmem:[#allocation6 + $0x2b48] ss:$16 sps:$4 sm:$0xff]  }
 0x68b   :  { %11743 = vmatprep.subr.bf16.mxu1 %v21474_v2  ;;  %v21549_v2 = vld [vmem:[#allocation6 + $0x2b64] ss:$16 sps:$4 sm:$0xff]  }
 0x68d   :  { %11658 = vmatpush1.bf16.msra.mxu0 %v21469_v45  ;;  %v21552_v45 = vld [vmem:[#allocation6 + $0x2b6c] ss:$16 sps:$4 sm:$0xff]  }
 0x68e   :  { %11744 = vmatpush1.bf16.msra.mxu1 %v21472_v10  ;;  %11659 = vmatprep.subr.bf16.mxu0 %v21477_v27  ;;  %v21547_v10 = vld [vmem:[#allocation6 + $0x2b60] ss:$16 sps:$4 sm:$0xff]   ;;  %v21550_v27 = vld [vmem:[#allocation6 + $0x2b68] ss:$16 sps:$4 sm:$0xff]  }
 0x68f   :  { %11745 = vmatprep.subr.bf16.mxu1 %v21480_v36  ;;  %v21555_v36 = vld [vmem:[#allocation6 + $0x2b84] ss:$16 sps:$4 sm:$0xff]  }
 0x691   :  { %11660 = vmatpush1.bf16.msra.mxu0 %v21475_v18  ;;  %v21558_v18 = vld [vmem:[#allocation6 + $0x2b8c] ss:$16 sps:$4 sm:$0xff]  }
 0x692   :  { %11746 = vmatpush1.bf16.msra.mxu1 %v21478_v15  ;;  %11672 = vmatprep.subr.bf16.mxu0 %v21483_v9  ;;  %v21553_v15 = vld [vmem:[#allocation6 + $0x2b80] ss:$16 sps:$4 sm:$0xff]   ;;  %v21556_v9 = vld [vmem:[#allocation6 + $0x2b88] ss:$16 sps:$4 sm:$0xff]  }
 0x693   :  { %11758 = vmatprep.subr.bf16.mxu1 %v21486_v3  ;;  %v21561_v3 = vld [vmem:[#allocation6 + $0x2ba4] ss:$16 sps:$4 sm:$0xff]  }
 0x694   :  { %11662 = vmatmul.mubr.bf16.vlgmr.msra.gmra.mrb[64].mxu0 %v24123_v25 }
 0x695   :  { %11748 = vmatmul.mubr.bf16.vlgmr.msra.gmra.mrb[64].mxu1 %v24123_v25  ;;  %11673 = vmatpush1.bf16.msra.mxu0 %v21481_v52  ;;  %v21564_v52 = vld [vmem:[#allocation6 + $0x2bac] ss:$16 sps:$4 sm:$0xff]   ;;  %v21567_v25 = vld [vmem:[#allocation6 + $0x2bc4] ss:$16 sps:$4 sm:$0xff]  }
 0x696   :  { %11704 = vmatprep.mubr.bf16.mxu0 %v23674_v41  ;;  %11759 = vmatpush1.bf16.msra.mxu1 %v21484_v37  ;;  %v21559_v37 = vld [vmem:[#allocation6 + $0x2ba0] ss:$16 sps:$4 sm:$0xff]  }
 0x697   :  { %11790 = vmatprep.mubr.bf16.mxu1 %v23674_v41  ;;  %11674 = vmatprep.subr.bf16.mxu0 %v21489_v8  ;;  %v21505_v41 = vld [vmem:[#allocation6 + $0x2a80] ss:$16 sps:$4 sm:$0xff]   ;;  %v21562_v8 = vld [vmem:[#allocation6 + $0x2ba8] ss:$16 sps:$4 sm:$0xff]  }
 0x698   :  { %11760 = vmatprep.subr.bf16.mxu1 %v21492_v23  ;;  %v21570_v23 = vld [vmem:[#allocation6 + $0x2bcc] ss:$16 sps:$4 sm:$0xff]  }
 0x699   :  { %11675 = vmatpush1.bf16.msra.mxu0 %v21487_v0  ;;  %v21565_v0 = vld [vmem:[#allocation6 + $0x2bc0] ss:$16 sps:$4 sm:$0xff]  }
 0x69a   :  { %11761 = vmatpush1.bf16.msra.mxu1 %v21490_v49  ;;  %11676 = vmatprep.subr.bf16.mxu0 %v21495_v61  ;;  %v21568_v49 = vld [vmem:[#allocation6 + $0x2bc8] ss:$16 sps:$4 sm:$0xff]   ;;  %v21573_v61 = vld [vmem:[#allocation6 + $0x2be4] ss:$16 sps:$4 sm:$0xff]  }
 0x69b   :  { %11762 = vmatprep.subr.bf16.mxu1 %v21498_v35  ;;  %v21576_v35 = vld [vmem:[#allocation6 + $0x2bec] ss:$16 sps:$4 sm:$0xff]  }
 0x69d   :  { %11677 = vmatpush1.bf16.msra.mxu0 %v21493_v56  ;;  %v21571_v56 = vld [vmem:[#allocation6 + $0x2be0] ss:$16 sps:$4 sm:$0xff]  }
 0x69e   :  { %11763 = vmatpush1.bf16.msra.mxu1 %v21496_v51  ;;  %11678 = vmatprep.subr.bf16.mxu0 %v21501_v34  ;;  %v21574_v51 = vld [vmem:[#allocation6 + $0x2be8] ss:$16 sps:$4 sm:$0xff]   ;;  %v21579_v34 = vld [vmem:[#allocation6 + $0x2c04] ss:$16 sps:$4 sm:$0xff]  }
 0x69f   :  { %11764 = vmatprep.subr.bf16.mxu1 %v21504_v38  ;;  %v21582_v38 = vld [vmem:[#allocation6 + $0x2c0c] ss:$16 sps:$4 sm:$0xff]  }
 0x6a1   :  { %11679 = vmatpush1.bf16.msra.mxu0 %v21499_v55  ;;  %v21577_v55 = vld [vmem:[#allocation6 + $0x2c00] ss:$16 sps:$4 sm:$0xff]  }
 0x6a2   :  { %11765 = vmatpush1.bf16.msra.mxu1 %v21502_v53  ;;  %11680 = vmatprep.subr.bf16.mxu0 %v21507_v46  ;;  %v21580_v53 = vld [vmem:[#allocation6 + $0x2c08] ss:$16 sps:$4 sm:$0xff]   ;;  %v21585_v46 = vld [vmem:[#allocation6 + $0x2c24] ss:$16 sps:$4 sm:$0xff]  }
 0x6a3   :  { %11766 = vmatprep.subr.bf16.mxu1 %v21510_v59  ;;  %v24124_v59 = vld [vmem:[#allocation63_spill] sm:$0xff] }
 0x6a5   :  { %11681 = vmatpush1.bf16.msra.mxu0 %v21505_v41  ;;  %v21588_v41 = vld [vmem:[#allocation6 + $0x2c2c] ss:$16 sps:$4 sm:$0xff]  }
 0x6a6   :  { %11767 = vmatpush1.bf16.msra.mxu1 %v21508_v20  ;;  %11682 = vmatprep.subr.bf16.mxu0 %v21513_v22  ;;  %v21583_v20 = vld [vmem:[#allocation6 + $0x2c20] ss:$16 sps:$4 sm:$0xff]   ;;  %v21586_v22 = vld [vmem:[#allocation6 + $0x2c28] ss:$16 sps:$4 sm:$0xff]  }
 0x6a7   :  { %11768 = vmatprep.subr.bf16.mxu1 %v21516_v48  ;;  %v21591_v48 = vld [vmem:[#allocation6 + $0x2c44] ss:$16 sps:$4 sm:$0xff]  }
 0x6a9   :  { %11683 = vmatpush1.bf16.msra.mxu0 %v21511_v29  ;;  %v21594_v29 = vld [vmem:[#allocation6 + $0x2c4c] ss:$16 sps:$4 sm:$0xff]  }
 0x6aa   :  { %11769 = vmatpush1.bf16.msra.mxu1 %v21514_v19  ;;  %11684 = vmatprep.subr.bf16.mxu0 %v21519_v12  ;;  %v21589_v19 = vld [vmem:[#allocation6 + $0x2c40] ss:$16 sps:$4 sm:$0xff]   ;;  %v21592_v12 = vld [vmem:[#allocation6 + $0x2c48] ss:$16 sps:$4 sm:$0xff]  }
 0x6ab   :  { %11770 = vmatprep.subr.bf16.mxu1 %v21522_v57  ;;  %v21597_v57 = vld [vmem:[#allocation6 + $0x2c64] ss:$16 sps:$4 sm:$0xff]  }
 0x6ad   :  { %11685 = vmatpush1.bf16.msra.mxu0 %v21517_v1  ;;  %v21600_v1 = vld [vmem:[#allocation6 + $0x2c6c] ss:$16 sps:$4 sm:$0xff]  }
 0x6ae   :  { %11771 = vmatpush1.bf16.msra.mxu1 %v21520_v58  ;;  %11686 = vmatprep.subr.bf16.mxu0 %v21525_v24  ;;  %v21595_v58 = vld [vmem:[#allocation6 + $0x2c60] ss:$16 sps:$4 sm:$0xff]   ;;  %v21598_v24 = vld [vmem:[#allocation6 + $0x2c68] ss:$16 sps:$4 sm:$0xff]  }
 0x6af   :  { %11772 = vmatprep.subr.bf16.mxu1 %v21528_v6  ;;  %v21603_v6 = vld [vmem:[#allocation6 + $0x2c84] ss:$16 sps:$4 sm:$0xff]  }
 0x6b1   :  { %11687 = vmatpush1.bf16.msra.mxu0 %v21523_v60  ;;  %v21606_v60 = vld [vmem:[#allocation6 + $0x2c8c] ss:$16 sps:$4 sm:$0xff]  }
 0x6b2   :  { %11773 = vmatpush1.bf16.msra.mxu1 %v21526_v31  ;;  %11688 = vmatprep.subr.bf16.mxu0 %v21531_v50  ;;  %v21604_v31 = vld [vmem:[#allocation6 + $0x2c88] ss:$16 sps:$4 sm:$0xff]   ;;  %v21609_v50 = vld [vmem:[#allocation6 + $0x2ca4] ss:$16 sps:$4 sm:$0xff]  }
 0x6b3   :  { %11774 = vmatprep.subr.bf16.mxu1 %v21534_v17  ;;  %v21612_v17 = vld [vmem:[#allocation6 + $0x2cac] ss:$16 sps:$4 sm:$0xff]  }
 0x6b5   :  { %11689 = vmatpush1.bf16.msra.mxu0 %v21529_v16  ;;  %v21607_v16 = vld [vmem:[#allocation6 + $0x2ca0] ss:$16 sps:$4 sm:$0xff]  }
 0x6b6   :  { %11775 = vmatpush1.bf16.msra.mxu1 %v21532_v13  ;;  %11690 = vmatprep.subr.bf16.mxu0 %v21537_v44  ;;  %v21610_v13 = vld [vmem:[#allocation6 + $0x2ca8] ss:$16 sps:$4 sm:$0xff]   ;;  %v21615_v44 = vld [vmem:[#allocation6 + $0x2cc4] ss:$16 sps:$4 sm:$0xff]  }
 0x6b7   :  { %11776 = vmatprep.subr.bf16.mxu1 %v21540_v14  ;;  %v21618_v14 = vld [vmem:[#allocation6 + $0x2ccc] ss:$16 sps:$4 sm:$0xff]  }
 0x6b9   :  { %11691 = vmatpush1.bf16.msra.mxu0 %v21535_v7  ;;  %v21613_v7 = vld [vmem:[#allocation6 + $0x2cc0] ss:$16 sps:$4 sm:$0xff]  }
 0x6ba   :  { %11777 = vmatpush1.bf16.msra.mxu1 %v21538_v30  ;;  %11692 = vmatprep.subr.bf16.mxu0 %v21543_v33  ;;  %v21616_v30 = vld [vmem:[#allocation6 + $0x2cc8] ss:$16 sps:$4 sm:$0xff]   ;;  %v21621_v33 = vld [vmem:[#allocation6 + $0x2ce4] ss:$16 sps:$4 sm:$0xff]  }
 0x6bb   :  { %11778 = vmatprep.subr.bf16.mxu1 %v21546_v63  ;;  %v21624_v63 = vld [vmem:[#allocation6 + $0x2cec] ss:$16 sps:$4 sm:$0xff]  }
 0x6bd   :  { %11693 = vmatpush1.bf16.msra.mxu0 %v21541_v42  ;;  %v21619_v42 = vld [vmem:[#allocation6 + $0x2ce0] ss:$16 sps:$4 sm:$0xff]  }
 0x6be   :  { %11779 = vmatpush1.bf16.msra.mxu1 %v21544_v5  ;;  %11694 = vmatprep.subr.bf16.mxu0 %v21549_v2  ;;  %v21622_v5 = vld [vmem:[#allocation6 + $0x2ce8] ss:$16 sps:$4 sm:$0xff]   ;;  %v21627_v2 = vld [vmem:[#allocation6 + $0x2d04] ss:$16 sps:$4 sm:$0xff]  }
 0x6bf   :  { %11780 = vmatprep.subr.bf16.mxu1 %v21552_v45  ;;  %v21630_v45 = vld [vmem:[#allocation6 + $0x2d0c] ss:$16 sps:$4 sm:$0xff]  }
 0x6c1   :  { %11695 = vmatpush1.bf16.msra.mxu0 %v21547_v10  ;;  %v21625_v10 = vld [vmem:[#allocation6 + $0x2d00] ss:$16 sps:$4 sm:$0xff]  }
 0x6c2   :  { %11781 = vmatpush1.bf16.msra.mxu1 %v21550_v27  ;;  %11696 = vmatprep.subr.bf16.mxu0 %v21555_v36  ;;  %v21628_v27 = vld [vmem:[#allocation6 + $0x2d08] ss:$16 sps:$4 sm:$0xff]   ;;  %v21633_v36 = vld [vmem:[#allocation6 + $0x2d24] ss:$16 sps:$4 sm:$0xff]  }
 0x6c3   :  { %11782 = vmatprep.subr.bf16.mxu1 %v21558_v18  ;;  %v21636_v18 = vld [vmem:[#allocation6 + $0x2d2c] ss:$16 sps:$4 sm:$0xff]  }
 0x6c5   :  { %11697 = vmatpush1.bf16.msra.mxu0 %v21553_v15  ;;  %v21631_v15 = vld [vmem:[#allocation6 + $0x2d20] ss:$16 sps:$4 sm:$0xff]  }
 0x6c6   :  { %11783 = vmatpush1.bf16.msra.mxu1 %v21556_v9  ;;  %11698 = vmatprep.subr.bf16.mxu0 %v21561_v3  ;;  %v21634_v9 = vld [vmem:[#allocation6 + $0x2d28] ss:$16 sps:$4 sm:$0xff]   ;;  %v21639_v3 = vld [vmem:[#allocation6 + $0x2d44] ss:$16 sps:$4 sm:$0xff]  }
 0x6c7   :  { %11784 = vmatprep.subr.bf16.mxu1 %v21564_v52  ;;  %v21642_v52 = vld [vmem:[#allocation6 + $0x2d4c] ss:$16 sps:$4 sm:$0xff]  }
 0x6c9   :  { %11699 = vmatpush1.bf16.msra.mxu0 %v21559_v37  ;;  %v21637_v37 = vld [vmem:[#allocation6 + $0x2d40] ss:$16 sps:$4 sm:$0xff]  }
 0x6ca   :  { %11785 = vmatpush1.bf16.msra.mxu1 %v21562_v8  ;;  %11700 = vmatprep.subr.bf16.mxu0 %v21567_v25  ;;  %v21640_v8 = vld [vmem:[#allocation6 + $0x2d48] ss:$16 sps:$4 sm:$0xff]   ;;  %v21645_v25 = vld [vmem:[#allocation6 + $0x2d64] ss:$16 sps:$4 sm:$0xff]  }
 0x6cb   :  { %11786 = vmatprep.subr.bf16.mxu1 %v21570_v23  ;;  %v21648_v23 = vld [vmem:[#allocation6 + $0x2d6c] ss:$16 sps:$4 sm:$0xff]  }
 0x6cd   :  { %11701 = vmatpush1.bf16.msra.mxu0 %v21565_v0  ;;  %v21643_v0 = vld [vmem:[#allocation6 + $0x2d60] ss:$16 sps:$4 sm:$0xff]  }
 0x6ce   :  { %11787 = vmatpush1.bf16.msra.mxu1 %v21568_v49  ;;  %11702 = vmatprep.subr.bf16.mxu0 %v21573_v61  ;;  %v21646_v49 = vld [vmem:[#allocation6 + $0x2d68] ss:$16 sps:$4 sm:$0xff]   ;;  %v21651_v61 = vld [vmem:[#allocation6 + $0x2d84] ss:$16 sps:$4 sm:$0xff]  }
 0x6cf   :  { %11788 = vmatprep.subr.bf16.mxu1 %v21576_v35  ;;  %v21654_v35 = vld [vmem:[#allocation6 + $0x2d8c] ss:$16 sps:$4 sm:$0xff]  }
 0x6d1   :  { %11703 = vmatpush1.bf16.msra.mxu0 %v21571_v56  ;;  %v21649_v56 = vld [vmem:[#allocation6 + $0x2d80] ss:$16 sps:$4 sm:$0xff]  }
 0x6d2   :  { %11789 = vmatpush1.bf16.msra.mxu1 %v21574_v51  ;;  %12578 = vmatprep.subr.bf16.mxu0 %v21579_v34  ;;  %v21652_v51 = vld [vmem:[#allocation6 + $0x2d88] ss:$16 sps:$4 sm:$0xff]   ;;  %v21657_v34 = vld [vmem:[#allocation6 + $0x2da4] ss:$16 sps:$4 sm:$0xff]  }
 0x6d3   :  { %12664 = vmatprep.subr.bf16.mxu1 %v21582_v38  ;;  %v21660_v38 = vld [vmem:[#allocation6 + $0x2dac] ss:$16 sps:$4 sm:$0xff]  }
 0x6d4   :  { %11705 = vmatmul.mubr.bf16.vlgmr.msra.gmra.mrb[64].mxu0 %v24124_v59 }
 0x6d5   :  { %11791 = vmatmul.mubr.bf16.vlgmr.msra.gmra.mrb[64].mxu1 %v24124_v59  ;;  %12579 = vmatpush1.bf16.msra.mxu0 %v21577_v55  ;;  %v21655_v55 = vld [vmem:[#allocation6 + $0x2da0] ss:$16 sps:$4 sm:$0xff]   ;;  %v21666_v59 = vld [vmem:[#allocation6 + $0x2dcc] ss:$16 sps:$4 sm:$0xff]  }
 0x6d6   :  { %12610 = vmatprep.mubr.bf16.mxu0 %v23684_v28  ;;  %12665 = vmatpush1.bf16.msra.mxu1 %v21580_v53  ;;  %v21658_v53 = vld [vmem:[#allocation6 + $0x2da8] ss:$16 sps:$4 sm:$0xff]  }
 0x6d7   :  { %12696 = vmatprep.mubr.bf16.mxu1 %v23684_v28  ;;  %12580 = vmatprep.subr.bf16.mxu0 %v21585_v46  ;;  %v21601_v28 = vld [vmem:[#allocation6 + $0x2c80] ss:$16 sps:$4 sm:$0xff]   ;;  %v21663_v46 = vld [vmem:[#allocation6 + $0x2dc4] ss:$16 sps:$4 sm:$0xff]  }
 0x6d8   :  { %12666 = vmatprep.subr.bf16.mxu1 %v21588_v41  ;;  %v21661_v41 = vld [vmem:[#allocation6 + $0x2dc0] ss:$16 sps:$4 sm:$0xff]  }
 0x6d9   :  { %12581 = vmatpush1.bf16.msra.mxu0 %v21583_v20  ;;  %v21664_v20 = vld [vmem:[#allocation6 + $0x2dc8] ss:$16 sps:$4 sm:$0xff]  }
 0x6da   :  { %12667 = vmatpush1.bf16.msra.mxu1 %v21586_v22  ;;  %12582 = vmatprep.subr.bf16.mxu0 %v21591_v48  ;;  %v21669_v22 = vld [vmem:[#allocation6 + $0x2de4] ss:$16 sps:$4 sm:$0xff]   ;;  %v21672_v48 = vld [vmem:[#allocation6 + $0x2dec] ss:$16 sps:$4 sm:$0xff]  }
 0x6db   :  { %12668 = vmatprep.subr.bf16.mxu1 %v21594_v29  ;;  %v21667_v29 = vld [vmem:[#allocation6 + $0x2de0] ss:$16 sps:$4 sm:$0xff]  }
 0x6dd   :  { %12583 = vmatpush1.bf16.msra.mxu0 %v21589_v19  ;;  %v21670_v19 = vld [vmem:[#allocation6 + $0x2de8] ss:$16 sps:$4 sm:$0xff]  }
 0x6de   :  { %12669 = vmatpush1.bf16.msra.mxu1 %v21592_v12  ;;  %12584 = vmatprep.subr.bf16.mxu0 %v21597_v57  ;;  %v21675_v12 = vld [vmem:[#allocation6 + $0x2e04] ss:$16 sps:$4 sm:$0xff]   ;;  %v21678_v57 = vld [vmem:[#allocation6 + $0x2e0c] ss:$16 sps:$4 sm:$0xff]  }
 0x6df   :  { %12670 = vmatprep.subr.bf16.mxu1 %v21600_v1  ;;  %v21673_v1 = vld [vmem:[#allocation6 + $0x2e00] ss:$16 sps:$4 sm:$0xff]  }
 0x6e1   :  { %12585 = vmatpush1.bf16.msra.mxu0 %v21595_v58  ;;  %v21676_v58 = vld [vmem:[#allocation6 + $0x2e08] ss:$16 sps:$4 sm:$0xff]  }
 0x6e2   :  { %12671 = vmatpush1.bf16.msra.mxu1 %v21598_v24  ;;  %12586 = vmatprep.subr.bf16.mxu0 %v21603_v6  ;;  %v21681_v24 = vld [vmem:[#allocation6 + $0x2e24] ss:$16 sps:$4 sm:$0xff]  }
 0x6e3   :  { %12672 = vmatprep.subr.bf16.mxu1 %v21606_v60  ;;  %v24125_v6 = vld [vmem:[#allocation58_spill] sm:$0xff] }
 0x6e4   :  { %v21684_v60 = vld [vmem:[#allocation6 + $0x2e2c] ss:$16 sps:$4 sm:$0xff]  }
 0x6e5   :  { %12587 = vmatpush1.bf16.msra.mxu0 %v21601_v28  ;;  %v21679_v28 = vld [vmem:[#allocation6 + $0x2e20] ss:$16 sps:$4 sm:$0xff]  }
 0x6e6   :  { %12673 = vmatpush1.bf16.msra.mxu1 %v21604_v31  ;;  %12588 = vmatprep.subr.bf16.mxu0 %v21609_v50  ;;  %v21682_v31 = vld [vmem:[#allocation6 + $0x2e28] ss:$16 sps:$4 sm:$0xff]   ;;  %v21687_v50 = vld [vmem:[#allocation6 + $0x2e44] ss:$16 sps:$4 sm:$0xff]  }
 0x6e7   :  { %12674 = vmatprep.subr.bf16.mxu1 %v21612_v17  ;;  %v21690_v17 = vld [vmem:[#allocation6 + $0x2e4c] ss:$16 sps:$4 sm:$0xff]  }
 0x6e9   :  { %12589 = vmatpush1.bf16.msra.mxu0 %v21607_v16  ;;  %v21685_v16 = vld [vmem:[#allocation6 + $0x2e40] ss:$16 sps:$4 sm:$0xff]  }
 0x6ea   :  { %12675 = vmatpush1.bf16.msra.mxu1 %v21610_v13  ;;  %12590 = vmatprep.subr.bf16.mxu0 %v21615_v44  ;;  %v21688_v13 = vld [vmem:[#allocation6 + $0x2e48] ss:$16 sps:$4 sm:$0xff]   ;;  %v21693_v44 = vld [vmem:[#allocation6 + $0x2e64] ss:$16 sps:$4 sm:$0xff]  }
 0x6eb   :  { %12676 = vmatprep.subr.bf16.mxu1 %v21618_v14  ;;  %v21696_v14 = vld [vmem:[#allocation6 + $0x2e6c] ss:$16 sps:$4 sm:$0xff]  }
 0x6ed   :  { %12591 = vmatpush1.bf16.msra.mxu0 %v21613_v7  ;;  %v21691_v7 = vld [vmem:[#allocation6 + $0x2e60] ss:$16 sps:$4 sm:$0xff]  }
 0x6ee   :  { %12677 = vmatpush1.bf16.msra.mxu1 %v21616_v30  ;;  %12592 = vmatprep.subr.bf16.mxu0 %v21621_v33  ;;  %v21694_v30 = vld [vmem:[#allocation6 + $0x2e68] ss:$16 sps:$4 sm:$0xff]   ;;  %v21699_v33 = vld [vmem:[#allocation6 + $0x2e84] ss:$16 sps:$4 sm:$0xff]  }
 0x6ef   :  { %12678 = vmatprep.subr.bf16.mxu1 %v21624_v63  ;;  %v21702_v63 = vld [vmem:[#allocation6 + $0x2e8c] ss:$16 sps:$4 sm:$0xff]  }
 0x6f1   :  { %12593 = vmatpush1.bf16.msra.mxu0 %v21619_v42  ;;  %v21700_v42 = vld [vmem:[#allocation6 + $0x2e88] ss:$16 sps:$4 sm:$0xff]  }
 0x6f2   :  { %12679 = vmatpush1.bf16.msra.mxu1 %v21622_v5  ;;  %12594 = vmatprep.subr.bf16.mxu0 %v21627_v2  ;;  %v21705_v5 = vld [vmem:[#allocation6 + $0x2ea4] ss:$16 sps:$4 sm:$0xff]   ;;  %v21708_v2 = vld [vmem:[#allocation6 + $0x2eac] ss:$16 sps:$4 sm:$0xff]  }
 0x6f3   :  { %12680 = vmatprep.subr.bf16.mxu1 %v21630_v45  ;;  %v21703_v45 = vld [vmem:[#allocation6 + $0x2ea0] ss:$16 sps:$4 sm:$0xff]  }
 0x6f5   :  { %12595 = vmatpush1.bf16.msra.mxu0 %v21625_v10  ;;  %v21706_v10 = vld [vmem:[#allocation6 + $0x2ea8] ss:$16 sps:$4 sm:$0xff]  }
 0x6f6   :  { %12681 = vmatpush1.bf16.msra.mxu1 %v21628_v27  ;;  %12596 = vmatprep.subr.bf16.mxu0 %v21633_v36  ;;  %v21711_v27 = vld [vmem:[#allocation6 + $0x2ec4] ss:$16 sps:$4 sm:$0xff]   ;;  %v21714_v36 = vld [vmem:[#allocation6 + $0x2ecc] ss:$16 sps:$4 sm:$0xff]  }
 0x6f7   :  { %12682 = vmatprep.subr.bf16.mxu1 %v21636_v18  ;;  %v21709_v18 = vld [vmem:[#allocation6 + $0x2ec0] ss:$16 sps:$4 sm:$0xff]  }
 0x6f9   :  { %12597 = vmatpush1.bf16.msra.mxu0 %v21631_v15  ;;  %v21712_v15 = vld [vmem:[#allocation6 + $0x2ec8] ss:$16 sps:$4 sm:$0xff]  }
 0x6fa   :  { %12683 = vmatpush1.bf16.msra.mxu1 %v21634_v9  ;;  %12598 = vmatprep.subr.bf16.mxu0 %v21639_v3  ;;  %v21717_v9 = vld [vmem:[#allocation6 + $0x2ee4] ss:$16 sps:$4 sm:$0xff]   ;;  %v21720_v3 = vld [vmem:[#allocation6 + $0x2eec] ss:$16 sps:$4 sm:$0xff]  }
 0x6fb   :  { %12684 = vmatprep.subr.bf16.mxu1 %v21642_v52  ;;  %v21715_v52 = vld [vmem:[#allocation6 + $0x2ee0] ss:$16 sps:$4 sm:$0xff]  }
 0x6fd   :  { %12599 = vmatpush1.bf16.msra.mxu0 %v21637_v37  ;;  %v21718_v37 = vld [vmem:[#allocation6 + $0x2ee8] ss:$16 sps:$4 sm:$0xff]  }
 0x6fe   :  { %12685 = vmatpush1.bf16.msra.mxu1 %v21640_v8  ;;  %12600 = vmatprep.subr.bf16.mxu0 %v21645_v25  ;;  %v21723_v8 = vld [vmem:[#allocation6 + $0x2f04] ss:$16 sps:$4 sm:$0xff]   ;;  %v21726_v25 = vld [vmem:[#allocation6 + $0x2f0c] ss:$16 sps:$4 sm:$0xff]  }
 0x6ff   :  { %12686 = vmatprep.subr.bf16.mxu1 %v21648_v23  ;;  %v21721_v23 = vld [vmem:[#allocation6 + $0x2f00] ss:$16 sps:$4 sm:$0xff]  }
 0x701   :  { %12601 = vmatpush1.bf16.msra.mxu0 %v21643_v0  ;;  %v21724_v0 = vld [vmem:[#allocation6 + $0x2f08] ss:$16 sps:$4 sm:$0xff]  }
 0x702   :  { %12687 = vmatpush1.bf16.msra.mxu1 %v21646_v49  ;;  %12602 = vmatprep.subr.bf16.mxu0 %v21651_v61  ;;  %v21729_v49 = vld [vmem:[#allocation6 + $0x2f24] ss:$16 sps:$4 sm:$0xff]   ;;  %v21732_v61 = vld [vmem:[#allocation6 + $0x2f2c] ss:$16 sps:$4 sm:$0xff]  }
 0x703   :  { %12688 = vmatprep.subr.bf16.mxu1 %v21654_v35  ;;  %v21727_v35 = vld [vmem:[#allocation6 + $0x2f20] ss:$16 sps:$4 sm:$0xff]  }
 0x705   :  { %12603 = vmatpush1.bf16.msra.mxu0 %v21649_v56  ;;  %v21730_v56 = vld [vmem:[#allocation6 + $0x2f28] ss:$16 sps:$4 sm:$0xff]  }
 0x706   :  { %12689 = vmatpush1.bf16.msra.mxu1 %v21652_v51  ;;  %12604 = vmatprep.subr.bf16.mxu0 %v21657_v34  ;;  %v21735_v51 = vld [vmem:[#allocation6 + $0x2f44] ss:$16 sps:$4 sm:$0xff]   ;;  %v21738_v34 = vld [vmem:[#allocation6 + $0x2f4c] ss:$16 sps:$4 sm:$0xff]  }
 0x707   :  { %12690 = vmatprep.subr.bf16.mxu1 %v21660_v38  ;;  %v21733_v38 = vld [vmem:[#allocation6 + $0x2f40] ss:$16 sps:$4 sm:$0xff]  }
 0x709   :  { %12605 = vmatpush1.bf16.msra.mxu0 %v21655_v55  ;;  %v21736_v55 = vld [vmem:[#allocation6 + $0x2f48] ss:$16 sps:$4 sm:$0xff]  }
 0x70a   :  { %12691 = vmatpush1.bf16.msra.mxu1 %v21658_v53  ;;  %12606 = vmatprep.subr.bf16.mxu0 %v21663_v46  ;;  %v21741_v53 = vld [vmem:[#allocation6 + $0x2f64] ss:$16 sps:$4 sm:$0xff]   ;;  %v21744_v46 = vld [vmem:[#allocation6 + $0x2f6c] ss:$16 sps:$4 sm:$0xff]  }
 0x70b   :  { %12692 = vmatprep.subr.bf16.mxu1 %v21666_v59  ;;  %v21739_v59 = vld [vmem:[#allocation6 + $0x2f60] ss:$16 sps:$4 sm:$0xff]  }
 0x70d   :  { %12607 = vmatpush1.bf16.msra.mxu0 %v21661_v41  ;;  %v21742_v41 = vld [vmem:[#allocation6 + $0x2f68] ss:$16 sps:$4 sm:$0xff]  }
 0x70e   :  { %12693 = vmatpush1.bf16.msra.mxu1 %v21664_v20  ;;  %12608 = vmatprep.subr.bf16.mxu0 %v21669_v22  ;;  %v21747_v20 = vld [vmem:[#allocation6 + $0x2f84] ss:$16 sps:$4 sm:$0xff]   ;;  %v21750_v22 = vld [vmem:[#allocation6 + $0x2f8c] ss:$16 sps:$4 sm:$0xff]  }
 0x70f   :  { %12694 = vmatprep.subr.bf16.mxu1 %v21672_v48  ;;  %v21745_v48 = vld [vmem:[#allocation6 + $0x2f80] ss:$16 sps:$4 sm:$0xff]  }
 0x711   :  { %12609 = vmatpush1.bf16.msra.mxu0 %v21667_v29  ;;  %v21748_v29 = vld [vmem:[#allocation6 + $0x2f88] ss:$16 sps:$4 sm:$0xff]  }
 0x712   :  { %12695 = vmatpush1.bf16.msra.mxu1 %v21670_v19  ;;  %12621 = vmatprep.subr.bf16.mxu0 %v21675_v12  ;;  %v21753_v19 = vld [vmem:[#allocation6 + $0x2fa4] ss:$16 sps:$4 sm:$0xff]   ;;  %v21756_v12 = vld [vmem:[#allocation6 + $0x2fac] ss:$16 sps:$4 sm:$0xff]  }
 0x713   :  { %12707 = vmatprep.subr.bf16.mxu1 %v21678_v57  ;;  %v21751_v57 = vld [vmem:[#allocation6 + $0x2fa0] ss:$16 sps:$4 sm:$0xff]  }
 0x714   :  { %12611 = vmatmul.mubr.bf16.vlgmr.msra.gmra.mrb[64].mxu0 %v24125_v6 }
 0x715   :  { %12697 = vmatmul.mubr.bf16.vlgmr.msra.gmra.mrb[64].mxu1 %v24125_v6  ;;  %12622 = vmatpush1.bf16.msra.mxu0 %v21673_v1  ;;  %v21754_v1 = vld [vmem:[#allocation6 + $0x2fa8] ss:$16 sps:$4 sm:$0xff]   ;;  %v21757_v6 = vld [vmem:[#allocation6 + $0x2fc0] ss:$16 sps:$4 sm:$0xff]  }
 0x716   :  { %12653 = vmatprep.mubr.bf16.mxu0 %v23699_v21  ;;  %12708 = vmatpush1.bf16.msra.mxu1 %v21676_v58  ;;  %v21759_v58 = vld [vmem:[#allocation6 + $0x2fc4] ss:$16 sps:$4 sm:$0xff]  }
 0x717   :  { %12739 = vmatprep.mubr.bf16.mxu1 %v23699_v21  ;;  %12623 = vmatprep.subr.bf16.mxu0 %v21681_v24  ;;  %v21697_v21 = vld [vmem:[#allocation6 + $0x2e80] ss:$16 sps:$4 sm:$0xff]   ;;  %v21762_v24 = vld [vmem:[#allocation6 + $0x2fcc] ss:$16 sps:$4 sm:$0xff]  }
 0x718   :  { %12709 = vmatprep.subr.bf16.mxu1 %v21684_v60  ;;  %v21760_v60 = vld [vmem:[#allocation6 + $0x2fc8] ss:$16 sps:$4 sm:$0xff]  }
 0x719   :  { %12624 = vmatpush1.bf16.msra.mxu0 %v21679_v28  ;;  %v21765_v28 = vld [vmem:[#allocation6 + $0x2fe4] ss:$16 sps:$4 sm:$0xff]  }
 0x71a   :  { %12710 = vmatpush1.bf16.msra.mxu1 %v21682_v31  ;;  %12625 = vmatprep.subr.bf16.mxu0 %v21687_v50  ;;  %v21768_v31 = vld [vmem:[#allocation6 + $0x2fec] ss:$16 sps:$4 sm:$0xff]   ;;  %v21763_v50 = vld [vmem:[#allocation6 + $0x2fe0] ss:$16 sps:$4 sm:$0xff]  }
 0x71b   :  { %12711 = vmatprep.subr.bf16.mxu1 %v21690_v17  ;;  %v21766_v17 = vld [vmem:[#allocation6 + $0x2fe8] ss:$16 sps:$4 sm:$0xff]  }
 0x71d   :  { %12626 = vmatpush1.bf16.msra.mxu0 %v21685_v16  ;;  %v21771_v16 = vld [vmem:[#allocation6 + $0x3004] ss:$16 sps:$4 sm:$0xff]  }
 0x71e   :  { %12712 = vmatpush1.bf16.msra.mxu1 %v21688_v13  ;;  %12627 = vmatprep.subr.bf16.mxu0 %v21693_v44  ;;  %v21774_v13 = vld [vmem:[#allocation6 + $0x300c] ss:$16 sps:$4 sm:$0xff]   ;;  %v21769_v44 = vld [vmem:[#allocation6 + $0x3000] ss:$16 sps:$4 sm:$0xff]  }
 0x71f   :  { %12713 = vmatprep.subr.bf16.mxu1 %v21696_v14  ;;  %v21772_v14 = vld [vmem:[#allocation6 + $0x3008] ss:$16 sps:$4 sm:$0xff]  }
 0x721   :  { %12628 = vmatpush1.bf16.msra.mxu0 %v21691_v7  ;;  %v21777_v7 = vld [vmem:[#allocation6 + $0x3024] ss:$16 sps:$4 sm:$0xff]  }
 0x722   :  { %12714 = vmatpush1.bf16.msra.mxu1 %v21694_v30  ;;  %12629 = vmatprep.subr.bf16.mxu0 %v21699_v33  ;;  %v24126_v30 = vld [vmem:[#allocation69_spill] sm:$0xff] }
 0x723   :  { %12715 = vmatprep.subr.bf16.mxu1 %v21702_v63  ;;  %v21780_v33 = vld [vmem:[#allocation6 + $0x302c] ss:$16 sps:$4 sm:$0xff]   ;;  %v21775_v63 = vld [vmem:[#allocation6 + $0x3020] ss:$16 sps:$4 sm:$0xff]  }
 0x725   :  { %12630 = vmatpush1.bf16.msra.mxu0 %v21697_v21  ;;  %v21778_v21 = vld [vmem:[#allocation6 + $0x3028] ss:$16 sps:$4 sm:$0xff]  }
 0x726   :  { %12716 = vmatpush1.bf16.msra.mxu1 %v21700_v42  ;;  %12631 = vmatprep.subr.bf16.mxu0 %v21705_v5  ;;  %v21783_v42 = vld [vmem:[#allocation6 + $0x3044] ss:$16 sps:$4 sm:$0xff]   ;;  %v21786_v5 = vld [vmem:[#allocation6 + $0x304c] ss:$16 sps:$4 sm:$0xff]  }
 0x727   :  { %12717 = vmatprep.subr.bf16.mxu1 %v21708_v2  ;;  %v21781_v2 = vld [vmem:[#allocation6 + $0x3040] ss:$16 sps:$4 sm:$0xff]  }
 0x729   :  { %12632 = vmatpush1.bf16.msra.mxu0 %v21703_v45  ;;  %v21784_v45 = vld [vmem:[#allocation6 + $0x3048] ss:$16 sps:$4 sm:$0xff]  }
 0x72a   :  { %12718 = vmatpush1.bf16.msra.mxu1 %v21706_v10  ;;  %12633 = vmatprep.subr.bf16.mxu0 %v21711_v27  ;;  %v21789_v10 = vld [vmem:[#allocation6 + $0x3064] ss:$16 sps:$4 sm:$0xff]   ;;  %v21792_v27 = vld [vmem:[#allocation6 + $0x306c] ss:$16 sps:$4 sm:$0xff]  }
 0x72b   :  { %12719 = vmatprep.subr.bf16.mxu1 %v21714_v36  ;;  %v21787_v36 = vld [vmem:[#allocation6 + $0x3060] ss:$16 sps:$4 sm:$0xff]  }
 0x72d   :  { %12634 = vmatpush1.bf16.msra.mxu0 %v21709_v18  ;;  %v21790_v18 = vld [vmem:[#allocation6 + $0x3068] ss:$16 sps:$4 sm:$0xff]  }
 0x72e   :  { %12720 = vmatpush1.bf16.msra.mxu1 %v21712_v15  ;;  %12635 = vmatprep.subr.bf16.mxu0 %v21717_v9  ;;  %v21795_v15 = vld [vmem:[#allocation6 + $0x3084] ss:$16 sps:$4 sm:$0xff]   ;;  %v21798_v9 = vld [vmem:[#allocation6 + $0x308c] ss:$16 sps:$4 sm:$0xff]  }
 0x72f   :  { %12721 = vmatprep.subr.bf16.mxu1 %v21720_v3  ;;  %v21796_v3 = vld [vmem:[#allocation6 + $0x3088] ss:$16 sps:$4 sm:$0xff]  }
 0x731   :  { %12636 = vmatpush1.bf16.msra.mxu0 %v21715_v52  ;;  %v21801_v52 = vld [vmem:[#allocation6 + $0x30a4] ss:$16 sps:$4 sm:$0xff]  }
 0x732   :  { %12722 = vmatpush1.bf16.msra.mxu1 %v21718_v37  ;;  %12637 = vmatprep.subr.bf16.mxu0 %v21723_v8  ;;  %v21804_v37 = vld [vmem:[#allocation6 + $0x30ac] ss:$16 sps:$4 sm:$0xff]   ;;  %v21799_v8 = vld [vmem:[#allocation6 + $0x30a0] ss:$16 sps:$4 sm:$0xff]  }
 0x733   :  { %12723 = vmatprep.subr.bf16.mxu1 %v21726_v25  ;;  %v21802_v25 = vld [vmem:[#allocation6 + $0x30a8] ss:$16 sps:$4 sm:$0xff]  }
 0x735   :  { %12638 = vmatpush1.bf16.msra.mxu0 %v21721_v23  ;;  %v21807_v23 = vld [vmem:[#allocation6 + $0x30c4] ss:$16 sps:$4 sm:$0xff]  }
 0x736   :  { %12724 = vmatpush1.bf16.msra.mxu1 %v21724_v0  ;;  %12639 = vmatprep.subr.bf16.mxu0 %v21729_v49  ;;  %v21810_v0 = vld [vmem:[#allocation6 + $0x30cc] ss:$16 sps:$4 sm:$0xff]   ;;  %v21805_v49 = vld [vmem:[#allocation6 + $0x30c0] ss:$16 sps:$4 sm:$0xff]  }
 0x737   :  { %12725 = vmatprep.subr.bf16.mxu1 %v21732_v61  ;;  %v21808_v61 = vld [vmem:[#allocation6 + $0x30c8] ss:$16 sps:$4 sm:$0xff]  }
 0x739   :  { %12640 = vmatpush1.bf16.msra.mxu0 %v21727_v35  ;;  %v21813_v35 = vld [vmem:[#allocation6 + $0x30e4] ss:$16 sps:$4 sm:$0xff]  }
 0x73a   :  { %12726 = vmatpush1.bf16.msra.mxu1 %v21730_v56  ;;  %12641 = vmatprep.subr.bf16.mxu0 %v21735_v51  ;;  %v21816_v56 = vld [vmem:[#allocation6 + $0x30ec] ss:$16 sps:$4 sm:$0xff]   ;;  %v21811_v51 = vld [vmem:[#allocation6 + $0x30e0] ss:$16 sps:$4 sm:$0xff]  }
 0x73b   :  { %12727 = vmatprep.subr.bf16.mxu1 %v21738_v34  ;;  %v21814_v34 = vld [vmem:[#allocation6 + $0x30e8] ss:$16 sps:$4 sm:$0xff]  }
 0x73d   :  { %12642 = vmatpush1.bf16.msra.mxu0 %v21733_v38  ;;  %v21819_v38 = vld [vmem:[#allocation6 + $0x3104] ss:$16 sps:$4 sm:$0xff]  }
 0x73e   :  { %12728 = vmatpush1.bf16.msra.mxu1 %v21736_v55  ;;  %12643 = vmatprep.subr.bf16.mxu0 %v21741_v53  ;;  %v21822_v55 = vld [vmem:[#allocation6 + $0x310c] ss:$16 sps:$4 sm:$0xff]   ;;  %v21817_v53 = vld [vmem:[#allocation6 + $0x3100] ss:$16 sps:$4 sm:$0xff]  }
 0x73f   :  { %12729 = vmatprep.subr.bf16.mxu1 %v21744_v46  ;;  %v21820_v46 = vld [vmem:[#allocation6 + $0x3108] ss:$16 sps:$4 sm:$0xff]  }
 0x741   :  { %12644 = vmatpush1.bf16.msra.mxu0 %v21739_v59  ;;  %v21825_v59 = vld [vmem:[#allocation6 + $0x3124] ss:$16 sps:$4 sm:$0xff]  }
 0x742   :  { %12730 = vmatpush1.bf16.msra.mxu1 %v21742_v41  ;;  %12645 = vmatprep.subr.bf16.mxu0 %v21747_v20  ;;  %v21828_v41 = vld [vmem:[#allocation6 + $0x312c] ss:$16 sps:$4 sm:$0xff]   ;;  %v21823_v20 = vld [vmem:[#allocation6 + $0x3120] ss:$16 sps:$4 sm:$0xff]  }
 0x743   :  { %12731 = vmatprep.subr.bf16.mxu1 %v21750_v22  ;;  %v21826_v22 = vld [vmem:[#allocation6 + $0x3128] ss:$16 sps:$4 sm:$0xff]  }
 0x745   :  { %12646 = vmatpush1.bf16.msra.mxu0 %v21745_v48  ;;  %v21831_v48 = vld [vmem:[#allocation6 + $0x3144] ss:$16 sps:$4 sm:$0xff]  }
 0x746   :  { %12732 = vmatpush1.bf16.msra.mxu1 %v21748_v29  ;;  %12647 = vmatprep.subr.bf16.mxu0 %v21753_v19  ;;  %v21834_v29 = vld [vmem:[#allocation6 + $0x314c] ss:$16 sps:$4 sm:$0xff]   ;;  %v21829_v19 = vld [vmem:[#allocation6 + $0x3140] ss:$16 sps:$4 sm:$0xff]  }
 0x747   :  { %12733 = vmatprep.subr.bf16.mxu1 %v21756_v12  ;;  %v21832_v12 = vld [vmem:[#allocation6 + $0x3148] ss:$16 sps:$4 sm:$0xff]  }
 0x749   :  { %12648 = vmatpush1.bf16.msra.mxu0 %v21751_v57  ;;  %v21837_v57 = vld [vmem:[#allocation6 + $0x3164] ss:$16 sps:$4 sm:$0xff]  }
 0x74a   :  { %12734 = vmatpush1.bf16.msra.mxu1 %v21754_v1  ;;  %12649 = vmatprep.subr.bf16.mxu0 %v21759_v58  ;;  %v21840_v1 = vld [vmem:[#allocation6 + $0x316c] ss:$16 sps:$4 sm:$0xff]   ;;  %v21835_v58 = vld [vmem:[#allocation6 + $0x3160] ss:$16 sps:$4 sm:$0xff]  }
 0x74b   :  { %12735 = vmatprep.subr.bf16.mxu1 %v21762_v24  ;;  %v21838_v24 = vld [vmem:[#allocation6 + $0x3168] ss:$16 sps:$4 sm:$0xff]  }
 0x74d   :  { %12650 = vmatpush1.bf16.msra.mxu0 %v21757_v6  ;;  %v21843_v6 = vld [vmem:[#allocation6 + $0x3184] ss:$16 sps:$4 sm:$0xff]  }
 0x74e   :  { %12736 = vmatpush1.bf16.msra.mxu1 %v21760_v60  ;;  %12651 = vmatprep.subr.bf16.mxu0 %v21765_v28  ;;  %v21846_v60 = vld [vmem:[#allocation6 + $0x318c] ss:$16 sps:$4 sm:$0xff]   ;;  %v21841_v28 = vld [vmem:[#allocation6 + $0x3180] ss:$16 sps:$4 sm:$0xff]  }
 0x74f   :  { %12737 = vmatprep.subr.bf16.mxu1 %v21768_v31  ;;  %v21844_v31 = vld [vmem:[#allocation6 + $0x3188] ss:$16 sps:$4 sm:$0xff]  }
 0x751   :  { %12652 = vmatpush1.bf16.msra.mxu0 %v21763_v50  ;;  %v21849_v50 = vld [vmem:[#allocation6 + $0x31a4] ss:$16 sps:$4 sm:$0xff]  }
 0x752   :  { %12738 = vmatpush1.bf16.msra.mxu1 %v21766_v17  ;;  %13527 = vmatprep.subr.bf16.mxu0 %v21771_v16  ;;  %v21852_v17 = vld [vmem:[#allocation6 + $0x31ac] ss:$16 sps:$4 sm:$0xff]   ;;  %v21847_v16 = vld [vmem:[#allocation6 + $0x31a0] ss:$16 sps:$4 sm:$0xff]  }
 0x753   :  { %13613 = vmatprep.subr.bf16.mxu1 %v21774_v13  ;;  %v21850_v13 = vld [vmem:[#allocation6 + $0x31a8] ss:$16 sps:$4 sm:$0xff]  }
 0x754   :  { %12654 = vmatmul.mubr.bf16.vlgmr.msra.gmra.mrb[64].mxu0 %v24126_v30 }
 0x755   :  { %12740 = vmatmul.mubr.bf16.vlgmr.msra.gmra.mrb[64].mxu1 %v24126_v30  ;;  %13528 = vmatpush1.bf16.msra.mxu0 %v21769_v44  ;;  %v21855_v44 = vld [vmem:[#allocation6 + $0x31c4] ss:$16 sps:$4 sm:$0xff]   ;;  %v21856_v30 = vld [vmem:[#allocation6 + $0x31c8] ss:$16 sps:$4 sm:$0xff]  }
 0x756   :  { %13559 = vmatprep.mubr.bf16.mxu0 %v23715_v47  ;;  %13614 = vmatpush1.bf16.msra.mxu1 %v21772_v14  ;;  %v21858_v14 = vld [vmem:[#allocation6 + $0x31cc] ss:$16 sps:$4 sm:$0xff]  }
 0x757   :  { %13645 = vmatprep.mubr.bf16.mxu1 %v23715_v47  ;;  %13529 = vmatprep.subr.bf16.mxu0 %v21777_v7  ;;  %v21793_v47 = vld [vmem:[#allocation6 + $0x3080] ss:$16 sps:$4 sm:$0xff]  }
 0x758   :  { %13615 = vmatprep.subr.bf16.mxu1 %v21780_v33  ;;  %v21853_v7 = vld [vmem:[#allocation6 + $0x31c0] ss:$16 sps:$4 sm:$0xff]   ;;  %v21861_v33 = vld [vmem:[#allocation6 + $0x31e4] ss:$16 sps:$4 sm:$0xff]  }
 0x759   :  { %13530 = vmatpush1.bf16.msra.mxu0 %v21775_v63  ;;  %v21864_v63 = vld [vmem:[#allocation6 + $0x31ec] ss:$16 sps:$4 sm:$0xff]  }
 0x75a   :  { %13616 = vmatpush1.bf16.msra.mxu1 %v21778_v21  ;;  %13531 = vmatprep.subr.bf16.mxu0 %v21783_v42  ;;  %v21859_v21 = vld [vmem:[#allocation6 + $0x31e0] ss:$16 sps:$4 sm:$0xff]   ;;  %v21862_v42 = vld [vmem:[#allocation6 + $0x31e8] ss:$16 sps:$4 sm:$0xff]  }
 0x75b   :  { %13617 = vmatprep.subr.bf16.mxu1 %v21786_v5  ;;  %v21867_v5 = vld [vmem:[#allocation6 + $0x3204] ss:$16 sps:$4 sm:$0xff]  }
 0x75d   :  { %13532 = vmatpush1.bf16.msra.mxu0 %v21781_v2  ;;  %v21870_v2 = vld [vmem:[#allocation6 + $0x320c] ss:$16 sps:$4 sm:$0xff]  }
 0x75e   :  { %13618 = vmatpush1.bf16.msra.mxu1 %v21784_v45  ;;  %13533 = vmatprep.subr.bf16.mxu0 %v21789_v10  ;;  %v21865_v45 = vld [vmem:[#allocation6 + $0x3200] ss:$16 sps:$4 sm:$0xff]   ;;  %v21868_v10 = vld [vmem:[#allocation6 + $0x3208] ss:$16 sps:$4 sm:$0xff]  }
 0x75f   :  { %13619 = vmatprep.subr.bf16.mxu1 %v21792_v27  ;;  %v21873_v27 = vld [vmem:[#allocation6 + $0x3224] ss:$16 sps:$4 sm:$0xff]  }
 0x761   :  { %13534 = vmatpush1.bf16.msra.mxu0 %v21787_v36  ;;  %v24127_v36 = vld [vmem:[#allocation66_spill] sm:$0xff] }
 0x762   :  { %13620 = vmatpush1.bf16.msra.mxu1 %v21790_v18  ;;  %13535 = vmatprep.subr.bf16.mxu0 %v21795_v15  ;;  %v21876_v18 = vld [vmem:[#allocation6 + $0x322c] ss:$16 sps:$4 sm:$0xff]   ;;  %v21871_v15 = vld [vmem:[#allocation6 + $0x3220] ss:$16 sps:$4 sm:$0xff]  }
 0x763   :  { %13621 = vmatprep.subr.bf16.mxu1 %v21798_v9  ;;  %v21874_v9 = vld [vmem:[#allocation6 + $0x3228] ss:$16 sps:$4 sm:$0xff]  }
 0x765   :  { %13536 = vmatpush1.bf16.msra.mxu0 %v21793_v47  ;;  %v21879_v47 = vld [vmem:[#allocation6 + $0x3244] ss:$16 sps:$4 sm:$0xff]  }
 0x766   :  { %13622 = vmatpush1.bf16.msra.mxu1 %v21796_v3  ;;  %13537 = vmatprep.subr.bf16.mxu0 %v21801_v52  ;;  %v21882_v3 = vld [vmem:[#allocation6 + $0x324c] ss:$16 sps:$4 sm:$0xff]   ;;  %v21877_v52 = vld [vmem:[#allocation6 + $0x3240] ss:$16 sps:$4 sm:$0xff]  }
 0x767   :  { %13623 = vmatprep.subr.bf16.mxu1 %v21804_v37  ;;  %v21880_v37 = vld [vmem:[#allocation6 + $0x3248] ss:$16 sps:$4 sm:$0xff]  }
 0x769   :  { %13538 = vmatpush1.bf16.msra.mxu0 %v21799_v8  ;;  %v21885_v8 = vld [vmem:[#allocation6 + $0x3264] ss:$16 sps:$4 sm:$0xff]  }
 0x76a   :  { %13624 = vmatpush1.bf16.msra.mxu1 %v21802_v25  ;;  %13539 = vmatprep.subr.bf16.mxu0 %v21807_v23  ;;  %v21888_v25 = vld [vmem:[#allocation6 + $0x326c] ss:$16 sps:$4 sm:$0xff]   ;;  %v21883_v23 = vld [vmem:[#allocation6 + $0x3260] ss:$16 sps:$4 sm:$0xff]  }
 0x76b   :  { %13625 = vmatprep.subr.bf16.mxu1 %v21810_v0  ;;  %v21886_v0 = vld [vmem:[#allocation6 + $0x3268] ss:$16 sps:$4 sm:$0xff]  }
 0x76d   :  { %13540 = vmatpush1.bf16.msra.mxu0 %v21805_v49  ;;  %v21891_v49 = vld [vmem:[#allocation6 + $0x3284] ss:$16 sps:$4 sm:$0xff]  }
 0x76e   :  { %13626 = vmatpush1.bf16.msra.mxu1 %v21808_v61  ;;  %13541 = vmatprep.subr.bf16.mxu0 %v21813_v35  ;;  %v21894_v61 = vld [vmem:[#allocation6 + $0x328c] ss:$16 sps:$4 sm:$0xff]   ;;  %v21892_v35 = vld [vmem:[#allocation6 + $0x3288] ss:$16 sps:$4 sm:$0xff]  }
 0x76f   :  { %13627 = vmatprep.subr.bf16.mxu1 %v21816_v56  ;;  %v21897_v56 = vld [vmem:[#allocation6 + $0x32a4] ss:$16 sps:$4 sm:$0xff]  }
 0x771   :  { %13542 = vmatpush1.bf16.msra.mxu0 %v21811_v51  ;;  %v21900_v51 = vld [vmem:[#allocation6 + $0x32ac] ss:$16 sps:$4 sm:$0xff]  }
 0x772   :  { %13628 = vmatpush1.bf16.msra.mxu1 %v21814_v34  ;;  %13543 = vmatprep.subr.bf16.mxu0 %v21819_v38  ;;  %v21895_v34 = vld [vmem:[#allocation6 + $0x32a0] ss:$16 sps:$4 sm:$0xff]   ;;  %v21898_v38 = vld [vmem:[#allocation6 + $0x32a8] ss:$16 sps:$4 sm:$0xff]  }
 0x773   :  { %13629 = vmatprep.subr.bf16.mxu1 %v21822_v55  ;;  %v21903_v55 = vld [vmem:[#allocation6 + $0x32c4] ss:$16 sps:$4 sm:$0xff]  }
 0x775   :  { %13544 = vmatpush1.bf16.msra.mxu0 %v21817_v53  ;;  %v21906_v53 = vld [vmem:[#allocation6 + $0x32cc] ss:$16 sps:$4 sm:$0xff]  }
 0x776   :  { %13630 = vmatpush1.bf16.msra.mxu1 %v21820_v46  ;;  %13545 = vmatprep.subr.bf16.mxu0 %v21825_v59  ;;  %v21901_v46 = vld [vmem:[#allocation6 + $0x32c0] ss:$16 sps:$4 sm:$0xff]   ;;  %v21904_v59 = vld [vmem:[#allocation6 + $0x32c8] ss:$16 sps:$4 sm:$0xff]  }
 0x777   :  { %13631 = vmatprep.subr.bf16.mxu1 %v21828_v41  ;;  %v21909_v41 = vld [vmem:[#allocation6 + $0x32e4] ss:$16 sps:$4 sm:$0xff]  }
 0x779   :  { %13546 = vmatpush1.bf16.msra.mxu0 %v21823_v20  ;;  %v21912_v20 = vld [vmem:[#allocation6 + $0x32ec] ss:$16 sps:$4 sm:$0xff]  }
 0x77a   :  { %13632 = vmatpush1.bf16.msra.mxu1 %v21826_v22  ;;  %13547 = vmatprep.subr.bf16.mxu0 %v21831_v48  ;;  %v21907_v22 = vld [vmem:[#allocation6 + $0x32e0] ss:$16 sps:$4 sm:$0xff]   ;;  %v21910_v48 = vld [vmem:[#allocation6 + $0x32e8] ss:$16 sps:$4 sm:$0xff]  }
 0x77b   :  { %13633 = vmatprep.subr.bf16.mxu1 %v21834_v29  ;;  %v21915_v29 = vld [vmem:[#allocation6 + $0x3304] ss:$16 sps:$4 sm:$0xff]  }
 0x77d   :  { %13548 = vmatpush1.bf16.msra.mxu0 %v21829_v19  ;;  %v21918_v19 = vld [vmem:[#allocation6 + $0x330c] ss:$16 sps:$4 sm:$0xff]  }
 0x77e   :  { %13634 = vmatpush1.bf16.msra.mxu1 %v21832_v12  ;;  %13549 = vmatprep.subr.bf16.mxu0 %v21837_v57  ;;  %v21913_v12 = vld [vmem:[#allocation6 + $0x3300] ss:$16 sps:$4 sm:$0xff]   ;;  %v21916_v57 = vld [vmem:[#allocation6 + $0x3308] ss:$16 sps:$4 sm:$0xff]  }
 0x77f   :  { %13635 = vmatprep.subr.bf16.mxu1 %v21840_v1  ;;  %v21921_v1 = vld [vmem:[#allocation6 + $0x3324] ss:$16 sps:$4 sm:$0xff]  }
 0x781   :  { %13550 = vmatpush1.bf16.msra.mxu0 %v21835_v58  ;;  %v21924_v58 = vld [vmem:[#allocation6 + $0x332c] ss:$16 sps:$4 sm:$0xff]  }
 0x782   :  { %13636 = vmatpush1.bf16.msra.mxu1 %v21838_v24  ;;  %13551 = vmatprep.subr.bf16.mxu0 %v21843_v6  ;;  %v21919_v24 = vld [vmem:[#allocation6 + $0x3320] ss:$16 sps:$4 sm:$0xff]   ;;  %v21922_v6 = vld [vmem:[#allocation6 + $0x3328] ss:$16 sps:$4 sm:$0xff]  }
 0x783   :  { %13637 = vmatprep.subr.bf16.mxu1 %v21846_v60  ;;  %v21927_v60 = vld [vmem:[#allocation6 + $0x3344] ss:$16 sps:$4 sm:$0xff]  }
 0x785   :  { %13552 = vmatpush1.bf16.msra.mxu0 %v21841_v28  ;;  %v21930_v28 = vld [vmem:[#allocation6 + $0x334c] ss:$16 sps:$4 sm:$0xff]  }
 0x786   :  { %13638 = vmatpush1.bf16.msra.mxu1 %v21844_v31  ;;  %13553 = vmatprep.subr.bf16.mxu0 %v21849_v50  ;;  %v21925_v31 = vld [vmem:[#allocation6 + $0x3340] ss:$16 sps:$4 sm:$0xff]   ;;  %v21928_v50 = vld [vmem:[#allocation6 + $0x3348] ss:$16 sps:$4 sm:$0xff]  }
 0x787   :  { %13639 = vmatprep.subr.bf16.mxu1 %v21852_v17  ;;  %v21933_v17 = vld [vmem:[#allocation6 + $0x3364] ss:$16 sps:$4 sm:$0xff]  }
 0x789   :  { %13554 = vmatpush1.bf16.msra.mxu0 %v21847_v16  ;;  %v21936_v16 = vld [vmem:[#allocation6 + $0x336c] ss:$16 sps:$4 sm:$0xff]  }
 0x78a   :  { %13640 = vmatpush1.bf16.msra.mxu1 %v21850_v13  ;;  %13555 = vmatprep.subr.bf16.mxu0 %v21855_v44  ;;  %v21931_v13 = vld [vmem:[#allocation6 + $0x3360] ss:$16 sps:$4 sm:$0xff]   ;;  %v21934_v44 = vld [vmem:[#allocation6 + $0x3368] ss:$16 sps:$4 sm:$0xff]  }
 0x78b   :  { %13641 = vmatprep.subr.bf16.mxu1 %v21858_v14  ;;  %v21939_v14 = vld [vmem:[#allocation6 + $0x3384] ss:$16 sps:$4 sm:$0xff]  }
 0x78d   :  { %13556 = vmatpush1.bf16.msra.mxu0 %v21853_v7  ;;  %v21942_v7 = vld [vmem:[#allocation6 + $0x338c] ss:$16 sps:$4 sm:$0xff]  }
 0x78e   :  { %13642 = vmatpush1.bf16.msra.mxu1 %v21856_v30  ;;  %13557 = vmatprep.subr.bf16.mxu0 %v21861_v33  ;;  %v21937_v30 = vld [vmem:[#allocation6 + $0x3380] ss:$16 sps:$4 sm:$0xff]   ;;  %v21940_v33 = vld [vmem:[#allocation6 + $0x3388] ss:$16 sps:$4 sm:$0xff]  }
 0x78f   :  { %13643 = vmatprep.subr.bf16.mxu1 %v21864_v63  ;;  %v21945_v63 = vld [vmem:[#allocation6 + $0x33a4] ss:$16 sps:$4 sm:$0xff]  }
 0x791   :  { %13558 = vmatpush1.bf16.msra.mxu0 %v21859_v21  ;;  %v21948_v21 = vld [vmem:[#allocation6 + $0x33ac] ss:$16 sps:$4 sm:$0xff]  }
 0x792   :  { %13644 = vmatpush1.bf16.msra.mxu1 %v21862_v42  ;;  %13570 = vmatprep.subr.bf16.mxu0 %v21867_v5  ;;  %v21943_v42 = vld [vmem:[#allocation6 + $0x33a0] ss:$16 sps:$4 sm:$0xff]   ;;  %v21946_v5 = vld [vmem:[#allocation6 + $0x33a8] ss:$16 sps:$4 sm:$0xff]  }
 0x793   :  { %13656 = vmatprep.subr.bf16.mxu1 %v21870_v2  ;;  %v21951_v2 = vld [vmem:[#allocation6 + $0x33c4] ss:$16 sps:$4 sm:$0xff]  }
 0x794   :  { %13560 = vmatmul.mubr.bf16.vlgmr.msra.gmra.mrb[64].mxu0 %v24127_v36 }
 0x795   :  { %13646 = vmatmul.mubr.bf16.vlgmr.msra.gmra.mrb[64].mxu1 %v24127_v36  ;;  %13571 = vmatpush1.bf16.msra.mxu0 %v21865_v45  ;;  %v21954_v45 = vld [vmem:[#allocation6 + $0x33cc] ss:$16 sps:$4 sm:$0xff]   ;;  %v21957_v36 = vld [vmem:[#allocation6 + $0x33e4] ss:$16 sps:$4 sm:$0xff]  }
 0x796   :  { %13602 = vmatprep.mubr.bf16.mxu0 %v23717_v11  ;;  %13657 = vmatpush1.bf16.msra.mxu1 %v21868_v10  ;;  %v21949_v10 = vld [vmem:[#allocation6 + $0x33c0] ss:$16 sps:$4 sm:$0xff]  }
 0x797   :  { %13688 = vmatprep.mubr.bf16.mxu1 %v23717_v11  ;;  %13572 = vmatprep.subr.bf16.mxu0 %v21873_v27  ;;  %v21889_v11 = vld [vmem:[#allocation6 + $0x3280] ss:$16 sps:$4 sm:$0xff]   ;;  %v21952_v27 = vld [vmem:[#allocation6 + $0x33c8] ss:$16 sps:$4 sm:$0xff]  }
 0x798   :  { %13658 = vmatprep.subr.bf16.mxu1 %v21876_v18  ;;  %v21960_v18 = vld [vmem:[#allocation6 + $0x33ec] ss:$16 sps:$4 sm:$0xff]  }
 0x799   :  { %13573 = vmatpush1.bf16.msra.mxu0 %v21871_v15  ;;  %v21955_v15 = vld [vmem:[#allocation6 + $0x33e0] ss:$16 sps:$4 sm:$0xff]  }
 0x79a   :  { %13659 = vmatpush1.bf16.msra.mxu1 %v21874_v9  ;;  %13574 = vmatprep.subr.bf16.mxu0 %v21879_v47  ;;  %v21958_v9 = vld [vmem:[#allocation6 + $0x33e8] ss:$16 sps:$4 sm:$0xff]   ;;  %v21963_v47 = vld [vmem:[#allocation6 + $0x3404] ss:$16 sps:$4 sm:$0xff]  }
 0x79b   :  { %13660 = vmatprep.subr.bf16.mxu1 %v21882_v3  ;;  %v21966_v3 = vld [vmem:[#allocation6 + $0x340c] ss:$16 sps:$4 sm:$0xff]  }
 0x79d   :  { %13575 = vmatpush1.bf16.msra.mxu0 %v21877_v52  ;;  %v21961_v52 = vld [vmem:[#allocation6 + $0x3400] ss:$16 sps:$4 sm:$0xff]  }
 0x79e   :  { %13661 = vmatpush1.bf16.msra.mxu1 %v21880_v37  ;;  %13576 = vmatprep.subr.bf16.mxu0 %v21885_v8  ;;  %v21964_v37 = vld [vmem:[#allocation6 + $0x3408] ss:$16 sps:$4 sm:$0xff]   ;;  %v21969_v8 = vld [vmem:[#allocation6 + $0x3424] ss:$16 sps:$4 sm:$0xff]  }
 0x79f   :  { %13662 = vmatprep.subr.bf16.mxu1 %v21888_v25  ;;  %v24128_v25 = vld [vmem:[#allocation76_spill] sm:$0xff] }
 0x7a1   :  { %13577 = vmatpush1.bf16.msra.mxu0 %v21883_v23  ;;  %v21972_v23 = vld [vmem:[#allocation6 + $0x342c] ss:$16 sps:$4 sm:$0xff]  }
 0x7a2   :  { %13663 = vmatpush1.bf16.msra.mxu1 %v21886_v0  ;;  %13578 = vmatprep.subr.bf16.mxu0 %v21891_v49  ;;  %v21967_v0 = vld [vmem:[#allocation6 + $0x3420] ss:$16 sps:$4 sm:$0xff]   ;;  %v21970_v49 = vld [vmem:[#allocation6 + $0x3428] ss:$16 sps:$4 sm:$0xff]  }
 0x7a3   :  { %13664 = vmatprep.subr.bf16.mxu1 %v21894_v61  ;;  %v21975_v61 = vld [vmem:[#allocation6 + $0x3444] ss:$16 sps:$4 sm:$0xff]  }
 0x7a5   :  { %13579 = vmatpush1.bf16.msra.mxu0 %v21889_v11  ;;  %v21978_v11 = vld [vmem:[#allocation6 + $0x344c] ss:$16 sps:$4 sm:$0xff]  }
 0x7a6   :  { %13665 = vmatpush1.bf16.msra.mxu1 %v21892_v35  ;;  %13580 = vmatprep.subr.bf16.mxu0 %v21897_v56  ;;  %v21973_v35 = vld [vmem:[#allocation6 + $0x3440] ss:$16 sps:$4 sm:$0xff]   ;;  %v21976_v56 = vld [vmem:[#allocation6 + $0x3448] ss:$16 sps:$4 sm:$0xff]  }
 0x7a7   :  { %13666 = vmatprep.subr.bf16.mxu1 %v21900_v51  ;;  %v21981_v51 = vld [vmem:[#allocation6 + $0x3464] ss:$16 sps:$4 sm:$0xff]  }
 0x7a9   :  { %13581 = vmatpush1.bf16.msra.mxu0 %v21895_v34  ;;  %v21984_v34 = vld [vmem:[#allocation6 + $0x346c] ss:$16 sps:$4 sm:$0xff]  }
 0x7aa   :  { %13667 = vmatpush1.bf16.msra.mxu1 %v21898_v38  ;;  %13582 = vmatprep.subr.bf16.mxu0 %v21903_v55  ;;  %v21979_v38 = vld [vmem:[#allocation6 + $0x3460] ss:$16 sps:$4 sm:$0xff]   ;;  %v21982_v55 = vld [vmem:[#allocation6 + $0x3468] ss:$16 sps:$4 sm:$0xff]  }
 0x7ab   :  { %13668 = vmatprep.subr.bf16.mxu1 %v21906_v53  ;;  %v21987_v53 = vld [vmem:[#allocation6 + $0x3484] ss:$16 sps:$4 sm:$0xff]  }
 0x7ad   :  { %13583 = vmatpush1.bf16.msra.mxu0 %v21901_v46  ;;  %v21990_v46 = vld [vmem:[#allocation6 + $0x348c] ss:$16 sps:$4 sm:$0xff]  }
 0x7ae   :  { %13669 = vmatpush1.bf16.msra.mxu1 %v21904_v59  ;;  %13584 = vmatprep.subr.bf16.mxu0 %v21909_v41  ;;  %v21988_v59 = vld [vmem:[#allocation6 + $0x3488] ss:$16 sps:$4 sm:$0xff]   ;;  %v21993_v41 = vld [vmem:[#allocation6 + $0x34a4] ss:$16 sps:$4 sm:$0xff]  }
 0x7af   :  { %13670 = vmatprep.subr.bf16.mxu1 %v21912_v20  ;;  %v21996_v20 = vld [vmem:[#allocation6 + $0x34ac] ss:$16 sps:$4 sm:$0xff]  }
 0x7b1   :  { %13585 = vmatpush1.bf16.msra.mxu0 %v21907_v22  ;;  %v21991_v22 = vld [vmem:[#allocation6 + $0x34a0] ss:$16 sps:$4 sm:$0xff]  }
 0x7b2   :  { %13671 = vmatpush1.bf16.msra.mxu1 %v21910_v48  ;;  %13586 = vmatprep.subr.bf16.mxu0 %v21915_v29  ;;  %v21994_v48 = vld [vmem:[#allocation6 + $0x34a8] ss:$16 sps:$4 sm:$0xff]   ;;  %v21999_v29 = vld [vmem:[#allocation6 + $0x34c4] ss:$16 sps:$4 sm:$0xff]  }
 0x7b3   :  { %13672 = vmatprep.subr.bf16.mxu1 %v21918_v19  ;;  %v22002_v19 = vld [vmem:[#allocation6 + $0x34cc] ss:$16 sps:$4 sm:$0xff]  }
 0x7b5   :  { %13587 = vmatpush1.bf16.msra.mxu0 %v21913_v12  ;;  %v21997_v12 = vld [vmem:[#allocation6 + $0x34c0] ss:$16 sps:$4 sm:$0xff]  }
 0x7b6   :  { %13673 = vmatpush1.bf16.msra.mxu1 %v21916_v57  ;;  %13588 = vmatprep.subr.bf16.mxu0 %v21921_v1  ;;  %v22000_v57 = vld [vmem:[#allocation6 + $0x34c8] ss:$16 sps:$4 sm:$0xff]   ;;  %v22005_v1 = vld [vmem:[#allocation6 + $0x34e4] ss:$16 sps:$4 sm:$0xff]  }
 0x7b7   :  { %13674 = vmatprep.subr.bf16.mxu1 %v21924_v58  ;;  %v22008_v58 = vld [vmem:[#allocation6 + $0x34ec] ss:$16 sps:$4 sm:$0xff]  }
 0x7b9   :  { %13589 = vmatpush1.bf16.msra.mxu0 %v21919_v24  ;;  %v22003_v24 = vld [vmem:[#allocation6 + $0x34e0] ss:$16 sps:$4 sm:$0xff]  }
 0x7ba   :  { %13675 = vmatpush1.bf16.msra.mxu1 %v21922_v6  ;;  %13590 = vmatprep.subr.bf16.mxu0 %v21927_v60  ;;  %v22006_v6 = vld [vmem:[#allocation6 + $0x34e8] ss:$16 sps:$4 sm:$0xff]   ;;  %v22011_v60 = vld [vmem:[#allocation6 + $0x3504] ss:$16 sps:$4 sm:$0xff]  }
 0x7bb   :  { %13676 = vmatprep.subr.bf16.mxu1 %v21930_v28  ;;  %v22014_v28 = vld [vmem:[#allocation6 + $0x350c] ss:$16 sps:$4 sm:$0xff]  }
 0x7bd   :  { %13591 = vmatpush1.bf16.msra.mxu0 %v21925_v31  ;;  %v22009_v31 = vld [vmem:[#allocation6 + $0x3500] ss:$16 sps:$4 sm:$0xff]  }
 0x7be   :  { %13677 = vmatpush1.bf16.msra.mxu1 %v21928_v50  ;;  %13592 = vmatprep.subr.bf16.mxu0 %v21933_v17  ;;  %v22012_v50 = vld [vmem:[#allocation6 + $0x3508] ss:$16 sps:$4 sm:$0xff]   ;;  %v22017_v17 = vld [vmem:[#allocation6 + $0x3524] ss:$16 sps:$4 sm:$0xff]  }
 0x7bf   :  { %13678 = vmatprep.subr.bf16.mxu1 %v21936_v16  ;;  %v22020_v16 = vld [vmem:[#allocation6 + $0x352c] ss:$16 sps:$4 sm:$0xff]  }
 0x7c1   :  { %13593 = vmatpush1.bf16.msra.mxu0 %v21931_v13  ;;  %v22015_v13 = vld [vmem:[#allocation6 + $0x3520] ss:$16 sps:$4 sm:$0xff]  }
 0x7c2   :  { %13679 = vmatpush1.bf16.msra.mxu1 %v21934_v44  ;;  %13594 = vmatprep.subr.bf16.mxu0 %v21939_v14  ;;  %v22018_v44 = vld [vmem:[#allocation6 + $0x3528] ss:$16 sps:$4 sm:$0xff]   ;;  %v22023_v14 = vld [vmem:[#allocation6 + $0x3544] ss:$16 sps:$4 sm:$0xff]  }
 0x7c3   :  { %13680 = vmatprep.subr.bf16.mxu1 %v21942_v7  ;;  %v22026_v7 = vld [vmem:[#allocation6 + $0x354c] ss:$16 sps:$4 sm:$0xff]  }
 0x7c5   :  { %13595 = vmatpush1.bf16.msra.mxu0 %v21937_v30  ;;  %v22021_v30 = vld [vmem:[#allocation6 + $0x3540] ss:$16 sps:$4 sm:$0xff]  }
 0x7c6   :  { %13681 = vmatpush1.bf16.msra.mxu1 %v21940_v33  ;;  %13596 = vmatprep.subr.bf16.mxu0 %v21945_v63  ;;  %v22024_v33 = vld [vmem:[#allocation6 + $0x3548] ss:$16 sps:$4 sm:$0xff]   ;;  %v22029_v63 = vld [vmem:[#allocation6 + $0x3564] ss:$16 sps:$4 sm:$0xff]  }
 0x7c7   :  { %13682 = vmatprep.subr.bf16.mxu1 %v21948_v21  ;;  %v22032_v21 = vld [vmem:[#allocation6 + $0x356c] ss:$16 sps:$4 sm:$0xff]  }
 0x7c9   :  { %13597 = vmatpush1.bf16.msra.mxu0 %v21943_v42  ;;  %v22027_v42 = vld [vmem:[#allocation6 + $0x3560] ss:$16 sps:$4 sm:$0xff]  }
 0x7ca   :  { %13683 = vmatpush1.bf16.msra.mxu1 %v21946_v5  ;;  %13598 = vmatprep.subr.bf16.mxu0 %v21951_v2  ;;  %v22030_v5 = vld [vmem:[#allocation6 + $0x3568] ss:$16 sps:$4 sm:$0xff]   ;;  %v22035_v2 = vld [vmem:[#allocation6 + $0x3584] ss:$16 sps:$4 sm:$0xff]  }
 0x7cb   :  { %13684 = vmatprep.subr.bf16.mxu1 %v21954_v45  ;;  %v22038_v45 = vld [vmem:[#allocation6 + $0x358c] ss:$16 sps:$4 sm:$0xff]  }
 0x7cd   :  { %13599 = vmatpush1.bf16.msra.mxu0 %v21949_v10  ;;  %v22033_v10 = vld [vmem:[#allocation6 + $0x3580] ss:$16 sps:$4 sm:$0xff]  }
 0x7ce   :  { %13685 = vmatpush1.bf16.msra.mxu1 %v21952_v27  ;;  %13600 = vmatprep.subr.bf16.mxu0 %v21957_v36  ;;  %v22036_v27 = vld [vmem:[#allocation6 + $0x3588] ss:$16 sps:$4 sm:$0xff]   ;;  %v22041_v36 = vld [vmem:[#allocation6 + $0x35a4] ss:$16 sps:$4 sm:$0xff]  }
 0x7cf   :  { %13686 = vmatprep.subr.bf16.mxu1 %v21960_v18  ;;  %v22044_v18 = vld [vmem:[#allocation6 + $0x35ac] ss:$16 sps:$4 sm:$0xff]  }
 0x7d1   :  { %13601 = vmatpush1.bf16.msra.mxu0 %v21955_v15  ;;  %v22039_v15 = vld [vmem:[#allocation6 + $0x35a0] ss:$16 sps:$4 sm:$0xff]  }
 0x7d2   :  { %13687 = vmatpush1.bf16.msra.mxu1 %v21958_v9  ;;  %14476 = vmatprep.subr.bf16.mxu0 %v21963_v47  ;;  %v22042_v9 = vld [vmem:[#allocation6 + $0x35a8] ss:$16 sps:$4 sm:$0xff]   ;;  %v22047_v47 = vld [vmem:[#allocation6 + $0x35c4] ss:$16 sps:$4 sm:$0xff]  }
 0x7d3   :  { %14562 = vmatprep.subr.bf16.mxu1 %v21966_v3  ;;  %v22050_v3 = vld [vmem:[#allocation6 + $0x35cc] ss:$16 sps:$4 sm:$0xff]  }
 0x7d4   :  { %13603 = vmatmul.mubr.bf16.vlgmr.msra.gmra.mrb[64].mxu0 %v24128_v25 }
 0x7d5   :  { %13689 = vmatmul.mubr.bf16.vlgmr.msra.gmra.mrb[64].mxu1 %v24128_v25  ;;  %14477 = vmatpush1.bf16.msra.mxu0 %v21961_v52  ;;  %v22045_v52 = vld [vmem:[#allocation6 + $0x35c0] ss:$16 sps:$4 sm:$0xff]   ;;  %v22056_v25 = vld [vmem:[#allocation6 + $0x35ec] ss:$16 sps:$4 sm:$0xff]  }
 0x7d6   :  { %14508 = vmatprep.mubr.bf16.mxu0 %v23739_v62  ;;  %14563 = vmatpush1.bf16.msra.mxu1 %v21964_v37  ;;  %v22048_v37 = vld [vmem:[#allocation6 + $0x35c8] ss:$16 sps:$4 sm:$0xff]  }
 0x7d7   :  { %14594 = vmatprep.mubr.bf16.mxu1 %v23739_v62  ;;  %14478 = vmatprep.subr.bf16.mxu0 %v21969_v8  ;;  %v21985_v62 = vld [vmem:[#allocation6 + $0x3480] ss:$16 sps:$4 sm:$0xff]   ;;  %v22053_v8 = vld [vmem:[#allocation6 + $0x35e4] ss:$16 sps:$4 sm:$0xff]  }
 0x7d8   :  { %14564 = vmatprep.subr.bf16.mxu1 %v21972_v23  ;;  %v22051_v23 = vld [vmem:[#allocation6 + $0x35e0] ss:$16 sps:$4 sm:$0xff]  }
 0x7d9   :  { %14479 = vmatpush1.bf16.msra.mxu0 %v21967_v0  ;;  %v22054_v0 = vld [vmem:[#allocation6 + $0x35e8] ss:$16 sps:$4 sm:$0xff]  }
 0x7da   :  { %14565 = vmatpush1.bf16.msra.mxu1 %v21970_v49  ;;  %14480 = vmatprep.subr.bf16.mxu0 %v21975_v61  ;;  %v22059_v49 = vld [vmem:[#allocation6 + $0x3604] ss:$16 sps:$4 sm:$0xff]   ;;  %v22062_v61 = vld [vmem:[#allocation6 + $0x360c] ss:$16 sps:$4 sm:$0xff]  }
 0x7db   :  { %14566 = vmatprep.subr.bf16.mxu1 %v21978_v11  ;;  %v22057_v11 = vld [vmem:[#allocation6 + $0x3600] ss:$16 sps:$4 sm:$0xff]  }
 0x7dd   :  { %14481 = vmatpush1.bf16.msra.mxu0 %v21973_v35  ;;  %v22060_v35 = vld [vmem:[#allocation6 + $0x3608] ss:$16 sps:$4 sm:$0xff]  }
 0x7de   :  { %14567 = vmatpush1.bf16.msra.mxu1 %v21976_v56  ;;  %14482 = vmatprep.subr.bf16.mxu0 %v21981_v51  ;;  %v22065_v56 = vld [vmem:[#allocation6 + $0x3624] ss:$16 sps:$4 sm:$0xff]  }
 0x7df   :  { %14568 = vmatprep.subr.bf16.mxu1 %v21984_v34  ;;  %v24129_v51 = vld [vmem:[#allocation77_spill] sm:$0xff] }
 0x7e0   :  { %v22068_v34 = vld [vmem:[#allocation6 + $0x362c] ss:$16 sps:$4 sm:$0xff]  }
 0x7e1   :  { %14483 = vmatpush1.bf16.msra.mxu0 %v21979_v38  ;;  %v22063_v38 = vld [vmem:[#allocation6 + $0x3620] ss:$16 sps:$4 sm:$0xff]  }
 0x7e2   :  { %14569 = vmatpush1.bf16.msra.mxu1 %v21982_v55  ;;  %14484 = vmatprep.subr.bf16.mxu0 %v21987_v53  ;;  %v22066_v55 = vld [vmem:[#allocation6 + $0x3628] ss:$16 sps:$4 sm:$0xff]   ;;  %v22071_v53 = vld [vmem:[#allocation6 + $0x3644] ss:$16 sps:$4 sm:$0xff]  }
 0x7e3   :  { %14570 = vmatprep.subr.bf16.mxu1 %v21990_v46  ;;  %v22074_v46 = vld [vmem:[#allocation6 + $0x364c] ss:$16 sps:$4 sm:$0xff]  }
 0x7e5   :  { %14485 = vmatpush1.bf16.msra.mxu0 %v21985_v62  ;;  %v22069_v62 = vld [vmem:[#allocation6 + $0x3640] ss:$16 sps:$4 sm:$0xff]  }
 0x7e6   :  { %14571 = vmatpush1.bf16.msra.mxu1 %v21988_v59  ;;  %14486 = vmatprep.subr.bf16.mxu0 %v21993_v41  ;;  %v22072_v59 = vld [vmem:[#allocation6 + $0x3648] ss:$16 sps:$4 sm:$0xff]   ;;  %v22077_v41 = vld [vmem:[#allocation6 + $0x3664] ss:$16 sps:$4 sm:$0xff]  }
 0x7e7   :  { %14572 = vmatprep.subr.bf16.mxu1 %v21996_v20  ;;  %v22080_v20 = vld [vmem:[#allocation6 + $0x366c] ss:$16 sps:$4 sm:$0xff]  }
 0x7e9   :  { %14487 = vmatpush1.bf16.msra.mxu0 %v21991_v22  ;;  %v22075_v22 = vld [vmem:[#allocation6 + $0x3660] ss:$16 sps:$4 sm:$0xff]  }
 0x7ea   :  { %14573 = vmatpush1.bf16.msra.mxu1 %v21994_v48  ;;  %14488 = vmatprep.subr.bf16.mxu0 %v21999_v29  ;;  %v22078_v48 = vld [vmem:[#allocation6 + $0x3668] ss:$16 sps:$4 sm:$0xff]   ;;  %v22083_v29 = vld [vmem:[#allocation6 + $0x3684] ss:$16 sps:$4 sm:$0xff]  }
 0x7eb   :  { %14574 = vmatprep.subr.bf16.mxu1 %v22002_v19  ;;  %v22086_v19 = vld [vmem:[#allocation6 + $0x368c] ss:$16 sps:$4 sm:$0xff]  }
 0x7ed   :  { %14489 = vmatpush1.bf16.msra.mxu0 %v21997_v12  ;;  %v22084_v12 = vld [vmem:[#allocation6 + $0x3688] ss:$16 sps:$4 sm:$0xff]  }
 0x7ee   :  { %14575 = vmatpush1.bf16.msra.mxu1 %v22000_v57  ;;  %14490 = vmatprep.subr.bf16.mxu0 %v22005_v1  ;;  %v22089_v57 = vld [vmem:[#allocation6 + $0x36a4] ss:$16 sps:$4 sm:$0xff]   ;;  %v22092_v1 = vld [vmem:[#allocation6 + $0x36ac] ss:$16 sps:$4 sm:$0xff]  }
 0x7ef   :  { %14576 = vmatprep.subr.bf16.mxu1 %v22008_v58  ;;  %v22087_v58 = vld [vmem:[#allocation6 + $0x36a0] ss:$16 sps:$4 sm:$0xff]  }
 0x7f1   :  { %14491 = vmatpush1.bf16.msra.mxu0 %v22003_v24  ;;  %v22090_v24 = vld [vmem:[#allocation6 + $0x36a8] ss:$16 sps:$4 sm:$0xff]  }
 0x7f2   :  { %14577 = vmatpush1.bf16.msra.mxu1 %v22006_v6  ;;  %14492 = vmatprep.subr.bf16.mxu0 %v22011_v60  ;;  %v22095_v6 = vld [vmem:[#allocation6 + $0x36c4] ss:$16 sps:$4 sm:$0xff]   ;;  %v22098_v60 = vld [vmem:[#allocation6 + $0x36cc] ss:$16 sps:$4 sm:$0xff]  }
 0x7f3   :  { %14578 = vmatprep.subr.bf16.mxu1 %v22014_v28  ;;  %v22093_v28 = vld [vmem:[#allocation6 + $0x36c0] ss:$16 sps:$4 sm:$0xff]  }
 0x7f5   :  { %14493 = vmatpush1.bf16.msra.mxu0 %v22009_v31  ;;  %v22096_v31 = vld [vmem:[#allocation6 + $0x36c8] ss:$16 sps:$4 sm:$0xff]  }
 0x7f6   :  { %14579 = vmatpush1.bf16.msra.mxu1 %v22012_v50  ;;  %14494 = vmatprep.subr.bf16.mxu0 %v22017_v17  ;;  %v22101_v50 = vld [vmem:[#allocation6 + $0x36e4] ss:$16 sps:$4 sm:$0xff]   ;;  %v22104_v17 = vld [vmem:[#allocation6 + $0x36ec] ss:$16 sps:$4 sm:$0xff]  }
 0x7f7   :  { %14580 = vmatprep.subr.bf16.mxu1 %v22020_v16  ;;  %v22099_v16 = vld [vmem:[#allocation6 + $0x36e0] ss:$16 sps:$4 sm:$0xff]  }
 0x7f9   :  { %14495 = vmatpush1.bf16.msra.mxu0 %v22015_v13  ;;  %v22102_v13 = vld [vmem:[#allocation6 + $0x36e8] ss:$16 sps:$4 sm:$0xff]  }
 0x7fa   :  { %14581 = vmatpush1.bf16.msra.mxu1 %v22018_v44  ;;  %14496 = vmatprep.subr.bf16.mxu0 %v22023_v14  ;;  %v22107_v44 = vld [vmem:[#allocation6 + $0x3704] ss:$16 sps:$4 sm:$0xff]   ;;  %v22110_v14 = vld [vmem:[#allocation6 + $0x370c] ss:$16 sps:$4 sm:$0xff]  }
 0x7fb   :  { %14582 = vmatprep.subr.bf16.mxu1 %v22026_v7  ;;  %v22105_v7 = vld [vmem:[#allocation6 + $0x3700] ss:$16 sps:$4 sm:$0xff]  }
 0x7fd   :  { %14497 = vmatpush1.bf16.msra.mxu0 %v22021_v30  ;;  %v22108_v30 = vld [vmem:[#allocation6 + $0x3708] ss:$16 sps:$4 sm:$0xff]  }
 0x7fe   :  { %14583 = vmatpush1.bf16.msra.mxu1 %v22024_v33  ;;  %14498 = vmatprep.subr.bf16.mxu0 %v22029_v63  ;;  %v22113_v33 = vld [vmem:[#allocation6 + $0x3724] ss:$16 sps:$4 sm:$0xff]   ;;  %v22116_v63 = vld [vmem:[#allocation6 + $0x372c] ss:$16 sps:$4 sm:$0xff]  }
 0x7ff   :  { %14584 = vmatprep.subr.bf16.mxu1 %v22032_v21  ;;  %v22111_v21 = vld [vmem:[#allocation6 + $0x3720] ss:$16 sps:$4 sm:$0xff]  }
 0x801   :  { %14499 = vmatpush1.bf16.msra.mxu0 %v22027_v42  ;;  %v22114_v42 = vld [vmem:[#allocation6 + $0x3728] ss:$16 sps:$4 sm:$0xff]  }
 0x802   :  { %14585 = vmatpush1.bf16.msra.mxu1 %v22030_v5  ;;  %14500 = vmatprep.subr.bf16.mxu0 %v22035_v2  ;;  %v22119_v5 = vld [vmem:[#allocation6 + $0x3744] ss:$16 sps:$4 sm:$0xff]   ;;  %v22122_v2 = vld [vmem:[#allocation6 + $0x374c] ss:$16 sps:$4 sm:$0xff]  }
 0x803   :  { %14586 = vmatprep.subr.bf16.mxu1 %v22038_v45  ;;  %v22117_v45 = vld [vmem:[#allocation6 + $0x3740] ss:$16 sps:$4 sm:$0xff]  }
 0x805   :  { %14501 = vmatpush1.bf16.msra.mxu0 %v22033_v10  ;;  %v22120_v10 = vld [vmem:[#allocation6 + $0x3748] ss:$16 sps:$4 sm:$0xff]  }
 0x806   :  { %14587 = vmatpush1.bf16.msra.mxu1 %v22036_v27  ;;  %14502 = vmatprep.subr.bf16.mxu0 %v22041_v36  ;;  %v22125_v27 = vld [vmem:[#allocation6 + $0x3764] ss:$16 sps:$4 sm:$0xff]   ;;  %v22128_v36 = vld [vmem:[#allocation6 + $0x376c] ss:$16 sps:$4 sm:$0xff]  }
 0x807   :  { %14588 = vmatprep.subr.bf16.mxu1 %v22044_v18  ;;  %v22123_v18 = vld [vmem:[#allocation6 + $0x3760] ss:$16 sps:$4 sm:$0xff]  }
 0x809   :  { %14503 = vmatpush1.bf16.msra.mxu0 %v22039_v15  ;;  %v22126_v15 = vld [vmem:[#allocation6 + $0x3768] ss:$16 sps:$4 sm:$0xff]  }
 0x80a   :  { %14589 = vmatpush1.bf16.msra.mxu1 %v22042_v9  ;;  %14504 = vmatprep.subr.bf16.mxu0 %v22047_v47  ;;  %v22131_v9 = vld [vmem:[#allocation6 + $0x3784] ss:$16 sps:$4 sm:$0xff]   ;;  %v22134_v47 = vld [vmem:[#allocation6 + $0x378c] ss:$16 sps:$4 sm:$0xff]  }
 0x80b   :  { %14590 = vmatprep.subr.bf16.mxu1 %v22050_v3  ;;  %v22129_v3 = vld [vmem:[#allocation6 + $0x3780] ss:$16 sps:$4 sm:$0xff]  }
 0x80d   :  { %14505 = vmatpush1.bf16.msra.mxu0 %v22045_v52  ;;  %v22132_v52 = vld [vmem:[#allocation6 + $0x3788] ss:$16 sps:$4 sm:$0xff]  }
 0x80e   :  { %14591 = vmatpush1.bf16.msra.mxu1 %v22048_v37  ;;  %14506 = vmatprep.subr.bf16.mxu0 %v22053_v8  ;;  %v22137_v37 = vld [vmem:[#allocation6 + $0x37a4] ss:$16 sps:$4 sm:$0xff]   ;;  %v22140_v8 = vld [vmem:[#allocation6 + $0x37ac] ss:$16 sps:$4 sm:$0xff]  }
 0x80f   :  { %14592 = vmatprep.subr.bf16.mxu1 %v22056_v25  ;;  %v22135_v25 = vld [vmem:[#allocation6 + $0x37a0] ss:$16 sps:$4 sm:$0xff]  }
 0x811   :  { %14507 = vmatpush1.bf16.msra.mxu0 %v22051_v23  ;;  %v22138_v23 = vld [vmem:[#allocation6 + $0x37a8] ss:$16 sps:$4 sm:$0xff]  }
 0x812   :  { %14593 = vmatpush1.bf16.msra.mxu1 %v22054_v0  ;;  %14519 = vmatprep.subr.bf16.mxu0 %v22059_v49  ;;  %v22143_v0 = vld [vmem:[#allocation6 + $0x37c4] ss:$16 sps:$4 sm:$0xff]   ;;  %v22146_v49 = vld [vmem:[#allocation6 + $0x37cc] ss:$16 sps:$4 sm:$0xff]  }
 0x813   :  { %14605 = vmatprep.subr.bf16.mxu1 %v22062_v61  ;;  %v22141_v61 = vld [vmem:[#allocation6 + $0x37c0] ss:$16 sps:$4 sm:$0xff]  }
 0x814   :  { %14509 = vmatmul.mubr.bf16.vlgmr.msra.gmra.mrb[64].mxu0 %v24129_v51 }
 0x815   :  { %14595 = vmatmul.mubr.bf16.vlgmr.msra.gmra.mrb[64].mxu1 %v24129_v51  ;;  %14520 = vmatpush1.bf16.msra.mxu0 %v22057_v11  ;;  %v22144_v11 = vld [vmem:[#allocation6 + $0x37c8] ss:$16 sps:$4 sm:$0xff]   ;;  %v22147_v51 = vld [vmem:[#allocation6 + $0x37e0] ss:$16 sps:$4 sm:$0xff]  }
 0x816   :  { %14551 = vmatprep.mubr.bf16.mxu0 %v23741_v40  ;;  %14606 = vmatpush1.bf16.msra.mxu1 %v22060_v35  ;;  %v22149_v35 = vld [vmem:[#allocation6 + $0x37e4] ss:$16 sps:$4 sm:$0xff]  }
 0x817   :  { %14637 = vmatprep.mubr.bf16.mxu1 %v23741_v40  ;;  %14521 = vmatprep.subr.bf16.mxu0 %v22065_v56  ;;  %v22081_v40 = vld [vmem:[#allocation6 + $0x3680] ss:$16 sps:$4 sm:$0xff]   ;;  %v22152_v56 = vld [vmem:[#allocation6 + $0x37ec] ss:$16 sps:$4 sm:$0xff]  }
 0x818   :  { %14607 = vmatprep.subr.bf16.mxu1 %v22068_v34  ;;  %v22150_v34 = vld [vmem:[#allocation6 + $0x37e8] ss:$16 sps:$4 sm:$0xff]  }
 0x819   :  { %14522 = vmatpush1.bf16.msra.mxu0 %v22063_v38  ;;  %v22155_v38 = vld [vmem:[#allocation6 + $0x3804] ss:$16 sps:$4 sm:$0xff]  }
 0x81a   :  { %14608 = vmatpush1.bf16.msra.mxu1 %v22066_v55  ;;  %14523 = vmatprep.subr.bf16.mxu0 %v22071_v53  ;;  %v22158_v55 = vld [vmem:[#allocation6 + $0x380c] ss:$16 sps:$4 sm:$0xff]   ;;  %v22153_v53 = vld [vmem:[#allocation6 + $0x3800] ss:$16 sps:$4 sm:$0xff]  }
 0x81b   :  { %14609 = vmatprep.subr.bf16.mxu1 %v22074_v46  ;;  %v22156_v46 = vld [vmem:[#allocation6 + $0x3808] ss:$16 sps:$4 sm:$0xff]  }
 0x81d   :  { %14524 = vmatpush1.bf16.msra.mxu0 %v22069_v62  ;;  %v22161_v62 = vld [vmem:[#allocation6 + $0x3824] ss:$16 sps:$4 sm:$0xff]  }
 0x81e   :  { %14610 = vmatpush1.bf16.msra.mxu1 %v22072_v59  ;;  %14525 = vmatprep.subr.bf16.mxu0 %v22077_v41  ;;  %v24130_v59 = vld [vmem:[#allocation33_spill] sm:$0xff] }
 0x81f   :  { %14611 = vmatprep.subr.bf16.mxu1 %v22080_v20  ;;  %v22164_v41 = vld [vmem:[#allocation6 + $0x382c] ss:$16 sps:$4 sm:$0xff]   ;;  %v22159_v20 = vld [vmem:[#allocation6 + $0x3820] ss:$16 sps:$4 sm:$0xff]  }
 0x821   :  { %14526 = vmatpush1.bf16.msra.mxu0 %v22075_v22  ;;  %v22162_v22 = vld [vmem:[#allocation6 + $0x3828] ss:$16 sps:$4 sm:$0xff]  }
 0x822   :  { %14612 = vmatpush1.bf16.msra.mxu1 %v22078_v48  ;;  %14527 = vmatprep.subr.bf16.mxu0 %v22083_v29  ;;  %v22167_v48 = vld [vmem:[#allocation6 + $0x3844] ss:$16 sps:$4 sm:$0xff]   ;;  %v22170_v29 = vld [vmem:[#allocation6 + $0x384c] ss:$16 sps:$4 sm:$0xff]  }
 0x823   :  { %14613 = vmatprep.subr.bf16.mxu1 %v22086_v19  ;;  %v22165_v19 = vld [vmem:[#allocation6 + $0x3840] ss:$16 sps:$4 sm:$0xff]  }
 0x825   :  { %14528 = vmatpush1.bf16.msra.mxu0 %v22081_v40  ;;  %v22168_v40 = vld [vmem:[#allocation6 + $0x3848] ss:$16 sps:$4 sm:$0xff]  }
 0x826   :  { %14614 = vmatpush1.bf16.msra.mxu1 %v22084_v12  ;;  %14529 = vmatprep.subr.bf16.mxu0 %v22089_v57  ;;  %v22173_v12 = vld [vmem:[#allocation6 + $0x3864] ss:$16 sps:$4 sm:$0xff]   ;;  %v22176_v57 = vld [vmem:[#allocation6 + $0x386c] ss:$16 sps:$4 sm:$0xff]  }
 0x827   :  { %14615 = vmatprep.subr.bf16.mxu1 %v22092_v1  ;;  %v22171_v1 = vld [vmem:[#allocation6 + $0x3860] ss:$16 sps:$4 sm:$0xff]  }
 0x829   :  { %14530 = vmatpush1.bf16.msra.mxu0 %v22087_v58  ;;  %v22174_v58 = vld [vmem:[#allocation6 + $0x3868] ss:$16 sps:$4 sm:$0xff]  }
 0x82a   :  { %14616 = vmatpush1.bf16.msra.mxu1 %v22090_v24  ;;  %14531 = vmatprep.subr.bf16.mxu0 %v22095_v6  ;;  %v22179_v24 = vld [vmem:[#allocation6 + $0x3884] ss:$16 sps:$4 sm:$0xff]   ;;  %v22182_v6 = vld [vmem:[#allocation6 + $0x388c] ss:$16 sps:$4 sm:$0xff]  }
 0x82b   :  { %14617 = vmatprep.subr.bf16.mxu1 %v22098_v60  ;;  %v22180_v60 = vld [vmem:[#allocation6 + $0x3888] ss:$16 sps:$4 sm:$0xff]  }
 0x82d   :  { %14532 = vmatpush1.bf16.msra.mxu0 %v22093_v28  ;;  %v22185_v28 = vld [vmem:[#allocation6 + $0x38a4] ss:$16 sps:$4 sm:$0xff]  }
 0x82e   :  { %14618 = vmatpush1.bf16.msra.mxu1 %v22096_v31  ;;  %14533 = vmatprep.subr.bf16.mxu0 %v22101_v50  ;;  %v22188_v31 = vld [vmem:[#allocation6 + $0x38ac] ss:$16 sps:$4 sm:$0xff]   ;;  %v22183_v50 = vld [vmem:[#allocation6 + $0x38a0] ss:$16 sps:$4 sm:$0xff]  }
 0x82f   :  { %14619 = vmatprep.subr.bf16.mxu1 %v22104_v17  ;;  %v22186_v17 = vld [vmem:[#allocation6 + $0x38a8] ss:$16 sps:$4 sm:$0xff]  }
 0x831   :  { %14534 = vmatpush1.bf16.msra.mxu0 %v22099_v16  ;;  %v22191_v16 = vld [vmem:[#allocation6 + $0x38c4] ss:$16 sps:$4 sm:$0xff]  }
 0x832   :  { %14620 = vmatpush1.bf16.msra.mxu1 %v22102_v13  ;;  %14535 = vmatprep.subr.bf16.mxu0 %v22107_v44  ;;  %v22194_v13 = vld [vmem:[#allocation6 + $0x38cc] ss:$16 sps:$4 sm:$0xff]   ;;  %v22189_v44 = vld [vmem:[#allocation6 + $0x38c0] ss:$16 sps:$4 sm:$0xff]  }
 0x833   :  { %14621 = vmatprep.subr.bf16.mxu1 %v22110_v14  ;;  %v22192_v14 = vld [vmem:[#allocation6 + $0x38c8] ss:$16 sps:$4 sm:$0xff]  }
 0x835   :  { %14536 = vmatpush1.bf16.msra.mxu0 %v22105_v7  ;;  %v22197_v7 = vld [vmem:[#allocation6 + $0x38e4] ss:$16 sps:$4 sm:$0xff]  }
 0x836   :  { %14622 = vmatpush1.bf16.msra.mxu1 %v22108_v30  ;;  %14537 = vmatprep.subr.bf16.mxu0 %v22113_v33  ;;  %v22200_v30 = vld [vmem:[#allocation6 + $0x38ec] ss:$16 sps:$4 sm:$0xff]   ;;  %v22195_v33 = vld [vmem:[#allocation6 + $0x38e0] ss:$16 sps:$4 sm:$0xff]  }
 0x837   :  { %14623 = vmatprep.subr.bf16.mxu1 %v22116_v63  ;;  %v22198_v63 = vld [vmem:[#allocation6 + $0x38e8] ss:$16 sps:$4 sm:$0xff]  }
 0x839   :  { %14538 = vmatpush1.bf16.msra.mxu0 %v22111_v21  ;;  %v22203_v21 = vld [vmem:[#allocation6 + $0x3904] ss:$16 sps:$4 sm:$0xff]  }
 0x83a   :  { %14624 = vmatpush1.bf16.msra.mxu1 %v22114_v42  ;;  %14539 = vmatprep.subr.bf16.mxu0 %v22119_v5  ;;  %v22206_v42 = vld [vmem:[#allocation6 + $0x390c] ss:$16 sps:$4 sm:$0xff]   ;;  %v22201_v5 = vld [vmem:[#allocation6 + $0x3900] ss:$16 sps:$4 sm:$0xff]  }
 0x83b   :  { %14625 = vmatprep.subr.bf16.mxu1 %v22122_v2  ;;  %v22204_v2 = vld [vmem:[#allocation6 + $0x3908] ss:$16 sps:$4 sm:$0xff]  }
 0x83d   :  { %14540 = vmatpush1.bf16.msra.mxu0 %v22117_v45  ;;  %v22209_v45 = vld [vmem:[#allocation6 + $0x3924] ss:$16 sps:$4 sm:$0xff]  }
 0x83e   :  { %14626 = vmatpush1.bf16.msra.mxu1 %v22120_v10  ;;  %14541 = vmatprep.subr.bf16.mxu0 %v22125_v27  ;;  %v22212_v10 = vld [vmem:[#allocation6 + $0x392c] ss:$16 sps:$4 sm:$0xff]   ;;  %v22207_v27 = vld [vmem:[#allocation6 + $0x3920] ss:$16 sps:$4 sm:$0xff]  }
 0x83f   :  { %14627 = vmatprep.subr.bf16.mxu1 %v22128_v36  ;;  %v22210_v36 = vld [vmem:[#allocation6 + $0x3928] ss:$16 sps:$4 sm:$0xff]  }
 0x841   :  { %14542 = vmatpush1.bf16.msra.mxu0 %v22123_v18  ;;  %v22215_v18 = vld [vmem:[#allocation6 + $0x3944] ss:$16 sps:$4 sm:$0xff]  }
 0x842   :  { %14628 = vmatpush1.bf16.msra.mxu1 %v22126_v15  ;;  %14543 = vmatprep.subr.bf16.mxu0 %v22131_v9  ;;  %v22218_v15 = vld [vmem:[#allocation6 + $0x394c] ss:$16 sps:$4 sm:$0xff]   ;;  %v22213_v9 = vld [vmem:[#allocation6 + $0x3940] ss:$16 sps:$4 sm:$0xff]  }
 0x843   :  { %14629 = vmatprep.subr.bf16.mxu1 %v22134_v47  ;;  %v22216_v47 = vld [vmem:[#allocation6 + $0x3948] ss:$16 sps:$4 sm:$0xff]  }
 0x845   :  { %14544 = vmatpush1.bf16.msra.mxu0 %v22129_v3  ;;  %v22221_v3 = vld [vmem:[#allocation6 + $0x3964] ss:$16 sps:$4 sm:$0xff]  }
 0x846   :  { %14630 = vmatpush1.bf16.msra.mxu1 %v22132_v52  ;;  %14545 = vmatprep.subr.bf16.mxu0 %v22137_v37  ;;  %v22224_v52 = vld [vmem:[#allocation6 + $0x396c] ss:$16 sps:$4 sm:$0xff]   ;;  %v22219_v37 = vld [vmem:[#allocation6 + $0x3960] ss:$16 sps:$4 sm:$0xff]  }
 0x847   :  { %14631 = vmatprep.subr.bf16.mxu1 %v22140_v8  ;;  %v22222_v8 = vld [vmem:[#allocation6 + $0x3968] ss:$16 sps:$4 sm:$0xff]  }
 0x849   :  { %14546 = vmatpush1.bf16.msra.mxu0 %v22135_v25  ;;  %v22227_v25 = vld [vmem:[#allocation6 + $0x3984] ss:$16 sps:$4 sm:$0xff]  }
 0x84a   :  { %14632 = vmatpush1.bf16.msra.mxu1 %v22138_v23  ;;  %14547 = vmatprep.subr.bf16.mxu0 %v22143_v0  ;;  %v22230_v23 = vld [vmem:[#allocation6 + $0x398c] ss:$16 sps:$4 sm:$0xff]   ;;  %v22225_v0 = vld [vmem:[#allocation6 + $0x3980] ss:$16 sps:$4 sm:$0xff]  }
 0x84b   :  { %14633 = vmatprep.subr.bf16.mxu1 %v22146_v49  ;;  %v22228_v49 = vld [vmem:[#allocation6 + $0x3988] ss:$16 sps:$4 sm:$0xff]  }
 0x84d   :  { %14548 = vmatpush1.bf16.msra.mxu0 %v22141_v61  ;;  %v22233_v61 = vld [vmem:[#allocation6 + $0x39a4] ss:$16 sps:$4 sm:$0xff]  }
 0x84e   :  { %14634 = vmatpush1.bf16.msra.mxu1 %v22144_v11  ;;  %14549 = vmatprep.subr.bf16.mxu0 %v22149_v35  ;;  %v22236_v11 = vld [vmem:[#allocation6 + $0x39ac] ss:$16 sps:$4 sm:$0xff]   ;;  %v22231_v35 = vld [vmem:[#allocation6 + $0x39a0] ss:$16 sps:$4 sm:$0xff]  }
 0x84f   :  { %14635 = vmatprep.subr.bf16.mxu1 %v22152_v56  ;;  %v22234_v56 = vld [vmem:[#allocation6 + $0x39a8] ss:$16 sps:$4 sm:$0xff]  }
 0x851   :  { %14550 = vmatpush1.bf16.msra.mxu0 %v22147_v51  ;;  %v22239_v51 = vld [vmem:[#allocation6 + $0x39c4] ss:$16 sps:$4 sm:$0xff]  }
 0x852   :  { %14636 = vmatpush1.bf16.msra.mxu1 %v22150_v34  ;;  %15425 = vmatprep.subr.bf16.mxu0 %v22155_v38  ;;  %v22242_v34 = vld [vmem:[#allocation6 + $0x39cc] ss:$16 sps:$4 sm:$0xff]   ;;  %v22237_v38 = vld [vmem:[#allocation6 + $0x39c0] ss:$16 sps:$4 sm:$0xff]  }
 0x853   :  { %15511 = vmatprep.subr.bf16.mxu1 %v22158_v55  ;;  %v22240_v55 = vld [vmem:[#allocation6 + $0x39c8] ss:$16 sps:$4 sm:$0xff]  }
 0x854   :  { %14552 = vmatmul.mubr.bf16.vlgmr.msra.gmra.mrb[64].mxu0 %v24130_v59 }
 0x855   :  { %14638 = vmatmul.mubr.bf16.vlgmr.msra.gmra.mrb[64].mxu1 %v24130_v59  ;;  %15426 = vmatpush1.bf16.msra.mxu0 %v22153_v53  ;;  %v22245_v53 = vld [vmem:[#allocation6 + $0x39e4] ss:$16 sps:$4 sm:$0xff]   ;;  %v22246_v59 = vld [vmem:[#allocation6 + $0x39e8] ss:$16 sps:$4 sm:$0xff]  }
 0x856   :  { %15457 = vmatprep.mubr.bf16.mxu0 %v23763_v26  ;;  %15512 = vmatpush1.bf16.msra.mxu1 %v22156_v46  ;;  %v22248_v46 = vld [vmem:[#allocation6 + $0x39ec] ss:$16 sps:$4 sm:$0xff]  }
 0x857   :  { %15543 = vmatprep.mubr.bf16.mxu1 %v23763_v26  ;;  %15427 = vmatprep.subr.bf16.mxu0 %v22161_v62  ;;  %v22177_v26 = vld [vmem:[#allocation6 + $0x3880] ss:$16 sps:$4 sm:$0xff]  }
 0x858   :  { %15513 = vmatprep.subr.bf16.mxu1 %v22164_v41  ;;  %v22243_v62 = vld [vmem:[#allocation6 + $0x39e0] ss:$16 sps:$4 sm:$0xff]   ;;  %v22251_v41 = vld [vmem:[#allocation6 + $0x3a04] ss:$16 sps:$4 sm:$0xff]  }
 0x859   :  { %15428 = vmatpush1.bf16.msra.mxu0 %v22159_v20  ;;  %v22254_v20 = vld [vmem:[#allocation6 + $0x3a0c] ss:$16 sps:$4 sm:$0xff]  }
 0x85a   :  { %15514 = vmatpush1.bf16.msra.mxu1 %v22162_v22  ;;  %15429 = vmatprep.subr.bf16.mxu0 %v22167_v48  ;;  %v22249_v22 = vld [vmem:[#allocation6 + $0x3a00] ss:$16 sps:$4 sm:$0xff]   ;;  %v22252_v48 = vld [vmem:[#allocation6 + $0x3a08] ss:$16 sps:$4 sm:$0xff]  }
 0x85b   :  { %15515 = vmatprep.subr.bf16.mxu1 %v22170_v29  ;;  %v22257_v29 = vld [vmem:[#allocation6 + $0x3a24] ss:$16 sps:$4 sm:$0xff]  }
 0x85d   :  { %15430 = vmatpush1.bf16.msra.mxu0 %v22165_v19  ;;  %v24131_v19 = vld [vmem:[#allocation43_spill] sm:$0xff] }
 0x85e   :  { %15516 = vmatpush1.bf16.msra.mxu1 %v22168_v40  ;;  %15431 = vmatprep.subr.bf16.mxu0 %v22173_v12  ;;  %v22260_v40 = vld [vmem:[#allocation6 + $0x3a2c] ss:$16 sps:$4 sm:$0xff]   ;;  %v22255_v12 = vld [vmem:[#allocation6 + $0x3a20] ss:$16 sps:$4 sm:$0xff]  }
 0x85f   :  { %15517 = vmatprep.subr.bf16.mxu1 %v22176_v57  ;;  %v22258_v57 = vld [vmem:[#allocation6 + $0x3a28] ss:$16 sps:$4 sm:$0xff]  }
 0x861   :  { %15432 = vmatpush1.bf16.msra.mxu0 %v22171_v1  ;;  %v22263_v1 = vld [vmem:[#allocation6 + $0x3a44] ss:$16 sps:$4 sm:$0xff]  }
 0x862   :  { %15518 = vmatpush1.bf16.msra.mxu1 %v22174_v58  ;;  %15433 = vmatprep.subr.bf16.mxu0 %v22179_v24  ;;  %v22266_v58 = vld [vmem:[#allocation6 + $0x3a4c] ss:$16 sps:$4 sm:$0xff]   ;;  %v22261_v24 = vld [vmem:[#allocation6 + $0x3a40] ss:$16 sps:$4 sm:$0xff]  }
 0x863   :  { %15519 = vmatprep.subr.bf16.mxu1 %v22182_v6  ;;  %v22264_v6 = vld [vmem:[#allocation6 + $0x3a48] ss:$16 sps:$4 sm:$0xff]  }
 0x865   :  { %15434 = vmatpush1.bf16.msra.mxu0 %v22177_v26  ;;  %v22269_v26 = vld [vmem:[#allocation6 + $0x3a64] ss:$16 sps:$4 sm:$0xff]  }
 0x866   :  { %15520 = vmatpush1.bf16.msra.mxu1 %v22180_v60  ;;  %15435 = vmatprep.subr.bf16.mxu0 %v22185_v28  ;;  %v22272_v60 = vld [vmem:[#allocation6 + $0x3a6c] ss:$16 sps:$4 sm:$0xff]   ;;  %v22267_v28 = vld [vmem:[#allocation6 + $0x3a60] ss:$16 sps:$4 sm:$0xff]  }
 0x867   :  { %15521 = vmatprep.subr.bf16.mxu1 %v22188_v31  ;;  %v22270_v31 = vld [vmem:[#allocation6 + $0x3a68] ss:$16 sps:$4 sm:$0xff]  }
 0x869   :  { %15436 = vmatpush1.bf16.msra.mxu0 %v22183_v50  ;;  %v22275_v50 = vld [vmem:[#allocation6 + $0x3a84] ss:$16 sps:$4 sm:$0xff]  }
 0x86a   :  { %15522 = vmatpush1.bf16.msra.mxu1 %v22186_v17  ;;  %15437 = vmatprep.subr.bf16.mxu0 %v22191_v16  ;;  %v22278_v17 = vld [vmem:[#allocation6 + $0x3a8c] ss:$16 sps:$4 sm:$0xff]   ;;  %v22276_v16 = vld [vmem:[#allocation6 + $0x3a88] ss:$16 sps:$4 sm:$0xff]  }
 0x86b   :  { %15523 = vmatprep.subr.bf16.mxu1 %v22194_v13  ;;  %v22281_v13 = vld [vmem:[#allocation6 + $0x3aa4] ss:$16 sps:$4 sm:$0xff]  }
 0x86d   :  { %15438 = vmatpush1.bf16.msra.mxu0 %v22189_v44  ;;  %v22284_v44 = vld [vmem:[#allocation6 + $0x3aac] ss:$16 sps:$4 sm:$0xff]  }
 0x86e   :  { %15524 = vmatpush1.bf16.msra.mxu1 %v22192_v14  ;;  %15439 = vmatprep.subr.bf16.mxu0 %v22197_v7  ;;  %v22279_v14 = vld [vmem:[#allocation6 + $0x3aa0] ss:$16 sps:$4 sm:$0xff]   ;;  %v22282_v7 = vld [vmem:[#allocation6 + $0x3aa8] ss:$16 sps:$4 sm:$0xff]  }
 0x86f   :  { %15525 = vmatprep.subr.bf16.mxu1 %v22200_v30  ;;  %v22287_v30 = vld [vmem:[#allocation6 + $0x3ac4] ss:$16 sps:$4 sm:$0xff]  }
 0x871   :  { %15440 = vmatpush1.bf16.msra.mxu0 %v22195_v33  ;;  %v22290_v33 = vld [vmem:[#allocation6 + $0x3acc] ss:$16 sps:$4 sm:$0xff]  }
 0x872   :  { %15526 = vmatpush1.bf16.msra.mxu1 %v22198_v63  ;;  %15441 = vmatprep.subr.bf16.mxu0 %v22203_v21  ;;  %v22285_v63 = vld [vmem:[#allocation6 + $0x3ac0] ss:$16 sps:$4 sm:$0xff]   ;;  %v22288_v21 = vld [vmem:[#allocation6 + $0x3ac8] ss:$16 sps:$4 sm:$0xff]  }
 0x873   :  { %15527 = vmatprep.subr.bf16.mxu1 %v22206_v42  ;;  %v22293_v42 = vld [vmem:[#allocation6 + $0x3ae4] ss:$16 sps:$4 sm:$0xff]  }
 0x875   :  { %15442 = vmatpush1.bf16.msra.mxu0 %v22201_v5  ;;  %v22296_v5 = vld [vmem:[#allocation6 + $0x3aec] ss:$16 sps:$4 sm:$0xff]  }
 0x876   :  { %15528 = vmatpush1.bf16.msra.mxu1 %v22204_v2  ;;  %15443 = vmatprep.subr.bf16.mxu0 %v22209_v45  ;;  %v22291_v2 = vld [vmem:[#allocation6 + $0x3ae0] ss:$16 sps:$4 sm:$0xff]   ;;  %v22294_v45 = vld [vmem:[#allocation6 + $0x3ae8] ss:$16 sps:$4 sm:$0xff]  }
 0x877   :  { %15529 = vmatprep.subr.bf16.mxu1 %v22212_v10  ;;  %v22299_v10 = vld [vmem:[#allocation6 + $0x3b04] ss:$16 sps:$4 sm:$0xff]  }
 0x879   :  { %15444 = vmatpush1.bf16.msra.mxu0 %v22207_v27  ;;  %v22302_v27 = vld [vmem:[#allocation6 + $0x3b0c] ss:$16 sps:$4 sm:$0xff]  }
 0x87a   :  { %15530 = vmatpush1.bf16.msra.mxu1 %v22210_v36  ;;  %15445 = vmatprep.subr.bf16.mxu0 %v22215_v18  ;;  %v22297_v36 = vld [vmem:[#allocation6 + $0x3b00] ss:$16 sps:$4 sm:$0xff]   ;;  %v22300_v18 = vld [vmem:[#allocation6 + $0x3b08] ss:$16 sps:$4 sm:$0xff]  }
 0x87b   :  { %15531 = vmatprep.subr.bf16.mxu1 %v22218_v15  ;;  %v22305_v15 = vld [vmem:[#allocation6 + $0x3b24] ss:$16 sps:$4 sm:$0xff]  }
 0x87d   :  { %15446 = vmatpush1.bf16.msra.mxu0 %v22213_v9  ;;  %v22308_v9 = vld [vmem:[#allocation6 + $0x3b2c] ss:$16 sps:$4 sm:$0xff]  }
 0x87e   :  { %15532 = vmatpush1.bf16.msra.mxu1 %v22216_v47  ;;  %15447 = vmatprep.subr.bf16.mxu0 %v22221_v3  ;;  %v22303_v47 = vld [vmem:[#allocation6 + $0x3b20] ss:$16 sps:$4 sm:$0xff]   ;;  %v22306_v3 = vld [vmem:[#allocation6 + $0x3b28] ss:$16 sps:$4 sm:$0xff]  }
 0x87f   :  { %15533 = vmatprep.subr.bf16.mxu1 %v22224_v52  ;;  %v22311_v52 = vld [vmem:[#allocation6 + $0x3b44] ss:$16 sps:$4 sm:$0xff]  }
 0x881   :  { %15448 = vmatpush1.bf16.msra.mxu0 %v22219_v37  ;;  %v22314_v37 = vld [vmem:[#allocation6 + $0x3b4c] ss:$16 sps:$4 sm:$0xff]  }
 0x882   :  { %15534 = vmatpush1.bf16.msra.mxu1 %v22222_v8  ;;  %15449 = vmatprep.subr.bf16.mxu0 %v22227_v25  ;;  %v22309_v8 = vld [vmem:[#allocation6 + $0x3b40] ss:$16 sps:$4 sm:$0xff]   ;;  %v22312_v25 = vld [vmem:[#allocation6 + $0x3b48] ss:$16 sps:$4 sm:$0xff]  }
 0x883   :  { %15535 = vmatprep.subr.bf16.mxu1 %v22230_v23  ;;  %v22317_v23 = vld [vmem:[#allocation6 + $0x3b64] ss:$16 sps:$4 sm:$0xff]  }
 0x885   :  { %15450 = vmatpush1.bf16.msra.mxu0 %v22225_v0  ;;  %v22320_v0 = vld [vmem:[#allocation6 + $0x3b6c] ss:$16 sps:$4 sm:$0xff]  }
 0x886   :  { %15536 = vmatpush1.bf16.msra.mxu1 %v22228_v49  ;;  %15451 = vmatprep.subr.bf16.mxu0 %v22233_v61  ;;  %v22315_v49 = vld [vmem:[#allocation6 + $0x3b60] ss:$16 sps:$4 sm:$0xff]   ;;  %v22318_v61 = vld [vmem:[#allocation6 + $0x3b68] ss:$16 sps:$4 sm:$0xff]  }
 0x887   :  { %15537 = vmatprep.subr.bf16.mxu1 %v22236_v11  ;;  %v22323_v11 = vld [vmem:[#allocation6 + $0x3b84] ss:$16 sps:$4 sm:$0xff]  }
 0x889   :  { %15452 = vmatpush1.bf16.msra.mxu0 %v22231_v35  ;;  %v22326_v35 = vld [vmem:[#allocation6 + $0x3b8c] ss:$16 sps:$4 sm:$0xff]  }
 0x88a   :  { %15538 = vmatpush1.bf16.msra.mxu1 %v22234_v56  ;;  %15453 = vmatprep.subr.bf16.mxu0 %v22239_v51  ;;  %v22321_v56 = vld [vmem:[#allocation6 + $0x3b80] ss:$16 sps:$4 sm:$0xff]   ;;  %v22324_v51 = vld [vmem:[#allocation6 + $0x3b88] ss:$16 sps:$4 sm:$0xff]  }
 0x88b   :  { %15539 = vmatprep.subr.bf16.mxu1 %v22242_v34  ;;  %v22329_v34 = vld [vmem:[#allocation6 + $0x3ba4] ss:$16 sps:$4 sm:$0xff]  }
 0x88d   :  { %15454 = vmatpush1.bf16.msra.mxu0 %v22237_v38  ;;  %v22332_v38 = vld [vmem:[#allocation6 + $0x3bac] ss:$16 sps:$4 sm:$0xff]  }
 0x88e   :  { %15540 = vmatpush1.bf16.msra.mxu1 %v22240_v55  ;;  %15455 = vmatprep.subr.bf16.mxu0 %v22245_v53  ;;  %v22327_v55 = vld [vmem:[#allocation6 + $0x3ba0] ss:$16 sps:$4 sm:$0xff]   ;;  %v22330_v53 = vld [vmem:[#allocation6 + $0x3ba8] ss:$16 sps:$4 sm:$0xff]  }
 0x88f   :  { %15541 = vmatprep.subr.bf16.mxu1 %v22248_v46  ;;  %v22335_v46 = vld [vmem:[#allocation6 + $0x3bc4] ss:$16 sps:$4 sm:$0xff]  }
 0x891   :  { %15456 = vmatpush1.bf16.msra.mxu0 %v22243_v62  ;;  %v22338_v62 = vld [vmem:[#allocation6 + $0x3bcc] ss:$16 sps:$4 sm:$0xff]  }
 0x892   :  { %15542 = vmatpush1.bf16.msra.mxu1 %v22246_v59  ;;  %15468 = vmatprep.subr.bf16.mxu0 %v22251_v41  ;;  %v22333_v59 = vld [vmem:[#allocation6 + $0x3bc0] ss:$16 sps:$4 sm:$0xff]   ;;  %v22336_v41 = vld [vmem:[#allocation6 + $0x3bc8] ss:$16 sps:$4 sm:$0xff]  }
 0x893   :  { %15554 = vmatprep.subr.bf16.mxu1 %v22254_v20  ;;  %v22341_v20 = vld [vmem:[#allocation6 + $0x3be4] ss:$16 sps:$4 sm:$0xff]  }
 0x894   :  { %15458 = vmatmul.mubr.bf16.vlgmr.msra.gmra.mrb[64].mxu0 %v24131_v19 }
 0x895   :  { %15544 = vmatmul.mubr.bf16.vlgmr.msra.gmra.mrb[64].mxu1 %v24131_v19  ;;  %15469 = vmatpush1.bf16.msra.mxu0 %v22249_v22  ;;  %v22344_v22 = vld [vmem:[#allocation6 + $0x3bec] ss:$16 sps:$4 sm:$0xff]   ;;  %v22347_v19 = vld [vmem:[#allocation6 + $0x3c04] ss:$16 sps:$4 sm:$0xff]  }
 0x896   :  { %15500 = vmatprep.mubr.bf16.mxu0 %v23765_v54  ;;  %15555 = vmatpush1.bf16.msra.mxu1 %v22252_v48  ;;  %v22339_v48 = vld [vmem:[#allocation6 + $0x3be0] ss:$16 sps:$4 sm:$0xff]  }
 0x897   :  { %15586 = vmatprep.mubr.bf16.mxu1 %v23765_v54  ;;  %15470 = vmatprep.subr.bf16.mxu0 %v22257_v29  ;;  %v22273_v54 = vld [vmem:[#allocation6 + $0x3a80] ss:$16 sps:$4 sm:$0xff]   ;;  %v22342_v29 = vld [vmem:[#allocation6 + $0x3be8] ss:$16 sps:$4 sm:$0xff]  }
 0x898   :  { %15556 = vmatprep.subr.bf16.mxu1 %v22260_v40  ;;  %v22350_v40 = vld [vmem:[#allocation6 + $0x3c0c] ss:$16 sps:$4 sm:$0xff]  }
 0x899   :  { %15471 = vmatpush1.bf16.msra.mxu0 %v22255_v12  ;;  %v22345_v12 = vld [vmem:[#allocation6 + $0x3c00] ss:$16 sps:$4 sm:$0xff]  }
 0x89a   :  { %15557 = vmatpush1.bf16.msra.mxu1 %v22258_v57  ;;  %15472 = vmatprep.subr.bf16.mxu0 %v22263_v1  ;;  %v22348_v57 = vld [vmem:[#allocation6 + $0x3c08] ss:$16 sps:$4 sm:$0xff]   ;;  %v22353_v1 = vld [vmem:[#allocation6 + $0x3c24] ss:$16 sps:$4 sm:$0xff]  }
 0x89b   :  { %15558 = vmatprep.subr.bf16.mxu1 %v22266_v58  ;;  %v24132_v58 = vld [vmem:[#allocation81_spill] sm:$0xff] }
 0x89d   :  { %15473 = vmatpush1.bf16.msra.mxu0 %v22261_v24  ;;  %v22356_v24 = vld [vmem:[#allocation6 + $0x3c2c] ss:$16 sps:$4 sm:$0xff]  }
 0x89e   :  { %15559 = vmatpush1.bf16.msra.mxu1 %v22264_v6  ;;  %15474 = vmatprep.subr.bf16.mxu0 %v22269_v26  ;;  %v22351_v6 = vld [vmem:[#allocation6 + $0x3c20] ss:$16 sps:$4 sm:$0xff]   ;;  %v22354_v26 = vld [vmem:[#allocation6 + $0x3c28] ss:$16 sps:$4 sm:$0xff]  }
 0x89f   :  { %15560 = vmatprep.subr.bf16.mxu1 %v22272_v60  ;;  %v22359_v60 = vld [vmem:[#allocation6 + $0x3c44] ss:$16 sps:$4 sm:$0xff]  }
 0x8a1   :  { %15475 = vmatpush1.bf16.msra.mxu0 %v22267_v28  ;;  %v22362_v28 = vld [vmem:[#allocation6 + $0x3c4c] ss:$16 sps:$4 sm:$0xff]  }
 0x8a2   :  { %15561 = vmatpush1.bf16.msra.mxu1 %v22270_v31  ;;  %15476 = vmatprep.subr.bf16.mxu0 %v22275_v50  ;;  %v22357_v31 = vld [vmem:[#allocation6 + $0x3c40] ss:$16 sps:$4 sm:$0xff]   ;;  %v22360_v50 = vld [vmem:[#allocation6 + $0x3c48] ss:$16 sps:$4 sm:$0xff]  }
 0x8a3   :  { %15562 = vmatprep.subr.bf16.mxu1 %v22278_v17  ;;  %v22365_v17 = vld [vmem:[#allocation6 + $0x3c64] ss:$16 sps:$4 sm:$0xff]  }
 0x8a5   :  { %15477 = vmatpush1.bf16.msra.mxu0 %v22273_v54  ;;  %v22368_v54 = vld [vmem:[#allocation6 + $0x3c6c] ss:$16 sps:$4 sm:$0xff]  }
 0x8a6   :  { %15563 = vmatpush1.bf16.msra.mxu1 %v22276_v16  ;;  %15478 = vmatprep.subr.bf16.mxu0 %v22281_v13  ;;  %v22363_v16 = vld [vmem:[#allocation6 + $0x3c60] ss:$16 sps:$4 sm:$0xff]   ;;  %v22366_v13 = vld [vmem:[#allocation6 + $0x3c68] ss:$16 sps:$4 sm:$0xff]  }
 0x8a7   :  { %15564 = vmatprep.subr.bf16.mxu1 %v22284_v44  ;;  %v22371_v44 = vld [vmem:[#allocation6 + $0x3c84] ss:$16 sps:$4 sm:$0xff]  }
 0x8a9   :  { %15479 = vmatpush1.bf16.msra.mxu0 %v22279_v14  ;;  %v22374_v14 = vld [vmem:[#allocation6 + $0x3c8c] ss:$16 sps:$4 sm:$0xff]  }
 0x8aa   :  { %15565 = vmatpush1.bf16.msra.mxu1 %v22282_v7  ;;  %15480 = vmatprep.subr.bf16.mxu0 %v22287_v30  ;;  %v22372_v7 = vld [vmem:[#allocation6 + $0x3c88] ss:$16 sps:$4 sm:$0xff]   ;;  %v22377_v30 = vld [vmem:[#allocation6 + $0x3ca4] ss:$16 sps:$4 sm:$0xff]  }
 0x8ab   :  { %15566 = vmatprep.subr.bf16.mxu1 %v22290_v33  ;;  %v22380_v33 = vld [vmem:[#allocation6 + $0x3cac] ss:$16 sps:$4 sm:$0xff]  }
 0x8ad   :  { %15481 = vmatpush1.bf16.msra.mxu0 %v22285_v63  ;;  %v22375_v63 = vld [vmem:[#allocation6 + $0x3ca0] ss:$16 sps:$4 sm:$0xff]  }
 0x8ae   :  { %15567 = vmatpush1.bf16.msra.mxu1 %v22288_v21  ;;  %15482 = vmatprep.subr.bf16.mxu0 %v22293_v42  ;;  %v22378_v21 = vld [vmem:[#allocation6 + $0x3ca8] ss:$16 sps:$4 sm:$0xff]   ;;  %v22383_v42 = vld [vmem:[#allocation6 + $0x3cc4] ss:$16 sps:$4 sm:$0xff]  }
 0x8af   :  { %15568 = vmatprep.subr.bf16.mxu1 %v22296_v5  ;;  %v22386_v5 = vld [vmem:[#allocation6 + $0x3ccc] ss:$16 sps:$4 sm:$0xff]  }
 0x8b1   :  { %15483 = vmatpush1.bf16.msra.mxu0 %v22291_v2  ;;  %v22381_v2 = vld [vmem:[#allocation6 + $0x3cc0] ss:$16 sps:$4 sm:$0xff]  }
 0x8b2   :  { %15569 = vmatpush1.bf16.msra.mxu1 %v22294_v45  ;;  %15484 = vmatprep.subr.bf16.mxu0 %v22299_v10  ;;  %v22384_v45 = vld [vmem:[#allocation6 + $0x3cc8] ss:$16 sps:$4 sm:$0xff]   ;;  %v22389_v10 = vld [vmem:[#allocation6 + $0x3ce4] ss:$16 sps:$4 sm:$0xff]  }
 0x8b3   :  { %15570 = vmatprep.subr.bf16.mxu1 %v22302_v27  ;;  %v22392_v27 = vld [vmem:[#allocation6 + $0x3cec] ss:$16 sps:$4 sm:$0xff]  }
 0x8b5   :  { %15485 = vmatpush1.bf16.msra.mxu0 %v22297_v36  ;;  %v22387_v36 = vld [vmem:[#allocation6 + $0x3ce0] ss:$16 sps:$4 sm:$0xff]  }
 0x8b6   :  { %15571 = vmatpush1.bf16.msra.mxu1 %v22300_v18  ;;  %15486 = vmatprep.subr.bf16.mxu0 %v22305_v15  ;;  %v22390_v18 = vld [vmem:[#allocation6 + $0x3ce8] ss:$16 sps:$4 sm:$0xff]   ;;  %v22395_v15 = vld [vmem:[#allocation6 + $0x3d04] ss:$16 sps:$4 sm:$0xff]  }
 0x8b7   :  { %15572 = vmatprep.subr.bf16.mxu1 %v22308_v9  ;;  %v22398_v9 = vld [vmem:[#allocation6 + $0x3d0c] ss:$16 sps:$4 sm:$0xff]  }
 0x8b9   :  { %15487 = vmatpush1.bf16.msra.mxu0 %v22303_v47  ;;  %v22393_v47 = vld [vmem:[#allocation6 + $0x3d00] ss:$16 sps:$4 sm:$0xff]  }
 0x8ba   :  { %15573 = vmatpush1.bf16.msra.mxu1 %v22306_v3  ;;  %15488 = vmatprep.subr.bf16.mxu0 %v22311_v52  ;;  %v22396_v3 = vld [vmem:[#allocation6 + $0x3d08] ss:$16 sps:$4 sm:$0xff]   ;;  %v22401_v52 = vld [vmem:[#allocation6 + $0x3d24] ss:$16 sps:$4 sm:$0xff]  }
 0x8bb   :  { %15574 = vmatprep.subr.bf16.mxu1 %v22314_v37  ;;  %v22404_v37 = vld [vmem:[#allocation6 + $0x3d2c] ss:$16 sps:$4 sm:$0xff]  }
 0x8bd   :  { %15489 = vmatpush1.bf16.msra.mxu0 %v22309_v8  ;;  %v22399_v8 = vld [vmem:[#allocation6 + $0x3d20] ss:$16 sps:$4 sm:$0xff]  }
 0x8be   :  { %15575 = vmatpush1.bf16.msra.mxu1 %v22312_v25  ;;  %15490 = vmatprep.subr.bf16.mxu0 %v22317_v23  ;;  %v22402_v25 = vld [vmem:[#allocation6 + $0x3d28] ss:$16 sps:$4 sm:$0xff]   ;;  %v22407_v23 = vld [vmem:[#allocation6 + $0x3d44] ss:$16 sps:$4 sm:$0xff]  }
 0x8bf   :  { %15576 = vmatprep.subr.bf16.mxu1 %v22320_v0  ;;  %v22410_v0 = vld [vmem:[#allocation6 + $0x3d4c] ss:$16 sps:$4 sm:$0xff]  }
 0x8c1   :  { %15491 = vmatpush1.bf16.msra.mxu0 %v22315_v49  ;;  %v22405_v49 = vld [vmem:[#allocation6 + $0x3d40] ss:$16 sps:$4 sm:$0xff]  }
 0x8c2   :  { %15577 = vmatpush1.bf16.msra.mxu1 %v22318_v61  ;;  %15492 = vmatprep.subr.bf16.mxu0 %v22323_v11  ;;  %v22408_v61 = vld [vmem:[#allocation6 + $0x3d48] ss:$16 sps:$4 sm:$0xff]   ;;  %v22413_v11 = vld [vmem:[#allocation6 + $0x3d64] ss:$16 sps:$4 sm:$0xff]  }
 0x8c3   :  { %15578 = vmatprep.subr.bf16.mxu1 %v22326_v35  ;;  %v22416_v35 = vld [vmem:[#allocation6 + $0x3d6c] ss:$16 sps:$4 sm:$0xff]  }
 0x8c5   :  { %15493 = vmatpush1.bf16.msra.mxu0 %v22321_v56  ;;  %v22411_v56 = vld [vmem:[#allocation6 + $0x3d60] ss:$16 sps:$4 sm:$0xff]  }
 0x8c6   :  { %15579 = vmatpush1.bf16.msra.mxu1 %v22324_v51  ;;  %15494 = vmatprep.subr.bf16.mxu0 %v22329_v34  ;;  %v22414_v51 = vld [vmem:[#allocation6 + $0x3d68] ss:$16 sps:$4 sm:$0xff]   ;;  %v22419_v34 = vld [vmem:[#allocation6 + $0x3d84] ss:$16 sps:$4 sm:$0xff]  }
 0x8c7   :  { %15580 = vmatprep.subr.bf16.mxu1 %v22332_v38  ;;  %v22422_v38 = vld [vmem:[#allocation6 + $0x3d8c] ss:$16 sps:$4 sm:$0xff]  }
 0x8c9   :  { %15495 = vmatpush1.bf16.msra.mxu0 %v22327_v55  ;;  %v22417_v55 = vld [vmem:[#allocation6 + $0x3d80] ss:$16 sps:$4 sm:$0xff]  }
 0x8ca   :  { %15581 = vmatpush1.bf16.msra.mxu1 %v22330_v53  ;;  %15496 = vmatprep.subr.bf16.mxu0 %v22335_v46  ;;  %v22420_v53 = vld [vmem:[#allocation6 + $0x3d88] ss:$16 sps:$4 sm:$0xff]   ;;  %v22425_v46 = vld [vmem:[#allocation6 + $0x3da4] ss:$16 sps:$4 sm:$0xff]  }
 0x8cb   :  { %15582 = vmatprep.subr.bf16.mxu1 %v22338_v62  ;;  %v22428_v62 = vld [vmem:[#allocation6 + $0x3dac] ss:$16 sps:$4 sm:$0xff]  }
 0x8cd   :  { %15497 = vmatpush1.bf16.msra.mxu0 %v22333_v59  ;;  %v22423_v59 = vld [vmem:[#allocation6 + $0x3da0] ss:$16 sps:$4 sm:$0xff]  }
 0x8ce   :  { %15583 = vmatpush1.bf16.msra.mxu1 %v22336_v41  ;;  %15498 = vmatprep.subr.bf16.mxu0 %v22341_v20  ;;  %v22426_v41 = vld [vmem:[#allocation6 + $0x3da8] ss:$16 sps:$4 sm:$0xff]   ;;  %v22431_v20 = vld [vmem:[#allocation6 + $0x3dc4] ss:$16 sps:$4 sm:$0xff]  }
 0x8cf   :  { %15584 = vmatprep.subr.bf16.mxu1 %v22344_v22  ;;  %v22434_v22 = vld [vmem:[#allocation6 + $0x3dcc] ss:$16 sps:$4 sm:$0xff]  }
 0x8d1   :  { %15499 = vmatpush1.bf16.msra.mxu0 %v22339_v48  ;;  %v22429_v48 = vld [vmem:[#allocation6 + $0x3dc0] ss:$16 sps:$4 sm:$0xff]  }
 0x8d2   :  { %15585 = vmatpush1.bf16.msra.mxu1 %v22342_v29  ;;  %16374 = vmatprep.subr.bf16.mxu0 %v22347_v19  ;;  %v22432_v29 = vld [vmem:[#allocation6 + $0x3dc8] ss:$16 sps:$4 sm:$0xff]   ;;  %v22437_v19 = vld [vmem:[#allocation6 + $0x3de4] ss:$16 sps:$4 sm:$0xff]  }
 0x8d3   :  { %16460 = vmatprep.subr.bf16.mxu1 %v22350_v40  ;;  %v22440_v40 = vld [vmem:[#allocation6 + $0x3dec] ss:$16 sps:$4 sm:$0xff]  }
 0x8d4   :  { %15501 = vmatmul.mubr.bf16.vlgmr.msra.gmra.mrb[64].mxu0 %v24132_v58 }
 0x8d5   :  { %15587 = vmatmul.mubr.bf16.vlgmr.msra.gmra.mrb[64].mxu1 %v24132_v58  ;;  %16375 = vmatpush1.bf16.msra.mxu0 %v22345_v12  ;;  %v22435_v12 = vld [vmem:[#allocation6 + $0x3de0] ss:$16 sps:$4 sm:$0xff]   ;;  %v22446_v58 = vld [vmem:[#allocation6 + $0x3e0c] ss:$16 sps:$4 sm:$0xff]  }
 0x8d6   :  { %16406 = vmatprep.mubr.bf16.mxu0 %v23774_v39  ;;  %16461 = vmatpush1.bf16.msra.mxu1 %v22348_v57  ;;  %v22438_v57 = vld [vmem:[#allocation6 + $0x3de8] ss:$16 sps:$4 sm:$0xff]  }
 0x8d7   :  { %16492 = vmatprep.mubr.bf16.mxu1 %v23774_v39  ;;  %16376 = vmatprep.subr.bf16.mxu0 %v22353_v1  ;;  %v22369_v39 = vld [vmem:[#allocation6 + $0x3c80] ss:$16 sps:$4 sm:$0xff]   ;;  %v22443_v1 = vld [vmem:[#allocation6 + $0x3e04] ss:$16 sps:$4 sm:$0xff]  }
 0x8d8   :  { %16462 = vmatprep.subr.bf16.mxu1 %v22356_v24  ;;  %v22441_v24 = vld [vmem:[#allocation6 + $0x3e00] ss:$16 sps:$4 sm:$0xff]  }
 0x8d9   :  { %16377 = vmatpush1.bf16.msra.mxu0 %v22351_v6  ;;  %v22444_v6 = vld [vmem:[#allocation6 + $0x3e08] ss:$16 sps:$4 sm:$0xff]  }
 0x8da   :  { %16463 = vmatpush1.bf16.msra.mxu1 %v22354_v26  ;;  %16378 = vmatprep.subr.bf16.mxu0 %v22359_v60  ;;  %v22449_v26 = vld [vmem:[#allocation6 + $0x3e24] ss:$16 sps:$4 sm:$0xff]   ;;  %v22452_v60 = vld [vmem:[#allocation6 + $0x3e2c] ss:$16 sps:$4 sm:$0xff]  }
 0x8db   :  { %16464 = vmatprep.subr.bf16.mxu1 %v22362_v28  ;;  %v22447_v28 = vld [vmem:[#allocation6 + $0x3e20] ss:$16 sps:$4 sm:$0xff]  }
 0x8dd   :  { %16379 = vmatpush1.bf16.msra.mxu0 %v22357_v31  ;;  %v22450_v31 = vld [vmem:[#allocation6 + $0x3e28] ss:$16 sps:$4 sm:$0xff]  }
 0x8de   :  { %16465 = vmatpush1.bf16.msra.mxu1 %v22360_v50  ;;  %16380 = vmatprep.subr.bf16.mxu0 %v22365_v17  ;;  %v22455_v50 = vld [vmem:[#allocation6 + $0x3e44] ss:$16 sps:$4 sm:$0xff]   ;;  %v22458_v17 = vld [vmem:[#allocation6 + $0x3e4c] ss:$16 sps:$4 sm:$0xff]  }
 0x8df   :  { %16466 = vmatprep.subr.bf16.mxu1 %v22368_v54  ;;  %v22453_v54 = vld [vmem:[#allocation6 + $0x3e40] ss:$16 sps:$4 sm:$0xff]  }
 0x8e1   :  { %16381 = vmatpush1.bf16.msra.mxu0 %v22363_v16  ;;  %v22456_v16 = vld [vmem:[#allocation6 + $0x3e48] ss:$16 sps:$4 sm:$0xff]  }
 0x8e2   :  { %16467 = vmatpush1.bf16.msra.mxu1 %v22366_v13  ;;  %16382 = vmatprep.subr.bf16.mxu0 %v22371_v44  ;;  %v22461_v13 = vld [vmem:[#allocation6 + $0x3e64] ss:$16 sps:$4 sm:$0xff]   ;;  %v22459_v44 = vld [vmem:[#allocation6 + $0x3e60] ss:$16 sps:$4 sm:$0xff]  }
 0x8e3   :  { %16468 = vmatprep.subr.bf16.mxu1 %v22374_v14  ;;  %v22462_v14 = vld [vmem:[#allocation6 + $0x3e68] ss:$16 sps:$4 sm:$0xff]  }
 0x8e5   :  { %16383 = vmatpush1.bf16.msra.mxu0 %v22369_v39  ;;  %v22467_v39 = vld [vmem:[#allocation6 + $0x3e84] ss:$16 sps:$4 sm:$0xff]  }
 0x8e6   :  { %16469 = vmatpush1.bf16.msra.mxu1 %v22372_v7  ;;  %16384 = vmatprep.subr.bf16.mxu0 %v22377_v30  ;;  %v22470_v7 = vld [vmem:[#allocation6 + $0x3e8c] ss:$16 sps:$4 sm:$0xff]   ;;  %v22468_v30 = vld [vmem:[#allocation6 + $0x3e88] ss:$16 sps:$4 sm:$0xff]  }
 0x8e7   :  { %16470 = vmatprep.subr.bf16.mxu1 %v22380_v33  ;;  %v22473_v33 = vld [vmem:[#allocation6 + $0x3ea4] ss:$16 sps:$4 sm:$0xff]  }
 0x8e9   :  { %16385 = vmatpush1.bf16.msra.mxu0 %v22375_v63  ;;  %v22476_v63 = vld [vmem:[#allocation6 + $0x3eac] ss:$16 sps:$4 sm:$0xff]  }
 0x8ea   :  { %16471 = vmatpush1.bf16.msra.mxu1 %v22378_v21  ;;  %16386 = vmatprep.subr.bf16.mxu0 %v22383_v42  ;;  %v22471_v21 = vld [vmem:[#allocation6 + $0x3ea0] ss:$16 sps:$4 sm:$0xff]   ;;  %v22474_v42 = vld [vmem:[#allocation6 + $0x3ea8] ss:$16 sps:$4 sm:$0xff]  }
 0x8eb   :  { %16472 = vmatprep.subr.bf16.mxu1 %v22386_v5  ;;  %v22479_v5 = vld [vmem:[#allocation6 + $0x3ec4] ss:$16 sps:$4 sm:$0xff]  }
 0x8ed   :  { %16387 = vmatpush1.bf16.msra.mxu0 %v22381_v2  ;;  %v22482_v2 = vld [vmem:[#allocation6 + $0x3ecc] ss:$16 sps:$4 sm:$0xff]  }
 0x8ee   :  { %16473 = vmatpush1.bf16.msra.mxu1 %v22384_v45  ;;  %16388 = vmatprep.subr.bf16.mxu0 %v22389_v10  ;;  %v22477_v45 = vld [vmem:[#allocation6 + $0x3ec0] ss:$16 sps:$4 sm:$0xff]   ;;  %v22480_v10 = vld [vmem:[#allocation6 + $0x3ec8] ss:$16 sps:$4 sm:$0xff]  }
 0x8ef   :  { %16474 = vmatprep.subr.bf16.mxu1 %v22392_v27  ;;  %v22485_v27 = vld [vmem:[#allocation6 + $0x3ee4] ss:$16 sps:$4 sm:$0xff]  }
 0x8f1   :  { %16389 = vmatpush1.bf16.msra.mxu0 %v22387_v36  ;;  %v22488_v36 = vld [vmem:[#allocation6 + $0x3eec] ss:$16 sps:$4 sm:$0xff]  }
 0x8f2   :  { %16475 = vmatpush1.bf16.msra.mxu1 %v22390_v18  ;;  %16390 = vmatprep.subr.bf16.mxu0 %v22395_v15  ;;  %v22483_v18 = vld [vmem:[#allocation6 + $0x3ee0] ss:$16 sps:$4 sm:$0xff]   ;;  %v22486_v15 = vld [vmem:[#allocation6 + $0x3ee8] ss:$16 sps:$4 sm:$0xff]  }
 0x8f3   :  { %16476 = vmatprep.subr.bf16.mxu1 %v22398_v9  ;;  %v22491_v9 = vld [vmem:[#allocation6 + $0x3f04] ss:$16 sps:$4 sm:$0xff]  }
 0x8f5   :  { %16391 = vmatpush1.bf16.msra.mxu0 %v22393_v47  ;;  %v22494_v47 = vld [vmem:[#allocation6 + $0x3f0c] ss:$16 sps:$4 sm:$0xff]  }
 0x8f6   :  { %16477 = vmatpush1.bf16.msra.mxu1 %v22396_v3  ;;  %16392 = vmatprep.subr.bf16.mxu0 %v22401_v52  ;;  %v22489_v3 = vld [vmem:[#allocation6 + $0x3f00] ss:$16 sps:$4 sm:$0xff]   ;;  %v22492_v52 = vld [vmem:[#allocation6 + $0x3f08] ss:$16 sps:$4 sm:$0xff]  }
 0x8f7   :  { %16478 = vmatprep.subr.bf16.mxu1 %v22404_v37  ;;  %v22497_v37 = vld [vmem:[#allocation6 + $0x3f24] ss:$16 sps:$4 sm:$0xff]  }
 0x8f9   :  { %16393 = vmatpush1.bf16.msra.mxu0 %v22399_v8  ;;  %v22500_v8 = vld [vmem:[#allocation6 + $0x3f2c] ss:$16 sps:$4 sm:$0xff]  }
 0x8fa   :  { %16479 = vmatpush1.bf16.msra.mxu1 %v22402_v25  ;;  %16394 = vmatprep.subr.bf16.mxu0 %v22407_v23  ;;  %v22495_v25 = vld [vmem:[#allocation6 + $0x3f20] ss:$16 sps:$4 sm:$0xff]   ;;  %v22498_v23 = vld [vmem:[#allocation6 + $0x3f28] ss:$16 sps:$4 sm:$0xff]  }
 0x8fb   :  { %16480 = vmatprep.subr.bf16.mxu1 %v22410_v0  ;;  %v22503_v0 = vld [vmem:[#allocation6 + $0x3f44] ss:$16 sps:$4 sm:$0xff]  }
 0x8fd   :  { %16395 = vmatpush1.bf16.msra.mxu0 %v22405_v49  ;;  %v22506_v49 = vld [vmem:[#allocation6 + $0x3f4c] ss:$16 sps:$4 sm:$0xff]  }
 0x8fe   :  { %16481 = vmatpush1.bf16.msra.mxu1 %v22408_v61  ;;  %16396 = vmatprep.subr.bf16.mxu0 %v22413_v11  ;;  %v22501_v61 = vld [vmem:[#allocation6 + $0x3f40] ss:$16 sps:$4 sm:$0xff]   ;;  %v22504_v11 = vld [vmem:[#allocation6 + $0x3f48] ss:$16 sps:$4 sm:$0xff]  }
 0x8ff   :  { %16482 = vmatprep.subr.bf16.mxu1 %v22416_v35  ;;  %v22509_v35 = vld [vmem:[#allocation6 + $0x3f64] ss:$16 sps:$4 sm:$0xff]  }
 0x901   :  { %16397 = vmatpush1.bf16.msra.mxu0 %v22411_v56  ;;  %v22512_v56 = vld [vmem:[#allocation6 + $0x3f6c] ss:$16 sps:$4 sm:$0xff]  }
 0x902   :  { %16483 = vmatpush1.bf16.msra.mxu1 %v22414_v51  ;;  %16398 = vmatprep.subr.bf16.mxu0 %v22419_v34  ;;  %v22507_v51 = vld [vmem:[#allocation6 + $0x3f60] ss:$16 sps:$4 sm:$0xff]   ;;  %v22510_v34 = vld [vmem:[#allocation6 + $0x3f68] ss:$16 sps:$4 sm:$0xff]  }
 0x903   :  { %16484 = vmatprep.subr.bf16.mxu1 %v22422_v38  ;;  %v22515_v38 = vld [vmem:[#allocation6 + $0x3f84] ss:$16 sps:$4 sm:$0xff]  }
 0x905   :  { %16399 = vmatpush1.bf16.msra.mxu0 %v22417_v55  ;;  %v22518_v55 = vld [vmem:[#allocation6 + $0x3f8c] ss:$16 sps:$4 sm:$0xff]  }
 0x906   :  { %16485 = vmatpush1.bf16.msra.mxu1 %v22420_v53  ;;  %16400 = vmatprep.subr.bf16.mxu0 %v22425_v46  ;;  %v22513_v53 = vld [vmem:[#allocation6 + $0x3f80] ss:$16 sps:$4 sm:$0xff]   ;;  %v22516_v46 = vld [vmem:[#allocation6 + $0x3f88] ss:$16 sps:$4 sm:$0xff]  }
 0x907   :  { %16486 = vmatprep.subr.bf16.mxu1 %v22428_v62  ;;  %v22521_v62 = vld [vmem:[#allocation6 + $0x3fa4] ss:$16 sps:$4 sm:$0xff]  }
 0x909   :  { %16401 = vmatpush1.bf16.msra.mxu0 %v22423_v59  ;;  %v22524_v59 = vld [vmem:[#allocation6 + $0x3fac] ss:$16 sps:$4 sm:$0xff]  }
 0x90a   :  { %16487 = vmatpush1.bf16.msra.mxu1 %v22426_v41  ;;  %16402 = vmatprep.subr.bf16.mxu0 %v22431_v20  ;;  %v22519_v41 = vld [vmem:[#allocation6 + $0x3fa0] ss:$16 sps:$4 sm:$0xff]   ;;  %v22522_v20 = vld [vmem:[#allocation6 + $0x3fa8] ss:$16 sps:$4 sm:$0xff]  }
 0x90b   :  { %16488 = vmatprep.subr.bf16.mxu1 %v22434_v22  ;;  %v22527_v22 = vld [vmem:[#allocation6 + $0x3fc4] ss:$16 sps:$4 sm:$0xff]  }
 0x90d   :  { %16403 = vmatpush1.bf16.msra.mxu0 %v22429_v48  ;;  %v22530_v48 = vld [vmem:[#allocation6 + $0x3fcc] ss:$16 sps:$4 sm:$0xff]  }
 0x90e   :  { %16489 = vmatpush1.bf16.msra.mxu1 %v22432_v29  ;;  %16404 = vmatprep.subr.bf16.mxu0 %v22437_v19  ;;  %v22525_v29 = vld [vmem:[#allocation6 + $0x3fc0] ss:$16 sps:$4 sm:$0xff]   ;;  %v22528_v19 = vld [vmem:[#allocation6 + $0x3fc8] ss:$16 sps:$4 sm:$0xff]  }
 0x90f   :  { %16490 = vmatprep.subr.bf16.mxu1 %v22440_v40  ;;  %v22533_v40 = vld [vmem:[#allocation6 + $0x3fe4] ss:$16 sps:$4 sm:$0xff]  }
 0x911   :  { %16405 = vmatpush1.bf16.msra.mxu0 %v22435_v12  ;;  %v22536_v12 = vld [vmem:[#allocation6 + $0x3fec] ss:$16 sps:$4 sm:$0xff]  }
 0x912   :  { %16491 = vmatpush1.bf16.msra.mxu1 %v22438_v57  ;;  %16417 = vmatprep.subr.bf16.mxu0 %v22443_v1  ;;  %v22531_v57 = vld [vmem:[#allocation6 + $0x3fe0] ss:$16 sps:$4 sm:$0xff]   ;;  %v22534_v1 = vld [vmem:[#allocation6 + $0x3fe8] ss:$16 sps:$4 sm:$0xff]  }
 0x913   :  { %16503 = vmatprep.subr.bf16.mxu1 %v22446_v58  ;;  %v22537_v58 = vld [vmem:[#allocation9 + $0x40] sm:$0xff]  }
 0x914   :  { %16407 = vmatmul.mubr.bf16.vlgmr.msra.gmra.mrb[64].mxu0 %v23569_v43 }
 0x915   :  { %16493 = vmatmul.mubr.bf16.vlgmr.msra.gmra.mrb[64].mxu1 %v23569_v43  ;;  %16418 = vmatpush1.bf16.msra.mxu0 %v22441_v24  ;;  %v22464_v43 = vld [vmem:[#allocation6 + $0x3e6c] ss:$16 sps:$4 sm:$0xff]   ;;  %v22538_v24 = vld [vmem:[#allocation9 + $0xc0] sm:$0xff]  }
 0x916   :  { %16449 = vmatprep.mubr.bf16.mxu0 %v23779_v32  ;;  %16504 = vmatpush1.bf16.msra.mxu1 %v22444_v6  ;;  %v22539_v6 = vld [vmem:[#allocation9] sm:$0xff]  }
 0x917   :  { %16535 = vmatprep.mubr.bf16.mxu1 %v23779_v32  ;;  %16419 = vmatprep.subr.bf16.mxu0 %v22449_v26  ;;  %v22465_v32 = vld [vmem:[#allocation6 + $0x3e80] ss:$16 sps:$4 sm:$0xff]   ;;  %v22540_v26 = vld [vmem:[#allocation9 + $0x80] sm:$0xff]  }
 0x918   :  { %16505 = vmatprep.subr.bf16.mxu1 %v22452_v60  ;;  %v22541_v60 = vld [vmem:[#allocation9 + $0x48] sm:$0xff]  }
 0x919   :  { %16420 = vmatpush1.bf16.msra.mxu0 %v22447_v28  ;;  %v22542_v28 = vld [vmem:[#allocation9 + $0xc8] sm:$0xff]  }
 0x91a   :  { %16506 = vmatpush1.bf16.msra.mxu1 %v22450_v31  ;;  %16421 = vmatprep.subr.bf16.mxu0 %v22455_v50  ;;  %v22543_v31 = vld [vmem:[#allocation9 + $0x8] sm:$0xff]  }
 0x91b   :  { %16507 = vmatprep.subr.bf16.mxu1 %v22458_v17  ;;  %v22544_v50 = vld [vmem:[#allocation9 + $0x88] sm:$0xff]   ;;  %v22545_v17 = vld [vmem:[#allocation9 + $0x50] sm:$0xff]  }
 0x91d   :  { %16422 = vmatpush1.bf16.msra.mxu0 %v22453_v54  ;;  %v22546_v54 = vld [vmem:[#allocation9 + $0xd0] sm:$0xff]  }
 0x91e   :  { %16508 = vmatpush1.bf16.msra.mxu1 %v22456_v16  ;;  %16423 = vmatprep.subr.bf16.mxu0 %v22461_v13  ;;  %v22547_v16 = vld [vmem:[#allocation9 + $0x10] sm:$0xff]  }
 0x91f   :  { %16509 = vmatprep.subr.bf16.mxu1 %v22464_v43  ;;  %v22548_v13 = vld [vmem:[#allocation9 + $0x90] sm:$0xff]   ;;  %v22549_v43 = vld [vmem:[#allocation9 + $0x58] sm:$0xff]  }
 0x921   :  { %16424 = vmatpush1.bf16.msra.mxu0 %v22459_v44  ;;  %v22550_v44 = vld [vmem:[#allocation9 + $0xd8] sm:$0xff]  }
 0x922   :  { %16510 = vmatpush1.bf16.msra.mxu1 %v22462_v14  ;;  %16425 = vmatprep.subr.bf16.mxu0 %v22467_v39  ;;  %v22551_v14 = vld [vmem:[#allocation9 + $0x18] sm:$0xff]   ;;  %v22553_v39 = vld [vmem:[#allocation9 + $0x60] sm:$0xff]  }
 0x923   :  { %16511 = vmatprep.subr.bf16.mxu1 %v22470_v7  ;;  %v22554_v7 = vld [vmem:[#allocation9 + $0xe0] sm:$0xff]  }
 0x925   :  { %16426 = vmatpush1.bf16.msra.mxu0 %v22465_v32  ;;  %v22555_v32 = vld [vmem:[#allocation9 + $0x20] sm:$0xff]  }
 0x926   :  { %16512 = vmatpush1.bf16.msra.mxu1 %v22468_v30  ;;  %16427 = vmatprep.subr.bf16.mxu0 %v22473_v33  ;;  %v22556_v30 = vld [vmem:[#allocation9 + $0xa0] sm:$0xff]   ;;  %v22557_v33 = vld [vmem:[#allocation9 + $0x68] sm:$0xff]  }
 0x927   :  { %16513 = vmatprep.subr.bf16.mxu1 %v22476_v63  ;;  %v22558_v63 = vld [vmem:[#allocation9 + $0xe8] sm:$0xff]  }
 0x929   :  { %16428 = vmatpush1.bf16.msra.mxu0 %v22471_v21  ;;  %v22559_v21 = vld [vmem:[#allocation9 + $0x28] sm:$0xff]  }
 0x92a   :  { %16514 = vmatpush1.bf16.msra.mxu1 %v22474_v42  ;;  %16429 = vmatprep.subr.bf16.mxu0 %v22479_v5  ;;  %v22560_v42 = vld [vmem:[#allocation9 + $0xa8] sm:$0xff]   ;;  %v22561_v5 = vld [vmem:[#allocation9 + $0x70] sm:$0xff]  }
 0x92b   :  { %16515 = vmatprep.subr.bf16.mxu1 %v22482_v2  ;;  %v22562_v2 = vld [vmem:[#allocation9 + $0xf0] sm:$0xff]  }
 0x92d   :  { %16430 = vmatpush1.bf16.msra.mxu0 %v22477_v45  ;;  %v22563_v45 = vld [vmem:[#allocation9 + $0x30] sm:$0xff]  }
 0x92e   :  { %16516 = vmatpush1.bf16.msra.mxu1 %v22480_v10  ;;  %16431 = vmatprep.subr.bf16.mxu0 %v22485_v27  ;;  %v22564_v10 = vld [vmem:[#allocation9 + $0xb0] sm:$0xff]   ;;  %v22565_v27 = vld [vmem:[#allocation9 + $0x78] sm:$0xff]  }
 0x92f   :  { %16517 = vmatprep.subr.bf16.mxu1 %v22488_v36  ;;  %v22566_v36 = vld [vmem:[#allocation9 + $0xf8] sm:$0xff]  }
 0x931   :  { %16432 = vmatpush1.bf16.msra.mxu0 %v22483_v18  ;;  %v22567_v18 = vld [vmem:[#allocation9 + $0x38] sm:$0xff]  }
 0x932   :  { %16518 = vmatpush1.bf16.msra.mxu1 %v22486_v15  ;;  %16433 = vmatprep.subr.bf16.mxu0 %v22491_v9  ;;  %v22568_v15 = vld [vmem:[#allocation9 + $0xb8] sm:$0xff]   ;;  %v16556_v9 = vlaneseq }
 0x933   :  { %16519 = vmatprep.subr.bf16.mxu1 %v22494_v47 }
 0x934   :  { %v16557_v47 = vshrl.u32 %v16556_v9, 7 }
 0x935   :  { %16434 = vmatpush1.bf16.msra.mxu0 %v22489_v3 }
 0x936   :  { %16520 = vmatpush1.bf16.msra.mxu1 %v22492_v52  ;;  %16435 = vmatprep.subr.bf16.mxu0 %v22497_v37  ;;  %v16558_v3 = vsub.s32 0, %v16557_v47  ;;  %v16554_v52 = vld [vmem:[#allocation7] sm:$0xf]  ;;  %v16566_v37 = vsub.s32 2, %v16557_v47 }
 0x937   :  { %16521 = vmatprep.subr.bf16.mxu1 %v22500_v8  ;;  %v16562_v8 = vsub.s32 1, %v16557_v47 }
 0x939   :  { %16436 = vmatpush1.bf16.msra.mxu0 %v22495_v25  ;;  %v16570_v25 = vsub.s32 3, %v16557_v47 }
 0x93a   :  { %16522 = vmatpush1.bf16.msra.mxu1 %v22498_v23  ;;  %16437 = vmatprep.subr.bf16.mxu0 %v22503_v0  ;;  %v16559_v23 = vrot.slane %v16554_v52, %v16558_v3  ;;  %v16567_v0 = vrot.slane %v16554_v52, %v16566_v37 }
 0x93b   :  { %16523 = vmatprep.subr.bf16.mxu1 %v22506_v49  ;;  %v16563_v49 = vrot.slane %v16554_v52, %v16562_v8 }
 0x93d   :  { %16438 = vmatpush1.bf16.msra.mxu0 %v22501_v61  ;;  %v16571_v61 = vrot.slane %v16554_v52, %v16570_v25 }
 0x93e   :  { %16524 = vmatpush1.bf16.msra.mxu1 %v22504_v11  ;;  %16439 = vmatprep.subr.bf16.mxu0 %v22509_v35 }
 0x93f   :  { %16525 = vmatprep.subr.bf16.mxu1 %v22512_v56 }
 0x941   :  { %16440 = vmatpush1.bf16.msra.mxu0 %v22507_v51 }
 0x942   :  { %16526 = vmatpush1.bf16.msra.mxu1 %v22510_v34  ;;  %16441 = vmatprep.subr.bf16.mxu0 %v22515_v38 }
 0x943   :  { %16527 = vmatprep.subr.bf16.mxu1 %v22518_v55 }
 0x945   :  { %16442 = vmatpush1.bf16.msra.mxu0 %v22513_v53 }
 0x946   :  { %16528 = vmatpush1.bf16.msra.mxu1 %v22516_v46  ;;  %16443 = vmatprep.subr.bf16.mxu0 %v22521_v62 }
 0x947   :  { %16529 = vmatprep.subr.bf16.mxu1 %v22524_v59 }
 0x949   :  { %16444 = vmatpush1.bf16.msra.mxu0 %v22519_v41 }
 0x94a   :  { %16530 = vmatpush1.bf16.msra.mxu1 %v22522_v20  ;;  %16445 = vmatprep.subr.bf16.mxu0 %v22527_v22 }
 0x94b   :  { %16531 = vmatprep.subr.bf16.mxu1 %v22530_v48 }
 0x94d   :  { %16446 = vmatpush1.bf16.msra.mxu0 %v22525_v29 }
 0x94e   :  { %16532 = vmatpush1.bf16.msra.mxu1 %v22528_v19  ;;  %16447 = vmatprep.subr.bf16.mxu0 %v22533_v40 }
 0x94f   :  { %16533 = vmatprep.subr.bf16.mxu1 %v22536_v12 }
 0x951   :  { %16448 = vmatpush1.bf16.msra.mxu0 %v22531_v57 }
 0x952   :  { %16534 = vmatpush1.bf16.msra.mxu1 %v22534_v1  ;;  %19096 = vmatprep.subr.bf16.mxu0 %v22537_v58 }
 0x953   :  { %19118 = vmatprep.subr.bf16.mxu1 %v22538_v24 }
 0x954   :  { %16450 = vmatmul.mubr.bf16.vlgmr.msra.gmra.mrb[64].mxu0 %v23607_v4 }
 0x955   :  { %16536 = vmatmul.mubr.bf16.vlgmr.msra.gmra.mrb[64].mxu1 %v23607_v4  ;;  %19097 = vmatpush3.bf16.msra.mxu0 %v22539_v6  ;;  %v22552_v4 = vld [vmem:[#allocation9 + $0x98] sm:$0xff]  }
 0x956   :  { %19119 = vmatpush3.bf16.msra.mxu1 %v22540_v26  ;;  %19098 = vmatprep.subr.bf16.mxu0 %v22541_v60 }
 0x957   :  { %19120 = vmatprep.subr.bf16.mxu1 %v22542_v28 }
 0x959   :  { %19099 = vmatpush3.bf16.msra.mxu0 %v22543_v31 }
 0x95a   :  { %19121 = vmatpush3.bf16.msra.mxu1 %v22544_v50  ;;  %19100 = vmatprep.subr.bf16.mxu0 %v22545_v17 }
 0x95b   :  { %19122 = vmatprep.subr.bf16.mxu1 %v22546_v54 }
 0x95d   :  { %19101 = vmatpush3.bf16.msra.mxu0 %v22547_v16 }
 0x95e   :  { %19123 = vmatpush3.bf16.msra.mxu1 %v22548_v13  ;;  %19102 = vmatprep.subr.bf16.mxu0 %v22549_v43 }
 0x95f   :  { %19124 = vmatprep.subr.bf16.mxu1 %v22550_v44 }
 0x961   :  { %19103 = vmatpush3.bf16.msra.mxu0 %v22551_v14 }
 0x962   :  { %19125 = vmatpush3.bf16.msra.mxu1 %v22552_v4  ;;  %19104 = vmatprep.subr.bf16.mxu0 %v22553_v39 }
 0x963   :  { %19126 = vmatprep.subr.bf16.mxu1 %v22554_v7  ;;  %v19063_v7 = vld [vmem:[#allocation10] ss:$0 sm:$0xff] }
 0x965   :  { %19105 = vmatpush3.bf16.msra.mxu0 %v22555_v32 }
 0x966   :  { %19127 = vmatpush3.bf16.msra.mxu1 %v22556_v30  ;;  %19106 = vmatprep.subr.bf16.mxu0 %v22557_v33 }
 0x967   :  { %19128 = vmatprep.subr.bf16.mxu1 %v22558_v63 }
 0x969   :  { %19107 = vmatpush3.bf16.msra.mxu0 %v22559_v21 }
 0x96a   :  { %19129 = vmatpush3.bf16.msra.mxu1 %v22560_v42  ;;  %19108 = vmatprep.subr.bf16.mxu0 %v22561_v5 }
 0x96b   :  { %19130 = vmatprep.subr.bf16.mxu1 %v22562_v2 }
 0x96d   :  { %19109 = vmatpush3.bf16.msra.mxu0 %v22563_v45 }
 0x96e   :  { %19131 = vmatpush3.bf16.msra.mxu1 %v22564_v10  ;;  %19110 = vmatprep.subr.bf16.mxu0 %v22565_v27 }
 0x96f   :  { %19132 = vmatprep.subr.bf16.mxu1 %v22566_v36 }
 0x971   :  { %19111 = vmatpush3.bf16.msra.mxu0 %v22567_v18 }
 0x972   :  { %19133 = vmatpush3.bf16.msra.mxu1 %v22568_v15 }
 0xa27   :  { %v16451_v11 = vpop.f32.mrb[64].mxu0 }
 0xa28   :  { %v16576_v35 = vadd.f32 %v16559_v23, %v16451_v11  ;;  %v16537_v56 = vpop.f32.mrb[64].mxu1  ;;  %v16453_v51 = vpop.f32.mrb[65].mxu0 }
 0xa29   :  { %v16578_v34 = vadd.f32 %v16567_v0, %v16537_v56  ;;  %v16577_v38 = vadd.f32 %v16563_v49, %v16453_v51  ;;  %v16539_v55 = vpop.f32.mrb[65].mxu1  ;;  %v16455_v53 = vpop.f32.mrb[66].mxu0 }
 0xa2a   :  { %v16592_v46 = vmul.f32 0.2, %v16576_v35  ;;  %v16579_v62 = vadd.f32 %v16571_v61, %v16539_v55  ;;  %v16580_v59 = vadd.f32 %v16559_v23, %v16455_v53  ;;  %v16541_v41 = vpop.f32.mrb[66].mxu1  ;;  %v16457_v20 = vpop.f32.mrb[67].mxu0  ;;  %vm16584_vm15 = vcmp.ge.f32.partialorder %v16576_v35, 0.0 }
 0xa2b   :  { %vm16586_vm3 = vcmp.ge.f32.partialorder %v16578_v34, 0.0  ;;  %v16594_v22 = vmul.f32 0.2, %v16578_v34  ;;  %vm16585_vm8 = vcmp.ge.f32.partialorder %v16577_v38, 0.0  ;;  %v16543_v48 = vpop.f32.mrb[67].mxu1  ;;  %v16582_v40 = vadd.f32 %v16567_v0, %v16541_v41 }
 0xa2c   :  { %vm16588_vm6 = vcmp.ge.f32.partialorder %v16580_v59, 0.0  ;;  %v16593_v29 = vmul.f32 0.2, %v16577_v38  ;;  %v16596_v19 = vmul.f32 0.2, %v16580_v59  ;;  %v16581_v12 = vadd.f32 %v16563_v49, %v16457_v20 }
 0xa2d   :  { %v16600_v57 = vsel %vm16584_vm15, %v16576_v35, %v16592_v46  ;;  %vm16587_vm7 = vcmp.ge.f32.partialorder %v16579_v62, 0.0  ;;  %v16595_v1 = vmul.f32 0.2, %v16579_v62  ;;  %v16583_v58 = vadd.f32 %v16571_v61, %v16543_v48 }
 0xa2e   :  { %v16604_v24 = vsel %vm16588_vm6, %v16580_v59, %v16596_v19  ;;  %vm16590_vm4 = vcmp.ge.f32.partialorder %v16582_v40, 0.0  ;;  %v16598_v6 = vmul.f32 0.2, %v16582_v40  ;;  %vm16589_vm9 = vcmp.ge.f32.partialorder %v16581_v12, 0.0 }
 0xa2f   :  { %v16608_v26 = vpack.c.bf16 %v16604_v24, %v16600_v57  ;;  %v16597_v60 = vmul.f32 0.2, %v16581_v12  ;;  %vm16591_vm14 = vcmp.ge.f32.partialorder %v16583_v58, 0.0  ;;  %v16599_v28 = vmul.f32 0.2, %v16583_v58 }
 0xa30   :  { %v16602_v31 = vsel %vm16586_vm3, %v16578_v34, %v16594_v22  ;;  %v16606_v50 = vsel %vm16590_vm4, %v16582_v40, %v16598_v6  ;;  %v16601_v17 = vsel %vm16585_vm8, %v16577_v38, %v16593_v29  ;;  %v16603_v13 = vsel %vm16587_vm7, %v16579_v62, %v16595_v1 }
 0xa31   :  { %v16610_v54 = vpack.c.bf16 %v16606_v50, %v16602_v31  ;;  %v16605_v16 = vsel %vm16589_vm9, %v16581_v12, %v16597_v60  ;;  %v16607_v43 = vsel %vm16591_vm14, %v16583_v58, %v16599_v28 }
 0xa32   :  { %v16609_v44 = vpack.c.bf16 %v16605_v16, %v16601_v17  ;;  %v16611_v14 = vpack.c.bf16 %v16607_v43, %v16603_v13 }
 0xa34   :  { %16907 = vmatprep.mubr.bf16.mxu0 %v16609_v44  ;;  %16948 = vmatprep.mubr.bf16.mxu1 %v16611_v14 }
 0xa35   :  { %16908 = vmatmul.mubr.bf16.vlgmr.msra.gmra.mrb[68].mxu0 %v16608_v26  ;;  %16949 = vmatmul.mubr.bf16.vlgmr.msra.gmra.mrb[68].mxu1 %v16610_v54 }
 0xb08   :  { %v19112_v4 = vpop.f32.mrb[68].mxu0  ;;  %v19134_v39 = vpop.f32.mrb[68].mxu1 }
 0xb09   :  { %v19113_v32 = vpop.f32.mrb[69].mxu0  ;;  %v19135_v30 = vpop.f32.mrb[69].mxu1 }
 0xb0a   :  { %v19114_v33 = vadd.f32 %v19113_v32, %v19112_v4  ;;  %v19136_v63 = vadd.f32 %v19135_v30, %v19134_v39  ;;  %v19115_v21 = vpop.f32.mrb[70].mxu0  ;;  %v19137_v42 = vpop.f32.mrb[70].mxu1 }
 0xb0b   :  { %v19116_v5 = vpop.f32.mrb[71].mxu0  ;;  %v19138_v2 = vpop.f32.mrb[71].mxu1 }
 0xb0c   :  { %v16910_v45 = vadd.f32 %v19114_v33, %v19063_v7  ;;  %v19117_v10 = vadd.f32 %v19116_v5, %v19115_v21  ;;  %v19139_v27 = vadd.f32 %v19138_v2, %v19137_v42 }
 0xb0e   :  { %v16951_v36 = vadd.f32 %v19136_v63, %v16910_v45  ;;  %v16913_v18 = vadd.f32 %v19117_v10, %v19063_v7 }
 0xb10   :  { %16957 = vst [vmem:[%s23911_s7] sm:$0xff] %v16951_v36  ;;  %v16954_v15 = vadd.f32 %v19139_v27, %v16913_v18 }
 0xb12   :  { %16958 = vst [vmem:[%s23911_s7 + $0x8] sm:$0xff] %v16954_v15 }
 0xb13   :  { %16963 = vsyncpa [#allocation3], 1 }
 0xb14   :  { %16964 = vsyncpa [#allocation5], 1 }
 0xb15   :  { %16965 = vsyncpa [#allocation8], 1 }
 0xb16   :  { %16966 = vsyncpa [#allocation11], 1 }

</bundles_post_ra>
